<compile_context>
chip_gen: v7x
topology: tpu7x:2x2x1
jax: 0.10.0
libtpu: 0.0.40
codegen_flags: <defaults>
</compile_context>

<pallas_src>
import functools

import jax
import jax.numpy as jnp
from jax import lax
from jax.experimental import pallas as pl
from jax.experimental.pallas import tpu as pltpu

_EPS = 1e-5
_LANE = 128
_VMEM_LIMIT = 32 * 1024 * 1024          # safe scoped-VMEM budget on v5e/v6e/v7x
_FUSED_VMEM_BUDGET = 16 * 1024 * 1024   # use the single-shot fused path below this


def _round_up(x, m):
    return (x + m - 1) // m * m


# ----------------------------------------------------------------------------
# Fused single-shot kernel: conv + BatchNorm(batch stats) + ReLU for one layer.
#   s2d_ref : (N, Hs, Ws, Cs)  bf16   space-to-depth input (Hs=Ho+1, Ws=Wo+1)
#   w_ref   : (4, Cs, Cpad)    bf16   fused 2x2 weights, index = 2*dr + dc
#   gamma/beta_ref : (1, Cpad) f32    (zero-padded lanes)
#   o_ref   : (N, Ho, Wo, Cpad) f32
# ----------------------------------------------------------------------------
def _fused_conv_bn_relu_kernel(s2d_ref, w_ref, gamma_ref, beta_ref, o_ref):
    n, hs, ws, _ = s2d_ref.shape
    ho, wo = hs - 1, ws - 1
    cpad = w_ref.shape[-1]

    # ---- conv (4 MXU matmuls per output row) + running channel statistics ----
    sum_c = jnp.zeros((1, cpad), jnp.float32)
    ssq_c = jnp.zeros((1, cpad), jnp.float32)
    for b in range(n):
        for r in range(ho):
            acc = jnp.zeros((wo, cpad), jnp.float32)
            for dr in range(2):
                row = s2d_ref[b, r + dr]                       # (Ws, Cs) bf16
                for dc in range(2):
                    acc = acc + jnp.dot(row[dc:dc + wo, :], w_ref[2 * dr + dc],
                                        preferred_element_type=jnp.float32)
            o_ref[b, r] = acc                                   # stash pre-BN rows
            sum_c = sum_c + jnp.sum(acc, axis=0, keepdims=True)
            ssq_c = ssq_c + jnp.sum(acc * acc, axis=0, keepdims=True)

    # ---- BN affine from batch statistics (biased variance), then ReLU -------
    cnt = jnp.float32(n * ho * wo)
    mean = sum_c / cnt
    var = jnp.maximum(ssq_c / cnt - mean * mean, 0.0)
    scale = gamma_ref[...] * lax.rsqrt(var + _EPS)              # (1, Cpad)
    shift = beta_ref[...] - mean * scale
    for b in range(n):
        for r in range(ho):
            o_ref[b, r] = jnp.maximum(o_ref[b, r] * scale + shift, 0.0)


# ----------------------------------------------------------------------------
# Fallback (large inputs): two-pass, one output row per grid step.
#   v0_ref: s2d row r     (Ws, 4*Cin)  bf16
#   v1_ref: s2d row r + 1 (Ws, 4*Cin)  bf16
# ----------------------------------------------------------------------------
def _conv_row(v0_ref, v1_ref, w_ref):
    ws, _ = v0_ref.shape
    wo = ws - 1
    cpad = w_ref.shape[-1]
    acc = jnp.zeros((wo, cpad), jnp.float32)
    for dr in range(2):
        v_ref = v0_ref if dr == 0 else v1_ref
        for dc in range(2):
            acc = acc + jnp.dot(v_ref[dc:dc + wo, :], w_ref[2 * dr + dc],
                                preferred_element_type=jnp.float32)
    return acc


def _conv_stats_kernel(v0_ref, v1_ref, w_ref, sum_ref, ssq_ref):
    """Pass 1: conv one output row, accumulate per-channel sum / sum-of-squares."""
    y = _conv_row(v0_ref, v1_ref, w_ref)                        # (Wo, Cpad) f32

    @pl.when(pl.program_id(1) == 0)
    def _():
        sum_ref[...] = jnp.zeros_like(sum_ref)
        ssq_ref[...] = jnp.zeros_like(ssq_ref)

    sum_ref[...] += jnp.sum(y, axis=0, keepdims=True)
    ssq_ref[...] += jnp.sum(y * y, axis=0, keepdims=True)


def _conv_bn_relu_kernel(v0_ref, v1_ref, w_ref, scale_ref, shift_ref, o_ref):
    """Pass 2: recompute the conv row, apply y*scale + shift, ReLU (all f32)."""
    y = _conv_row(v0_ref, v1_ref, w_ref)                        # (Wo, Cpad) f32
    o_ref[...] = jnp.maximum(y * scale_ref[...] + shift_ref[...], 0.0)


# ----------------------------------------------------------------------------
# JAX-side glue: space-to-depth relayout + fused 2x2 weights
# ----------------------------------------------------------------------------
def _space_to_depth(x_nhwc, ho, wo):
    """pad(1) + 2x2 space-to-depth -> (N, Ho+1, Wo+1, 4*Cin) bf16."""
    n, h, w, cin = x_nhwc.shape
    xp = jnp.pad(x_nhwc,
                 ((0, 0), (1, 2 * ho + 1 - h), (1, 2 * wo + 1 - w), (0, 0)))
    xp = xp.astype(jnp.bfloat16)
    s2d = xp.reshape(n, ho + 1, 2, wo + 1, 2, cin)
    s2d = s2d.transpose(0, 1, 3, 2, 4, 5).reshape(n, ho + 1, wo + 1, 4 * cin)
    return s2d


def _fused_weights(w_hwio, cpad):
    """(3,3,Cin,Cout) -> (4, 4*Cin, Cpad) bf16.

    Reindexes the 3x3/stride-2 taps as a 2x2/stride-1 conv over the
    space-to-depth input.  Tap (kh, kw) = (2*dr+pr, 2*dc+pc); the 7 (of 16)
    positions with kh==3 or kw==3 stay zero.  Output channels are zero-padded
    to cpad so the kernel output is lane-dense.
    """
    cin, cout = w_hwio.shape[2], w_hwio.shape[3]
    w2 = jnp.zeros((2, 2, 2, 2, cin, cpad), jnp.float32)
    for dr in range(2):
        for dc in range(2):
            for pr in range(2):
                for pc in range(2):
                    kh, kw = 2 * dr + pr, 2 * dc + pc
                    if kh < 3 and kw < 3:
                        w2 = w2.at[dr, dc, pr, pc, :, :cout].set(w_hwio[kh, kw])
    return w2.reshape(4, 4 * cin, cpad).astype(jnp.bfloat16)


def _fused_vmem_bytes(n, hs, ws, cs, ho, wo, cpad):
    s2d_b = n * hs * ws * cs * 2
    w_b = 4 * cs * cpad * 2
    out_b = n * ho * wo * cpad * 4
    vec_b = 2 * cpad * 4
    return 2 * (s2d_b + w_b + out_b) + 2 * vec_b     # assume double-buffering


# ----------------------------------------------------------------------------
# One Basic_Conv3x3: Conv3x3(s=2,p=1,no bias) + BatchNorm2d(batch stats) + ReLU
# ----------------------------------------------------------------------------
def basic_conv3x3(x_nhwc, w_hwio, gamma, beta):
    n, h, w, cin = x_nhwc.shape
    cout = w_hwio.shape[3]
    ho, wo = (h - 1) // 2 + 1, (w - 1) // 2 + 1
    hs, ws = ho + 1, wo + 1
    cs = 4 * cin
    cpad = _round_up(cout, _LANE)

    s2d = _space_to_depth(x_nhwc, ho, wo)            # (N, Hs, Ws, Cs)  bf16
    w2 = _fused_weights(w_hwio, cpad)                # (4, Cs, Cpad)    bf16
    gamma_p = jnp.pad(gamma.reshape(-1), (0, cpad - cout)) \
        .reshape(1, cpad).astype(jnp.float32)        # padded lanes -> 0
    beta_p = jnp.pad(beta.reshape(-1), (0, cpad - cout)) \
        .reshape(1, cpad).astype(jnp.float32)

    # ---- Fast path: whole layer fits in VMEM -> one fused kernel -----------
    if _fused_vmem_bytes(n, hs, ws, cs, ho, wo, cpad) <= _FUSED_VMEM_BUDGET:
        y = pl.pallas_call(
            _fused_conv_bn_relu_kernel,
            grid=(1,),
            in_specs=[pl.BlockSpec((n, hs, ws, cs), lambda i: (0, 0, 0, 0)),
                      pl.BlockSpec((4, cs, cpad), lambda i: (0, 0, 0)),
                      pl.BlockSpec((1, cpad), lambda i: (0, 0)),
                      pl.BlockSpec((1, cpad), lambda i: (0, 0))],
            out_specs=pl.BlockSpec((n, ho, wo, cpad), lambda i: (0, 0, 0, 0)),
            out_shape=jax.ShapeDtypeStruct((n, ho, wo, cpad), jnp.float32),
            compiler_params=pltpu.CompilerParams(
                dimension_semantics=("arbitrary",),
                vmem_limit_bytes=_VMEM_LIMIT),
        )(s2d, w2, gamma_p, beta_p)
        return y[..., :cout]                         # drop padded channels (=0)

    # ---- Fallback: two passes, one output row per grid step ----------------
    # Two views of the same array: row r and row r+1 (handles the 1-row
    # window overlap without duplicating the input in HBM).
    row_lo = pl.BlockSpec((None, None, ws, cs), lambda b, r: (b, r, 0, 0))
    row_hi = pl.BlockSpec((None, None, ws, cs), lambda b, r: (b, r + 1, 0, 0))
    w_spec = pl.BlockSpec((4, cs, cpad), lambda b, r: (0, 0, 0))
    vec_spec = pl.BlockSpec((1, cpad), lambda b, r: (0, 0))
    stat_spec = pl.BlockSpec((None, 1, cpad), lambda b, r: (b, 0, 0))

    sums, ssqs = pl.pallas_call(
        _conv_stats_kernel,
        grid=(n, ho),
        in_specs=[row_lo, row_hi, w_spec],
        out_specs=[stat_spec, stat_spec],
        out_shape=[jax.ShapeDtypeStruct((n, 1, cpad), jnp.float32),
                   jax.ShapeDtypeStruct((n, 1, cpad), jnp.float32)],
        compiler_params=pltpu.CompilerParams(
            dimension_semantics=("parallel", "arbitrary"),
            vmem_limit_bytes=_VMEM_LIMIT),
    )(s2d, s2d, w2)

    # Finalize BN (batch stats, biased variance) in plain JAX: O(C).
    cnt = jnp.float32(n * ho * wo)
    mean = jnp.sum(sums, axis=(0, 1)) / cnt
    var = jnp.maximum(jnp.sum(ssqs, axis=(0, 1)) / cnt - mean * mean, 0.0)
    scale = gamma_p.reshape(-1) * lax.rsqrt(var + _EPS)
    shift = beta_p.reshape(-1) - mean * scale
    scale = scale.reshape(1, cpad).astype(jnp.float32)
    shift = shift.reshape(1, cpad).astype(jnp.float32)

    y = pl.pallas_call(
        _conv_bn_relu_kernel,
        grid=(n, ho),
        in_specs=[row_lo, row_hi, w_spec, vec_spec, vec_spec],
        out_specs=pl.BlockSpec((None, None, wo, cpad), lambda b, r: (b, r, 0, 0)),
        out_shape=jax.ShapeDtypeStruct((n, ho, wo, cpad), jnp.float32),
        compiler_params=pltpu.CompilerParams(
            dimension_semantics=("parallel", "parallel"),
            vmem_limit_bytes=_VMEM_LIMIT),
    )(s2d, s2d, w2, scale, shift)

    return y[..., :cout]                             # drop padded channels (=0)


# ----------------------------------------------------------------------------
# ConvStream forward (external interface NCHW, like the PyTorch module)
# ----------------------------------------------------------------------------
def conv_stream_forward(x_nchw, params):
    """params: list of (w_hwio (3,3,Cin,Cout), gamma (1,Cout), beta (1,Cout))."""
    out_dict = {"D0": x_nchw}
    x = jnp.transpose(x_nchw, (0, 2, 3, 1))          # NCHW -> NHWC once
    for i, (w, gamma, beta) in enumerate(params):
        x = basic_conv3x3(x, w, gamma, beta)         # stays NHWC layer-to-layer
        # NCHW copy only at the interface boundary (PyTorch layout parity).
        out_dict["D" + str(i + 1)] = jnp.transpose(x, (0, 3, 1, 2))
    return out_dict


# ----------------------------------------------------------------------------
# Pure-JAX reference (precision-matched: bf16 conv inputs, f32 everything else)
# ----------------------------------------------------------------------------
def _ref_layer(x_nhwc, w, gamma, beta):
    y = lax.conv_general_dilated(
        x_nhwc.astype(jnp.bfloat16), w.astype(jnp.bfloat16),
        window_strides=(2, 2), padding=[(1, 1), (1, 1)],
        dimension_numbers=("NHWC", "HWIO", "NHWC"),
        preferred_element_type=jnp.float32)
    mean = jnp.mean(y, axis=(0, 1, 2), keepdims=True)
    var = jnp.mean((y - mean) ** 2, axis=(0, 1, 2), keepdims=True)
    y = (y - mean) * lax.rsqrt(var + _EPS) * gamma.reshape(1, 1, 1, -1) \
        + beta.reshape(1, 1, 1, -1)
    return jnp.maximum(y, 0.0)


def _ref_forward(x_nchw, params):
    out_dict = {"D0": x_nchw}
    x = jnp.transpose(x_nchw, (0, 2, 3, 1))
    for i, (w, gamma, beta) in enumerate(params):
        x = _ref_layer(x, w, gamma, beta)
        out_dict["D" + str(i + 1)] = jnp.transpose(x, (0, 3, 1, 2))
    return out_dict


# ----------------------------------------------------------------------------
# Deterministic parameter init (synthetic; shapes match the PyTorch module)
# ----------------------------------------------------------------------------
def init_params(key, in_chans=4, out_chans=(48, 96, 192)):
    chans = [in_chans] + list(out_chans)
    params = []
    for i in range(len(chans) - 1):
        cin, cout = chans[i], chans[i + 1]
        key, kw, kg, kb = jax.random.split(key, 4)
        fan_in = 9 * cin
        w = jax.random.uniform(kw, (3, 3, cin, cout), jnp.float32,
                               minval=-1.0, maxval=1.0) / jnp.sqrt(fan_in)
        gamma = 1.0 + 0.1 * jax.random.normal(kg, (1, cout), jnp.float32)
        beta = 0.1 * jax.random.normal(kb, (1, cout), jnp.float32)
        params.append((w, gamma, beta))
    return params


if __name__ == "__main__":
    key = jax.random.PRNGKey(0)
    key, kx = jax.random.split(key)
    x = jax.random.normal(kx, (2, 4, 16, 16), jnp.float32)     # NCHW, like PyTorch

    params = init_params(key, in_chans=4, out_chans=(48, 96, 192))

    fwd = jax.jit(functools.partial(conv_stream_forward, params=params))
    out = jax.block_until_ready(fwd(x))

    # Expected shapes (NCHW): D0 (2,4,16,16), D1 (2,48,8,8), D2 (2,96,4,4), D3 (2,192,2,2)
    assert out["D0"].shape == (2, 4, 16, 16)
    assert out["D1"].shape == (2, 48, 8, 8)
    assert out["D2"].shape == (2, 96, 4, 4)
    assert out["D3"].shape == (2, 192, 2, 2)

    # Numerical sanity check against the precision-matched pure-JAX reference.
    ref = jax.block_until_ready(_ref_forward(x, params))
    for name in ("D1", "D2", "D3"):
        assert jnp.allclose(out[name], ref[name], rtol=1e-2, atol=1e-2), name

    print("KERNEL_OK")
</pallas_src>

<mosaic_0001>
module attributes {stable_mosaic.version = 11 : i64} {
  func.func @_fused_conv_bn_relu_kernel(%arg0: i32, %arg1: memref<2x9x9x16xbf16, #tpu.memory_space<vmem>>, %arg2: memref<4x16x128xbf16, #tpu.memory_space<vmem>>, %arg3: memref<1x128xf32, #tpu.memory_space<vmem>>, %arg4: memref<1x128xf32, #tpu.memory_space<vmem>>, %arg5: memref<2x8x8x128xf32, #tpu.memory_space<vmem>>) attributes {dimension_semantics = [#tpu.dimension_semantics<arbitrary>], iteration_bounds = array<i64: 1>, scalar_prefetch = 0 : i64, scratch_operands = 0 : i64, tpu.core_type = #tpu.core_type<tc>, window_params = [{pipeline_mode = #tpu.pipeline_mode<synchronous>, transform_indices = @transform_0, window_bounds = array<i64: 2, 9, 9, 16>}, {pipeline_mode = #tpu.pipeline_mode<synchronous>, transform_indices = @transform_1, window_bounds = array<i64: 4, 16, 128>}, {pipeline_mode = #tpu.pipeline_mode<synchronous>, transform_indices = @transform_2, window_bounds = array<i64: 1, 128>}, {pipeline_mode = #tpu.pipeline_mode<synchronous>, transform_indices = @transform_3, window_bounds = array<i64: 1, 128>}, {pipeline_mode = #tpu.pipeline_mode<synchronous>, transform_indices = @transform_4, window_bounds = array<i64: 2, 8, 8, 128>}]} {
    %cst = arith.constant 0.000000e+00 : f32
    %0 = vector.broadcast %cst : f32 to vector<1x128xf32>
    %cst_0 = arith.constant 0.000000e+00 : f32
    %1 = vector.broadcast %cst_0 : f32 to vector<1x128xf32>
    %cst_1 = arith.constant 0.000000e+00 : f32
    %2 = vector.broadcast %cst_1 : f32 to vector<8x128xf32>
    %c0 = arith.constant 0 : index
    %c0_2 = arith.constant 0 : index
    %c0_3 = arith.constant 0 : index
    %c0_4 = arith.constant 0 : index
    %3 = vector.load %arg1[%c0, %c0_2, %c0_3, %c0_4] : memref<2x9x9x16xbf16, #tpu.memory_space<vmem>>, vector<1x1x9x16xbf16>
    %4 = vector.shape_cast %3 : vector<1x1x9x16xbf16> to vector<9x16xbf16>
    %5 = vector.extract_strided_slice %4 {offsets = [0, 0], sizes = [8, 16], strides = [1, 1]} : vector<9x16xbf16> to vector<8x16xbf16>
    %c0_5 = arith.constant 0 : index
    %c0_6 = arith.constant 0 : index
    %c0_7 = arith.constant 0 : index
    %6 = vector.load %arg2[%c0_5, %c0_6, %c0_7] : memref<4x16x128xbf16, #tpu.memory_space<vmem>>, vector<1x16x128xbf16>
    %7 = vector.shape_cast %6 : vector<1x16x128xbf16> to vector<16x128xbf16>
    %cst_8 = arith.constant dense<0.000000e+00> : vector<8x128xf32>
    %8 = tpu.matmul %5, %7, %cst_8 {dimension_numbers = #tpu.dot_dimension_numbers<[1], [0], [0], [1], [0, 0, 1, 1], [], []>} : vector<8x16xbf16>, vector<16x128xbf16>, vector<8x128xf32> -> vector<8x128xf32>
    %9 = arith.addf %2, %8 : vector<8x128xf32>
    %10 = vector.extract_strided_slice %4 {offsets = [1, 0], sizes = [8, 16], strides = [1, 1]} : vector<9x16xbf16> to vector<8x16xbf16>
    %c1 = arith.constant 1 : index
    %c0_9 = arith.constant 0 : index
    %c0_10 = arith.constant 0 : index
    %11 = vector.load %arg2[%c1, %c0_9, %c0_10] : memref<4x16x128xbf16, #tpu.memory_space<vmem>>, vector<1x16x128xbf16>
    %12 = vector.shape_cast %11 : vector<1x16x128xbf16> to vector<16x128xbf16>
    %cst_11 = arith.constant dense<0.000000e+00> : vector<8x128xf32>
    %13 = tpu.matmul %10, %12, %cst_11 {dimension_numbers = #tpu.dot_dimension_numbers<[1], [0], [0], [1], [0, 0, 1, 1], [], []>} : vector<8x16xbf16>, vector<16x128xbf16>, vector<8x128xf32> -> vector<8x128xf32>
    %14 = arith.addf %9, %13 : vector<8x128xf32>
    %c0_12 = arith.constant 0 : index
    %c1_13 = arith.constant 1 : index
    %c0_14 = arith.constant 0 : index
    %c0_15 = arith.constant 0 : index
    %15 = vector.load %arg1[%c0_12, %c1_13, %c0_14, %c0_15] : memref<2x9x9x16xbf16, #tpu.memory_space<vmem>>, vector<1x1x9x16xbf16>
    %16 = vector.shape_cast %15 : vector<1x1x9x16xbf16> to vector<9x16xbf16>
    %17 = vector.extract_strided_slice %16 {offsets = [0, 0], sizes = [8, 16], strides = [1, 1]} : vector<9x16xbf16> to vector<8x16xbf16>
    %c2 = arith.constant 2 : index
    %c0_16 = arith.constant 0 : index
    %c0_17 = arith.constant 0 : index
    %18 = vector.load %arg2[%c2, %c0_16, %c0_17] : memref<4x16x128xbf16, #tpu.memory_space<vmem>>, vector<1x16x128xbf16>
    %19 = vector.shape_cast %18 : vector<1x16x128xbf16> to vector<16x128xbf16>
    %cst_18 = arith.constant dense<0.000000e+00> : vector<8x128xf32>
    %20 = tpu.matmul %17, %19, %cst_18 {dimension_numbers = #tpu.dot_dimension_numbers<[1], [0], [0], [1], [0, 0, 1, 1], [], []>} : vector<8x16xbf16>, vector<16x128xbf16>, vector<8x128xf32> -> vector<8x128xf32>
    %21 = arith.addf %14, %20 : vector<8x128xf32>
    %22 = vector.extract_strided_slice %16 {offsets = [1, 0], sizes = [8, 16], strides = [1, 1]} : vector<9x16xbf16> to vector<8x16xbf16>
    %c3 = arith.constant 3 : index
    %c0_19 = arith.constant 0 : index
    %c0_20 = arith.constant 0 : index
    %23 = vector.load %arg2[%c3, %c0_19, %c0_20] : memref<4x16x128xbf16, #tpu.memory_space<vmem>>, vector<1x16x128xbf16>
    %24 = vector.shape_cast %23 : vector<1x16x128xbf16> to vector<16x128xbf16>
    %cst_21 = arith.constant dense<0.000000e+00> : vector<8x128xf32>
    %25 = tpu.matmul %22, %24, %cst_21 {dimension_numbers = #tpu.dot_dimension_numbers<[1], [0], [0], [1], [0, 0, 1, 1], [], []>} : vector<8x16xbf16>, vector<16x128xbf16>, vector<8x128xf32> -> vector<8x128xf32>
    %26 = arith.addf %21, %25 : vector<8x128xf32>
    %c0_22 = arith.constant 0 : index
    %c0_23 = arith.constant 0 : index
    %c0_24 = arith.constant 0 : index
    %c0_25 = arith.constant 0 : index
    %27 = vector.load %arg5[%c0_22, %c0_23, %c0_24, %c0_25] : memref<2x8x8x128xf32, #tpu.memory_space<vmem>>, vector<1x1x8x128xf32>
    %28 = vector.shape_cast %27 : vector<1x1x8x128xf32> to vector<8x128xf32>
    %29 = vector.shape_cast %26 : vector<8x128xf32> to vector<1x1x8x128xf32>
    tpu.vector_store %arg5[%c0_22, %c0_23, %c0_24, %c0_25], %29 {strides = array<i32>} : memref<2x8x8x128xf32, #tpu.memory_space<vmem>>, vector<1x1x8x128xf32>,
    %cst_26 = arith.constant dense<0.000000e+00> : vector<128xf32>
    %30 = vector.multi_reduction <add>, %26, %cst_26 [0] : vector<8x128xf32> to vector<128xf32>
    %31 = vector.shape_cast %30 : vector<128xf32> to vector<1x128xf32>
    %32 = arith.addf %0, %31 : vector<1x128xf32>
    %33 = arith.mulf %26, %26 : vector<8x128xf32>
    %cst_27 = arith.constant dense<0.000000e+00> : vector<128xf32>
    %34 = vector.multi_reduction <add>, %33, %cst_27 [0] : vector<8x128xf32> to vector<128xf32>
    %35 = vector.shape_cast %34 : vector<128xf32> to vector<1x128xf32>
    %36 = arith.addf %1, %35 : vector<1x128xf32>
    %cst_28 = arith.constant 0.000000e+00 : f32
    %37 = vector.broadcast %cst_28 : f32 to vector<8x128xf32>
    %c0_29 = arith.constant 0 : index
    %c1_30 = arith.constant 1 : index
    %c0_31 = arith.constant 0 : index
    %c0_32 = arith.constant 0 : index
    %38 = vector.load %arg1[%c0_29, %c1_30, %c0_31, %c0_32] : memref<2x9x9x16xbf16, #tpu.memory_space<vmem>>, vector<1x1x9x16xbf16>
    %39 = vector.shape_cast %38 : vector<1x1x9x16xbf16> to vector<9x16xbf16>
    %40 = vector.extract_strided_slice %39 {offsets = [0, 0], sizes = [8, 16], strides = [1, 1]} : vector<9x16xbf16> to vector<8x16xbf16>
    %c0_33 = arith.constant 0 : index
    %c0_34 = arith.constant 0 : index
    %c0_35 = arith.constant 0 : index
    %41 = vector.load %arg2[%c0_33, %c0_34, %c0_35] : memref<4x16x128xbf16, #tpu.memory_space<vmem>>, vector<1x16x128xbf16>
    %42 = vector.shape_cast %41 : vector<1x16x128xbf16> to vector<16x128xbf16>
    %cst_36 = arith.constant dense<0.000000e+00> : vector<8x128xf32>
    %43 = tpu.matmul %40, %42, %cst_36 {dimension_numbers = #tpu.dot_dimension_numbers<[1], [0], [0], [1], [0, 0, 1, 1], [], []>} : vector<8x16xbf16>, vector<16x128xbf16>, vector<8x128xf32> -> vector<8x128xf32>
    %44 = arith.addf %37, %43 : vector<8x128xf32>
    %45 = vector.extract_strided_slice %39 {offsets = [1, 0], sizes = [8, 16], strides = [1, 1]} : vector<9x16xbf16> to vector<8x16xbf16>
    %c1_37 = arith.constant 1 : index
    %c0_38 = arith.constant 0 : index
    %c0_39 = arith.constant 0 : index
    %46 = vector.load %arg2[%c1_37, %c0_38, %c0_39] : memref<4x16x128xbf16, #tpu.memory_space<vmem>>, vector<1x16x128xbf16>
    %47 = vector.shape_cast %46 : vector<1x16x128xbf16> to vector<16x128xbf16>
    %cst_40 = arith.constant dense<0.000000e+00> : vector<8x128xf32>
    %48 = tpu.matmul %45, %47, %cst_40 {dimension_numbers = #tpu.dot_dimension_numbers<[1], [0], [0], [1], [0, 0, 1, 1], [], []>} : vector<8x16xbf16>, vector<16x128xbf16>, vector<8x128xf32> -> vector<8x128xf32>
    %49 = arith.addf %44, %48 : vector<8x128xf32>
    %c0_41 = arith.constant 0 : index
    %c2_42 = arith.constant 2 : index
    %c0_43 = arith.constant 0 : index
    %c0_44 = arith.constant 0 : index
    %50 = vector.load %arg1[%c0_41, %c2_42, %c0_43, %c0_44] : memref<2x9x9x16xbf16, #tpu.memory_space<vmem>>, vector<1x1x9x16xbf16>
    %51 = vector.shape_cast %50 : vector<1x1x9x16xbf16> to vector<9x16xbf16>
    %52 = vector.extract_strided_slice %51 {offsets = [0, 0], sizes = [8, 16], strides = [1, 1]} : vector<9x16xbf16> to vector<8x16xbf16>
    %c2_45 = arith.constant 2 : index
    %c0_46 = arith.constant 0 : index
    %c0_47 = arith.constant 0 : index
    %53 = vector.load %arg2[%c2_45, %c0_46, %c0_47] : memref<4x16x128xbf16, #tpu.memory_space<vmem>>, vector<1x16x128xbf16>
    %54 = vector.shape_cast %53 : vector<1x16x128xbf16> to vector<16x128xbf16>
    %cst_48 = arith.constant dense<0.000000e+00> : vector<8x128xf32>
    %55 = tpu.matmul %52, %54, %cst_48 {dimension_numbers = #tpu.dot_dimension_numbers<[1], [0], [0], [1], [0, 0, 1, 1], [], []>} : vector<8x16xbf16>, vector<16x128xbf16>, vector<8x128xf32> -> vector<8x128xf32>
    %56 = arith.addf %49, %55 : vector<8x128xf32>
    %57 = vector.extract_strided_slice %51 {offsets = [1, 0], sizes = [8, 16], strides = [1, 1]} : vector<9x16xbf16> to vector<8x16xbf16>
    %c3_49 = arith.constant 3 : index
    %c0_50 = arith.constant 0 : index
    %c0_51 = arith.constant 0 : index
    %58 = vector.load %arg2[%c3_49, %c0_50, %c0_51] : memref<4x16x128xbf16, #tpu.memory_space<vmem>>, vector<1x16x128xbf16>
    %59 = vector.shape_cast %58 : vector<1x16x128xbf16> to vector<16x128xbf16>
    %cst_52 = arith.constant dense<0.000000e+00> : vector<8x128xf32>
    %60 = tpu.matmul %57, %59, %cst_52 {dimension_numbers = #tpu.dot_dimension_numbers<[1], [0], [0], [1], [0, 0, 1, 1], [], []>} : vector<8x16xbf16>, vector<16x128xbf16>, vector<8x128xf32> -> vector<8x128xf32>
    %61 = arith.addf %56, %60 : vector<8x128xf32>
    %c0_53 = arith.constant 0 : index
    %c1_54 = arith.constant 1 : index
    %c0_55 = arith.constant 0 : index
    %c0_56 = arith.constant 0 : index
    %62 = vector.load %arg5[%c0_53, %c1_54, %c0_55, %c0_56] : memref<2x8x8x128xf32, #tpu.memory_space<vmem>>, vector<1x1x8x128xf32>
    %63 = vector.shape_cast %62 : vector<1x1x8x128xf32> to vector<8x128xf32>
    %64 = vector.shape_cast %61 : vector<8x128xf32> to vector<1x1x8x128xf32>
    tpu.vector_store %arg5[%c0_53, %c1_54, %c0_55, %c0_56], %64 {strides = array<i32>} : memref<2x8x8x128xf32, #tpu.memory_space<vmem>>, vector<1x1x8x128xf32>,
    %cst_57 = arith.constant dense<0.000000e+00> : vector<128xf32>
    %65 = vector.multi_reduction <add>, %61, %cst_57 [0] : vector<8x128xf32> to vector<128xf32>
    %66 = vector.shape_cast %65 : vector<128xf32> to vector<1x128xf32>
    %67 = arith.addf %32, %66 : vector<1x128xf32>
    %68 = arith.mulf %61, %61 : vector<8x128xf32>
    %cst_58 = arith.constant dense<0.000000e+00> : vector<128xf32>
    %69 = vector.multi_reduction <add>, %68, %cst_58 [0] : vector<8x128xf32> to vector<128xf32>
    %70 = vector.shape_cast %69 : vector<128xf32> to vector<1x128xf32>
    %71 = arith.addf %36, %70 : vector<1x128xf32>
    %cst_59 = arith.constant 0.000000e+00 : f32
    %72 = vector.broadcast %cst_59 : f32 to vector<8x128xf32>
    %c0_60 = arith.constant 0 : index
    %c2_61 = arith.constant 2 : index
    %c0_62 = arith.constant 0 : index
    %c0_63 = arith.constant 0 : index
    %73 = vector.load %arg1[%c0_60, %c2_61, %c0_62, %c0_63] : memref<2x9x9x16xbf16, #tpu.memory_space<vmem>>, vector<1x1x9x16xbf16>
    %74 = vector.shape_cast %73 : vector<1x1x9x16xbf16> to vector<9x16xbf16>
    %75 = vector.extract_strided_slice %74 {offsets = [0, 0], sizes = [8, 16], strides = [1, 1]} : vector<9x16xbf16> to vector<8x16xbf16>
    %c0_64 = arith.constant 0 : index
    %c0_65 = arith.constant 0 : index
    %c0_66 = arith.constant 0 : index
    %76 = vector.load %arg2[%c0_64, %c0_65, %c0_66] : memref<4x16x128xbf16, #tpu.memory_space<vmem>>, vector<1x16x128xbf16>
    %77 = vector.shape_cast %76 : vector<1x16x128xbf16> to vector<16x128xbf16>
    %cst_67 = arith.constant dense<0.000000e+00> : vector<8x128xf32>
    %78 = tpu.matmul %75, %77, %cst_67 {dimension_numbers = #tpu.dot_dimension_numbers<[1], [0], [0], [1], [0, 0, 1, 1], [], []>} : vector<8x16xbf16>, vector<16x128xbf16>, vector<8x128xf32> -> vector<8x128xf32>
    %79 = arith.addf %72, %78 : vector<8x128xf32>
    %80 = vector.extract_strided_slice %74 {offsets = [1, 0], sizes = [8, 16], strides = [1, 1]} : vector<9x16xbf16> to vector<8x16xbf16>
    %c1_68 = arith.constant 1 : index
    %c0_69 = arith.constant 0 : index
    %c0_70 = arith.constant 0 : index
    %81 = vector.load %arg2[%c1_68, %c0_69, %c0_70] : memref<4x16x128xbf16, #tpu.memory_space<vmem>>, vector<1x16x128xbf16>
    %82 = vector.shape_cast %81 : vector<1x16x128xbf16> to vector<16x128xbf16>
    %cst_71 = arith.constant dense<0.000000e+00> : vector<8x128xf32>
    %83 = tpu.matmul %80, %82, %cst_71 {dimension_numbers = #tpu.dot_dimension_numbers<[1], [0], [0], [1], [0, 0, 1, 1], [], []>} : vector<8x16xbf16>, vector<16x128xbf16>, vector<8x128xf32> -> vector<8x128xf32>
    %84 = arith.addf %79, %83 : vector<8x128xf32>
    %c0_72 = arith.constant 0 : index
    %c3_73 = arith.constant 3 : index
    %c0_74 = arith.constant 0 : index
    %c0_75 = arith.constant 0 : index
    %85 = vector.load %arg1[%c0_72, %c3_73, %c0_74, %c0_75] : memref<2x9x9x16xbf16, #tpu.memory_space<vmem>>, vector<1x1x9x16xbf16>
    %86 = vector.shape_cast %85 : vector<1x1x9x16xbf16> to vector<9x16xbf16>
    %87 = vector.extract_strided_slice %86 {offsets = [0, 0], sizes = [8, 16], strides = [1, 1]} : vector<9x16xbf16> to vector<8x16xbf16>
    %c2_76 = arith.constant 2 : index
    %c0_77 = arith.constant 0 : index
    %c0_78 = arith.constant 0 : index
    %88 = vector.load %arg2[%c2_76, %c0_77, %c0_78] : memref<4x16x128xbf16, #tpu.memory_space<vmem>>, vector<1x16x128xbf16>
    %89 = vector.shape_cast %88 : vector<1x16x128xbf16> to vector<16x128xbf16>
    %cst_79 = arith.constant dense<0.000000e+00> : vector<8x128xf32>
    %90 = tpu.matmul %87, %89, %cst_79 {dimension_numbers = #tpu.dot_dimension_numbers<[1], [0], [0], [1], [0, 0, 1, 1], [], []>} : vector<8x16xbf16>, vector<16x128xbf16>, vector<8x128xf32> -> vector<8x128xf32>
    %91 = arith.addf %84, %90 : vector<8x128xf32>
    %92 = vector.extract_strided_slice %86 {offsets = [1, 0], sizes = [8, 16], strides = [1, 1]} : vector<9x16xbf16> to vector<8x16xbf16>
    %c3_80 = arith.constant 3 : index
    %c0_81 = arith.constant 0 : index
    %c0_82 = arith.constant 0 : index
    %93 = vector.load %arg2[%c3_80, %c0_81, %c0_82] : memref<4x16x128xbf16, #tpu.memory_space<vmem>>, vector<1x16x128xbf16>
    %94 = vector.shape_cast %93 : vector<1x16x128xbf16> to vector<16x128xbf16>
    %cst_83 = arith.constant dense<0.000000e+00> : vector<8x128xf32>
    %95 = tpu.matmul %92, %94, %cst_83 {dimension_numbers = #tpu.dot_dimension_numbers<[1], [0], [0], [1], [0, 0, 1, 1], [], []>} : vector<8x16xbf16>, vector<16x128xbf16>, vector<8x128xf32> -> vector<8x128xf32>
    %96 = arith.addf %91, %95 : vector<8x128xf32>
    %c0_84 = arith.constant 0 : index
    %c2_85 = arith.constant 2 : index
    %c0_86 = arith.constant 0 : index
    %c0_87 = arith.constant 0 : index
    %97 = vector.load %arg5[%c0_84, %c2_85, %c0_86, %c0_87] : memref<2x8x8x128xf32, #tpu.memory_space<vmem>>, vector<1x1x8x128xf32>
    %98 = vector.shape_cast %97 : vector<1x1x8x128xf32> to vector<8x128xf32>
    %99 = vector.shape_cast %96 : vector<8x128xf32> to vector<1x1x8x128xf32>
    tpu.vector_store %arg5[%c0_84, %c2_85, %c0_86, %c0_87], %99 {strides = array<i32>} : memref<2x8x8x128xf32, #tpu.memory_space<vmem>>, vector<1x1x8x128xf32>,
    %cst_88 = arith.constant dense<0.000000e+00> : vector<128xf32>
    %100 = vector.multi_reduction <add>, %96, %cst_88 [0] : vector<8x128xf32> to vector<128xf32>
    %101 = vector.shape_cast %100 : vector<128xf32> to vector<1x128xf32>
    %102 = arith.addf %67, %101 : vector<1x128xf32>
    %103 = arith.mulf %96, %96 : vector<8x128xf32>
    %cst_89 = arith.constant dense<0.000000e+00> : vector<128xf32>
    %104 = vector.multi_reduction <add>, %103, %cst_89 [0] : vector<8x128xf32> to vector<128xf32>
    %105 = vector.shape_cast %104 : vector<128xf32> to vector<1x128xf32>
    %106 = arith.addf %71, %105 : vector<1x128xf32>
    %cst_90 = arith.constant 0.000000e+00 : f32
    %107 = vector.broadcast %cst_90 : f32 to vector<8x128xf32>
    %c0_91 = arith.constant 0 : index
    %c3_92 = arith.constant 3 : index
    %c0_93 = arith.constant 0 : index
    %c0_94 = arith.constant 0 : index
    %108 = vector.load %arg1[%c0_91, %c3_92, %c0_93, %c0_94] : memref<2x9x9x16xbf16, #tpu.memory_space<vmem>>, vector<1x1x9x16xbf16>
    %109 = vector.shape_cast %108 : vector<1x1x9x16xbf16> to vector<9x16xbf16>
    %110 = vector.extract_strided_slice %109 {offsets = [0, 0], sizes = [8, 16], strides = [1, 1]} : vector<9x16xbf16> to vector<8x16xbf16>
    %c0_95 = arith.constant 0 : index
    %c0_96 = arith.constant 0 : index
    %c0_97 = arith.constant 0 : index
    %111 = vector.load %arg2[%c0_95, %c0_96, %c0_97] : memref<4x16x128xbf16, #tpu.memory_space<vmem>>, vector<1x16x128xbf16>
    %112 = vector.shape_cast %111 : vector<1x16x128xbf16> to vector<16x128xbf16>
    %cst_98 = arith.constant dense<0.000000e+00> : vector<8x128xf32>
    %113 = tpu.matmul %110, %112, %cst_98 {dimension_numbers = #tpu.dot_dimension_numbers<[1], [0], [0], [1], [0, 0, 1, 1], [], []>} : vector<8x16xbf16>, vector<16x128xbf16>, vector<8x128xf32> -> vector<8x128xf32>
    %114 = arith.addf %107, %113 : vector<8x128xf32>
    %115 = vector.extract_strided_slice %109 {offsets = [1, 0], sizes = [8, 16], strides = [1, 1]} : vector<9x16xbf16> to vector<8x16xbf16>
    %c1_99 = arith.constant 1 : index
    %c0_100 = arith.constant 0 : index
    %c0_101 = arith.constant 0 : index
    %116 = vector.load %arg2[%c1_99, %c0_100, %c0_101] : memref<4x16x128xbf16, #tpu.memory_space<vmem>>, vector<1x16x128xbf16>
    %117 = vector.shape_cast %116 : vector<1x16x128xbf16> to vector<16x128xbf16>
    %cst_102 = arith.constant dense<0.000000e+00> : vector<8x128xf32>
    %118 = tpu.matmul %115, %117, %cst_102 {dimension_numbers = #tpu.dot_dimension_numbers<[1], [0], [0], [1], [0, 0, 1, 1], [], []>} : vector<8x16xbf16>, vector<16x128xbf16>, vector<8x128xf32> -> vector<8x128xf32>
    %119 = arith.addf %114, %118 : vector<8x128xf32>
    %c0_103 = arith.constant 0 : index
    %c4 = arith.constant 4 : index
    %c0_104 = arith.constant 0 : index
    %c0_105 = arith.constant 0 : index
    %120 = vector.load %arg1[%c0_103, %c4, %c0_104, %c0_105] : memref<2x9x9x16xbf16, #tpu.memory_space<vmem>>, vector<1x1x9x16xbf16>
    %121 = vector.shape_cast %120 : vector<1x1x9x16xbf16> to vector<9x16xbf16>
    %122 = vector.extract_strided_slice %121 {offsets = [0, 0], sizes = [8, 16], strides = [1, 1]} : vector<9x16xbf16> to vector<8x16xbf16>
    %c2_106 = arith.constant 2 : index
    %c0_107 = arith.constant 0 : index
    %c0_108 = arith.constant 0 : index
    %123 = vector.load %arg2[%c2_106, %c0_107, %c0_108] : memref<4x16x128xbf16, #tpu.memory_space<vmem>>, vector<1x16x128xbf16>
    %124 = vector.shape_cast %123 : vector<1x16x128xbf16> to vector<16x128xbf16>
    %cst_109 = arith.constant dense<0.000000e+00> : vector<8x128xf32>
    %125 = tpu.matmul %122, %124, %cst_109 {dimension_numbers = #tpu.dot_dimension_numbers<[1], [0], [0], [1], [0, 0, 1, 1], [], []>} : vector<8x16xbf16>, vector<16x128xbf16>, vector<8x128xf32> -> vector<8x128xf32>
    %126 = arith.addf %119, %125 : vector<8x128xf32>
    %127 = vector.extract_strided_slice %121 {offsets = [1, 0], sizes = [8, 16], strides = [1, 1]} : vector<9x16xbf16> to vector<8x16xbf16>
    %c3_110 = arith.constant 3 : index
    %c0_111 = arith.constant 0 : index
    %c0_112 = arith.constant 0 : index
    %128 = vector.load %arg2[%c3_110, %c0_111, %c0_112] : memref<4x16x128xbf16, #tpu.memory_space<vmem>>, vector<1x16x128xbf16>
    %129 = vector.shape_cast %128 : vector<1x16x128xbf16> to vector<16x128xbf16>
    %cst_113 = arith.constant dense<0.000000e+00> : vector<8x128xf32>
    %130 = tpu.matmul %127, %129, %cst_113 {dimension_numbers = #tpu.dot_dimension_numbers<[1], [0], [0], [1], [0, 0, 1, 1], [], []>} : vector<8x16xbf16>, vector<16x128xbf16>, vector<8x128xf32> -> vector<8x128xf32>
    %131 = arith.addf %126, %130 : vector<8x128xf32>
    %c0_114 = arith.constant 0 : index
    %c3_115 = arith.constant 3 : index
    %c0_116 = arith.constant 0 : index
    %c0_117 = arith.constant 0 : index
    %132 = vector.load %arg5[%c0_114, %c3_115, %c0_116, %c0_117] : memref<2x8x8x128xf32, #tpu.memory_space<vmem>>, vector<1x1x8x128xf32>
    %133 = vector.shape_cast %132 : vector<1x1x8x128xf32> to vector<8x128xf32>
    %134 = vector.shape_cast %131 : vector<8x128xf32> to vector<1x1x8x128xf32>
    tpu.vector_store %arg5[%c0_114, %c3_115, %c0_116, %c0_117], %134 {strides = array<i32>} : memref<2x8x8x128xf32, #tpu.memory_space<vmem>>, vector<1x1x8x128xf32>,
    %cst_118 = arith.constant dense<0.000000e+00> : vector<128xf32>
    %135 = vector.multi_reduction <add>, %131, %cst_118 [0] : vector<8x128xf32> to vector<128xf32>
    %136 = vector.shape_cast %135 : vector<128xf32> to vector<1x128xf32>
    %137 = arith.addf %102, %136 : vector<1x128xf32>
    %138 = arith.mulf %131, %131 : vector<8x128xf32>
    %cst_119 = arith.constant dense<0.000000e+00> : vector<128xf32>
    %139 = vector.multi_reduction <add>, %138, %cst_119 [0] : vector<8x128xf32> to vector<128xf32>
    %140 = vector.shape_cast %139 : vector<128xf32> to vector<1x128xf32>
    %141 = arith.addf %106, %140 : vector<1x128xf32>
    %cst_120 = arith.constant 0.000000e+00 : f32
    %142 = vector.broadcast %cst_120 : f32 to vector<8x128xf32>
    %c0_121 = arith.constant 0 : index
    %c4_122 = arith.constant 4 : index
    %c0_123 = arith.constant 0 : index
    %c0_124 = arith.constant 0 : index
    %143 = vector.load %arg1[%c0_121, %c4_122, %c0_123, %c0_124] : memref<2x9x9x16xbf16, #tpu.memory_space<vmem>>, vector<1x1x9x16xbf16>
    %144 = vector.shape_cast %143 : vector<1x1x9x16xbf16> to vector<9x16xbf16>
    %145 = vector.extract_strided_slice %144 {offsets = [0, 0], sizes = [8, 16], strides = [1, 1]} : vector<9x16xbf16> to vector<8x16xbf16>
    %c0_125 = arith.constant 0 : index
    %c0_126 = arith.constant 0 : index
    %c0_127 = arith.constant 0 : index
    %146 = vector.load %arg2[%c0_125, %c0_126, %c0_127] : memref<4x16x128xbf16, #tpu.memory_space<vmem>>, vector<1x16x128xbf16>
    %147 = vector.shape_cast %146 : vector<1x16x128xbf16> to vector<16x128xbf16>
    %cst_128 = arith.constant dense<0.000000e+00> : vector<8x128xf32>
    %148 = tpu.matmul %145, %147, %cst_128 {dimension_numbers = #tpu.dot_dimension_numbers<[1], [0], [0], [1], [0, 0, 1, 1], [], []>} : vector<8x16xbf16>, vector<16x128xbf16>, vector<8x128xf32> -> vector<8x128xf32>
    %149 = arith.addf %142, %148 : vector<8x128xf32>
    %150 = vector.extract_strided_slice %144 {offsets = [1, 0], sizes = [8, 16], strides = [1, 1]} : vector<9x16xbf16> to vector<8x16xbf16>
    %c1_129 = arith.constant 1 : index
    %c0_130 = arith.constant 0 : index
    %c0_131 = arith.constant 0 : index
    %151 = vector.load %arg2[%c1_129, %c0_130, %c0_131] : memref<4x16x128xbf16, #tpu.memory_space<vmem>>, vector<1x16x128xbf16>
    %152 = vector.shape_cast %151 : vector<1x16x128xbf16> to vector<16x128xbf16>
    %cst_132 = arith.constant dense<0.000000e+00> : vector<8x128xf32>
    %153 = tpu.matmul %150, %152, %cst_132 {dimension_numbers = #tpu.dot_dimension_numbers<[1], [0], [0], [1], [0, 0, 1, 1], [], []>} : vector<8x16xbf16>, vector<16x128xbf16>, vector<8x128xf32> -> vector<8x128xf32>
    %154 = arith.addf %149, %153 : vector<8x128xf32>
    %c0_133 = arith.constant 0 : index
    %c5 = arith.constant 5 : index
    %c0_134 = arith.constant 0 : index
    %c0_135 = arith.constant 0 : index
    %155 = vector.load %arg1[%c0_133, %c5, %c0_134, %c0_135] : memref<2x9x9x16xbf16, #tpu.memory_space<vmem>>, vector<1x1x9x16xbf16>
    %156 = vector.shape_cast %155 : vector<1x1x9x16xbf16> to vector<9x16xbf16>
    %157 = vector.extract_strided_slice %156 {offsets = [0, 0], sizes = [8, 16], strides = [1, 1]} : vector<9x16xbf16> to vector<8x16xbf16>
    %c2_136 = arith.constant 2 : index
    %c0_137 = arith.constant 0 : index
    %c0_138 = arith.constant 0 : index
    %158 = vector.load %arg2[%c2_136, %c0_137, %c0_138] : memref<4x16x128xbf16, #tpu.memory_space<vmem>>, vector<1x16x128xbf16>
    %159 = vector.shape_cast %158 : vector<1x16x128xbf16> to vector<16x128xbf16>
    %cst_139 = arith.constant dense<0.000000e+00> : vector<8x128xf32>
    %160 = tpu.matmul %157, %159, %cst_139 {dimension_numbers = #tpu.dot_dimension_numbers<[1], [0], [0], [1], [0, 0, 1, 1], [], []>} : vector<8x16xbf16>, vector<16x128xbf16>, vector<8x128xf32> -> vector<8x128xf32>
    %161 = arith.addf %154, %160 : vector<8x128xf32>
    %162 = vector.extract_strided_slice %156 {offsets = [1, 0], sizes = [8, 16], strides = [1, 1]} : vector<9x16xbf16> to vector<8x16xbf16>
    %c3_140 = arith.constant 3 : index
    %c0_141 = arith.constant 0 : index
    %c0_142 = arith.constant 0 : index
    %163 = vector.load %arg2[%c3_140, %c0_141, %c0_142] : memref<4x16x128xbf16, #tpu.memory_space<vmem>>, vector<1x16x128xbf16>
    %164 = vector.shape_cast %163 : vector<1x16x128xbf16> to vector<16x128xbf16>
    %cst_143 = arith.constant dense<0.000000e+00> : vector<8x128xf32>
    %165 = tpu.matmul %162, %164, %cst_143 {dimension_numbers = #tpu.dot_dimension_numbers<[1], [0], [0], [1], [0, 0, 1, 1], [], []>} : vector<8x16xbf16>, vector<16x128xbf16>, vector<8x128xf32> -> vector<8x128xf32>
    %166 = arith.addf %161, %165 : vector<8x128xf32>
    %c0_144 = arith.constant 0 : index
    %c4_145 = arith.constant 4 : index
    %c0_146 = arith.constant 0 : index
    %c0_147 = arith.constant 0 : index
    %167 = vector.load %arg5[%c0_144, %c4_145, %c0_146, %c0_147] : memref<2x8x8x128xf32, #tpu.memory_space<vmem>>, vector<1x1x8x128xf32>
    %168 = vector.shape_cast %167 : vector<1x1x8x128xf32> to vector<8x128xf32>
    %169 = vector.shape_cast %166 : vector<8x128xf32> to vector<1x1x8x128xf32>
    tpu.vector_store %arg5[%c0_144, %c4_145, %c0_146, %c0_147], %169 {strides = array<i32>} : memref<2x8x8x128xf32, #tpu.memory_space<vmem>>, vector<1x1x8x128xf32>,
    %cst_148 = arith.constant dense<0.000000e+00> : vector<128xf32>
    %170 = vector.multi_reduction <add>, %166, %cst_148 [0] : vector<8x128xf32> to vector<128xf32>
    %171 = vector.shape_cast %170 : vector<128xf32> to vector<1x128xf32>
    %172 = arith.addf %137, %171 : vector<1x128xf32>
    %173 = arith.mulf %166, %166 : vector<8x128xf32>
    %cst_149 = arith.constant dense<0.000000e+00> : vector<128xf32>
    %174 = vector.multi_reduction <add>, %173, %cst_149 [0] : vector<8x128xf32> to vector<128xf32>
    %175 = vector.shape_cast %174 : vector<128xf32> to vector<1x128xf32>
    %176 = arith.addf %141, %175 : vector<1x128xf32>
    %cst_150 = arith.constant 0.000000e+00 : f32
    %177 = vector.broadcast %cst_150 : f32 to vector<8x128xf32>
    %c0_151 = arith.constant 0 : index
    %c5_152 = arith.constant 5 : index
    %c0_153 = arith.constant 0 : index
    %c0_154 = arith.constant 0 : index
    %178 = vector.load %arg1[%c0_151, %c5_152, %c0_153, %c0_154] : memref<2x9x9x16xbf16, #tpu.memory_space<vmem>>, vector<1x1x9x16xbf16>
    %179 = vector.shape_cast %178 : vector<1x1x9x16xbf16> to vector<9x16xbf16>
    %180 = vector.extract_strided_slice %179 {offsets = [0, 0], sizes = [8, 16], strides = [1, 1]} : vector<9x16xbf16> to vector<8x16xbf16>
    %c0_155 = arith.constant 0 : index
    %c0_156 = arith.constant 0 : index
    %c0_157 = arith.constant 0 : index
    %181 = vector.load %arg2[%c0_155, %c0_156, %c0_157] : memref<4x16x128xbf16, #tpu.memory_space<vmem>>, vector<1x16x128xbf16>
    %182 = vector.shape_cast %181 : vector<1x16x128xbf16> to vector<16x128xbf16>
    %cst_158 = arith.constant dense<0.000000e+00> : vector<8x128xf32>
    %183 = tpu.matmul %180, %182, %cst_158 {dimension_numbers = #tpu.dot_dimension_numbers<[1], [0], [0], [1], [0, 0, 1, 1], [], []>} : vector<8x16xbf16>, vector<16x128xbf16>, vector<8x128xf32> -> vector<8x128xf32>
    %184 = arith.addf %177, %183 : vector<8x128xf32>
    %185 = vector.extract_strided_slice %179 {offsets = [1, 0], sizes = [8, 16], strides = [1, 1]} : vector<9x16xbf16> to vector<8x16xbf16>
    %c1_159 = arith.constant 1 : index
    %c0_160 = arith.constant 0 : index
    %c0_161 = arith.constant 0 : index
    %186 = vector.load %arg2[%c1_159, %c0_160, %c0_161] : memref<4x16x128xbf16, #tpu.memory_space<vmem>>, vector<1x16x128xbf16>
    %187 = vector.shape_cast %186 : vector<1x16x128xbf16> to vector<16x128xbf16>
    %cst_162 = arith.constant dense<0.000000e+00> : vector<8x128xf32>
    %188 = tpu.matmul %185, %187, %cst_162 {dimension_numbers = #tpu.dot_dimension_numbers<[1], [0], [0], [1], [0, 0, 1, 1], [], []>} : vector<8x16xbf16>, vector<16x128xbf16>, vector<8x128xf32> -> vector<8x128xf32>
    %189 = arith.addf %184, %188 : vector<8x128xf32>
    %c0_163 = arith.constant 0 : index
    %c6 = arith.constant 6 : index
    %c0_164 = arith.constant 0 : index
    %c0_165 = arith.constant 0 : index
    %190 = vector.load %arg1[%c0_163, %c6, %c0_164, %c0_165] : memref<2x9x9x16xbf16, #tpu.memory_space<vmem>>, vector<1x1x9x16xbf16>
    %191 = vector.shape_cast %190 : vector<1x1x9x16xbf16> to vector<9x16xbf16>
    %192 = vector.extract_strided_slice %191 {offsets = [0, 0], sizes = [8, 16], strides = [1, 1]} : vector<9x16xbf16> to vector<8x16xbf16>
    %c2_166 = arith.constant 2 : index
    %c0_167 = arith.constant 0 : index
    %c0_168 = arith.constant 0 : index
    %193 = vector.load %arg2[%c2_166, %c0_167, %c0_168] : memref<4x16x128xbf16, #tpu.memory_space<vmem>>, vector<1x16x128xbf16>
    %194 = vector.shape_cast %193 : vector<1x16x128xbf16> to vector<16x128xbf16>
    %cst_169 = arith.constant dense<0.000000e+00> : vector<8x128xf32>
    %195 = tpu.matmul %192, %194, %cst_169 {dimension_numbers = #tpu.dot_dimension_numbers<[1], [0], [0], [1], [0, 0, 1, 1], [], []>} : vector<8x16xbf16>, vector<16x128xbf16>, vector<8x128xf32> -> vector<8x128xf32>
    %196 = arith.addf %189, %195 : vector<8x128xf32>
    %197 = vector.extract_strided_slice %191 {offsets = [1, 0], sizes = [8, 16], strides = [1, 1]} : vector<9x16xbf16> to vector<8x16xbf16>
    %c3_170 = arith.constant 3 : index
    %c0_171 = arith.constant 0 : index
    %c0_172 = arith.constant 0 : index
    %198 = vector.load %arg2[%c3_170, %c0_171, %c0_172] : memref<4x16x128xbf16, #tpu.memory_space<vmem>>, vector<1x16x128xbf16>
    %199 = vector.shape_cast %198 : vector<1x16x128xbf16> to vector<16x128xbf16>
    %cst_173 = arith.constant dense<0.000000e+00> : vector<8x128xf32>
    %200 = tpu.matmul %197, %199, %cst_173 {dimension_numbers = #tpu.dot_dimension_numbers<[1], [0], [0], [1], [0, 0, 1, 1], [], []>} : vector<8x16xbf16>, vector<16x128xbf16>, vector<8x128xf32> -> vector<8x128xf32>
    %201 = arith.addf %196, %200 : vector<8x128xf32>
    %c0_174 = arith.constant 0 : index
    %c5_175 = arith.constant 5 : index
    %c0_176 = arith.constant 0 : index
    %c0_177 = arith.constant 0 : index
    %202 = vector.load %arg5[%c0_174, %c5_175, %c0_176, %c0_177] : memref<2x8x8x128xf32, #tpu.memory_space<vmem>>, vector<1x1x8x128xf32>
    %203 = vector.shape_cast %202 : vector<1x1x8x128xf32> to vector<8x128xf32>
    %204 = vector.shape_cast %201 : vector<8x128xf32> to vector<1x1x8x128xf32>
    tpu.vector_store %arg5[%c0_174, %c5_175, %c0_176, %c0_177], %204 {strides = array<i32>} : memref<2x8x8x128xf32, #tpu.memory_space<vmem>>, vector<1x1x8x128xf32>,
    %cst_178 = arith.constant dense<0.000000e+00> : vector<128xf32>
    %205 = vector.multi_reduction <add>, %201, %cst_178 [0] : vector<8x128xf32> to vector<128xf32>
    %206 = vector.shape_cast %205 : vector<128xf32> to vector<1x128xf32>
    %207 = arith.addf %172, %206 : vector<1x128xf32>
    %208 = arith.mulf %201, %201 : vector<8x128xf32>
    %cst_179 = arith.constant dense<0.000000e+00> : vector<128xf32>
    %209 = vector.multi_reduction <add>, %208, %cst_179 [0] : vector<8x128xf32> to vector<128xf32>
    %210 = vector.shape_cast %209 : vector<128xf32> to vector<1x128xf32>
    %211 = arith.addf %176, %210 : vector<1x128xf32>
    %cst_180 = arith.constant 0.000000e+00 : f32
    %212 = vector.broadcast %cst_180 : f32 to vector<8x128xf32>
    %c0_181 = arith.constant 0 : index
    %c6_182 = arith.constant 6 : index
    %c0_183 = arith.constant 0 : index
    %c0_184 = arith.constant 0 : index
    %213 = vector.load %arg1[%c0_181, %c6_182, %c0_183, %c0_184] : memref<2x9x9x16xbf16, #tpu.memory_space<vmem>>, vector<1x1x9x16xbf16>
    %214 = vector.shape_cast %213 : vector<1x1x9x16xbf16> to vector<9x16xbf16>
    %215 = vector.extract_strided_slice %214 {offsets = [0, 0], sizes = [8, 16], strides = [1, 1]} : vector<9x16xbf16> to vector<8x16xbf16>
    %c0_185 = arith.constant 0 : index
    %c0_186 = arith.constant 0 : index
    %c0_187 = arith.constant 0 : index
    %216 = vector.load %arg2[%c0_185, %c0_186, %c0_187] : memref<4x16x128xbf16, #tpu.memory_space<vmem>>, vector<1x16x128xbf16>
    %217 = vector.shape_cast %216 : vector<1x16x128xbf16> to vector<16x128xbf16>
    %cst_188 = arith.constant dense<0.000000e+00> : vector<8x128xf32>
    %218 = tpu.matmul %215, %217, %cst_188 {dimension_numbers = #tpu.dot_dimension_numbers<[1], [0], [0], [1], [0, 0, 1, 1], [], []>} : vector<8x16xbf16>, vector<16x128xbf16>, vector<8x128xf32> -> vector<8x128xf32>
    %219 = arith.addf %212, %218 : vector<8x128xf32>
    %220 = vector.extract_strided_slice %214 {offsets = [1, 0], sizes = [8, 16], strides = [1, 1]} : vector<9x16xbf16> to vector<8x16xbf16>
    %c1_189 = arith.constant 1 : index
    %c0_190 = arith.constant 0 : index
    %c0_191 = arith.constant 0 : index
    %221 = vector.load %arg2[%c1_189, %c0_190, %c0_191] : memref<4x16x128xbf16, #tpu.memory_space<vmem>>, vector<1x16x128xbf16>
    %222 = vector.shape_cast %221 : vector<1x16x128xbf16> to vector<16x128xbf16>
    %cst_192 = arith.constant dense<0.000000e+00> : vector<8x128xf32>
    %223 = tpu.matmul %220, %222, %cst_192 {dimension_numbers = #tpu.dot_dimension_numbers<[1], [0], [0], [1], [0, 0, 1, 1], [], []>} : vector<8x16xbf16>, vector<16x128xbf16>, vector<8x128xf32> -> vector<8x128xf32>
    %224 = arith.addf %219, %223 : vector<8x128xf32>
    %c0_193 = arith.constant 0 : index
    %c7 = arith.constant 7 : index
    %c0_194 = arith.constant 0 : index
    %c0_195 = arith.constant 0 : index
    %225 = vector.load %arg1[%c0_193, %c7, %c0_194, %c0_195] : memref<2x9x9x16xbf16, #tpu.memory_space<vmem>>, vector<1x1x9x16xbf16>
    %226 = vector.shape_cast %225 : vector<1x1x9x16xbf16> to vector<9x16xbf16>
    %227 = vector.extract_strided_slice %226 {offsets = [0, 0], sizes = [8, 16], strides = [1, 1]} : vector<9x16xbf16> to vector<8x16xbf16>
    %c2_196 = arith.constant 2 : index
    %c0_197 = arith.constant 0 : index
    %c0_198 = arith.constant 0 : index
    %228 = vector.load %arg2[%c2_196, %c0_197, %c0_198] : memref<4x16x128xbf16, #tpu.memory_space<vmem>>, vector<1x16x128xbf16>
    %229 = vector.shape_cast %228 : vector<1x16x128xbf16> to vector<16x128xbf16>
    %cst_199 = arith.constant dense<0.000000e+00> : vector<8x128xf32>
    %230 = tpu.matmul %227, %229, %cst_199 {dimension_numbers = #tpu.dot_dimension_numbers<[1], [0], [0], [1], [0, 0, 1, 1], [], []>} : vector<8x16xbf16>, vector<16x128xbf16>, vector<8x128xf32> -> vector<8x128xf32>
    %231 = arith.addf %224, %230 : vector<8x128xf32>
    %232 = vector.extract_strided_slice %226 {offsets = [1, 0], sizes = [8, 16], strides = [1, 1]} : vector<9x16xbf16> to vector<8x16xbf16>
    %c3_200 = arith.constant 3 : index
    %c0_201 = arith.constant 0 : index
    %c0_202 = arith.constant 0 : index
    %233 = vector.load %arg2[%c3_200, %c0_201, %c0_202] : memref<4x16x128xbf16, #tpu.memory_space<vmem>>, vector<1x16x128xbf16>
    %234 = vector.shape_cast %233 : vector<1x16x128xbf16> to vector<16x128xbf16>
    %cst_203 = arith.constant dense<0.000000e+00> : vector<8x128xf32>
    %235 = tpu.matmul %232, %234, %cst_203 {dimension_numbers = #tpu.dot_dimension_numbers<[1], [0], [0], [1], [0, 0, 1, 1], [], []>} : vector<8x16xbf16>, vector<16x128xbf16>, vector<8x128xf32> -> vector<8x128xf32>
    %236 = arith.addf %231, %235 : vector<8x128xf32>
    %c0_204 = arith.constant 0 : index
    %c6_205 = arith.constant 6 : index
    %c0_206 = arith.constant 0 : index
    %c0_207 = arith.constant 0 : index
    %237 = vector.load %arg5[%c0_204, %c6_205, %c0_206, %c0_207] : memref<2x8x8x128xf32, #tpu.memory_space<vmem>>, vector<1x1x8x128xf32>
    %238 = vector.shape_cast %237 : vector<1x1x8x128xf32> to vector<8x128xf32>
    %239 = vector.shape_cast %236 : vector<8x128xf32> to vector<1x1x8x128xf32>
    tpu.vector_store %arg5[%c0_204, %c6_205, %c0_206, %c0_207], %239 {strides = array<i32>} : memref<2x8x8x128xf32, #tpu.memory_space<vmem>>, vector<1x1x8x128xf32>,
    %cst_208 = arith.constant dense<0.000000e+00> : vector<128xf32>
    %240 = vector.multi_reduction <add>, %236, %cst_208 [0] : vector<8x128xf32> to vector<128xf32>
    %241 = vector.shape_cast %240 : vector<128xf32> to vector<1x128xf32>
    %242 = arith.addf %207, %241 : vector<1x128xf32>
    %243 = arith.mulf %236, %236 : vector<8x128xf32>
    %cst_209 = arith.constant dense<0.000000e+00> : vector<128xf32>
    %244 = vector.multi_reduction <add>, %243, %cst_209 [0] : vector<8x128xf32> to vector<128xf32>
    %245 = vector.shape_cast %244 : vector<128xf32> to vector<1x128xf32>
    %246 = arith.addf %211, %245 : vector<1x128xf32>
    %cst_210 = arith.constant 0.000000e+00 : f32
    %247 = vector.broadcast %cst_210 : f32 to vector<8x128xf32>
    %c0_211 = arith.constant 0 : index
    %c7_212 = arith.constant 7 : index
    %c0_213 = arith.constant 0 : index
    %c0_214 = arith.constant 0 : index
    %248 = vector.load %arg1[%c0_211, %c7_212, %c0_213, %c0_214] : memref<2x9x9x16xbf16, #tpu.memory_space<vmem>>, vector<1x1x9x16xbf16>
    %249 = vector.shape_cast %248 : vector<1x1x9x16xbf16> to vector<9x16xbf16>
    %250 = vector.extract_strided_slice %249 {offsets = [0, 0], sizes = [8, 16], strides = [1, 1]} : vector<9x16xbf16> to vector<8x16xbf16>
    %c0_215 = arith.constant 0 : index
    %c0_216 = arith.constant 0 : index
    %c0_217 = arith.constant 0 : index
    %251 = vector.load %arg2[%c0_215, %c0_216, %c0_217] : memref<4x16x128xbf16, #tpu.memory_space<vmem>>, vector<1x16x128xbf16>
    %252 = vector.shape_cast %251 : vector<1x16x128xbf16> to vector<16x128xbf16>
    %cst_218 = arith.constant dense<0.000000e+00> : vector<8x128xf32>
    %253 = tpu.matmul %250, %252, %cst_218 {dimension_numbers = #tpu.dot_dimension_numbers<[1], [0], [0], [1], [0, 0, 1, 1], [], []>} : vector<8x16xbf16>, vector<16x128xbf16>, vector<8x128xf32> -> vector<8x128xf32>
    %254 = arith.addf %247, %253 : vector<8x128xf32>
    %255 = vector.extract_strided_slice %249 {offsets = [1, 0], sizes = [8, 16], strides = [1, 1]} : vector<9x16xbf16> to vector<8x16xbf16>
    %c1_219 = arith.constant 1 : index
    %c0_220 = arith.constant 0 : index
    %c0_221 = arith.constant 0 : index
    %256 = vector.load %arg2[%c1_219, %c0_220, %c0_221] : memref<4x16x128xbf16, #tpu.memory_space<vmem>>, vector<1x16x128xbf16>
    %257 = vector.shape_cast %256 : vector<1x16x128xbf16> to vector<16x128xbf16>
    %cst_222 = arith.constant dense<0.000000e+00> : vector<8x128xf32>
    %258 = tpu.matmul %255, %257, %cst_222 {dimension_numbers = #tpu.dot_dimension_numbers<[1], [0], [0], [1], [0, 0, 1, 1], [], []>} : vector<8x16xbf16>, vector<16x128xbf16>, vector<8x128xf32> -> vector<8x128xf32>
    %259 = arith.addf %254, %258 : vector<8x128xf32>
    %c0_223 = arith.constant 0 : index
    %c8 = arith.constant 8 : index
    %c0_224 = arith.constant 0 : index
    %c0_225 = arith.constant 0 : index
    %260 = vector.load %arg1[%c0_223, %c8, %c0_224, %c0_225] : memref<2x9x9x16xbf16, #tpu.memory_space<vmem>>, vector<1x1x9x16xbf16>
    %261 = vector.shape_cast %260 : vector<1x1x9x16xbf16> to vector<9x16xbf16>
    %262 = vector.extract_strided_slice %261 {offsets = [0, 0], sizes = [8, 16], strides = [1, 1]} : vector<9x16xbf16> to vector<8x16xbf16>
    %c2_226 = arith.constant 2 : index
    %c0_227 = arith.constant 0 : index
    %c0_228 = arith.constant 0 : index
    %263 = vector.load %arg2[%c2_226, %c0_227, %c0_228] : memref<4x16x128xbf16, #tpu.memory_space<vmem>>, vector<1x16x128xbf16>
    %264 = vector.shape_cast %263 : vector<1x16x128xbf16> to vector<16x128xbf16>
    %cst_229 = arith.constant dense<0.000000e+00> : vector<8x128xf32>
    %265 = tpu.matmul %262, %264, %cst_229 {dimension_numbers = #tpu.dot_dimension_numbers<[1], [0], [0], [1], [0, 0, 1, 1], [], []>} : vector<8x16xbf16>, vector<16x128xbf16>, vector<8x128xf32> -> vector<8x128xf32>
    %266 = arith.addf %259, %265 : vector<8x128xf32>
    %267 = vector.extract_strided_slice %261 {offsets = [1, 0], sizes = [8, 16], strides = [1, 1]} : vector<9x16xbf16> to vector<8x16xbf16>
    %c3_230 = arith.constant 3 : index
    %c0_231 = arith.constant 0 : index
    %c0_232 = arith.constant 0 : index
    %268 = vector.load %arg2[%c3_230, %c0_231, %c0_232] : memref<4x16x128xbf16, #tpu.memory_space<vmem>>, vector<1x16x128xbf16>
    %269 = vector.shape_cast %268 : vector<1x16x128xbf16> to vector<16x128xbf16>
    %cst_233 = arith.constant dense<0.000000e+00> : vector<8x128xf32>
    %270 = tpu.matmul %267, %269, %cst_233 {dimension_numbers = #tpu.dot_dimension_numbers<[1], [0], [0], [1], [0, 0, 1, 1], [], []>} : vector<8x16xbf16>, vector<16x128xbf16>, vector<8x128xf32> -> vector<8x128xf32>
    %271 = arith.addf %266, %270 : vector<8x128xf32>
    %c0_234 = arith.constant 0 : index
    %c7_235 = arith.constant 7 : index
    %c0_236 = arith.constant 0 : index
    %c0_237 = arith.constant 0 : index
    %272 = vector.load %arg5[%c0_234, %c7_235, %c0_236, %c0_237] : memref<2x8x8x128xf32, #tpu.memory_space<vmem>>, vector<1x1x8x128xf32>
    %273 = vector.shape_cast %272 : vector<1x1x8x128xf32> to vector<8x128xf32>
    %274 = vector.shape_cast %271 : vector<8x128xf32> to vector<1x1x8x128xf32>
    tpu.vector_store %arg5[%c0_234, %c7_235, %c0_236, %c0_237], %274 {strides = array<i32>} : memref<2x8x8x128xf32, #tpu.memory_space<vmem>>, vector<1x1x8x128xf32>,
    %cst_238 = arith.constant dense<0.000000e+00> : vector<128xf32>
    %275 = vector.multi_reduction <add>, %271, %cst_238 [0] : vector<8x128xf32> to vector<128xf32>
    %276 = vector.shape_cast %275 : vector<128xf32> to vector<1x128xf32>
    %277 = arith.addf %242, %276 : vector<1x128xf32>
    %278 = arith.mulf %271, %271 : vector<8x128xf32>
    %cst_239 = arith.constant dense<0.000000e+00> : vector<128xf32>
    %279 = vector.multi_reduction <add>, %278, %cst_239 [0] : vector<8x128xf32> to vector<128xf32>
    %280 = vector.shape_cast %279 : vector<128xf32> to vector<1x128xf32>
    %281 = arith.addf %246, %280 : vector<1x128xf32>
    %cst_240 = arith.constant 0.000000e+00 : f32
    %282 = vector.broadcast %cst_240 : f32 to vector<8x128xf32>
    %c1_241 = arith.constant 1 : index
    %c0_242 = arith.constant 0 : index
    %c0_243 = arith.constant 0 : index
    %c0_244 = arith.constant 0 : index
    %283 = vector.load %arg1[%c1_241, %c0_242, %c0_243, %c0_244] : memref<2x9x9x16xbf16, #tpu.memory_space<vmem>>, vector<1x1x9x16xbf16>
    %284 = vector.shape_cast %283 : vector<1x1x9x16xbf16> to vector<9x16xbf16>
    %285 = vector.extract_strided_slice %284 {offsets = [0, 0], sizes = [8, 16], strides = [1, 1]} : vector<9x16xbf16> to vector<8x16xbf16>
    %c0_245 = arith.constant 0 : index
    %c0_246 = arith.constant 0 : index
    %c0_247 = arith.constant 0 : index
    %286 = vector.load %arg2[%c0_245, %c0_246, %c0_247] : memref<4x16x128xbf16, #tpu.memory_space<vmem>>, vector<1x16x128xbf16>
    %287 = vector.shape_cast %286 : vector<1x16x128xbf16> to vector<16x128xbf16>
    %cst_248 = arith.constant dense<0.000000e+00> : vector<8x128xf32>
    %288 = tpu.matmul %285, %287, %cst_248 {dimension_numbers = #tpu.dot_dimension_numbers<[1], [0], [0], [1], [0, 0, 1, 1], [], []>} : vector<8x16xbf16>, vector<16x128xbf16>, vector<8x128xf32> -> vector<8x128xf32>
    %289 = arith.addf %282, %288 : vector<8x128xf32>
    %290 = vector.extract_strided_slice %284 {offsets = [1, 0], sizes = [8, 16], strides = [1, 1]} : vector<9x16xbf16> to vector<8x16xbf16>
    %c1_249 = arith.constant 1 : index
    %c0_250 = arith.constant 0 : index
    %c0_251 = arith.constant 0 : index
    %291 = vector.load %arg2[%c1_249, %c0_250, %c0_251] : memref<4x16x128xbf16, #tpu.memory_space<vmem>>, vector<1x16x128xbf16>
    %292 = vector.shape_cast %291 : vector<1x16x128xbf16> to vector<16x128xbf16>
    %cst_252 = arith.constant dense<0.000000e+00> : vector<8x128xf32>
    %293 = tpu.matmul %290, %292, %cst_252 {dimension_numbers = #tpu.dot_dimension_numbers<[1], [0], [0], [1], [0, 0, 1, 1], [], []>} : vector<8x16xbf16>, vector<16x128xbf16>, vector<8x128xf32> -> vector<8x128xf32>
    %294 = arith.addf %289, %293 : vector<8x128xf32>
    %c1_253 = arith.constant 1 : index
    %c1_254 = arith.constant 1 : index
    %c0_255 = arith.constant 0 : index
    %c0_256 = arith.constant 0 : index
    %295 = vector.load %arg1[%c1_253, %c1_254, %c0_255, %c0_256] : memref<2x9x9x16xbf16, #tpu.memory_space<vmem>>, vector<1x1x9x16xbf16>
    %296 = vector.shape_cast %295 : vector<1x1x9x16xbf16> to vector<9x16xbf16>
    %297 = vector.extract_strided_slice %296 {offsets = [0, 0], sizes = [8, 16], strides = [1, 1]} : vector<9x16xbf16> to vector<8x16xbf16>
    %c2_257 = arith.constant 2 : index
    %c0_258 = arith.constant 0 : index
    %c0_259 = arith.constant 0 : index
    %298 = vector.load %arg2[%c2_257, %c0_258, %c0_259] : memref<4x16x128xbf16, #tpu.memory_space<vmem>>, vector<1x16x128xbf16>
    %299 = vector.shape_cast %298 : vector<1x16x128xbf16> to vector<16x128xbf16>
    %cst_260 = arith.constant dense<0.000000e+00> : vector<8x128xf32>
    %300 = tpu.matmul %297, %299, %cst_260 {dimension_numbers = #tpu.dot_dimension_numbers<[1], [0], [0], [1], [0, 0, 1, 1], [], []>} : vector<8x16xbf16>, vector<16x128xbf16>, vector<8x128xf32> -> vector<8x128xf32>
    %301 = arith.addf %294, %300 : vector<8x128xf32>
    %302 = vector.extract_strided_slice %296 {offsets = [1, 0], sizes = [8, 16], strides = [1, 1]} : vector<9x16xbf16> to vector<8x16xbf16>
    %c3_261 = arith.constant 3 : index
    %c0_262 = arith.constant 0 : index
    %c0_263 = arith.constant 0 : index
    %303 = vector.load %arg2[%c3_261, %c0_262, %c0_263] : memref<4x16x128xbf16, #tpu.memory_space<vmem>>, vector<1x16x128xbf16>
    %304 = vector.shape_cast %303 : vector<1x16x128xbf16> to vector<16x128xbf16>
    %cst_264 = arith.constant dense<0.000000e+00> : vector<8x128xf32>
    %305 = tpu.matmul %302, %304, %cst_264 {dimension_numbers = #tpu.dot_dimension_numbers<[1], [0], [0], [1], [0, 0, 1, 1], [], []>} : vector<8x16xbf16>, vector<16x128xbf16>, vector<8x128xf32> -> vector<8x128xf32>
    %306 = arith.addf %301, %305 : vector<8x128xf32>
    %c1_265 = arith.constant 1 : index
    %c0_266 = arith.constant 0 : index
    %c0_267 = arith.constant 0 : index
    %c0_268 = arith.constant 0 : index
    %307 = vector.load %arg5[%c1_265, %c0_266, %c0_267, %c0_268] : memref<2x8x8x128xf32, #tpu.memory_space<vmem>>, vector<1x1x8x128xf32>
    %308 = vector.shape_cast %307 : vector<1x1x8x128xf32> to vector<8x128xf32>
    %309 = vector.shape_cast %306 : vector<8x128xf32> to vector<1x1x8x128xf32>
    tpu.vector_store %arg5[%c1_265, %c0_266, %c0_267, %c0_268], %309 {strides = array<i32>} : memref<2x8x8x128xf32, #tpu.memory_space<vmem>>, vector<1x1x8x128xf32>,
    %cst_269 = arith.constant dense<0.000000e+00> : vector<128xf32>
    %310 = vector.multi_reduction <add>, %306, %cst_269 [0] : vector<8x128xf32> to vector<128xf32>
    %311 = vector.shape_cast %310 : vector<128xf32> to vector<1x128xf32>
    %312 = arith.addf %277, %311 : vector<1x128xf32>
    %313 = arith.mulf %306, %306 : vector<8x128xf32>
    %cst_270 = arith.constant dense<0.000000e+00> : vector<128xf32>
    %314 = vector.multi_reduction <add>, %313, %cst_270 [0] : vector<8x128xf32> to vector<128xf32>
    %315 = vector.shape_cast %314 : vector<128xf32> to vector<1x128xf32>
    %316 = arith.addf %281, %315 : vector<1x128xf32>
    %cst_271 = arith.constant 0.000000e+00 : f32
    %317 = vector.broadcast %cst_271 : f32 to vector<8x128xf32>
    %c1_272 = arith.constant 1 : index
    %c1_273 = arith.constant 1 : index
    %c0_274 = arith.constant 0 : index
    %c0_275 = arith.constant 0 : index
    %318 = vector.load %arg1[%c1_272, %c1_273, %c0_274, %c0_275] : memref<2x9x9x16xbf16, #tpu.memory_space<vmem>>, vector<1x1x9x16xbf16>
    %319 = vector.shape_cast %318 : vector<1x1x9x16xbf16> to vector<9x16xbf16>
    %320 = vector.extract_strided_slice %319 {offsets = [0, 0], sizes = [8, 16], strides = [1, 1]} : vector<9x16xbf16> to vector<8x16xbf16>
    %c0_276 = arith.constant 0 : index
    %c0_277 = arith.constant 0 : index
    %c0_278 = arith.constant 0 : index
    %321 = vector.load %arg2[%c0_276, %c0_277, %c0_278] : memref<4x16x128xbf16, #tpu.memory_space<vmem>>, vector<1x16x128xbf16>
    %322 = vector.shape_cast %321 : vector<1x16x128xbf16> to vector<16x128xbf16>
    %cst_279 = arith.constant dense<0.000000e+00> : vector<8x128xf32>
    %323 = tpu.matmul %320, %322, %cst_279 {dimension_numbers = #tpu.dot_dimension_numbers<[1], [0], [0], [1], [0, 0, 1, 1], [], []>} : vector<8x16xbf16>, vector<16x128xbf16>, vector<8x128xf32> -> vector<8x128xf32>
    %324 = arith.addf %317, %323 : vector<8x128xf32>
    %325 = vector.extract_strided_slice %319 {offsets = [1, 0], sizes = [8, 16], strides = [1, 1]} : vector<9x16xbf16> to vector<8x16xbf16>
    %c1_280 = arith.constant 1 : index
    %c0_281 = arith.constant 0 : index
    %c0_282 = arith.constant 0 : index
    %326 = vector.load %arg2[%c1_280, %c0_281, %c0_282] : memref<4x16x128xbf16, #tpu.memory_space<vmem>>, vector<1x16x128xbf16>
    %327 = vector.shape_cast %326 : vector<1x16x128xbf16> to vector<16x128xbf16>
    %cst_283 = arith.constant dense<0.000000e+00> : vector<8x128xf32>
    %328 = tpu.matmul %325, %327, %cst_283 {dimension_numbers = #tpu.dot_dimension_numbers<[1], [0], [0], [1], [0, 0, 1, 1], [], []>} : vector<8x16xbf16>, vector<16x128xbf16>, vector<8x128xf32> -> vector<8x128xf32>
    %329 = arith.addf %324, %328 : vector<8x128xf32>
    %c1_284 = arith.constant 1 : index
    %c2_285 = arith.constant 2 : index
    %c0_286 = arith.constant 0 : index
    %c0_287 = arith.constant 0 : index
    %330 = vector.load %arg1[%c1_284, %c2_285, %c0_286, %c0_287] : memref<2x9x9x16xbf16, #tpu.memory_space<vmem>>, vector<1x1x9x16xbf16>
    %331 = vector.shape_cast %330 : vector<1x1x9x16xbf16> to vector<9x16xbf16>
    %332 = vector.extract_strided_slice %331 {offsets = [0, 0], sizes = [8, 16], strides = [1, 1]} : vector<9x16xbf16> to vector<8x16xbf16>
    %c2_288 = arith.constant 2 : index
    %c0_289 = arith.constant 0 : index
    %c0_290 = arith.constant 0 : index
    %333 = vector.load %arg2[%c2_288, %c0_289, %c0_290] : memref<4x16x128xbf16, #tpu.memory_space<vmem>>, vector<1x16x128xbf16>
    %334 = vector.shape_cast %333 : vector<1x16x128xbf16> to vector<16x128xbf16>
    %cst_291 = arith.constant dense<0.000000e+00> : vector<8x128xf32>
    %335 = tpu.matmul %332, %334, %cst_291 {dimension_numbers = #tpu.dot_dimension_numbers<[1], [0], [0], [1], [0, 0, 1, 1], [], []>} : vector<8x16xbf16>, vector<16x128xbf16>, vector<8x128xf32> -> vector<8x128xf32>
    %336 = arith.addf %329, %335 : vector<8x128xf32>
    %337 = vector.extract_strided_slice %331 {offsets = [1, 0], sizes = [8, 16], strides = [1, 1]} : vector<9x16xbf16> to vector<8x16xbf16>
    %c3_292 = arith.constant 3 : index
    %c0_293 = arith.constant 0 : index
    %c0_294 = arith.constant 0 : index
    %338 = vector.load %arg2[%c3_292, %c0_293, %c0_294] : memref<4x16x128xbf16, #tpu.memory_space<vmem>>, vector<1x16x128xbf16>
    %339 = vector.shape_cast %338 : vector<1x16x128xbf16> to vector<16x128xbf16>
    %cst_295 = arith.constant dense<0.000000e+00> : vector<8x128xf32>
    %340 = tpu.matmul %337, %339, %cst_295 {dimension_numbers = #tpu.dot_dimension_numbers<[1], [0], [0], [1], [0, 0, 1, 1], [], []>} : vector<8x16xbf16>, vector<16x128xbf16>, vector<8x128xf32> -> vector<8x128xf32>
    %341 = arith.addf %336, %340 : vector<8x128xf32>
    %c1_296 = arith.constant 1 : index
    %c1_297 = arith.constant 1 : index
    %c0_298 = arith.constant 0 : index
    %c0_299 = arith.constant 0 : index
    %342 = vector.load %arg5[%c1_296, %c1_297, %c0_298, %c0_299] : memref<2x8x8x128xf32, #tpu.memory_space<vmem>>, vector<1x1x8x128xf32>
    %343 = vector.shape_cast %342 : vector<1x1x8x128xf32> to vector<8x128xf32>
    %344 = vector.shape_cast %341 : vector<8x128xf32> to vector<1x1x8x128xf32>
    tpu.vector_store %arg5[%c1_296, %c1_297, %c0_298, %c0_299], %344 {strides = array<i32>} : memref<2x8x8x128xf32, #tpu.memory_space<vmem>>, vector<1x1x8x128xf32>,
    %cst_300 = arith.constant dense<0.000000e+00> : vector<128xf32>
    %345 = vector.multi_reduction <add>, %341, %cst_300 [0] : vector<8x128xf32> to vector<128xf32>
    %346 = vector.shape_cast %345 : vector<128xf32> to vector<1x128xf32>
    %347 = arith.addf %312, %346 : vector<1x128xf32>
    %348 = arith.mulf %341, %341 : vector<8x128xf32>
    %cst_301 = arith.constant dense<0.000000e+00> : vector<128xf32>
    %349 = vector.multi_reduction <add>, %348, %cst_301 [0] : vector<8x128xf32> to vector<128xf32>
    %350 = vector.shape_cast %349 : vector<128xf32> to vector<1x128xf32>
    %351 = arith.addf %316, %350 : vector<1x128xf32>
    %cst_302 = arith.constant 0.000000e+00 : f32
    %352 = vector.broadcast %cst_302 : f32 to vector<8x128xf32>
    %c1_303 = arith.constant 1 : index
    %c2_304 = arith.constant 2 : index
    %c0_305 = arith.constant 0 : index
    %c0_306 = arith.constant 0 : index
    %353 = vector.load %arg1[%c1_303, %c2_304, %c0_305, %c0_306] : memref<2x9x9x16xbf16, #tpu.memory_space<vmem>>, vector<1x1x9x16xbf16>
    %354 = vector.shape_cast %353 : vector<1x1x9x16xbf16> to vector<9x16xbf16>
    %355 = vector.extract_strided_slice %354 {offsets = [0, 0], sizes = [8, 16], strides = [1, 1]} : vector<9x16xbf16> to vector<8x16xbf16>
    %c0_307 = arith.constant 0 : index
    %c0_308 = arith.constant 0 : index
    %c0_309 = arith.constant 0 : index
    %356 = vector.load %arg2[%c0_307, %c0_308, %c0_309] : memref<4x16x128xbf16, #tpu.memory_space<vmem>>, vector<1x16x128xbf16>
    %357 = vector.shape_cast %356 : vector<1x16x128xbf16> to vector<16x128xbf16>
    %cst_310 = arith.constant dense<0.000000e+00> : vector<8x128xf32>
    %358 = tpu.matmul %355, %357, %cst_310 {dimension_numbers = #tpu.dot_dimension_numbers<[1], [0], [0], [1], [0, 0, 1, 1], [], []>} : vector<8x16xbf16>, vector<16x128xbf16>, vector<8x128xf32> -> vector<8x128xf32>
    %359 = arith.addf %352, %358 : vector<8x128xf32>
    %360 = vector.extract_strided_slice %354 {offsets = [1, 0], sizes = [8, 16], strides = [1, 1]} : vector<9x16xbf16> to vector<8x16xbf16>
    %c1_311 = arith.constant 1 : index
    %c0_312 = arith.constant 0 : index
    %c0_313 = arith.constant 0 : index
    %361 = vector.load %arg2[%c1_311, %c0_312, %c0_313] : memref<4x16x128xbf16, #tpu.memory_space<vmem>>, vector<1x16x128xbf16>
    %362 = vector.shape_cast %361 : vector<1x16x128xbf16> to vector<16x128xbf16>
    %cst_314 = arith.constant dense<0.000000e+00> : vector<8x128xf32>
    %363 = tpu.matmul %360, %362, %cst_314 {dimension_numbers = #tpu.dot_dimension_numbers<[1], [0], [0], [1], [0, 0, 1, 1], [], []>} : vector<8x16xbf16>, vector<16x128xbf16>, vector<8x128xf32> -> vector<8x128xf32>
    %364 = arith.addf %359, %363 : vector<8x128xf32>
    %c1_315 = arith.constant 1 : index
    %c3_316 = arith.constant 3 : index
    %c0_317 = arith.constant 0 : index
    %c0_318 = arith.constant 0 : index
    %365 = vector.load %arg1[%c1_315, %c3_316, %c0_317, %c0_318] : memref<2x9x9x16xbf16, #tpu.memory_space<vmem>>, vector<1x1x9x16xbf16>
    %366 = vector.shape_cast %365 : vector<1x1x9x16xbf16> to vector<9x16xbf16>
    %367 = vector.extract_strided_slice %366 {offsets = [0, 0], sizes = [8, 16], strides = [1, 1]} : vector<9x16xbf16> to vector<8x16xbf16>
    %c2_319 = arith.constant 2 : index
    %c0_320 = arith.constant 0 : index
    %c0_321 = arith.constant 0 : index
    %368 = vector.load %arg2[%c2_319, %c0_320, %c0_321] : memref<4x16x128xbf16, #tpu.memory_space<vmem>>, vector<1x16x128xbf16>
    %369 = vector.shape_cast %368 : vector<1x16x128xbf16> to vector<16x128xbf16>
    %cst_322 = arith.constant dense<0.000000e+00> : vector<8x128xf32>
    %370 = tpu.matmul %367, %369, %cst_322 {dimension_numbers = #tpu.dot_dimension_numbers<[1], [0], [0], [1], [0, 0, 1, 1], [], []>} : vector<8x16xbf16>, vector<16x128xbf16>, vector<8x128xf32> -> vector<8x128xf32>
    %371 = arith.addf %364, %370 : vector<8x128xf32>
    %372 = vector.extract_strided_slice %366 {offsets = [1, 0], sizes = [8, 16], strides = [1, 1]} : vector<9x16xbf16> to vector<8x16xbf16>
    %c3_323 = arith.constant 3 : index
    %c0_324 = arith.constant 0 : index
    %c0_325 = arith.constant 0 : index
    %373 = vector.load %arg2[%c3_323, %c0_324, %c0_325] : memref<4x16x128xbf16, #tpu.memory_space<vmem>>, vector<1x16x128xbf16>
    %374 = vector.shape_cast %373 : vector<1x16x128xbf16> to vector<16x128xbf16>
    %cst_326 = arith.constant dense<0.000000e+00> : vector<8x128xf32>
    %375 = tpu.matmul %372, %374, %cst_326 {dimension_numbers = #tpu.dot_dimension_numbers<[1], [0], [0], [1], [0, 0, 1, 1], [], []>} : vector<8x16xbf16>, vector<16x128xbf16>, vector<8x128xf32> -> vector<8x128xf32>
    %376 = arith.addf %371, %375 : vector<8x128xf32>
    %c1_327 = arith.constant 1 : index
    %c2_328 = arith.constant 2 : index
    %c0_329 = arith.constant 0 : index
    %c0_330 = arith.constant 0 : index
    %377 = vector.load %arg5[%c1_327, %c2_328, %c0_329, %c0_330] : memref<2x8x8x128xf32, #tpu.memory_space<vmem>>, vector<1x1x8x128xf32>
    %378 = vector.shape_cast %377 : vector<1x1x8x128xf32> to vector<8x128xf32>
    %379 = vector.shape_cast %376 : vector<8x128xf32> to vector<1x1x8x128xf32>
    tpu.vector_store %arg5[%c1_327, %c2_328, %c0_329, %c0_330], %379 {strides = array<i32>} : memref<2x8x8x128xf32, #tpu.memory_space<vmem>>, vector<1x1x8x128xf32>,
    %cst_331 = arith.constant dense<0.000000e+00> : vector<128xf32>
    %380 = vector.multi_reduction <add>, %376, %cst_331 [0] : vector<8x128xf32> to vector<128xf32>
    %381 = vector.shape_cast %380 : vector<128xf32> to vector<1x128xf32>
    %382 = arith.addf %347, %381 : vector<1x128xf32>
    %383 = arith.mulf %376, %376 : vector<8x128xf32>
    %cst_332 = arith.constant dense<0.000000e+00> : vector<128xf32>
    %384 = vector.multi_reduction <add>, %383, %cst_332 [0] : vector<8x128xf32> to vector<128xf32>
    %385 = vector.shape_cast %384 : vector<128xf32> to vector<1x128xf32>
    %386 = arith.addf %351, %385 : vector<1x128xf32>
    %cst_333 = arith.constant 0.000000e+00 : f32
    %387 = vector.broadcast %cst_333 : f32 to vector<8x128xf32>
    %c1_334 = arith.constant 1 : index
    %c3_335 = arith.constant 3 : index
    %c0_336 = arith.constant 0 : index
    %c0_337 = arith.constant 0 : index
    %388 = vector.load %arg1[%c1_334, %c3_335, %c0_336, %c0_337] : memref<2x9x9x16xbf16, #tpu.memory_space<vmem>>, vector<1x1x9x16xbf16>
    %389 = vector.shape_cast %388 : vector<1x1x9x16xbf16> to vector<9x16xbf16>
    %390 = vector.extract_strided_slice %389 {offsets = [0, 0], sizes = [8, 16], strides = [1, 1]} : vector<9x16xbf16> to vector<8x16xbf16>
    %c0_338 = arith.constant 0 : index
    %c0_339 = arith.constant 0 : index
    %c0_340 = arith.constant 0 : index
    %391 = vector.load %arg2[%c0_338, %c0_339, %c0_340] : memref<4x16x128xbf16, #tpu.memory_space<vmem>>, vector<1x16x128xbf16>
    %392 = vector.shape_cast %391 : vector<1x16x128xbf16> to vector<16x128xbf16>
    %cst_341 = arith.constant dense<0.000000e+00> : vector<8x128xf32>
    %393 = tpu.matmul %390, %392, %cst_341 {dimension_numbers = #tpu.dot_dimension_numbers<[1], [0], [0], [1], [0, 0, 1, 1], [], []>} : vector<8x16xbf16>, vector<16x128xbf16>, vector<8x128xf32> -> vector<8x128xf32>
    %394 = arith.addf %387, %393 : vector<8x128xf32>
    %395 = vector.extract_strided_slice %389 {offsets = [1, 0], sizes = [8, 16], strides = [1, 1]} : vector<9x16xbf16> to vector<8x16xbf16>
    %c1_342 = arith.constant 1 : index
    %c0_343 = arith.constant 0 : index
    %c0_344 = arith.constant 0 : index
    %396 = vector.load %arg2[%c1_342, %c0_343, %c0_344] : memref<4x16x128xbf16, #tpu.memory_space<vmem>>, vector<1x16x128xbf16>
    %397 = vector.shape_cast %396 : vector<1x16x128xbf16> to vector<16x128xbf16>
    %cst_345 = arith.constant dense<0.000000e+00> : vector<8x128xf32>
    %398 = tpu.matmul %395, %397, %cst_345 {dimension_numbers = #tpu.dot_dimension_numbers<[1], [0], [0], [1], [0, 0, 1, 1], [], []>} : vector<8x16xbf16>, vector<16x128xbf16>, vector<8x128xf32> -> vector<8x128xf32>
    %399 = arith.addf %394, %398 : vector<8x128xf32>
    %c1_346 = arith.constant 1 : index
    %c4_347 = arith.constant 4 : index
    %c0_348 = arith.constant 0 : index
    %c0_349 = arith.constant 0 : index
    %400 = vector.load %arg1[%c1_346, %c4_347, %c0_348, %c0_349] : memref<2x9x9x16xbf16, #tpu.memory_space<vmem>>, vector<1x1x9x16xbf16>
    %401 = vector.shape_cast %400 : vector<1x1x9x16xbf16> to vector<9x16xbf16>
    %402 = vector.extract_strided_slice %401 {offsets = [0, 0], sizes = [8, 16], strides = [1, 1]} : vector<9x16xbf16> to vector<8x16xbf16>
    %c2_350 = arith.constant 2 : index
    %c0_351 = arith.constant 0 : index
    %c0_352 = arith.constant 0 : index
    %403 = vector.load %arg2[%c2_350, %c0_351, %c0_352] : memref<4x16x128xbf16, #tpu.memory_space<vmem>>, vector<1x16x128xbf16>
    %404 = vector.shape_cast %403 : vector<1x16x128xbf16> to vector<16x128xbf16>
    %cst_353 = arith.constant dense<0.000000e+00> : vector<8x128xf32>
    %405 = tpu.matmul %402, %404, %cst_353 {dimension_numbers = #tpu.dot_dimension_numbers<[1], [0], [0], [1], [0, 0, 1, 1], [], []>} : vector<8x16xbf16>, vector<16x128xbf16>, vector<8x128xf32> -> vector<8x128xf32>
    %406 = arith.addf %399, %405 : vector<8x128xf32>
    %407 = vector.extract_strided_slice %401 {offsets = [1, 0], sizes = [8, 16], strides = [1, 1]} : vector<9x16xbf16> to vector<8x16xbf16>
    %c3_354 = arith.constant 3 : index
    %c0_355 = arith.constant 0 : index
    %c0_356 = arith.constant 0 : index
    %408 = vector.load %arg2[%c3_354, %c0_355, %c0_356] : memref<4x16x128xbf16, #tpu.memory_space<vmem>>, vector<1x16x128xbf16>
    %409 = vector.shape_cast %408 : vector<1x16x128xbf16> to vector<16x128xbf16>
    %cst_357 = arith.constant dense<0.000000e+00> : vector<8x128xf32>
    %410 = tpu.matmul %407, %409, %cst_357 {dimension_numbers = #tpu.dot_dimension_numbers<[1], [0], [0], [1], [0, 0, 1, 1], [], []>} : vector<8x16xbf16>, vector<16x128xbf16>, vector<8x128xf32> -> vector<8x128xf32>
    %411 = arith.addf %406, %410 : vector<8x128xf32>
    %c1_358 = arith.constant 1 : index
    %c3_359 = arith.constant 3 : index
    %c0_360 = arith.constant 0 : index
    %c0_361 = arith.constant 0 : index
    %412 = vector.load %arg5[%c1_358, %c3_359, %c0_360, %c0_361] : memref<2x8x8x128xf32, #tpu.memory_space<vmem>>, vector<1x1x8x128xf32>
    %413 = vector.shape_cast %412 : vector<1x1x8x128xf32> to vector<8x128xf32>
    %414 = vector.shape_cast %411 : vector<8x128xf32> to vector<1x1x8x128xf32>
    tpu.vector_store %arg5[%c1_358, %c3_359, %c0_360, %c0_361], %414 {strides = array<i32>} : memref<2x8x8x128xf32, #tpu.memory_space<vmem>>, vector<1x1x8x128xf32>,
    %cst_362 = arith.constant dense<0.000000e+00> : vector<128xf32>
    %415 = vector.multi_reduction <add>, %411, %cst_362 [0] : vector<8x128xf32> to vector<128xf32>
    %416 = vector.shape_cast %415 : vector<128xf32> to vector<1x128xf32>
    %417 = arith.addf %382, %416 : vector<1x128xf32>
    %418 = arith.mulf %411, %411 : vector<8x128xf32>
    %cst_363 = arith.constant dense<0.000000e+00> : vector<128xf32>
    %419 = vector.multi_reduction <add>, %418, %cst_363 [0] : vector<8x128xf32> to vector<128xf32>
    %420 = vector.shape_cast %419 : vector<128xf32> to vector<1x128xf32>
    %421 = arith.addf %386, %420 : vector<1x128xf32>
    %cst_364 = arith.constant 0.000000e+00 : f32
    %422 = vector.broadcast %cst_364 : f32 to vector<8x128xf32>
    %c1_365 = arith.constant 1 : index
    %c4_366 = arith.constant 4 : index
    %c0_367 = arith.constant 0 : index
    %c0_368 = arith.constant 0 : index
    %423 = vector.load %arg1[%c1_365, %c4_366, %c0_367, %c0_368] : memref<2x9x9x16xbf16, #tpu.memory_space<vmem>>, vector<1x1x9x16xbf16>
    %424 = vector.shape_cast %423 : vector<1x1x9x16xbf16> to vector<9x16xbf16>
    %425 = vector.extract_strided_slice %424 {offsets = [0, 0], sizes = [8, 16], strides = [1, 1]} : vector<9x16xbf16> to vector<8x16xbf16>
    %c0_369 = arith.constant 0 : index
    %c0_370 = arith.constant 0 : index
    %c0_371 = arith.constant 0 : index
    %426 = vector.load %arg2[%c0_369, %c0_370, %c0_371] : memref<4x16x128xbf16, #tpu.memory_space<vmem>>, vector<1x16x128xbf16>
    %427 = vector.shape_cast %426 : vector<1x16x128xbf16> to vector<16x128xbf16>
    %cst_372 = arith.constant dense<0.000000e+00> : vector<8x128xf32>
    %428 = tpu.matmul %425, %427, %cst_372 {dimension_numbers = #tpu.dot_dimension_numbers<[1], [0], [0], [1], [0, 0, 1, 1], [], []>} : vector<8x16xbf16>, vector<16x128xbf16>, vector<8x128xf32> -> vector<8x128xf32>
    %429 = arith.addf %422, %428 : vector<8x128xf32>
    %430 = vector.extract_strided_slice %424 {offsets = [1, 0], sizes = [8, 16], strides = [1, 1]} : vector<9x16xbf16> to vector<8x16xbf16>
    %c1_373 = arith.constant 1 : index
    %c0_374 = arith.constant 0 : index
    %c0_375 = arith.constant 0 : index
    %431 = vector.load %arg2[%c1_373, %c0_374, %c0_375] : memref<4x16x128xbf16, #tpu.memory_space<vmem>>, vector<1x16x128xbf16>
    %432 = vector.shape_cast %431 : vector<1x16x128xbf16> to vector<16x128xbf16>
    %cst_376 = arith.constant dense<0.000000e+00> : vector<8x128xf32>
    %433 = tpu.matmul %430, %432, %cst_376 {dimension_numbers = #tpu.dot_dimension_numbers<[1], [0], [0], [1], [0, 0, 1, 1], [], []>} : vector<8x16xbf16>, vector<16x128xbf16>, vector<8x128xf32> -> vector<8x128xf32>
    %434 = arith.addf %429, %433 : vector<8x128xf32>
    %c1_377 = arith.constant 1 : index
    %c5_378 = arith.constant 5 : index
    %c0_379 = arith.constant 0 : index
    %c0_380 = arith.constant 0 : index
    %435 = vector.load %arg1[%c1_377, %c5_378, %c0_379, %c0_380] : memref<2x9x9x16xbf16, #tpu.memory_space<vmem>>, vector<1x1x9x16xbf16>
    %436 = vector.shape_cast %435 : vector<1x1x9x16xbf16> to vector<9x16xbf16>
    %437 = vector.extract_strided_slice %436 {offsets = [0, 0], sizes = [8, 16], strides = [1, 1]} : vector<9x16xbf16> to vector<8x16xbf16>
    %c2_381 = arith.constant 2 : index
    %c0_382 = arith.constant 0 : index
    %c0_383 = arith.constant 0 : index
    %438 = vector.load %arg2[%c2_381, %c0_382, %c0_383] : memref<4x16x128xbf16, #tpu.memory_space<vmem>>, vector<1x16x128xbf16>
    %439 = vector.shape_cast %438 : vector<1x16x128xbf16> to vector<16x128xbf16>
    %cst_384 = arith.constant dense<0.000000e+00> : vector<8x128xf32>
    %440 = tpu.matmul %437, %439, %cst_384 {dimension_numbers = #tpu.dot_dimension_numbers<[1], [0], [0], [1], [0, 0, 1, 1], [], []>} : vector<8x16xbf16>, vector<16x128xbf16>, vector<8x128xf32> -> vector<8x128xf32>
    %441 = arith.addf %434, %440 : vector<8x128xf32>
    %442 = vector.extract_strided_slice %436 {offsets = [1, 0], sizes = [8, 16], strides = [1, 1]} : vector<9x16xbf16> to vector<8x16xbf16>
    %c3_385 = arith.constant 3 : index
    %c0_386 = arith.constant 0 : index
    %c0_387 = arith.constant 0 : index
    %443 = vector.load %arg2[%c3_385, %c0_386, %c0_387] : memref<4x16x128xbf16, #tpu.memory_space<vmem>>, vector<1x16x128xbf16>
    %444 = vector.shape_cast %443 : vector<1x16x128xbf16> to vector<16x128xbf16>
    %cst_388 = arith.constant dense<0.000000e+00> : vector<8x128xf32>
    %445 = tpu.matmul %442, %444, %cst_388 {dimension_numbers = #tpu.dot_dimension_numbers<[1], [0], [0], [1], [0, 0, 1, 1], [], []>} : vector<8x16xbf16>, vector<16x128xbf16>, vector<8x128xf32> -> vector<8x128xf32>
    %446 = arith.addf %441, %445 : vector<8x128xf32>
    %c1_389 = arith.constant 1 : index
    %c4_390 = arith.constant 4 : index
    %c0_391 = arith.constant 0 : index
    %c0_392 = arith.constant 0 : index
    %447 = vector.load %arg5[%c1_389, %c4_390, %c0_391, %c0_392] : memref<2x8x8x128xf32, #tpu.memory_space<vmem>>, vector<1x1x8x128xf32>
    %448 = vector.shape_cast %447 : vector<1x1x8x128xf32> to vector<8x128xf32>
    %449 = vector.shape_cast %446 : vector<8x128xf32> to vector<1x1x8x128xf32>
    tpu.vector_store %arg5[%c1_389, %c4_390, %c0_391, %c0_392], %449 {strides = array<i32>} : memref<2x8x8x128xf32, #tpu.memory_space<vmem>>, vector<1x1x8x128xf32>,
    %cst_393 = arith.constant dense<0.000000e+00> : vector<128xf32>
    %450 = vector.multi_reduction <add>, %446, %cst_393 [0] : vector<8x128xf32> to vector<128xf32>
    %451 = vector.shape_cast %450 : vector<128xf32> to vector<1x128xf32>
    %452 = arith.addf %417, %451 : vector<1x128xf32>
    %453 = arith.mulf %446, %446 : vector<8x128xf32>
    %cst_394 = arith.constant dense<0.000000e+00> : vector<128xf32>
    %454 = vector.multi_reduction <add>, %453, %cst_394 [0] : vector<8x128xf32> to vector<128xf32>
    %455 = vector.shape_cast %454 : vector<128xf32> to vector<1x128xf32>
    %456 = arith.addf %421, %455 : vector<1x128xf32>
    %cst_395 = arith.constant 0.000000e+00 : f32
    %457 = vector.broadcast %cst_395 : f32 to vector<8x128xf32>
    %c1_396 = arith.constant 1 : index
    %c5_397 = arith.constant 5 : index
    %c0_398 = arith.constant 0 : index
    %c0_399 = arith.constant 0 : index
    %458 = vector.load %arg1[%c1_396, %c5_397, %c0_398, %c0_399] : memref<2x9x9x16xbf16, #tpu.memory_space<vmem>>, vector<1x1x9x16xbf16>
    %459 = vector.shape_cast %458 : vector<1x1x9x16xbf16> to vector<9x16xbf16>
    %460 = vector.extract_strided_slice %459 {offsets = [0, 0], sizes = [8, 16], strides = [1, 1]} : vector<9x16xbf16> to vector<8x16xbf16>
    %c0_400 = arith.constant 0 : index
    %c0_401 = arith.constant 0 : index
    %c0_402 = arith.constant 0 : index
    %461 = vector.load %arg2[%c0_400, %c0_401, %c0_402] : memref<4x16x128xbf16, #tpu.memory_space<vmem>>, vector<1x16x128xbf16>
    %462 = vector.shape_cast %461 : vector<1x16x128xbf16> to vector<16x128xbf16>
    %cst_403 = arith.constant dense<0.000000e+00> : vector<8x128xf32>
    %463 = tpu.matmul %460, %462, %cst_403 {dimension_numbers = #tpu.dot_dimension_numbers<[1], [0], [0], [1], [0, 0, 1, 1], [], []>} : vector<8x16xbf16>, vector<16x128xbf16>, vector<8x128xf32> -> vector<8x128xf32>
    %464 = arith.addf %457, %463 : vector<8x128xf32>
    %465 = vector.extract_strided_slice %459 {offsets = [1, 0], sizes = [8, 16], strides = [1, 1]} : vector<9x16xbf16> to vector<8x16xbf16>
    %c1_404 = arith.constant 1 : index
    %c0_405 = arith.constant 0 : index
    %c0_406 = arith.constant 0 : index
    %466 = vector.load %arg2[%c1_404, %c0_405, %c0_406] : memref<4x16x128xbf16, #tpu.memory_space<vmem>>, vector<1x16x128xbf16>
    %467 = vector.shape_cast %466 : vector<1x16x128xbf16> to vector<16x128xbf16>
    %cst_407 = arith.constant dense<0.000000e+00> : vector<8x128xf32>
    %468 = tpu.matmul %465, %467, %cst_407 {dimension_numbers = #tpu.dot_dimension_numbers<[1], [0], [0], [1], [0, 0, 1, 1], [], []>} : vector<8x16xbf16>, vector<16x128xbf16>, vector<8x128xf32> -> vector<8x128xf32>
    %469 = arith.addf %464, %468 : vector<8x128xf32>
    %c1_408 = arith.constant 1 : index
    %c6_409 = arith.constant 6 : index
    %c0_410 = arith.constant 0 : index
    %c0_411 = arith.constant 0 : index
    %470 = vector.load %arg1[%c1_408, %c6_409, %c0_410, %c0_411] : memref<2x9x9x16xbf16, #tpu.memory_space<vmem>>, vector<1x1x9x16xbf16>
    %471 = vector.shape_cast %470 : vector<1x1x9x16xbf16> to vector<9x16xbf16>
    %472 = vector.extract_strided_slice %471 {offsets = [0, 0], sizes = [8, 16], strides = [1, 1]} : vector<9x16xbf16> to vector<8x16xbf16>
    %c2_412 = arith.constant 2 : index
    %c0_413 = arith.constant 0 : index
    %c0_414 = arith.constant 0 : index
    %473 = vector.load %arg2[%c2_412, %c0_413, %c0_414] : memref<4x16x128xbf16, #tpu.memory_space<vmem>>, vector<1x16x128xbf16>
    %474 = vector.shape_cast %473 : vector<1x16x128xbf16> to vector<16x128xbf16>
    %cst_415 = arith.constant dense<0.000000e+00> : vector<8x128xf32>
    %475 = tpu.matmul %472, %474, %cst_415 {dimension_numbers = #tpu.dot_dimension_numbers<[1], [0], [0], [1], [0, 0, 1, 1], [], []>} : vector<8x16xbf16>, vector<16x128xbf16>, vector<8x128xf32> -> vector<8x128xf32>
    %476 = arith.addf %469, %475 : vector<8x128xf32>
    %477 = vector.extract_strided_slice %471 {offsets = [1, 0], sizes = [8, 16], strides = [1, 1]} : vector<9x16xbf16> to vector<8x16xbf16>
    %c3_416 = arith.constant 3 : index
    %c0_417 = arith.constant 0 : index
    %c0_418 = arith.constant 0 : index
    %478 = vector.load %arg2[%c3_416, %c0_417, %c0_418] : memref<4x16x128xbf16, #tpu.memory_space<vmem>>, vector<1x16x128xbf16>
    %479 = vector.shape_cast %478 : vector<1x16x128xbf16> to vector<16x128xbf16>
    %cst_419 = arith.constant dense<0.000000e+00> : vector<8x128xf32>
    %480 = tpu.matmul %477, %479, %cst_419 {dimension_numbers = #tpu.dot_dimension_numbers<[1], [0], [0], [1], [0, 0, 1, 1], [], []>} : vector<8x16xbf16>, vector<16x128xbf16>, vector<8x128xf32> -> vector<8x128xf32>
    %481 = arith.addf %476, %480 : vector<8x128xf32>
    %c1_420 = arith.constant 1 : index
    %c5_421 = arith.constant 5 : index
    %c0_422 = arith.constant 0 : index
    %c0_423 = arith.constant 0 : index
    %482 = vector.load %arg5[%c1_420, %c5_421, %c0_422, %c0_423] : memref<2x8x8x128xf32, #tpu.memory_space<vmem>>, vector<1x1x8x128xf32>
    %483 = vector.shape_cast %482 : vector<1x1x8x128xf32> to vector<8x128xf32>
    %484 = vector.shape_cast %481 : vector<8x128xf32> to vector<1x1x8x128xf32>
    tpu.vector_store %arg5[%c1_420, %c5_421, %c0_422, %c0_423], %484 {strides = array<i32>} : memref<2x8x8x128xf32, #tpu.memory_space<vmem>>, vector<1x1x8x128xf32>,
    %cst_424 = arith.constant dense<0.000000e+00> : vector<128xf32>
    %485 = vector.multi_reduction <add>, %481, %cst_424 [0] : vector<8x128xf32> to vector<128xf32>
    %486 = vector.shape_cast %485 : vector<128xf32> to vector<1x128xf32>
    %487 = arith.addf %452, %486 : vector<1x128xf32>
    %488 = arith.mulf %481, %481 : vector<8x128xf32>
    %cst_425 = arith.constant dense<0.000000e+00> : vector<128xf32>
    %489 = vector.multi_reduction <add>, %488, %cst_425 [0] : vector<8x128xf32> to vector<128xf32>
    %490 = vector.shape_cast %489 : vector<128xf32> to vector<1x128xf32>
    %491 = arith.addf %456, %490 : vector<1x128xf32>
    %cst_426 = arith.constant 0.000000e+00 : f32
    %492 = vector.broadcast %cst_426 : f32 to vector<8x128xf32>
    %c1_427 = arith.constant 1 : index
    %c6_428 = arith.constant 6 : index
    %c0_429 = arith.constant 0 : index
    %c0_430 = arith.constant 0 : index
    %493 = vector.load %arg1[%c1_427, %c6_428, %c0_429, %c0_430] : memref<2x9x9x16xbf16, #tpu.memory_space<vmem>>, vector<1x1x9x16xbf16>
    %494 = vector.shape_cast %493 : vector<1x1x9x16xbf16> to vector<9x16xbf16>
    %495 = vector.extract_strided_slice %494 {offsets = [0, 0], sizes = [8, 16], strides = [1, 1]} : vector<9x16xbf16> to vector<8x16xbf16>
    %c0_431 = arith.constant 0 : index
    %c0_432 = arith.constant 0 : index
    %c0_433 = arith.constant 0 : index
    %496 = vector.load %arg2[%c0_431, %c0_432, %c0_433] : memref<4x16x128xbf16, #tpu.memory_space<vmem>>, vector<1x16x128xbf16>
    %497 = vector.shape_cast %496 : vector<1x16x128xbf16> to vector<16x128xbf16>
    %cst_434 = arith.constant dense<0.000000e+00> : vector<8x128xf32>
    %498 = tpu.matmul %495, %497, %cst_434 {dimension_numbers = #tpu.dot_dimension_numbers<[1], [0], [0], [1], [0, 0, 1, 1], [], []>} : vector<8x16xbf16>, vector<16x128xbf16>, vector<8x128xf32> -> vector<8x128xf32>
    %499 = arith.addf %492, %498 : vector<8x128xf32>
    %500 = vector.extract_strided_slice %494 {offsets = [1, 0], sizes = [8, 16], strides = [1, 1]} : vector<9x16xbf16> to vector<8x16xbf16>
    %c1_435 = arith.constant 1 : index
    %c0_436 = arith.constant 0 : index
    %c0_437 = arith.constant 0 : index
    %501 = vector.load %arg2[%c1_435, %c0_436, %c0_437] : memref<4x16x128xbf16, #tpu.memory_space<vmem>>, vector<1x16x128xbf16>
    %502 = vector.shape_cast %501 : vector<1x16x128xbf16> to vector<16x128xbf16>
    %cst_438 = arith.constant dense<0.000000e+00> : vector<8x128xf32>
    %503 = tpu.matmul %500, %502, %cst_438 {dimension_numbers = #tpu.dot_dimension_numbers<[1], [0], [0], [1], [0, 0, 1, 1], [], []>} : vector<8x16xbf16>, vector<16x128xbf16>, vector<8x128xf32> -> vector<8x128xf32>
    %504 = arith.addf %499, %503 : vector<8x128xf32>
    %c1_439 = arith.constant 1 : index
    %c7_440 = arith.constant 7 : index
    %c0_441 = arith.constant 0 : index
    %c0_442 = arith.constant 0 : index
    %505 = vector.load %arg1[%c1_439, %c7_440, %c0_441, %c0_442] : memref<2x9x9x16xbf16, #tpu.memory_space<vmem>>, vector<1x1x9x16xbf16>
    %506 = vector.shape_cast %505 : vector<1x1x9x16xbf16> to vector<9x16xbf16>
    %507 = vector.extract_strided_slice %506 {offsets = [0, 0], sizes = [8, 16], strides = [1, 1]} : vector<9x16xbf16> to vector<8x16xbf16>
    %c2_443 = arith.constant 2 : index
    %c0_444 = arith.constant 0 : index
    %c0_445 = arith.constant 0 : index
    %508 = vector.load %arg2[%c2_443, %c0_444, %c0_445] : memref<4x16x128xbf16, #tpu.memory_space<vmem>>, vector<1x16x128xbf16>
    %509 = vector.shape_cast %508 : vector<1x16x128xbf16> to vector<16x128xbf16>
    %cst_446 = arith.constant dense<0.000000e+00> : vector<8x128xf32>
    %510 = tpu.matmul %507, %509, %cst_446 {dimension_numbers = #tpu.dot_dimension_numbers<[1], [0], [0], [1], [0, 0, 1, 1], [], []>} : vector<8x16xbf16>, vector<16x128xbf16>, vector<8x128xf32> -> vector<8x128xf32>
    %511 = arith.addf %504, %510 : vector<8x128xf32>
    %512 = vector.extract_strided_slice %506 {offsets = [1, 0], sizes = [8, 16], strides = [1, 1]} : vector<9x16xbf16> to vector<8x16xbf16>
    %c3_447 = arith.constant 3 : index
    %c0_448 = arith.constant 0 : index
    %c0_449 = arith.constant 0 : index
    %513 = vector.load %arg2[%c3_447, %c0_448, %c0_449] : memref<4x16x128xbf16, #tpu.memory_space<vmem>>, vector<1x16x128xbf16>
    %514 = vector.shape_cast %513 : vector<1x16x128xbf16> to vector<16x128xbf16>
    %cst_450 = arith.constant dense<0.000000e+00> : vector<8x128xf32>
    %515 = tpu.matmul %512, %514, %cst_450 {dimension_numbers = #tpu.dot_dimension_numbers<[1], [0], [0], [1], [0, 0, 1, 1], [], []>} : vector<8x16xbf16>, vector<16x128xbf16>, vector<8x128xf32> -> vector<8x128xf32>
    %516 = arith.addf %511, %515 : vector<8x128xf32>
    %c1_451 = arith.constant 1 : index
    %c6_452 = arith.constant 6 : index
    %c0_453 = arith.constant 0 : index
    %c0_454 = arith.constant 0 : index
    %517 = vector.load %arg5[%c1_451, %c6_452, %c0_453, %c0_454] : memref<2x8x8x128xf32, #tpu.memory_space<vmem>>, vector<1x1x8x128xf32>
    %518 = vector.shape_cast %517 : vector<1x1x8x128xf32> to vector<8x128xf32>
    %519 = vector.shape_cast %516 : vector<8x128xf32> to vector<1x1x8x128xf32>
    tpu.vector_store %arg5[%c1_451, %c6_452, %c0_453, %c0_454], %519 {strides = array<i32>} : memref<2x8x8x128xf32, #tpu.memory_space<vmem>>, vector<1x1x8x128xf32>,
    %cst_455 = arith.constant dense<0.000000e+00> : vector<128xf32>
    %520 = vector.multi_reduction <add>, %516, %cst_455 [0] : vector<8x128xf32> to vector<128xf32>
    %521 = vector.shape_cast %520 : vector<128xf32> to vector<1x128xf32>
    %522 = arith.addf %487, %521 : vector<1x128xf32>
    %523 = arith.mulf %516, %516 : vector<8x128xf32>
    %cst_456 = arith.constant dense<0.000000e+00> : vector<128xf32>
    %524 = vector.multi_reduction <add>, %523, %cst_456 [0] : vector<8x128xf32> to vector<128xf32>
    %525 = vector.shape_cast %524 : vector<128xf32> to vector<1x128xf32>
    %526 = arith.addf %491, %525 : vector<1x128xf32>
    %cst_457 = arith.constant 0.000000e+00 : f32
    %527 = vector.broadcast %cst_457 : f32 to vector<8x128xf32>
    %c1_458 = arith.constant 1 : index
    %c7_459 = arith.constant 7 : index
    %c0_460 = arith.constant 0 : index
    %c0_461 = arith.constant 0 : index
    %528 = vector.load %arg1[%c1_458, %c7_459, %c0_460, %c0_461] : memref<2x9x9x16xbf16, #tpu.memory_space<vmem>>, vector<1x1x9x16xbf16>
    %529 = vector.shape_cast %528 : vector<1x1x9x16xbf16> to vector<9x16xbf16>
    %530 = vector.extract_strided_slice %529 {offsets = [0, 0], sizes = [8, 16], strides = [1, 1]} : vector<9x16xbf16> to vector<8x16xbf16>
    %c0_462 = arith.constant 0 : index
    %c0_463 = arith.constant 0 : index
    %c0_464 = arith.constant 0 : index
    %531 = vector.load %arg2[%c0_462, %c0_463, %c0_464] : memref<4x16x128xbf16, #tpu.memory_space<vmem>>, vector<1x16x128xbf16>
    %532 = vector.shape_cast %531 : vector<1x16x128xbf16> to vector<16x128xbf16>
    %cst_465 = arith.constant dense<0.000000e+00> : vector<8x128xf32>
    %533 = tpu.matmul %530, %532, %cst_465 {dimension_numbers = #tpu.dot_dimension_numbers<[1], [0], [0], [1], [0, 0, 1, 1], [], []>} : vector<8x16xbf16>, vector<16x128xbf16>, vector<8x128xf32> -> vector<8x128xf32>
    %534 = arith.addf %527, %533 : vector<8x128xf32>
    %535 = vector.extract_strided_slice %529 {offsets = [1, 0], sizes = [8, 16], strides = [1, 1]} : vector<9x16xbf16> to vector<8x16xbf16>
    %c1_466 = arith.constant 1 : index
    %c0_467 = arith.constant 0 : index
    %c0_468 = arith.constant 0 : index
    %536 = vector.load %arg2[%c1_466, %c0_467, %c0_468] : memref<4x16x128xbf16, #tpu.memory_space<vmem>>, vector<1x16x128xbf16>
    %537 = vector.shape_cast %536 : vector<1x16x128xbf16> to vector<16x128xbf16>
    %cst_469 = arith.constant dense<0.000000e+00> : vector<8x128xf32>
    %538 = tpu.matmul %535, %537, %cst_469 {dimension_numbers = #tpu.dot_dimension_numbers<[1], [0], [0], [1], [0, 0, 1, 1], [], []>} : vector<8x16xbf16>, vector<16x128xbf16>, vector<8x128xf32> -> vector<8x128xf32>
    %539 = arith.addf %534, %538 : vector<8x128xf32>
    %c1_470 = arith.constant 1 : index
    %c8_471 = arith.constant 8 : index
    %c0_472 = arith.constant 0 : index
    %c0_473 = arith.constant 0 : index
    %540 = vector.load %arg1[%c1_470, %c8_471, %c0_472, %c0_473] : memref<2x9x9x16xbf16, #tpu.memory_space<vmem>>, vector<1x1x9x16xbf16>
    %541 = vector.shape_cast %540 : vector<1x1x9x16xbf16> to vector<9x16xbf16>
    %542 = vector.extract_strided_slice %541 {offsets = [0, 0], sizes = [8, 16], strides = [1, 1]} : vector<9x16xbf16> to vector<8x16xbf16>
    %c2_474 = arith.constant 2 : index
    %c0_475 = arith.constant 0 : index
    %c0_476 = arith.constant 0 : index
    %543 = vector.load %arg2[%c2_474, %c0_475, %c0_476] : memref<4x16x128xbf16, #tpu.memory_space<vmem>>, vector<1x16x128xbf16>
    %544 = vector.shape_cast %543 : vector<1x16x128xbf16> to vector<16x128xbf16>
    %cst_477 = arith.constant dense<0.000000e+00> : vector<8x128xf32>
    %545 = tpu.matmul %542, %544, %cst_477 {dimension_numbers = #tpu.dot_dimension_numbers<[1], [0], [0], [1], [0, 0, 1, 1], [], []>} : vector<8x16xbf16>, vector<16x128xbf16>, vector<8x128xf32> -> vector<8x128xf32>
    %546 = arith.addf %539, %545 : vector<8x128xf32>
    %547 = vector.extract_strided_slice %541 {offsets = [1, 0], sizes = [8, 16], strides = [1, 1]} : vector<9x16xbf16> to vector<8x16xbf16>
    %c3_478 = arith.constant 3 : index
    %c0_479 = arith.constant 0 : index
    %c0_480 = arith.constant 0 : index
    %548 = vector.load %arg2[%c3_478, %c0_479, %c0_480] : memref<4x16x128xbf16, #tpu.memory_space<vmem>>, vector<1x16x128xbf16>
    %549 = vector.shape_cast %548 : vector<1x16x128xbf16> to vector<16x128xbf16>
    %cst_481 = arith.constant dense<0.000000e+00> : vector<8x128xf32>
    %550 = tpu.matmul %547, %549, %cst_481 {dimension_numbers = #tpu.dot_dimension_numbers<[1], [0], [0], [1], [0, 0, 1, 1], [], []>} : vector<8x16xbf16>, vector<16x128xbf16>, vector<8x128xf32> -> vector<8x128xf32>
    %551 = arith.addf %546, %550 : vector<8x128xf32>
    %c1_482 = arith.constant 1 : index
    %c7_483 = arith.constant 7 : index
    %c0_484 = arith.constant 0 : index
    %c0_485 = arith.constant 0 : index
    %552 = vector.load %arg5[%c1_482, %c7_483, %c0_484, %c0_485] : memref<2x8x8x128xf32, #tpu.memory_space<vmem>>, vector<1x1x8x128xf32>
    %553 = vector.shape_cast %552 : vector<1x1x8x128xf32> to vector<8x128xf32>
    %554 = vector.shape_cast %551 : vector<8x128xf32> to vector<1x1x8x128xf32>
    tpu.vector_store %arg5[%c1_482, %c7_483, %c0_484, %c0_485], %554 {strides = array<i32>} : memref<2x8x8x128xf32, #tpu.memory_space<vmem>>, vector<1x1x8x128xf32>,
    %cst_486 = arith.constant dense<0.000000e+00> : vector<128xf32>
    %555 = vector.multi_reduction <add>, %551, %cst_486 [0] : vector<8x128xf32> to vector<128xf32>
    %556 = vector.shape_cast %555 : vector<128xf32> to vector<1x128xf32>
    %557 = arith.addf %522, %556 : vector<1x128xf32>
    %558 = arith.mulf %551, %551 : vector<8x128xf32>
    %cst_487 = arith.constant dense<0.000000e+00> : vector<128xf32>
    %559 = vector.multi_reduction <add>, %558, %cst_487 [0] : vector<8x128xf32> to vector<128xf32>
    %560 = vector.shape_cast %559 : vector<128xf32> to vector<1x128xf32>
    %561 = arith.addf %526, %560 : vector<1x128xf32>
    %cst_488 = arith.constant 1.280000e+02 : f32
    %562 = vector.broadcast %cst_488 : f32 to vector<1x128xf32>
    %563 = arith.divf %557, %562 : vector<1x128xf32>
    %cst_489 = arith.constant 1.280000e+02 : f32
    %564 = vector.broadcast %cst_489 : f32 to vector<1x128xf32>
    %565 = arith.divf %561, %564 : vector<1x128xf32>
    %566 = arith.mulf %563, %563 : vector<1x128xf32>
    %567 = arith.subf %565, %566 : vector<1x128xf32>
    %cst_490 = arith.constant 0.000000e+00 : f32
    %568 = vector.broadcast %cst_490 : f32 to vector<1x128xf32>
    %569 = arith.maximumf %567, %568 : vector<1x128xf32>
    %c0_491 = arith.constant 0 : index
    %c0_492 = arith.constant 0 : index
    %570 = vector.load %arg3[%c0_491, %c0_492] : memref<1x128xf32, #tpu.memory_space<vmem>>, vector<1x128xf32>
    %cst_493 = arith.constant 9.99999974E-6 : f32
    %571 = vector.broadcast %cst_493 : f32 to vector<1x128xf32>
    %572 = arith.addf %569, %571 : vector<1x128xf32>
    %573 = math.rsqrt %572 : vector<1x128xf32>
    %574 = arith.mulf %570, %573 : vector<1x128xf32>
    %c0_494 = arith.constant 0 : index
    %c0_495 = arith.constant 0 : index
    %575 = vector.load %arg4[%c0_494, %c0_495] : memref<1x128xf32, #tpu.memory_space<vmem>>, vector<1x128xf32>
    %576 = arith.mulf %563, %574 : vector<1x128xf32>
    %577 = arith.subf %575, %576 : vector<1x128xf32>
    %c0_496 = arith.constant 0 : index
    %c0_497 = arith.constant 0 : index
    %c0_498 = arith.constant 0 : index
    %c0_499 = arith.constant 0 : index
    %578 = vector.load %arg5[%c0_496, %c0_497, %c0_498, %c0_499] : memref<2x8x8x128xf32, #tpu.memory_space<vmem>>, vector<1x1x8x128xf32>
    %579 = vector.shape_cast %578 : vector<1x1x8x128xf32> to vector<8x128xf32>
    %580 = vector.broadcast %574 : vector<1x128xf32> to vector<8x128xf32>
    %581 = arith.mulf %579, %580 : vector<8x128xf32>
    %582 = vector.broadcast %577 : vector<1x128xf32> to vector<8x128xf32>
    %583 = arith.addf %581, %582 : vector<8x128xf32>
    %cst_500 = arith.constant 0.000000e+00 : f32
    %584 = vector.broadcast %cst_500 : f32 to vector<8x128xf32>
    %585 = arith.maximumf %583, %584 : vector<8x128xf32>
    %c0_501 = arith.constant 0 : index
    %c0_502 = arith.constant 0 : index
    %c0_503 = arith.constant 0 : index
    %c0_504 = arith.constant 0 : index
    %586 = vector.load %arg5[%c0_501, %c0_502, %c0_503, %c0_504] : memref<2x8x8x128xf32, #tpu.memory_space<vmem>>, vector<1x1x8x128xf32>
    %587 = vector.shape_cast %586 : vector<1x1x8x128xf32> to vector<8x128xf32>
    %588 = vector.shape_cast %585 : vector<8x128xf32> to vector<1x1x8x128xf32>
    tpu.vector_store %arg5[%c0_501, %c0_502, %c0_503, %c0_504], %588 {strides = array<i32>} : memref<2x8x8x128xf32, #tpu.memory_space<vmem>>, vector<1x1x8x128xf32>,
    %c0_505 = arith.constant 0 : index
    %c1_506 = arith.constant 1 : index
    %c0_507 = arith.constant 0 : index
    %c0_508 = arith.constant 0 : index
    %589 = vector.load %arg5[%c0_505, %c1_506, %c0_507, %c0_508] : memref<2x8x8x128xf32, #tpu.memory_space<vmem>>, vector<1x1x8x128xf32>
    %590 = vector.shape_cast %589 : vector<1x1x8x128xf32> to vector<8x128xf32>
    %591 = vector.broadcast %574 : vector<1x128xf32> to vector<8x128xf32>
    %592 = arith.mulf %590, %591 : vector<8x128xf32>
    %593 = vector.broadcast %577 : vector<1x128xf32> to vector<8x128xf32>
    %594 = arith.addf %592, %593 : vector<8x128xf32>
    %cst_509 = arith.constant 0.000000e+00 : f32
    %595 = vector.broadcast %cst_509 : f32 to vector<8x128xf32>
    %596 = arith.maximumf %594, %595 : vector<8x128xf32>
    %c0_510 = arith.constant 0 : index
    %c1_511 = arith.constant 1 : index
    %c0_512 = arith.constant 0 : index
    %c0_513 = arith.constant 0 : index
    %597 = vector.load %arg5[%c0_510, %c1_511, %c0_512, %c0_513] : memref<2x8x8x128xf32, #tpu.memory_space<vmem>>, vector<1x1x8x128xf32>
    %598 = vector.shape_cast %597 : vector<1x1x8x128xf32> to vector<8x128xf32>
    %599 = vector.shape_cast %596 : vector<8x128xf32> to vector<1x1x8x128xf32>
    tpu.vector_store %arg5[%c0_510, %c1_511, %c0_512, %c0_513], %599 {strides = array<i32>} : memref<2x8x8x128xf32, #tpu.memory_space<vmem>>, vector<1x1x8x128xf32>,
    %c0_514 = arith.constant 0 : index
    %c2_515 = arith.constant 2 : index
    %c0_516 = arith.constant 0 : index
    %c0_517 = arith.constant 0 : index
    %600 = vector.load %arg5[%c0_514, %c2_515, %c0_516, %c0_517] : memref<2x8x8x128xf32, #tpu.memory_space<vmem>>, vector<1x1x8x128xf32>
    %601 = vector.shape_cast %600 : vector<1x1x8x128xf32> to vector<8x128xf32>
    %602 = vector.broadcast %574 : vector<1x128xf32> to vector<8x128xf32>
    %603 = arith.mulf %601, %602 : vector<8x128xf32>
    %604 = vector.broadcast %577 : vector<1x128xf32> to vector<8x128xf32>
    %605 = arith.addf %603, %604 : vector<8x128xf32>
    %cst_518 = arith.constant 0.000000e+00 : f32
    %606 = vector.broadcast %cst_518 : f32 to vector<8x128xf32>
    %607 = arith.maximumf %605, %606 : vector<8x128xf32>
    %c0_519 = arith.constant 0 : index
    %c2_520 = arith.constant 2 : index
    %c0_521 = arith.constant 0 : index
    %c0_522 = arith.constant 0 : index
    %608 = vector.load %arg5[%c0_519, %c2_520, %c0_521, %c0_522] : memref<2x8x8x128xf32, #tpu.memory_space<vmem>>, vector<1x1x8x128xf32>
    %609 = vector.shape_cast %608 : vector<1x1x8x128xf32> to vector<8x128xf32>
    %610 = vector.shape_cast %607 : vector<8x128xf32> to vector<1x1x8x128xf32>
    tpu.vector_store %arg5[%c0_519, %c2_520, %c0_521, %c0_522], %610 {strides = array<i32>} : memref<2x8x8x128xf32, #tpu.memory_space<vmem>>, vector<1x1x8x128xf32>,
    %c0_523 = arith.constant 0 : index
    %c3_524 = arith.constant 3 : index
    %c0_525 = arith.constant 0 : index
    %c0_526 = arith.constant 0 : index
    %611 = vector.load %arg5[%c0_523, %c3_524, %c0_525, %c0_526] : memref<2x8x8x128xf32, #tpu.memory_space<vmem>>, vector<1x1x8x128xf32>
    %612 = vector.shape_cast %611 : vector<1x1x8x128xf32> to vector<8x128xf32>
    %613 = vector.broadcast %574 : vector<1x128xf32> to vector<8x128xf32>
    %614 = arith.mulf %612, %613 : vector<8x128xf32>
    %615 = vector.broadcast %577 : vector<1x128xf32> to vector<8x128xf32>
    %616 = arith.addf %614, %615 : vector<8x128xf32>
    %cst_527 = arith.constant 0.000000e+00 : f32
    %617 = vector.broadcast %cst_527 : f32 to vector<8x128xf32>
    %618 = arith.maximumf %616, %617 : vector<8x128xf32>
    %c0_528 = arith.constant 0 : index
    %c3_529 = arith.constant 3 : index
    %c0_530 = arith.constant 0 : index
    %c0_531 = arith.constant 0 : index
    %619 = vector.load %arg5[%c0_528, %c3_529, %c0_530, %c0_531] : memref<2x8x8x128xf32, #tpu.memory_space<vmem>>, vector<1x1x8x128xf32>
    %620 = vector.shape_cast %619 : vector<1x1x8x128xf32> to vector<8x128xf32>
    %621 = vector.shape_cast %618 : vector<8x128xf32> to vector<1x1x8x128xf32>
    tpu.vector_store %arg5[%c0_528, %c3_529, %c0_530, %c0_531], %621 {strides = array<i32>} : memref<2x8x8x128xf32, #tpu.memory_space<vmem>>, vector<1x1x8x128xf32>,
    %c0_532 = arith.constant 0 : index
    %c4_533 = arith.constant 4 : index
    %c0_534 = arith.constant 0 : index
    %c0_535 = arith.constant 0 : index
    %622 = vector.load %arg5[%c0_532, %c4_533, %c0_534, %c0_535] : memref<2x8x8x128xf32, #tpu.memory_space<vmem>>, vector<1x1x8x128xf32>
    %623 = vector.shape_cast %622 : vector<1x1x8x128xf32> to vector<8x128xf32>
    %624 = vector.broadcast %574 : vector<1x128xf32> to vector<8x128xf32>
    %625 = arith.mulf %623, %624 : vector<8x128xf32>
    %626 = vector.broadcast %577 : vector<1x128xf32> to vector<8x128xf32>
    %627 = arith.addf %625, %626 : vector<8x128xf32>
    %cst_536 = arith.constant 0.000000e+00 : f32
    %628 = vector.broadcast %cst_536 : f32 to vector<8x128xf32>
    %629 = arith.maximumf %627, %628 : vector<8x128xf32>
    %c0_537 = arith.constant 0 : index
    %c4_538 = arith.constant 4 : index
    %c0_539 = arith.constant 0 : index
    %c0_540 = arith.constant 0 : index
    %630 = vector.load %arg5[%c0_537, %c4_538, %c0_539, %c0_540] : memref<2x8x8x128xf32, #tpu.memory_space<vmem>>, vector<1x1x8x128xf32>
    %631 = vector.shape_cast %630 : vector<1x1x8x128xf32> to vector<8x128xf32>
    %632 = vector.shape_cast %629 : vector<8x128xf32> to vector<1x1x8x128xf32>
    tpu.vector_store %arg5[%c0_537, %c4_538, %c0_539, %c0_540], %632 {strides = array<i32>} : memref<2x8x8x128xf32, #tpu.memory_space<vmem>>, vector<1x1x8x128xf32>,
    %c0_541 = arith.constant 0 : index
    %c5_542 = arith.constant 5 : index
    %c0_543 = arith.constant 0 : index
    %c0_544 = arith.constant 0 : index
    %633 = vector.load %arg5[%c0_541, %c5_542, %c0_543, %c0_544] : memref<2x8x8x128xf32, #tpu.memory_space<vmem>>, vector<1x1x8x128xf32>
    %634 = vector.shape_cast %633 : vector<1x1x8x128xf32> to vector<8x128xf32>
    %635 = vector.broadcast %574 : vector<1x128xf32> to vector<8x128xf32>
    %636 = arith.mulf %634, %635 : vector<8x128xf32>
    %637 = vector.broadcast %577 : vector<1x128xf32> to vector<8x128xf32>
    %638 = arith.addf %636, %637 : vector<8x128xf32>
    %cst_545 = arith.constant 0.000000e+00 : f32
    %639 = vector.broadcast %cst_545 : f32 to vector<8x128xf32>
    %640 = arith.maximumf %638, %639 : vector<8x128xf32>
    %c0_546 = arith.constant 0 : index
    %c5_547 = arith.constant 5 : index
    %c0_548 = arith.constant 0 : index
    %c0_549 = arith.constant 0 : index
    %641 = vector.load %arg5[%c0_546, %c5_547, %c0_548, %c0_549] : memref<2x8x8x128xf32, #tpu.memory_space<vmem>>, vector<1x1x8x128xf32>
    %642 = vector.shape_cast %641 : vector<1x1x8x128xf32> to vector<8x128xf32>
    %643 = vector.shape_cast %640 : vector<8x128xf32> to vector<1x1x8x128xf32>
    tpu.vector_store %arg5[%c0_546, %c5_547, %c0_548, %c0_549], %643 {strides = array<i32>} : memref<2x8x8x128xf32, #tpu.memory_space<vmem>>, vector<1x1x8x128xf32>,
    %c0_550 = arith.constant 0 : index
    %c6_551 = arith.constant 6 : index
    %c0_552 = arith.constant 0 : index
    %c0_553 = arith.constant 0 : index
    %644 = vector.load %arg5[%c0_550, %c6_551, %c0_552, %c0_553] : memref<2x8x8x128xf32, #tpu.memory_space<vmem>>, vector<1x1x8x128xf32>
    %645 = vector.shape_cast %644 : vector<1x1x8x128xf32> to vector<8x128xf32>
    %646 = vector.broadcast %574 : vector<1x128xf32> to vector<8x128xf32>
    %647 = arith.mulf %645, %646 : vector<8x128xf32>
    %648 = vector.broadcast %577 : vector<1x128xf32> to vector<8x128xf32>
    %649 = arith.addf %647, %648 : vector<8x128xf32>
    %cst_554 = arith.constant 0.000000e+00 : f32
    %650 = vector.broadcast %cst_554 : f32 to vector<8x128xf32>
    %651 = arith.maximumf %649, %650 : vector<8x128xf32>
    %c0_555 = arith.constant 0 : index
    %c6_556 = arith.constant 6 : index
    %c0_557 = arith.constant 0 : index
    %c0_558 = arith.constant 0 : index
    %652 = vector.load %arg5[%c0_555, %c6_556, %c0_557, %c0_558] : memref<2x8x8x128xf32, #tpu.memory_space<vmem>>, vector<1x1x8x128xf32>
    %653 = vector.shape_cast %652 : vector<1x1x8x128xf32> to vector<8x128xf32>
    %654 = vector.shape_cast %651 : vector<8x128xf32> to vector<1x1x8x128xf32>
    tpu.vector_store %arg5[%c0_555, %c6_556, %c0_557, %c0_558], %654 {strides = array<i32>} : memref<2x8x8x128xf32, #tpu.memory_space<vmem>>, vector<1x1x8x128xf32>,
    %c0_559 = arith.constant 0 : index
    %c7_560 = arith.constant 7 : index
    %c0_561 = arith.constant 0 : index
    %c0_562 = arith.constant 0 : index
    %655 = vector.load %arg5[%c0_559, %c7_560, %c0_561, %c0_562] : memref<2x8x8x128xf32, #tpu.memory_space<vmem>>, vector<1x1x8x128xf32>
    %656 = vector.shape_cast %655 : vector<1x1x8x128xf32> to vector<8x128xf32>
    %657 = vector.broadcast %574 : vector<1x128xf32> to vector<8x128xf32>
    %658 = arith.mulf %656, %657 : vector<8x128xf32>
    %659 = vector.broadcast %577 : vector<1x128xf32> to vector<8x128xf32>
    %660 = arith.addf %658, %659 : vector<8x128xf32>
    %cst_563 = arith.constant 0.000000e+00 : f32
    %661 = vector.broadcast %cst_563 : f32 to vector<8x128xf32>
    %662 = arith.maximumf %660, %661 : vector<8x128xf32>
    %c0_564 = arith.constant 0 : index
    %c7_565 = arith.constant 7 : index
    %c0_566 = arith.constant 0 : index
    %c0_567 = arith.constant 0 : index
    %663 = vector.load %arg5[%c0_564, %c7_565, %c0_566, %c0_567] : memref<2x8x8x128xf32, #tpu.memory_space<vmem>>, vector<1x1x8x128xf32>
    %664 = vector.shape_cast %663 : vector<1x1x8x128xf32> to vector<8x128xf32>
    %665 = vector.shape_cast %662 : vector<8x128xf32> to vector<1x1x8x128xf32>
    tpu.vector_store %arg5[%c0_564, %c7_565, %c0_566, %c0_567], %665 {strides = array<i32>} : memref<2x8x8x128xf32, #tpu.memory_space<vmem>>, vector<1x1x8x128xf32>,
    %c1_568 = arith.constant 1 : index
    %c0_569 = arith.constant 0 : index
    %c0_570 = arith.constant 0 : index
    %c0_571 = arith.constant 0 : index
    %666 = vector.load %arg5[%c1_568, %c0_569, %c0_570, %c0_571] : memref<2x8x8x128xf32, #tpu.memory_space<vmem>>, vector<1x1x8x128xf32>
    %667 = vector.shape_cast %666 : vector<1x1x8x128xf32> to vector<8x128xf32>
    %668 = vector.broadcast %574 : vector<1x128xf32> to vector<8x128xf32>
    %669 = arith.mulf %667, %668 : vector<8x128xf32>
    %670 = vector.broadcast %577 : vector<1x128xf32> to vector<8x128xf32>
    %671 = arith.addf %669, %670 : vector<8x128xf32>
    %cst_572 = arith.constant 0.000000e+00 : f32
    %672 = vector.broadcast %cst_572 : f32 to vector<8x128xf32>
    %673 = arith.maximumf %671, %672 : vector<8x128xf32>
    %c1_573 = arith.constant 1 : index
    %c0_574 = arith.constant 0 : index
    %c0_575 = arith.constant 0 : index
    %c0_576 = arith.constant 0 : index
    %674 = vector.load %arg5[%c1_573, %c0_574, %c0_575, %c0_576] : memref<2x8x8x128xf32, #tpu.memory_space<vmem>>, vector<1x1x8x128xf32>
    %675 = vector.shape_cast %674 : vector<1x1x8x128xf32> to vector<8x128xf32>
    %676 = vector.shape_cast %673 : vector<8x128xf32> to vector<1x1x8x128xf32>
    tpu.vector_store %arg5[%c1_573, %c0_574, %c0_575, %c0_576], %676 {strides = array<i32>} : memref<2x8x8x128xf32, #tpu.memory_space<vmem>>, vector<1x1x8x128xf32>,
    %c1_577 = arith.constant 1 : index
    %c1_578 = arith.constant 1 : index
    %c0_579 = arith.constant 0 : index
    %c0_580 = arith.constant 0 : index
    %677 = vector.load %arg5[%c1_577, %c1_578, %c0_579, %c0_580] : memref<2x8x8x128xf32, #tpu.memory_space<vmem>>, vector<1x1x8x128xf32>
    %678 = vector.shape_cast %677 : vector<1x1x8x128xf32> to vector<8x128xf32>
    %679 = vector.broadcast %574 : vector<1x128xf32> to vector<8x128xf32>
    %680 = arith.mulf %678, %679 : vector<8x128xf32>
    %681 = vector.broadcast %577 : vector<1x128xf32> to vector<8x128xf32>
    %682 = arith.addf %680, %681 : vector<8x128xf32>
    %cst_581 = arith.constant 0.000000e+00 : f32
    %683 = vector.broadcast %cst_581 : f32 to vector<8x128xf32>
    %684 = arith.maximumf %682, %683 : vector<8x128xf32>
    %c1_582 = arith.constant 1 : index
    %c1_583 = arith.constant 1 : index
    %c0_584 = arith.constant 0 : index
    %c0_585 = arith.constant 0 : index
    %685 = vector.load %arg5[%c1_582, %c1_583, %c0_584, %c0_585] : memref<2x8x8x128xf32, #tpu.memory_space<vmem>>, vector<1x1x8x128xf32>
    %686 = vector.shape_cast %685 : vector<1x1x8x128xf32> to vector<8x128xf32>
    %687 = vector.shape_cast %684 : vector<8x128xf32> to vector<1x1x8x128xf32>
    tpu.vector_store %arg5[%c1_582, %c1_583, %c0_584, %c0_585], %687 {strides = array<i32>} : memref<2x8x8x128xf32, #tpu.memory_space<vmem>>, vector<1x1x8x128xf32>,
    %c1_586 = arith.constant 1 : index
    %c2_587 = arith.constant 2 : index
    %c0_588 = arith.constant 0 : index
    %c0_589 = arith.constant 0 : index
    %688 = vector.load %arg5[%c1_586, %c2_587, %c0_588, %c0_589] : memref<2x8x8x128xf32, #tpu.memory_space<vmem>>, vector<1x1x8x128xf32>
    %689 = vector.shape_cast %688 : vector<1x1x8x128xf32> to vector<8x128xf32>
    %690 = vector.broadcast %574 : vector<1x128xf32> to vector<8x128xf32>
    %691 = arith.mulf %689, %690 : vector<8x128xf32>
    %692 = vector.broadcast %577 : vector<1x128xf32> to vector<8x128xf32>
    %693 = arith.addf %691, %692 : vector<8x128xf32>
    %cst_590 = arith.constant 0.000000e+00 : f32
    %694 = vector.broadcast %cst_590 : f32 to vector<8x128xf32>
    %695 = arith.maximumf %693, %694 : vector<8x128xf32>
    %c1_591 = arith.constant 1 : index
    %c2_592 = arith.constant 2 : index
    %c0_593 = arith.constant 0 : index
    %c0_594 = arith.constant 0 : index
    %696 = vector.load %arg5[%c1_591, %c2_592, %c0_593, %c0_594] : memref<2x8x8x128xf32, #tpu.memory_space<vmem>>, vector<1x1x8x128xf32>
    %697 = vector.shape_cast %696 : vector<1x1x8x128xf32> to vector<8x128xf32>
    %698 = vector.shape_cast %695 : vector<8x128xf32> to vector<1x1x8x128xf32>
    tpu.vector_store %arg5[%c1_591, %c2_592, %c0_593, %c0_594], %698 {strides = array<i32>} : memref<2x8x8x128xf32, #tpu.memory_space<vmem>>, vector<1x1x8x128xf32>,
    %c1_595 = arith.constant 1 : index
    %c3_596 = arith.constant 3 : index
    %c0_597 = arith.constant 0 : index
    %c0_598 = arith.constant 0 : index
    %699 = vector.load %arg5[%c1_595, %c3_596, %c0_597, %c0_598] : memref<2x8x8x128xf32, #tpu.memory_space<vmem>>, vector<1x1x8x128xf32>
    %700 = vector.shape_cast %699 : vector<1x1x8x128xf32> to vector<8x128xf32>
    %701 = vector.broadcast %574 : vector<1x128xf32> to vector<8x128xf32>
    %702 = arith.mulf %700, %701 : vector<8x128xf32>
    %703 = vector.broadcast %577 : vector<1x128xf32> to vector<8x128xf32>
    %704 = arith.addf %702, %703 : vector<8x128xf32>
    %cst_599 = arith.constant 0.000000e+00 : f32
    %705 = vector.broadcast %cst_599 : f32 to vector<8x128xf32>
    %706 = arith.maximumf %704, %705 : vector<8x128xf32>
    %c1_600 = arith.constant 1 : index
    %c3_601 = arith.constant 3 : index
    %c0_602 = arith.constant 0 : index
    %c0_603 = arith.constant 0 : index
    %707 = vector.load %arg5[%c1_600, %c3_601, %c0_602, %c0_603] : memref<2x8x8x128xf32, #tpu.memory_space<vmem>>, vector<1x1x8x128xf32>
    %708 = vector.shape_cast %707 : vector<1x1x8x128xf32> to vector<8x128xf32>
    %709 = vector.shape_cast %706 : vector<8x128xf32> to vector<1x1x8x128xf32>
    tpu.vector_store %arg5[%c1_600, %c3_601, %c0_602, %c0_603], %709 {strides = array<i32>} : memref<2x8x8x128xf32, #tpu.memory_space<vmem>>, vector<1x1x8x128xf32>,
    %c1_604 = arith.constant 1 : index
    %c4_605 = arith.constant 4 : index
    %c0_606 = arith.constant 0 : index
    %c0_607 = arith.constant 0 : index
    %710 = vector.load %arg5[%c1_604, %c4_605, %c0_606, %c0_607] : memref<2x8x8x128xf32, #tpu.memory_space<vmem>>, vector<1x1x8x128xf32>
    %711 = vector.shape_cast %710 : vector<1x1x8x128xf32> to vector<8x128xf32>
    %712 = vector.broadcast %574 : vector<1x128xf32> to vector<8x128xf32>
    %713 = arith.mulf %711, %712 : vector<8x128xf32>
    %714 = vector.broadcast %577 : vector<1x128xf32> to vector<8x128xf32>
    %715 = arith.addf %713, %714 : vector<8x128xf32>
    %cst_608 = arith.constant 0.000000e+00 : f32
    %716 = vector.broadcast %cst_608 : f32 to vector<8x128xf32>
    %717 = arith.maximumf %715, %716 : vector<8x128xf32>
    %c1_609 = arith.constant 1 : index
    %c4_610 = arith.constant 4 : index
    %c0_611 = arith.constant 0 : index
    %c0_612 = arith.constant 0 : index
    %718 = vector.load %arg5[%c1_609, %c4_610, %c0_611, %c0_612] : memref<2x8x8x128xf32, #tpu.memory_space<vmem>>, vector<1x1x8x128xf32>
    %719 = vector.shape_cast %718 : vector<1x1x8x128xf32> to vector<8x128xf32>
    %720 = vector.shape_cast %717 : vector<8x128xf32> to vector<1x1x8x128xf32>
    tpu.vector_store %arg5[%c1_609, %c4_610, %c0_611, %c0_612], %720 {strides = array<i32>} : memref<2x8x8x128xf32, #tpu.memory_space<vmem>>, vector<1x1x8x128xf32>,
    %c1_613 = arith.constant 1 : index
    %c5_614 = arith.constant 5 : index
    %c0_615 = arith.constant 0 : index
    %c0_616 = arith.constant 0 : index
    %721 = vector.load %arg5[%c1_613, %c5_614, %c0_615, %c0_616] : memref<2x8x8x128xf32, #tpu.memory_space<vmem>>, vector<1x1x8x128xf32>
    %722 = vector.shape_cast %721 : vector<1x1x8x128xf32> to vector<8x128xf32>
    %723 = vector.broadcast %574 : vector<1x128xf32> to vector<8x128xf32>
    %724 = arith.mulf %722, %723 : vector<8x128xf32>
    %725 = vector.broadcast %577 : vector<1x128xf32> to vector<8x128xf32>
    %726 = arith.addf %724, %725 : vector<8x128xf32>
    %cst_617 = arith.constant 0.000000e+00 : f32
    %727 = vector.broadcast %cst_617 : f32 to vector<8x128xf32>
    %728 = arith.maximumf %726, %727 : vector<8x128xf32>
    %c1_618 = arith.constant 1 : index
    %c5_619 = arith.constant 5 : index
    %c0_620 = arith.constant 0 : index
    %c0_621 = arith.constant 0 : index
    %729 = vector.load %arg5[%c1_618, %c5_619, %c0_620, %c0_621] : memref<2x8x8x128xf32, #tpu.memory_space<vmem>>, vector<1x1x8x128xf32>
    %730 = vector.shape_cast %729 : vector<1x1x8x128xf32> to vector<8x128xf32>
    %731 = vector.shape_cast %728 : vector<8x128xf32> to vector<1x1x8x128xf32>
    tpu.vector_store %arg5[%c1_618, %c5_619, %c0_620, %c0_621], %731 {strides = array<i32>} : memref<2x8x8x128xf32, #tpu.memory_space<vmem>>, vector<1x1x8x128xf32>,
    %c1_622 = arith.constant 1 : index
    %c6_623 = arith.constant 6 : index
    %c0_624 = arith.constant 0 : index
    %c0_625 = arith.constant 0 : index
    %732 = vector.load %arg5[%c1_622, %c6_623, %c0_624, %c0_625] : memref<2x8x8x128xf32, #tpu.memory_space<vmem>>, vector<1x1x8x128xf32>
    %733 = vector.shape_cast %732 : vector<1x1x8x128xf32> to vector<8x128xf32>
    %734 = vector.broadcast %574 : vector<1x128xf32> to vector<8x128xf32>
    %735 = arith.mulf %733, %734 : vector<8x128xf32>
    %736 = vector.broadcast %577 : vector<1x128xf32> to vector<8x128xf32>
    %737 = arith.addf %735, %736 : vector<8x128xf32>
    %cst_626 = arith.constant 0.000000e+00 : f32
    %738 = vector.broadcast %cst_626 : f32 to vector<8x128xf32>
    %739 = arith.maximumf %737, %738 : vector<8x128xf32>
    %c1_627 = arith.constant 1 : index
    %c6_628 = arith.constant 6 : index
    %c0_629 = arith.constant 0 : index
    %c0_630 = arith.constant 0 : index
    %740 = vector.load %arg5[%c1_627, %c6_628, %c0_629, %c0_630] : memref<2x8x8x128xf32, #tpu.memory_space<vmem>>, vector<1x1x8x128xf32>
    %741 = vector.shape_cast %740 : vector<1x1x8x128xf32> to vector<8x128xf32>
    %742 = vector.shape_cast %739 : vector<8x128xf32> to vector<1x1x8x128xf32>
    tpu.vector_store %arg5[%c1_627, %c6_628, %c0_629, %c0_630], %742 {strides = array<i32>} : memref<2x8x8x128xf32, #tpu.memory_space<vmem>>, vector<1x1x8x128xf32>,
    %c1_631 = arith.constant 1 : index
    %c7_632 = arith.constant 7 : index
    %c0_633 = arith.constant 0 : index
    %c0_634 = arith.constant 0 : index
    %743 = vector.load %arg5[%c1_631, %c7_632, %c0_633, %c0_634] : memref<2x8x8x128xf32, #tpu.memory_space<vmem>>, vector<1x1x8x128xf32>
    %744 = vector.shape_cast %743 : vector<1x1x8x128xf32> to vector<8x128xf32>
    %745 = vector.broadcast %574 : vector<1x128xf32> to vector<8x128xf32>
    %746 = arith.mulf %744, %745 : vector<8x128xf32>
    %747 = vector.broadcast %577 : vector<1x128xf32> to vector<8x128xf32>
    %748 = arith.addf %746, %747 : vector<8x128xf32>
    %cst_635 = arith.constant 0.000000e+00 : f32
    %749 = vector.broadcast %cst_635 : f32 to vector<8x128xf32>
    %750 = arith.maximumf %748, %749 : vector<8x128xf32>
    %c1_636 = arith.constant 1 : index
    %c7_637 = arith.constant 7 : index
    %c0_638 = arith.constant 0 : index
    %c0_639 = arith.constant 0 : index
    %751 = vector.load %arg5[%c1_636, %c7_637, %c0_638, %c0_639] : memref<2x8x8x128xf32, #tpu.memory_space<vmem>>, vector<1x1x8x128xf32>
    %752 = vector.shape_cast %751 : vector<1x1x8x128xf32> to vector<8x128xf32>
    %753 = vector.shape_cast %750 : vector<8x128xf32> to vector<1x1x8x128xf32>
    tpu.vector_store %arg5[%c1_636, %c7_637, %c0_638, %c0_639], %753 {strides = array<i32>} : memref<2x8x8x128xf32, #tpu.memory_space<vmem>>, vector<1x1x8x128xf32>,
    return
  }
  func.func @transform_0(%arg0: i32) -> (i32, i32, i32, i32) {
    %c0_i32 = arith.constant 0 : i32
    %c0_i32_0 = arith.constant 0 : i32
    %c0_i32_1 = arith.constant 0 : i32
    %c0_i32_2 = arith.constant 0 : i32
    %c0_i32_3 = arith.constant 0 : i32
    return %c0_i32, %c0_i32_0, %c0_i32_1, %c0_i32_2 : i32, i32, i32, i32
  }
  func.func @transform_1(%arg0: i32) -> (i32, i32, i32) {
    %c0_i32 = arith.constant 0 : i32
    %c0_i32_0 = arith.constant 0 : i32
    %c0_i32_1 = arith.constant 0 : i32
    %c0_i32_2 = arith.constant 0 : i32
    return %c0_i32, %c0_i32_0, %c0_i32_1 : i32, i32, i32
  }
  func.func @transform_2(%arg0: i32) -> (i32, i32) {
    %c0_i32 = arith.constant 0 : i32
    %c0_i32_0 = arith.constant 0 : i32
    %c0_i32_1 = arith.constant 0 : i32
    return %c0_i32, %c0_i32_0 : i32, i32
  }
  func.func @transform_3(%arg0: i32) -> (i32, i32) {
    %c0_i32 = arith.constant 0 : i32
    %c0_i32_0 = arith.constant 0 : i32
    %c0_i32_1 = arith.constant 0 : i32
    return %c0_i32, %c0_i32_0 : i32, i32
  }
  func.func @transform_4(%arg0: i32) -> (i32, i32, i32, i32) {
    %c0_i32 = arith.constant 0 : i32
    %c0_i32_0 = arith.constant 0 : i32
    %c0_i32_1 = arith.constant 0 : i32
    %c0_i32_2 = arith.constant 0 : i32
    %c0_i32_3 = arith.constant 0 : i32
    return %c0_i32, %c0_i32_0, %c0_i32_1, %c0_i32_2 : i32, i32, i32, i32
  }
}

module attributes {stable_mosaic.version = 11 : i64} {
  func.func @_fused_conv_bn_relu_kernel(%arg0: i32, %arg1: memref<2x5x5x192xbf16, #tpu.memory_space<vmem>>, %arg2: memref<4x192x128xbf16, #tpu.memory_space<vmem>>, %arg3: memref<1x128xf32, #tpu.memory_space<vmem>>, %arg4: memref<1x128xf32, #tpu.memory_space<vmem>>, %arg5: memref<2x4x4x128xf32, #tpu.memory_space<vmem>>) attributes {dimension_semantics = [#tpu.dimension_semantics<arbitrary>], iteration_bounds = array<i64: 1>, scalar_prefetch = 0 : i64, scratch_operands = 0 : i64, tpu.core_type = #tpu.core_type<tc>, window_params = [{pipeline_mode = #tpu.pipeline_mode<synchronous>, transform_indices = @transform_0, window_bounds = array<i64: 2, 5, 5, 192>}, {pipeline_mode = #tpu.pipeline_mode<synchronous>, transform_indices = @transform_1, window_bounds = array<i64: 4, 192, 128>}, {pipeline_mode = #tpu.pipeline_mode<synchronous>, transform_indices = @transform_2, window_bounds = array<i64: 1, 128>}, {pipeline_mode = #tpu.pipeline_mode<synchronous>, transform_indices = @transform_3, window_bounds = array<i64: 1, 128>}, {pipeline_mode = #tpu.pipeline_mode<synchronous>, transform_indices = @transform_4, window_bounds = array<i64: 2, 4, 4, 128>}]} {
    %cst = arith.constant 0.000000e+00 : f32
    %0 = vector.broadcast %cst : f32 to vector<1x128xf32>
    %cst_0 = arith.constant 0.000000e+00 : f32
    %1 = vector.broadcast %cst_0 : f32 to vector<1x128xf32>
    %cst_1 = arith.constant 0.000000e+00 : f32
    %2 = vector.broadcast %cst_1 : f32 to vector<4x128xf32>
    %c0 = arith.constant 0 : index
    %c0_2 = arith.constant 0 : index
    %c0_3 = arith.constant 0 : index
    %c0_4 = arith.constant 0 : index
    %3 = vector.load %arg1[%c0, %c0_2, %c0_3, %c0_4] : memref<2x5x5x192xbf16, #tpu.memory_space<vmem>>, vector<1x1x5x192xbf16>
    %4 = vector.shape_cast %3 : vector<1x1x5x192xbf16> to vector<5x192xbf16>
    %5 = vector.extract_strided_slice %4 {offsets = [0, 0], sizes = [4, 192], strides = [1, 1]} : vector<5x192xbf16> to vector<4x192xbf16>
    %c0_5 = arith.constant 0 : index
    %c0_6 = arith.constant 0 : index
    %c0_7 = arith.constant 0 : index
    %6 = vector.load %arg2[%c0_5, %c0_6, %c0_7] : memref<4x192x128xbf16, #tpu.memory_space<vmem>>, vector<1x192x128xbf16>
    %7 = vector.shape_cast %6 : vector<1x192x128xbf16> to vector<192x128xbf16>
    %cst_8 = arith.constant dense<0.000000e+00> : vector<4x128xf32>
    %8 = tpu.matmul %5, %7, %cst_8 {dimension_numbers = #tpu.dot_dimension_numbers<[1], [0], [0], [1], [0, 0, 1, 1], [], []>} : vector<4x192xbf16>, vector<192x128xbf16>, vector<4x128xf32> -> vector<4x128xf32>
    %9 = arith.addf %2, %8 : vector<4x128xf32>
    %10 = vector.extract_strided_slice %4 {offsets = [1, 0], sizes = [4, 192], strides = [1, 1]} : vector<5x192xbf16> to vector<4x192xbf16>
    %c1 = arith.constant 1 : index
    %c0_9 = arith.constant 0 : index
    %c0_10 = arith.constant 0 : index
    %11 = vector.load %arg2[%c1, %c0_9, %c0_10] : memref<4x192x128xbf16, #tpu.memory_space<vmem>>, vector<1x192x128xbf16>
    %12 = vector.shape_cast %11 : vector<1x192x128xbf16> to vector<192x128xbf16>
    %cst_11 = arith.constant dense<0.000000e+00> : vector<4x128xf32>
    %13 = tpu.matmul %10, %12, %cst_11 {dimension_numbers = #tpu.dot_dimension_numbers<[1], [0], [0], [1], [0, 0, 1, 1], [], []>} : vector<4x192xbf16>, vector<192x128xbf16>, vector<4x128xf32> -> vector<4x128xf32>
    %14 = arith.addf %9, %13 : vector<4x128xf32>
    %c0_12 = arith.constant 0 : index
    %c1_13 = arith.constant 1 : index
    %c0_14 = arith.constant 0 : index
    %c0_15 = arith.constant 0 : index
    %15 = vector.load %arg1[%c0_12, %c1_13, %c0_14, %c0_15] : memref<2x5x5x192xbf16, #tpu.memory_space<vmem>>, vector<1x1x5x192xbf16>
    %16 = vector.shape_cast %15 : vector<1x1x5x192xbf16> to vector<5x192xbf16>
    %17 = vector.extract_strided_slice %16 {offsets = [0, 0], sizes = [4, 192], strides = [1, 1]} : vector<5x192xbf16> to vector<4x192xbf16>
    %c2 = arith.constant 2 : index
    %c0_16 = arith.constant 0 : index
    %c0_17 = arith.constant 0 : index
    %18 = vector.load %arg2[%c2, %c0_16, %c0_17] : memref<4x192x128xbf16, #tpu.memory_space<vmem>>, vector<1x192x128xbf16>
    %19 = vector.shape_cast %18 : vector<1x192x128xbf16> to vector<192x128xbf16>
    %cst_18 = arith.constant dense<0.000000e+00> : vector<4x128xf32>
    %20 = tpu.matmul %17, %19, %cst_18 {dimension_numbers = #tpu.dot_dimension_numbers<[1], [0], [0], [1], [0, 0, 1, 1], [], []>} : vector<4x192xbf16>, vector<192x128xbf16>, vector<4x128xf32> -> vector<4x128xf32>
    %21 = arith.addf %14, %20 : vector<4x128xf32>
    %22 = vector.extract_strided_slice %16 {offsets = [1, 0], sizes = [4, 192], strides = [1, 1]} : vector<5x192xbf16> to vector<4x192xbf16>
    %c3 = arith.constant 3 : index
    %c0_19 = arith.constant 0 : index
    %c0_20 = arith.constant 0 : index
    %23 = vector.load %arg2[%c3, %c0_19, %c0_20] : memref<4x192x128xbf16, #tpu.memory_space<vmem>>, vector<1x192x128xbf16>
    %24 = vector.shape_cast %23 : vector<1x192x128xbf16> to vector<192x128xbf16>
    %cst_21 = arith.constant dense<0.000000e+00> : vector<4x128xf32>
    %25 = tpu.matmul %22, %24, %cst_21 {dimension_numbers = #tpu.dot_dimension_numbers<[1], [0], [0], [1], [0, 0, 1, 1], [], []>} : vector<4x192xbf16>, vector<192x128xbf16>, vector<4x128xf32> -> vector<4x128xf32>
    %26 = arith.addf %21, %25 : vector<4x128xf32>
    %c0_22 = arith.constant 0 : index
    %c0_23 = arith.constant 0 : index
    %c0_24 = arith.constant 0 : index
    %c0_25 = arith.constant 0 : index
    %27 = vector.load %arg5[%c0_22, %c0_23, %c0_24, %c0_25] : memref<2x4x4x128xf32, #tpu.memory_space<vmem>>, vector<1x1x4x128xf32>
    %28 = vector.shape_cast %27 : vector<1x1x4x128xf32> to vector<4x128xf32>
    %29 = vector.shape_cast %26 : vector<4x128xf32> to vector<1x1x4x128xf32>
    tpu.vector_store %arg5[%c0_22, %c0_23, %c0_24, %c0_25], %29 {strides = array<i32>} : memref<2x4x4x128xf32, #tpu.memory_space<vmem>>, vector<1x1x4x128xf32>,
    %cst_26 = arith.constant dense<0.000000e+00> : vector<128xf32>
    %30 = vector.multi_reduction <add>, %26, %cst_26 [0] : vector<4x128xf32> to vector<128xf32>
    %31 = vector.shape_cast %30 : vector<128xf32> to vector<1x128xf32>
    %32 = arith.addf %0, %31 : vector<1x128xf32>
    %33 = arith.mulf %26, %26 : vector<4x128xf32>
    %cst_27 = arith.constant dense<0.000000e+00> : vector<128xf32>
    %34 = vector.multi_reduction <add>, %33, %cst_27 [0] : vector<4x128xf32> to vector<128xf32>
    %35 = vector.shape_cast %34 : vector<128xf32> to vector<1x128xf32>
    %36 = arith.addf %1, %35 : vector<1x128xf32>
    %cst_28 = arith.constant 0.000000e+00 : f32
    %37 = vector.broadcast %cst_28 : f32 to vector<4x128xf32>
    %c0_29 = arith.constant 0 : index
    %c1_30 = arith.constant 1 : index
    %c0_31 = arith.constant 0 : index
    %c0_32 = arith.constant 0 : index
    %38 = vector.load %arg1[%c0_29, %c1_30, %c0_31, %c0_32] : memref<2x5x5x192xbf16, #tpu.memory_space<vmem>>, vector<1x1x5x192xbf16>
    %39 = vector.shape_cast %38 : vector<1x1x5x192xbf16> to vector<5x192xbf16>
    %40 = vector.extract_strided_slice %39 {offsets = [0, 0], sizes = [4, 192], strides = [1, 1]} : vector<5x192xbf16> to vector<4x192xbf16>
    %c0_33 = arith.constant 0 : index
    %c0_34 = arith.constant 0 : index
    %c0_35 = arith.constant 0 : index
    %41 = vector.load %arg2[%c0_33, %c0_34, %c0_35] : memref<4x192x128xbf16, #tpu.memory_space<vmem>>, vector<1x192x128xbf16>
    %42 = vector.shape_cast %41 : vector<1x192x128xbf16> to vector<192x128xbf16>
    %cst_36 = arith.constant dense<0.000000e+00> : vector<4x128xf32>
    %43 = tpu.matmul %40, %42, %cst_36 {dimension_numbers = #tpu.dot_dimension_numbers<[1], [0], [0], [1], [0, 0, 1, 1], [], []>} : vector<4x192xbf16>, vector<192x128xbf16>, vector<4x128xf32> -> vector<4x128xf32>
    %44 = arith.addf %37, %43 : vector<4x128xf32>
    %45 = vector.extract_strided_slice %39 {offsets = [1, 0], sizes = [4, 192], strides = [1, 1]} : vector<5x192xbf16> to vector<4x192xbf16>
    %c1_37 = arith.constant 1 : index
    %c0_38 = arith.constant 0 : index
    %c0_39 = arith.constant 0 : index
    %46 = vector.load %arg2[%c1_37, %c0_38, %c0_39] : memref<4x192x128xbf16, #tpu.memory_space<vmem>>, vector<1x192x128xbf16>
    %47 = vector.shape_cast %46 : vector<1x192x128xbf16> to vector<192x128xbf16>
    %cst_40 = arith.constant dense<0.000000e+00> : vector<4x128xf32>
    %48 = tpu.matmul %45, %47, %cst_40 {dimension_numbers = #tpu.dot_dimension_numbers<[1], [0], [0], [1], [0, 0, 1, 1], [], []>} : vector<4x192xbf16>, vector<192x128xbf16>, vector<4x128xf32> -> vector<4x128xf32>
    %49 = arith.addf %44, %48 : vector<4x128xf32>
    %c0_41 = arith.constant 0 : index
    %c2_42 = arith.constant 2 : index
    %c0_43 = arith.constant 0 : index
    %c0_44 = arith.constant 0 : index
    %50 = vector.load %arg1[%c0_41, %c2_42, %c0_43, %c0_44] : memref<2x5x5x192xbf16, #tpu.memory_space<vmem>>, vector<1x1x5x192xbf16>
    %51 = vector.shape_cast %50 : vector<1x1x5x192xbf16> to vector<5x192xbf16>
    %52 = vector.extract_strided_slice %51 {offsets = [0, 0], sizes = [4, 192], strides = [1, 1]} : vector<5x192xbf16> to vector<4x192xbf16>
    %c2_45 = arith.constant 2 : index
    %c0_46 = arith.constant 0 : index
    %c0_47 = arith.constant 0 : index
    %53 = vector.load %arg2[%c2_45, %c0_46, %c0_47] : memref<4x192x128xbf16, #tpu.memory_space<vmem>>, vector<1x192x128xbf16>
    %54 = vector.shape_cast %53 : vector<1x192x128xbf16> to vector<192x128xbf16>
    %cst_48 = arith.constant dense<0.000000e+00> : vector<4x128xf32>
    %55 = tpu.matmul %52, %54, %cst_48 {dimension_numbers = #tpu.dot_dimension_numbers<[1], [0], [0], [1], [0, 0, 1, 1], [], []>} : vector<4x192xbf16>, vector<192x128xbf16>, vector<4x128xf32> -> vector<4x128xf32>
    %56 = arith.addf %49, %55 : vector<4x128xf32>
    %57 = vector.extract_strided_slice %51 {offsets = [1, 0], sizes = [4, 192], strides = [1, 1]} : vector<5x192xbf16> to vector<4x192xbf16>
    %c3_49 = arith.constant 3 : index
    %c0_50 = arith.constant 0 : index
    %c0_51 = arith.constant 0 : index
    %58 = vector.load %arg2[%c3_49, %c0_50, %c0_51] : memref<4x192x128xbf16, #tpu.memory_space<vmem>>, vector<1x192x128xbf16>
    %59 = vector.shape_cast %58 : vector<1x192x128xbf16> to vector<192x128xbf16>
    %cst_52 = arith.constant dense<0.000000e+00> : vector<4x128xf32>
    %60 = tpu.matmul %57, %59, %cst_52 {dimension_numbers = #tpu.dot_dimension_numbers<[1], [0], [0], [1], [0, 0, 1, 1], [], []>} : vector<4x192xbf16>, vector<192x128xbf16>, vector<4x128xf32> -> vector<4x128xf32>
    %61 = arith.addf %56, %60 : vector<4x128xf32>
    %c0_53 = arith.constant 0 : index
    %c1_54 = arith.constant 1 : index
    %c0_55 = arith.constant 0 : index
    %c0_56 = arith.constant 0 : index
    %62 = vector.load %arg5[%c0_53, %c1_54, %c0_55, %c0_56] : memref<2x4x4x128xf32, #tpu.memory_space<vmem>>, vector<1x1x4x128xf32>
    %63 = vector.shape_cast %62 : vector<1x1x4x128xf32> to vector<4x128xf32>
    %64 = vector.shape_cast %61 : vector<4x128xf32> to vector<1x1x4x128xf32>
    tpu.vector_store %arg5[%c0_53, %c1_54, %c0_55, %c0_56], %64 {strides = array<i32>} : memref<2x4x4x128xf32, #tpu.memory_space<vmem>>, vector<1x1x4x128xf32>,
    %cst_57 = arith.constant dense<0.000000e+00> : vector<128xf32>
    %65 = vector.multi_reduction <add>, %61, %cst_57 [0] : vector<4x128xf32> to vector<128xf32>
    %66 = vector.shape_cast %65 : vector<128xf32> to vector<1x128xf32>
    %67 = arith.addf %32, %66 : vector<1x128xf32>
    %68 = arith.mulf %61, %61 : vector<4x128xf32>
    %cst_58 = arith.constant dense<0.000000e+00> : vector<128xf32>
    %69 = vector.multi_reduction <add>, %68, %cst_58 [0] : vector<4x128xf32> to vector<128xf32>
    %70 = vector.shape_cast %69 : vector<128xf32> to vector<1x128xf32>
    %71 = arith.addf %36, %70 : vector<1x128xf32>
    %cst_59 = arith.constant 0.000000e+00 : f32
    %72 = vector.broadcast %cst_59 : f32 to vector<4x128xf32>
    %c0_60 = arith.constant 0 : index
    %c2_61 = arith.constant 2 : index
    %c0_62 = arith.constant 0 : index
    %c0_63 = arith.constant 0 : index
    %73 = vector.load %arg1[%c0_60, %c2_61, %c0_62, %c0_63] : memref<2x5x5x192xbf16, #tpu.memory_space<vmem>>, vector<1x1x5x192xbf16>
    %74 = vector.shape_cast %73 : vector<1x1x5x192xbf16> to vector<5x192xbf16>
    %75 = vector.extract_strided_slice %74 {offsets = [0, 0], sizes = [4, 192], strides = [1, 1]} : vector<5x192xbf16> to vector<4x192xbf16>
    %c0_64 = arith.constant 0 : index
    %c0_65 = arith.constant 0 : index
    %c0_66 = arith.constant 0 : index
    %76 = vector.load %arg2[%c0_64, %c0_65, %c0_66] : memref<4x192x128xbf16, #tpu.memory_space<vmem>>, vector<1x192x128xbf16>
    %77 = vector.shape_cast %76 : vector<1x192x128xbf16> to vector<192x128xbf16>
    %cst_67 = arith.constant dense<0.000000e+00> : vector<4x128xf32>
    %78 = tpu.matmul %75, %77, %cst_67 {dimension_numbers = #tpu.dot_dimension_numbers<[1], [0], [0], [1], [0, 0, 1, 1], [], []>} : vector<4x192xbf16>, vector<192x128xbf16>, vector<4x128xf32> -> vector<4x128xf32>
    %79 = arith.addf %72, %78 : vector<4x128xf32>
    %80 = vector.extract_strided_slice %74 {offsets = [1, 0], sizes = [4, 192], strides = [1, 1]} : vector<5x192xbf16> to vector<4x192xbf16>
    %c1_68 = arith.constant 1 : index
    %c0_69 = arith.constant 0 : index
    %c0_70 = arith.constant 0 : index
    %81 = vector.load %arg2[%c1_68, %c0_69, %c0_70] : memref<4x192x128xbf16, #tpu.memory_space<vmem>>, vector<1x192x128xbf16>
    %82 = vector.shape_cast %81 : vector<1x192x128xbf16> to vector<192x128xbf16>
    %cst_71 = arith.constant dense<0.000000e+00> : vector<4x128xf32>
    %83 = tpu.matmul %80, %82, %cst_71 {dimension_numbers = #tpu.dot_dimension_numbers<[1], [0], [0], [1], [0, 0, 1, 1], [], []>} : vector<4x192xbf16>, vector<192x128xbf16>, vector<4x128xf32> -> vector<4x128xf32>
    %84 = arith.addf %79, %83 : vector<4x128xf32>
    %c0_72 = arith.constant 0 : index
    %c3_73 = arith.constant 3 : index
    %c0_74 = arith.constant 0 : index
    %c0_75 = arith.constant 0 : index
    %85 = vector.load %arg1[%c0_72, %c3_73, %c0_74, %c0_75] : memref<2x5x5x192xbf16, #tpu.memory_space<vmem>>, vector<1x1x5x192xbf16>
    %86 = vector.shape_cast %85 : vector<1x1x5x192xbf16> to vector<5x192xbf16>
    %87 = vector.extract_strided_slice %86 {offsets = [0, 0], sizes = [4, 192], strides = [1, 1]} : vector<5x192xbf16> to vector<4x192xbf16>
    %c2_76 = arith.constant 2 : index
    %c0_77 = arith.constant 0 : index
    %c0_78 = arith.constant 0 : index
    %88 = vector.load %arg2[%c2_76, %c0_77, %c0_78] : memref<4x192x128xbf16, #tpu.memory_space<vmem>>, vector<1x192x128xbf16>
    %89 = vector.shape_cast %88 : vector<1x192x128xbf16> to vector<192x128xbf16>
    %cst_79 = arith.constant dense<0.000000e+00> : vector<4x128xf32>
    %90 = tpu.matmul %87, %89, %cst_79 {dimension_numbers = #tpu.dot_dimension_numbers<[1], [0], [0], [1], [0, 0, 1, 1], [], []>} : vector<4x192xbf16>, vector<192x128xbf16>, vector<4x128xf32> -> vector<4x128xf32>
    %91 = arith.addf %84, %90 : vector<4x128xf32>
    %92 = vector.extract_strided_slice %86 {offsets = [1, 0], sizes = [4, 192], strides = [1, 1]} : vector<5x192xbf16> to vector<4x192xbf16>
    %c3_80 = arith.constant 3 : index
    %c0_81 = arith.constant 0 : index
    %c0_82 = arith.constant 0 : index
    %93 = vector.load %arg2[%c3_80, %c0_81, %c0_82] : memref<4x192x128xbf16, #tpu.memory_space<vmem>>, vector<1x192x128xbf16>
    %94 = vector.shape_cast %93 : vector<1x192x128xbf16> to vector<192x128xbf16>
    %cst_83 = arith.constant dense<0.000000e+00> : vector<4x128xf32>
    %95 = tpu.matmul %92, %94, %cst_83 {dimension_numbers = #tpu.dot_dimension_numbers<[1], [0], [0], [1], [0, 0, 1, 1], [], []>} : vector<4x192xbf16>, vector<192x128xbf16>, vector<4x128xf32> -> vector<4x128xf32>
    %96 = arith.addf %91, %95 : vector<4x128xf32>
    %c0_84 = arith.constant 0 : index
    %c2_85 = arith.constant 2 : index
    %c0_86 = arith.constant 0 : index
    %c0_87 = arith.constant 0 : index
    %97 = vector.load %arg5[%c0_84, %c2_85, %c0_86, %c0_87] : memref<2x4x4x128xf32, #tpu.memory_space<vmem>>, vector<1x1x4x128xf32>
    %98 = vector.shape_cast %97 : vector<1x1x4x128xf32> to vector<4x128xf32>
    %99 = vector.shape_cast %96 : vector<4x128xf32> to vector<1x1x4x128xf32>
    tpu.vector_store %arg5[%c0_84, %c2_85, %c0_86, %c0_87], %99 {strides = array<i32>} : memref<2x4x4x128xf32, #tpu.memory_space<vmem>>, vector<1x1x4x128xf32>,
    %cst_88 = arith.constant dense<0.000000e+00> : vector<128xf32>
    %100 = vector.multi_reduction <add>, %96, %cst_88 [0] : vector<4x128xf32> to vector<128xf32>
    %101 = vector.shape_cast %100 : vector<128xf32> to vector<1x128xf32>
    %102 = arith.addf %67, %101 : vector<1x128xf32>
    %103 = arith.mulf %96, %96 : vector<4x128xf32>
    %cst_89 = arith.constant dense<0.000000e+00> : vector<128xf32>
    %104 = vector.multi_reduction <add>, %103, %cst_89 [0] : vector<4x128xf32> to vector<128xf32>
    %105 = vector.shape_cast %104 : vector<128xf32> to vector<1x128xf32>
    %106 = arith.addf %71, %105 : vector<1x128xf32>
    %cst_90 = arith.constant 0.000000e+00 : f32
    %107 = vector.broadcast %cst_90 : f32 to vector<4x128xf32>
    %c0_91 = arith.constant 0 : index
    %c3_92 = arith.constant 3 : index
    %c0_93 = arith.constant 0 : index
    %c0_94 = arith.constant 0 : index
    %108 = vector.load %arg1[%c0_91, %c3_92, %c0_93, %c0_94] : memref<2x5x5x192xbf16, #tpu.memory_space<vmem>>, vector<1x1x5x192xbf16>
    %109 = vector.shape_cast %108 : vector<1x1x5x192xbf16> to vector<5x192xbf16>
    %110 = vector.extract_strided_slice %109 {offsets = [0, 0], sizes = [4, 192], strides = [1, 1]} : vector<5x192xbf16> to vector<4x192xbf16>
    %c0_95 = arith.constant 0 : index
    %c0_96 = arith.constant 0 : index
    %c0_97 = arith.constant 0 : index
    %111 = vector.load %arg2[%c0_95, %c0_96, %c0_97] : memref<4x192x128xbf16, #tpu.memory_space<vmem>>, vector<1x192x128xbf16>
    %112 = vector.shape_cast %111 : vector<1x192x128xbf16> to vector<192x128xbf16>
    %cst_98 = arith.constant dense<0.000000e+00> : vector<4x128xf32>
    %113 = tpu.matmul %110, %112, %cst_98 {dimension_numbers = #tpu.dot_dimension_numbers<[1], [0], [0], [1], [0, 0, 1, 1], [], []>} : vector<4x192xbf16>, vector<192x128xbf16>, vector<4x128xf32> -> vector<4x128xf32>
    %114 = arith.addf %107, %113 : vector<4x128xf32>
    %115 = vector.extract_strided_slice %109 {offsets = [1, 0], sizes = [4, 192], strides = [1, 1]} : vector<5x192xbf16> to vector<4x192xbf16>
    %c1_99 = arith.constant 1 : index
    %c0_100 = arith.constant 0 : index
    %c0_101 = arith.constant 0 : index
    %116 = vector.load %arg2[%c1_99, %c0_100, %c0_101] : memref<4x192x128xbf16, #tpu.memory_space<vmem>>, vector<1x192x128xbf16>
    %117 = vector.shape_cast %116 : vector<1x192x128xbf16> to vector<192x128xbf16>
    %cst_102 = arith.constant dense<0.000000e+00> : vector<4x128xf32>
    %118 = tpu.matmul %115, %117, %cst_102 {dimension_numbers = #tpu.dot_dimension_numbers<[1], [0], [0], [1], [0, 0, 1, 1], [], []>} : vector<4x192xbf16>, vector<192x128xbf16>, vector<4x128xf32> -> vector<4x128xf32>
    %119 = arith.addf %114, %118 : vector<4x128xf32>
    %c0_103 = arith.constant 0 : index
    %c4 = arith.constant 4 : index
    %c0_104 = arith.constant 0 : index
    %c0_105 = arith.constant 0 : index
    %120 = vector.load %arg1[%c0_103, %c4, %c0_104, %c0_105] : memref<2x5x5x192xbf16, #tpu.memory_space<vmem>>, vector<1x1x5x192xbf16>
    %121 = vector.shape_cast %120 : vector<1x1x5x192xbf16> to vector<5x192xbf16>
    %122 = vector.extract_strided_slice %121 {offsets = [0, 0], sizes = [4, 192], strides = [1, 1]} : vector<5x192xbf16> to vector<4x192xbf16>
    %c2_106 = arith.constant 2 : index
    %c0_107 = arith.constant 0 : index
    %c0_108 = arith.constant 0 : index
    %123 = vector.load %arg2[%c2_106, %c0_107, %c0_108] : memref<4x192x128xbf16, #tpu.memory_space<vmem>>, vector<1x192x128xbf16>
    %124 = vector.shape_cast %123 : vector<1x192x128xbf16> to vector<192x128xbf16>
    %cst_109 = arith.constant dense<0.000000e+00> : vector<4x128xf32>
    %125 = tpu.matmul %122, %124, %cst_109 {dimension_numbers = #tpu.dot_dimension_numbers<[1], [0], [0], [1], [0, 0, 1, 1], [], []>} : vector<4x192xbf16>, vector<192x128xbf16>, vector<4x128xf32> -> vector<4x128xf32>
    %126 = arith.addf %119, %125 : vector<4x128xf32>
    %127 = vector.extract_strided_slice %121 {offsets = [1, 0], sizes = [4, 192], strides = [1, 1]} : vector<5x192xbf16> to vector<4x192xbf16>
    %c3_110 = arith.constant 3 : index
    %c0_111 = arith.constant 0 : index
    %c0_112 = arith.constant 0 : index
    %128 = vector.load %arg2[%c3_110, %c0_111, %c0_112] : memref<4x192x128xbf16, #tpu.memory_space<vmem>>, vector<1x192x128xbf16>
    %129 = vector.shape_cast %128 : vector<1x192x128xbf16> to vector<192x128xbf16>
    %cst_113 = arith.constant dense<0.000000e+00> : vector<4x128xf32>
    %130 = tpu.matmul %127, %129, %cst_113 {dimension_numbers = #tpu.dot_dimension_numbers<[1], [0], [0], [1], [0, 0, 1, 1], [], []>} : vector<4x192xbf16>, vector<192x128xbf16>, vector<4x128xf32> -> vector<4x128xf32>
    %131 = arith.addf %126, %130 : vector<4x128xf32>
    %c0_114 = arith.constant 0 : index
    %c3_115 = arith.constant 3 : index
    %c0_116 = arith.constant 0 : index
    %c0_117 = arith.constant 0 : index
    %132 = vector.load %arg5[%c0_114, %c3_115, %c0_116, %c0_117] : memref<2x4x4x128xf32, #tpu.memory_space<vmem>>, vector<1x1x4x128xf32>
    %133 = vector.shape_cast %132 : vector<1x1x4x128xf32> to vector<4x128xf32>
    %134 = vector.shape_cast %131 : vector<4x128xf32> to vector<1x1x4x128xf32>
    tpu.vector_store %arg5[%c0_114, %c3_115, %c0_116, %c0_117], %134 {strides = array<i32>} : memref<2x4x4x128xf32, #tpu.memory_space<vmem>>, vector<1x1x4x128xf32>,
    %cst_118 = arith.constant dense<0.000000e+00> : vector<128xf32>
    %135 = vector.multi_reduction <add>, %131, %cst_118 [0] : vector<4x128xf32> to vector<128xf32>
    %136 = vector.shape_cast %135 : vector<128xf32> to vector<1x128xf32>
    %137 = arith.addf %102, %136 : vector<1x128xf32>
    %138 = arith.mulf %131, %131 : vector<4x128xf32>
    %cst_119 = arith.constant dense<0.000000e+00> : vector<128xf32>
    %139 = vector.multi_reduction <add>, %138, %cst_119 [0] : vector<4x128xf32> to vector<128xf32>
    %140 = vector.shape_cast %139 : vector<128xf32> to vector<1x128xf32>
    %141 = arith.addf %106, %140 : vector<1x128xf32>
    %cst_120 = arith.constant 0.000000e+00 : f32
    %142 = vector.broadcast %cst_120 : f32 to vector<4x128xf32>
    %c1_121 = arith.constant 1 : index
    %c0_122 = arith.constant 0 : index
    %c0_123 = arith.constant 0 : index
    %c0_124 = arith.constant 0 : index
    %143 = vector.load %arg1[%c1_121, %c0_122, %c0_123, %c0_124] : memref<2x5x5x192xbf16, #tpu.memory_space<vmem>>, vector<1x1x5x192xbf16>
    %144 = vector.shape_cast %143 : vector<1x1x5x192xbf16> to vector<5x192xbf16>
    %145 = vector.extract_strided_slice %144 {offsets = [0, 0], sizes = [4, 192], strides = [1, 1]} : vector<5x192xbf16> to vector<4x192xbf16>
    %c0_125 = arith.constant 0 : index
    %c0_126 = arith.constant 0 : index
    %c0_127 = arith.constant 0 : index
    %146 = vector.load %arg2[%c0_125, %c0_126, %c0_127] : memref<4x192x128xbf16, #tpu.memory_space<vmem>>, vector<1x192x128xbf16>
    %147 = vector.shape_cast %146 : vector<1x192x128xbf16> to vector<192x128xbf16>
    %cst_128 = arith.constant dense<0.000000e+00> : vector<4x128xf32>
    %148 = tpu.matmul %145, %147, %cst_128 {dimension_numbers = #tpu.dot_dimension_numbers<[1], [0], [0], [1], [0, 0, 1, 1], [], []>} : vector<4x192xbf16>, vector<192x128xbf16>, vector<4x128xf32> -> vector<4x128xf32>
    %149 = arith.addf %142, %148 : vector<4x128xf32>
    %150 = vector.extract_strided_slice %144 {offsets = [1, 0], sizes = [4, 192], strides = [1, 1]} : vector<5x192xbf16> to vector<4x192xbf16>
    %c1_129 = arith.constant 1 : index
    %c0_130 = arith.constant 0 : index
    %c0_131 = arith.constant 0 : index
    %151 = vector.load %arg2[%c1_129, %c0_130, %c0_131] : memref<4x192x128xbf16, #tpu.memory_space<vmem>>, vector<1x192x128xbf16>
    %152 = vector.shape_cast %151 : vector<1x192x128xbf16> to vector<192x128xbf16>
    %cst_132 = arith.constant dense<0.000000e+00> : vector<4x128xf32>
    %153 = tpu.matmul %150, %152, %cst_132 {dimension_numbers = #tpu.dot_dimension_numbers<[1], [0], [0], [1], [0, 0, 1, 1], [], []>} : vector<4x192xbf16>, vector<192x128xbf16>, vector<4x128xf32> -> vector<4x128xf32>
    %154 = arith.addf %149, %153 : vector<4x128xf32>
    %c1_133 = arith.constant 1 : index
    %c1_134 = arith.constant 1 : index
    %c0_135 = arith.constant 0 : index
    %c0_136 = arith.constant 0 : index
    %155 = vector.load %arg1[%c1_133, %c1_134, %c0_135, %c0_136] : memref<2x5x5x192xbf16, #tpu.memory_space<vmem>>, vector<1x1x5x192xbf16>
    %156 = vector.shape_cast %155 : vector<1x1x5x192xbf16> to vector<5x192xbf16>
    %157 = vector.extract_strided_slice %156 {offsets = [0, 0], sizes = [4, 192], strides = [1, 1]} : vector<5x192xbf16> to vector<4x192xbf16>
    %c2_137 = arith.constant 2 : index
    %c0_138 = arith.constant 0 : index
    %c0_139 = arith.constant 0 : index
    %158 = vector.load %arg2[%c2_137, %c0_138, %c0_139] : memref<4x192x128xbf16, #tpu.memory_space<vmem>>, vector<1x192x128xbf16>
    %159 = vector.shape_cast %158 : vector<1x192x128xbf16> to vector<192x128xbf16>
    %cst_140 = arith.constant dense<0.000000e+00> : vector<4x128xf32>
    %160 = tpu.matmul %157, %159, %cst_140 {dimension_numbers = #tpu.dot_dimension_numbers<[1], [0], [0], [1], [0, 0, 1, 1], [], []>} : vector<4x192xbf16>, vector<192x128xbf16>, vector<4x128xf32> -> vector<4x128xf32>
    %161 = arith.addf %154, %160 : vector<4x128xf32>
    %162 = vector.extract_strided_slice %156 {offsets = [1, 0], sizes = [4, 192], strides = [1, 1]} : vector<5x192xbf16> to vector<4x192xbf16>
    %c3_141 = arith.constant 3 : index
    %c0_142 = arith.constant 0 : index
    %c0_143 = arith.constant 0 : index
    %163 = vector.load %arg2[%c3_141, %c0_142, %c0_143] : memref<4x192x128xbf16, #tpu.memory_space<vmem>>, vector<1x192x128xbf16>
    %164 = vector.shape_cast %163 : vector<1x192x128xbf16> to vector<192x128xbf16>
    %cst_144 = arith.constant dense<0.000000e+00> : vector<4x128xf32>
    %165 = tpu.matmul %162, %164, %cst_144 {dimension_numbers = #tpu.dot_dimension_numbers<[1], [0], [0], [1], [0, 0, 1, 1], [], []>} : vector<4x192xbf16>, vector<192x128xbf16>, vector<4x128xf32> -> vector<4x128xf32>
    %166 = arith.addf %161, %165 : vector<4x128xf32>
    %c1_145 = arith.constant 1 : index
    %c0_146 = arith.constant 0 : index
    %c0_147 = arith.constant 0 : index
    %c0_148 = arith.constant 0 : index
    %167 = vector.load %arg5[%c1_145, %c0_146, %c0_147, %c0_148] : memref<2x4x4x128xf32, #tpu.memory_space<vmem>>, vector<1x1x4x128xf32>
    %168 = vector.shape_cast %167 : vector<1x1x4x128xf32> to vector<4x128xf32>
    %169 = vector.shape_cast %166 : vector<4x128xf32> to vector<1x1x4x128xf32>
    tpu.vector_store %arg5[%c1_145, %c0_146, %c0_147, %c0_148], %169 {strides = array<i32>} : memref<2x4x4x128xf32, #tpu.memory_space<vmem>>, vector<1x1x4x128xf32>,
    %cst_149 = arith.constant dense<0.000000e+00> : vector<128xf32>
    %170 = vector.multi_reduction <add>, %166, %cst_149 [0] : vector<4x128xf32> to vector<128xf32>
    %171 = vector.shape_cast %170 : vector<128xf32> to vector<1x128xf32>
    %172 = arith.addf %137, %171 : vector<1x128xf32>
    %173 = arith.mulf %166, %166 : vector<4x128xf32>
    %cst_150 = arith.constant dense<0.000000e+00> : vector<128xf32>
    %174 = vector.multi_reduction <add>, %173, %cst_150 [0] : vector<4x128xf32> to vector<128xf32>
    %175 = vector.shape_cast %174 : vector<128xf32> to vector<1x128xf32>
    %176 = arith.addf %141, %175 : vector<1x128xf32>
    %cst_151 = arith.constant 0.000000e+00 : f32
    %177 = vector.broadcast %cst_151 : f32 to vector<4x128xf32>
    %c1_152 = arith.constant 1 : index
    %c1_153 = arith.constant 1 : index
    %c0_154 = arith.constant 0 : index
    %c0_155 = arith.constant 0 : index
    %178 = vector.load %arg1[%c1_152, %c1_153, %c0_154, %c0_155] : memref<2x5x5x192xbf16, #tpu.memory_space<vmem>>, vector<1x1x5x192xbf16>
    %179 = vector.shape_cast %178 : vector<1x1x5x192xbf16> to vector<5x192xbf16>
    %180 = vector.extract_strided_slice %179 {offsets = [0, 0], sizes = [4, 192], strides = [1, 1]} : vector<5x192xbf16> to vector<4x192xbf16>
    %c0_156 = arith.constant 0 : index
    %c0_157 = arith.constant 0 : index
    %c0_158 = arith.constant 0 : index
    %181 = vector.load %arg2[%c0_156, %c0_157, %c0_158] : memref<4x192x128xbf16, #tpu.memory_space<vmem>>, vector<1x192x128xbf16>
    %182 = vector.shape_cast %181 : vector<1x192x128xbf16> to vector<192x128xbf16>
    %cst_159 = arith.constant dense<0.000000e+00> : vector<4x128xf32>
    %183 = tpu.matmul %180, %182, %cst_159 {dimension_numbers = #tpu.dot_dimension_numbers<[1], [0], [0], [1], [0, 0, 1, 1], [], []>} : vector<4x192xbf16>, vector<192x128xbf16>, vector<4x128xf32> -> vector<4x128xf32>
    %184 = arith.addf %177, %183 : vector<4x128xf32>
    %185 = vector.extract_strided_slice %179 {offsets = [1, 0], sizes = [4, 192], strides = [1, 1]} : vector<5x192xbf16> to vector<4x192xbf16>
    %c1_160 = arith.constant 1 : index
    %c0_161 = arith.constant 0 : index
    %c0_162 = arith.constant 0 : index
    %186 = vector.load %arg2[%c1_160, %c0_161, %c0_162] : memref<4x192x128xbf16, #tpu.memory_space<vmem>>, vector<1x192x128xbf16>
    %187 = vector.shape_cast %186 : vector<1x192x128xbf16> to vector<192x128xbf16>
    %cst_163 = arith.constant dense<0.000000e+00> : vector<4x128xf32>
    %188 = tpu.matmul %185, %187, %cst_163 {dimension_numbers = #tpu.dot_dimension_numbers<[1], [0], [0], [1], [0, 0, 1, 1], [], []>} : vector<4x192xbf16>, vector<192x128xbf16>, vector<4x128xf32> -> vector<4x128xf32>
    %189 = arith.addf %184, %188 : vector<4x128xf32>
    %c1_164 = arith.constant 1 : index
    %c2_165 = arith.constant 2 : index
    %c0_166 = arith.constant 0 : index
    %c0_167 = arith.constant 0 : index
    %190 = vector.load %arg1[%c1_164, %c2_165, %c0_166, %c0_167] : memref<2x5x5x192xbf16, #tpu.memory_space<vmem>>, vector<1x1x5x192xbf16>
    %191 = vector.shape_cast %190 : vector<1x1x5x192xbf16> to vector<5x192xbf16>
    %192 = vector.extract_strided_slice %191 {offsets = [0, 0], sizes = [4, 192], strides = [1, 1]} : vector<5x192xbf16> to vector<4x192xbf16>
    %c2_168 = arith.constant 2 : index
    %c0_169 = arith.constant 0 : index
    %c0_170 = arith.constant 0 : index
    %193 = vector.load %arg2[%c2_168, %c0_169, %c0_170] : memref<4x192x128xbf16, #tpu.memory_space<vmem>>, vector<1x192x128xbf16>
    %194 = vector.shape_cast %193 : vector<1x192x128xbf16> to vector<192x128xbf16>
    %cst_171 = arith.constant dense<0.000000e+00> : vector<4x128xf32>
    %195 = tpu.matmul %192, %194, %cst_171 {dimension_numbers = #tpu.dot_dimension_numbers<[1], [0], [0], [1], [0, 0, 1, 1], [], []>} : vector<4x192xbf16>, vector<192x128xbf16>, vector<4x128xf32> -> vector<4x128xf32>
    %196 = arith.addf %189, %195 : vector<4x128xf32>
    %197 = vector.extract_strided_slice %191 {offsets = [1, 0], sizes = [4, 192], strides = [1, 1]} : vector<5x192xbf16> to vector<4x192xbf16>
    %c3_172 = arith.constant 3 : index
    %c0_173 = arith.constant 0 : index
    %c0_174 = arith.constant 0 : index
    %198 = vector.load %arg2[%c3_172, %c0_173, %c0_174] : memref<4x192x128xbf16, #tpu.memory_space<vmem>>, vector<1x192x128xbf16>
    %199 = vector.shape_cast %198 : vector<1x192x128xbf16> to vector<192x128xbf16>
    %cst_175 = arith.constant dense<0.000000e+00> : vector<4x128xf32>
    %200 = tpu.matmul %197, %199, %cst_175 {dimension_numbers = #tpu.dot_dimension_numbers<[1], [0], [0], [1], [0, 0, 1, 1], [], []>} : vector<4x192xbf16>, vector<192x128xbf16>, vector<4x128xf32> -> vector<4x128xf32>
    %201 = arith.addf %196, %200 : vector<4x128xf32>
    %c1_176 = arith.constant 1 : index
    %c1_177 = arith.constant 1 : index
    %c0_178 = arith.constant 0 : index
    %c0_179 = arith.constant 0 : index
    %202 = vector.load %arg5[%c1_176, %c1_177, %c0_178, %c0_179] : memref<2x4x4x128xf32, #tpu.memory_space<vmem>>, vector<1x1x4x128xf32>
    %203 = vector.shape_cast %202 : vector<1x1x4x128xf32> to vector<4x128xf32>
    %204 = vector.shape_cast %201 : vector<4x128xf32> to vector<1x1x4x128xf32>
    tpu.vector_store %arg5[%c1_176, %c1_177, %c0_178, %c0_179], %204 {strides = array<i32>} : memref<2x4x4x128xf32, #tpu.memory_space<vmem>>, vector<1x1x4x128xf32>,
    %cst_180 = arith.constant dense<0.000000e+00> : vector<128xf32>
    %205 = vector.multi_reduction <add>, %201, %cst_180 [0] : vector<4x128xf32> to vector<128xf32>
    %206 = vector.shape_cast %205 : vector<128xf32> to vector<1x128xf32>
    %207 = arith.addf %172, %206 : vector<1x128xf32>
    %208 = arith.mulf %201, %201 : vector<4x128xf32>
    %cst_181 = arith.constant dense<0.000000e+00> : vector<128xf32>
    %209 = vector.multi_reduction <add>, %208, %cst_181 [0] : vector<4x128xf32> to vector<128xf32>
    %210 = vector.shape_cast %209 : vector<128xf32> to vector<1x128xf32>
    %211 = arith.addf %176, %210 : vector<1x128xf32>
    %cst_182 = arith.constant 0.000000e+00 : f32
    %212 = vector.broadcast %cst_182 : f32 to vector<4x128xf32>
    %c1_183 = arith.constant 1 : index
    %c2_184 = arith.constant 2 : index
    %c0_185 = arith.constant 0 : index
    %c0_186 = arith.constant 0 : index
    %213 = vector.load %arg1[%c1_183, %c2_184, %c0_185, %c0_186] : memref<2x5x5x192xbf16, #tpu.memory_space<vmem>>, vector<1x1x5x192xbf16>
    %214 = vector.shape_cast %213 : vector<1x1x5x192xbf16> to vector<5x192xbf16>
    %215 = vector.extract_strided_slice %214 {offsets = [0, 0], sizes = [4, 192], strides = [1, 1]} : vector<5x192xbf16> to vector<4x192xbf16>
    %c0_187 = arith.constant 0 : index
    %c0_188 = arith.constant 0 : index
    %c0_189 = arith.constant 0 : index
    %216 = vector.load %arg2[%c0_187, %c0_188, %c0_189] : memref<4x192x128xbf16, #tpu.memory_space<vmem>>, vector<1x192x128xbf16>
    %217 = vector.shape_cast %216 : vector<1x192x128xbf16> to vector<192x128xbf16>
    %cst_190 = arith.constant dense<0.000000e+00> : vector<4x128xf32>
    %218 = tpu.matmul %215, %217, %cst_190 {dimension_numbers = #tpu.dot_dimension_numbers<[1], [0], [0], [1], [0, 0, 1, 1], [], []>} : vector<4x192xbf16>, vector<192x128xbf16>, vector<4x128xf32> -> vector<4x128xf32>
    %219 = arith.addf %212, %218 : vector<4x128xf32>
    %220 = vector.extract_strided_slice %214 {offsets = [1, 0], sizes = [4, 192], strides = [1, 1]} : vector<5x192xbf16> to vector<4x192xbf16>
    %c1_191 = arith.constant 1 : index
    %c0_192 = arith.constant 0 : index
    %c0_193 = arith.constant 0 : index
    %221 = vector.load %arg2[%c1_191, %c0_192, %c0_193] : memref<4x192x128xbf16, #tpu.memory_space<vmem>>, vector<1x192x128xbf16>
    %222 = vector.shape_cast %221 : vector<1x192x128xbf16> to vector<192x128xbf16>
    %cst_194 = arith.constant dense<0.000000e+00> : vector<4x128xf32>
    %223 = tpu.matmul %220, %222, %cst_194 {dimension_numbers = #tpu.dot_dimension_numbers<[1], [0], [0], [1], [0, 0, 1, 1], [], []>} : vector<4x192xbf16>, vector<192x128xbf16>, vector<4x128xf32> -> vector<4x128xf32>
    %224 = arith.addf %219, %223 : vector<4x128xf32>
    %c1_195 = arith.constant 1 : index
    %c3_196 = arith.constant 3 : index
    %c0_197 = arith.constant 0 : index
    %c0_198 = arith.constant 0 : index
    %225 = vector.load %arg1[%c1_195, %c3_196, %c0_197, %c0_198] : memref<2x5x5x192xbf16, #tpu.memory_space<vmem>>, vector<1x1x5x192xbf16>
    %226 = vector.shape_cast %225 : vector<1x1x5x192xbf16> to vector<5x192xbf16>
    %227 = vector.extract_strided_slice %226 {offsets = [0, 0], sizes = [4, 192], strides = [1, 1]} : vector<5x192xbf16> to vector<4x192xbf16>
    %c2_199 = arith.constant 2 : index
    %c0_200 = arith.constant 0 : index
    %c0_201 = arith.constant 0 : index
    %228 = vector.load %arg2[%c2_199, %c0_200, %c0_201] : memref<4x192x128xbf16, #tpu.memory_space<vmem>>, vector<1x192x128xbf16>
    %229 = vector.shape_cast %228 : vector<1x192x128xbf16> to vector<192x128xbf16>
    %cst_202 = arith.constant dense<0.000000e+00> : vector<4x128xf32>
    %230 = tpu.matmul %227, %229, %cst_202 {dimension_numbers = #tpu.dot_dimension_numbers<[1], [0], [0], [1], [0, 0, 1, 1], [], []>} : vector<4x192xbf16>, vector<192x128xbf16>, vector<4x128xf32> -> vector<4x128xf32>
    %231 = arith.addf %224, %230 : vector<4x128xf32>
    %232 = vector.extract_strided_slice %226 {offsets = [1, 0], sizes = [4, 192], strides = [1, 1]} : vector<5x192xbf16> to vector<4x192xbf16>
    %c3_203 = arith.constant 3 : index
    %c0_204 = arith.constant 0 : index
    %c0_205 = arith.constant 0 : index
    %233 = vector.load %arg2[%c3_203, %c0_204, %c0_205] : memref<4x192x128xbf16, #tpu.memory_space<vmem>>, vector<1x192x128xbf16>
    %234 = vector.shape_cast %233 : vector<1x192x128xbf16> to vector<192x128xbf16>
    %cst_206 = arith.constant dense<0.000000e+00> : vector<4x128xf32>
    %235 = tpu.matmul %232, %234, %cst_206 {dimension_numbers = #tpu.dot_dimension_numbers<[1], [0], [0], [1], [0, 0, 1, 1], [], []>} : vector<4x192xbf16>, vector<192x128xbf16>, vector<4x128xf32> -> vector<4x128xf32>
    %236 = arith.addf %231, %235 : vector<4x128xf32>
    %c1_207 = arith.constant 1 : index
    %c2_208 = arith.constant 2 : index
    %c0_209 = arith.constant 0 : index
    %c0_210 = arith.constant 0 : index
    %237 = vector.load %arg5[%c1_207, %c2_208, %c0_209, %c0_210] : memref<2x4x4x128xf32, #tpu.memory_space<vmem>>, vector<1x1x4x128xf32>
    %238 = vector.shape_cast %237 : vector<1x1x4x128xf32> to vector<4x128xf32>
    %239 = vector.shape_cast %236 : vector<4x128xf32> to vector<1x1x4x128xf32>
    tpu.vector_store %arg5[%c1_207, %c2_208, %c0_209, %c0_210], %239 {strides = array<i32>} : memref<2x4x4x128xf32, #tpu.memory_space<vmem>>, vector<1x1x4x128xf32>,
    %cst_211 = arith.constant dense<0.000000e+00> : vector<128xf32>
    %240 = vector.multi_reduction <add>, %236, %cst_211 [0] : vector<4x128xf32> to vector<128xf32>
    %241 = vector.shape_cast %240 : vector<128xf32> to vector<1x128xf32>
    %242 = arith.addf %207, %241 : vector<1x128xf32>
    %243 = arith.mulf %236, %236 : vector<4x128xf32>
    %cst_212 = arith.constant dense<0.000000e+00> : vector<128xf32>
    %244 = vector.multi_reduction <add>, %243, %cst_212 [0] : vector<4x128xf32> to vector<128xf32>
    %245 = vector.shape_cast %244 : vector<128xf32> to vector<1x128xf32>
    %246 = arith.addf %211, %245 : vector<1x128xf32>
    %cst_213 = arith.constant 0.000000e+00 : f32
    %247 = vector.broadcast %cst_213 : f32 to vector<4x128xf32>
    %c1_214 = arith.constant 1 : index
    %c3_215 = arith.constant 3 : index
    %c0_216 = arith.constant 0 : index
    %c0_217 = arith.constant 0 : index
    %248 = vector.load %arg1[%c1_214, %c3_215, %c0_216, %c0_217] : memref<2x5x5x192xbf16, #tpu.memory_space<vmem>>, vector<1x1x5x192xbf16>
    %249 = vector.shape_cast %248 : vector<1x1x5x192xbf16> to vector<5x192xbf16>
    %250 = vector.extract_strided_slice %249 {offsets = [0, 0], sizes = [4, 192], strides = [1, 1]} : vector<5x192xbf16> to vector<4x192xbf16>
    %c0_218 = arith.constant 0 : index
    %c0_219 = arith.constant 0 : index
    %c0_220 = arith.constant 0 : index
    %251 = vector.load %arg2[%c0_218, %c0_219, %c0_220] : memref<4x192x128xbf16, #tpu.memory_space<vmem>>, vector<1x192x128xbf16>
    %252 = vector.shape_cast %251 : vector<1x192x128xbf16> to vector<192x128xbf16>
    %cst_221 = arith.constant dense<0.000000e+00> : vector<4x128xf32>
    %253 = tpu.matmul %250, %252, %cst_221 {dimension_numbers = #tpu.dot_dimension_numbers<[1], [0], [0], [1], [0, 0, 1, 1], [], []>} : vector<4x192xbf16>, vector<192x128xbf16>, vector<4x128xf32> -> vector<4x128xf32>
    %254 = arith.addf %247, %253 : vector<4x128xf32>
    %255 = vector.extract_strided_slice %249 {offsets = [1, 0], sizes = [4, 192], strides = [1, 1]} : vector<5x192xbf16> to vector<4x192xbf16>
    %c1_222 = arith.constant 1 : index
    %c0_223 = arith.constant 0 : index
    %c0_224 = arith.constant 0 : index
    %256 = vector.load %arg2[%c1_222, %c0_223, %c0_224] : memref<4x192x128xbf16, #tpu.memory_space<vmem>>, vector<1x192x128xbf16>
    %257 = vector.shape_cast %256 : vector<1x192x128xbf16> to vector<192x128xbf16>
    %cst_225 = arith.constant dense<0.000000e+00> : vector<4x128xf32>
    %258 = tpu.matmul %255, %257, %cst_225 {dimension_numbers = #tpu.dot_dimension_numbers<[1], [0], [0], [1], [0, 0, 1, 1], [], []>} : vector<4x192xbf16>, vector<192x128xbf16>, vector<4x128xf32> -> vector<4x128xf32>
    %259 = arith.addf %254, %258 : vector<4x128xf32>
    %c1_226 = arith.constant 1 : index
    %c4_227 = arith.constant 4 : index
    %c0_228 = arith.constant 0 : index
    %c0_229 = arith.constant 0 : index
    %260 = vector.load %arg1[%c1_226, %c4_227, %c0_228, %c0_229] : memref<2x5x5x192xbf16, #tpu.memory_space<vmem>>, vector<1x1x5x192xbf16>
    %261 = vector.shape_cast %260 : vector<1x1x5x192xbf16> to vector<5x192xbf16>
    %262 = vector.extract_strided_slice %261 {offsets = [0, 0], sizes = [4, 192], strides = [1, 1]} : vector<5x192xbf16> to vector<4x192xbf16>
    %c2_230 = arith.constant 2 : index
    %c0_231 = arith.constant 0 : index
    %c0_232 = arith.constant 0 : index
    %263 = vector.load %arg2[%c2_230, %c0_231, %c0_232] : memref<4x192x128xbf16, #tpu.memory_space<vmem>>, vector<1x192x128xbf16>
    %264 = vector.shape_cast %263 : vector<1x192x128xbf16> to vector<192x128xbf16>
    %cst_233 = arith.constant dense<0.000000e+00> : vector<4x128xf32>
    %265 = tpu.matmul %262, %264, %cst_233 {dimension_numbers = #tpu.dot_dimension_numbers<[1], [0], [0], [1], [0, 0, 1, 1], [], []>} : vector<4x192xbf16>, vector<192x128xbf16>, vector<4x128xf32> -> vector<4x128xf32>
    %266 = arith.addf %259, %265 : vector<4x128xf32>
    %267 = vector.extract_strided_slice %261 {offsets = [1, 0], sizes = [4, 192], strides = [1, 1]} : vector<5x192xbf16> to vector<4x192xbf16>
    %c3_234 = arith.constant 3 : index
    %c0_235 = arith.constant 0 : index
    %c0_236 = arith.constant 0 : index
    %268 = vector.load %arg2[%c3_234, %c0_235, %c0_236] : memref<4x192x128xbf16, #tpu.memory_space<vmem>>, vector<1x192x128xbf16>
    %269 = vector.shape_cast %268 : vector<1x192x128xbf16> to vector<192x128xbf16>
    %cst_237 = arith.constant dense<0.000000e+00> : vector<4x128xf32>
    %270 = tpu.matmul %267, %269, %cst_237 {dimension_numbers = #tpu.dot_dimension_numbers<[1], [0], [0], [1], [0, 0, 1, 1], [], []>} : vector<4x192xbf16>, vector<192x128xbf16>, vector<4x128xf32> -> vector<4x128xf32>
    %271 = arith.addf %266, %270 : vector<4x128xf32>
    %c1_238 = arith.constant 1 : index
    %c3_239 = arith.constant 3 : index
    %c0_240 = arith.constant 0 : index
    %c0_241 = arith.constant 0 : index
    %272 = vector.load %arg5[%c1_238, %c3_239, %c0_240, %c0_241] : memref<2x4x4x128xf32, #tpu.memory_space<vmem>>, vector<1x1x4x128xf32>
    %273 = vector.shape_cast %272 : vector<1x1x4x128xf32> to vector<4x128xf32>
    %274 = vector.shape_cast %271 : vector<4x128xf32> to vector<1x1x4x128xf32>
    tpu.vector_store %arg5[%c1_238, %c3_239, %c0_240, %c0_241], %274 {strides = array<i32>} : memref<2x4x4x128xf32, #tpu.memory_space<vmem>>, vector<1x1x4x128xf32>,
    %cst_242 = arith.constant dense<0.000000e+00> : vector<128xf32>
    %275 = vector.multi_reduction <add>, %271, %cst_242 [0] : vector<4x128xf32> to vector<128xf32>
    %276 = vector.shape_cast %275 : vector<128xf32> to vector<1x128xf32>
    %277 = arith.addf %242, %276 : vector<1x128xf32>
    %278 = arith.mulf %271, %271 : vector<4x128xf32>
    %cst_243 = arith.constant dense<0.000000e+00> : vector<128xf32>
    %279 = vector.multi_reduction <add>, %278, %cst_243 [0] : vector<4x128xf32> to vector<128xf32>
    %280 = vector.shape_cast %279 : vector<128xf32> to vector<1x128xf32>
    %281 = arith.addf %246, %280 : vector<1x128xf32>
    %cst_244 = arith.constant 3.200000e+01 : f32
    %282 = vector.broadcast %cst_244 : f32 to vector<1x128xf32>
    %283 = arith.divf %277, %282 : vector<1x128xf32>
    %cst_245 = arith.constant 3.200000e+01 : f32
    %284 = vector.broadcast %cst_245 : f32 to vector<1x128xf32>
    %285 = arith.divf %281, %284 : vector<1x128xf32>
    %286 = arith.mulf %283, %283 : vector<1x128xf32>
    %287 = arith.subf %285, %286 : vector<1x128xf32>
    %cst_246 = arith.constant 0.000000e+00 : f32
    %288 = vector.broadcast %cst_246 : f32 to vector<1x128xf32>
    %289 = arith.maximumf %287, %288 : vector<1x128xf32>
    %c0_247 = arith.constant 0 : index
    %c0_248 = arith.constant 0 : index
    %290 = vector.load %arg3[%c0_247, %c0_248] : memref<1x128xf32, #tpu.memory_space<vmem>>, vector<1x128xf32>
    %cst_249 = arith.constant 9.99999974E-6 : f32
    %291 = vector.broadcast %cst_249 : f32 to vector<1x128xf32>
    %292 = arith.addf %289, %291 : vector<1x128xf32>
    %293 = math.rsqrt %292 : vector<1x128xf32>
    %294 = arith.mulf %290, %293 : vector<1x128xf32>
    %c0_250 = arith.constant 0 : index
    %c0_251 = arith.constant 0 : index
    %295 = vector.load %arg4[%c0_250, %c0_251] : memref<1x128xf32, #tpu.memory_space<vmem>>, vector<1x128xf32>
    %296 = arith.mulf %283, %294 : vector<1x128xf32>
    %297 = arith.subf %295, %296 : vector<1x128xf32>
    %c0_252 = arith.constant 0 : index
    %c0_253 = arith.constant 0 : index
    %c0_254 = arith.constant 0 : index
    %c0_255 = arith.constant 0 : index
    %298 = vector.load %arg5[%c0_252, %c0_253, %c0_254, %c0_255] : memref<2x4x4x128xf32, #tpu.memory_space<vmem>>, vector<1x1x4x128xf32>
    %299 = vector.shape_cast %298 : vector<1x1x4x128xf32> to vector<4x128xf32>
    %300 = vector.broadcast %294 : vector<1x128xf32> to vector<4x128xf32>
    %301 = arith.mulf %299, %300 : vector<4x128xf32>
    %302 = vector.broadcast %297 : vector<1x128xf32> to vector<4x128xf32>
    %303 = arith.addf %301, %302 : vector<4x128xf32>
    %cst_256 = arith.constant 0.000000e+00 : f32
    %304 = vector.broadcast %cst_256 : f32 to vector<4x128xf32>
    %305 = arith.maximumf %303, %304 : vector<4x128xf32>
    %c0_257 = arith.constant 0 : index
    %c0_258 = arith.constant 0 : index
    %c0_259 = arith.constant 0 : index
    %c0_260 = arith.constant 0 : index
    %306 = vector.load %arg5[%c0_257, %c0_258, %c0_259, %c0_260] : memref<2x4x4x128xf32, #tpu.memory_space<vmem>>, vector<1x1x4x128xf32>
    %307 = vector.shape_cast %306 : vector<1x1x4x128xf32> to vector<4x128xf32>
    %308 = vector.shape_cast %305 : vector<4x128xf32> to vector<1x1x4x128xf32>
    tpu.vector_store %arg5[%c0_257, %c0_258, %c0_259, %c0_260], %308 {strides = array<i32>} : memref<2x4x4x128xf32, #tpu.memory_space<vmem>>, vector<1x1x4x128xf32>,
    %c0_261 = arith.constant 0 : index
    %c1_262 = arith.constant 1 : index
    %c0_263 = arith.constant 0 : index
    %c0_264 = arith.constant 0 : index
    %309 = vector.load %arg5[%c0_261, %c1_262, %c0_263, %c0_264] : memref<2x4x4x128xf32, #tpu.memory_space<vmem>>, vector<1x1x4x128xf32>
    %310 = vector.shape_cast %309 : vector<1x1x4x128xf32> to vector<4x128xf32>
    %311 = vector.broadcast %294 : vector<1x128xf32> to vector<4x128xf32>
    %312 = arith.mulf %310, %311 : vector<4x128xf32>
    %313 = vector.broadcast %297 : vector<1x128xf32> to vector<4x128xf32>
    %314 = arith.addf %312, %313 : vector<4x128xf32>
    %cst_265 = arith.constant 0.000000e+00 : f32
    %315 = vector.broadcast %cst_265 : f32 to vector<4x128xf32>
    %316 = arith.maximumf %314, %315 : vector<4x128xf32>
    %c0_266 = arith.constant 0 : index
    %c1_267 = arith.constant 1 : index
    %c0_268 = arith.constant 0 : index
    %c0_269 = arith.constant 0 : index
    %317 = vector.load %arg5[%c0_266, %c1_267, %c0_268, %c0_269] : memref<2x4x4x128xf32, #tpu.memory_space<vmem>>, vector<1x1x4x128xf32>
    %318 = vector.shape_cast %317 : vector<1x1x4x128xf32> to vector<4x128xf32>
    %319 = vector.shape_cast %316 : vector<4x128xf32> to vector<1x1x4x128xf32>
    tpu.vector_store %arg5[%c0_266, %c1_267, %c0_268, %c0_269], %319 {strides = array<i32>} : memref<2x4x4x128xf32, #tpu.memory_space<vmem>>, vector<1x1x4x128xf32>,
    %c0_270 = arith.constant 0 : index
    %c2_271 = arith.constant 2 : index
    %c0_272 = arith.constant 0 : index
    %c0_273 = arith.constant 0 : index
    %320 = vector.load %arg5[%c0_270, %c2_271, %c0_272, %c0_273] : memref<2x4x4x128xf32, #tpu.memory_space<vmem>>, vector<1x1x4x128xf32>
    %321 = vector.shape_cast %320 : vector<1x1x4x128xf32> to vector<4x128xf32>
    %322 = vector.broadcast %294 : vector<1x128xf32> to vector<4x128xf32>
    %323 = arith.mulf %321, %322 : vector<4x128xf32>
    %324 = vector.broadcast %297 : vector<1x128xf32> to vector<4x128xf32>
    %325 = arith.addf %323, %324 : vector<4x128xf32>
    %cst_274 = arith.constant 0.000000e+00 : f32
    %326 = vector.broadcast %cst_274 : f32 to vector<4x128xf32>
    %327 = arith.maximumf %325, %326 : vector<4x128xf32>
    %c0_275 = arith.constant 0 : index
    %c2_276 = arith.constant 2 : index
    %c0_277 = arith.constant 0 : index
    %c0_278 = arith.constant 0 : index
    %328 = vector.load %arg5[%c0_275, %c2_276, %c0_277, %c0_278] : memref<2x4x4x128xf32, #tpu.memory_space<vmem>>, vector<1x1x4x128xf32>
    %329 = vector.shape_cast %328 : vector<1x1x4x128xf32> to vector<4x128xf32>
    %330 = vector.shape_cast %327 : vector<4x128xf32> to vector<1x1x4x128xf32>
    tpu.vector_store %arg5[%c0_275, %c2_276, %c0_277, %c0_278], %330 {strides = array<i32>} : memref<2x4x4x128xf32, #tpu.memory_space<vmem>>, vector<1x1x4x128xf32>,
    %c0_279 = arith.constant 0 : index
    %c3_280 = arith.constant 3 : index
    %c0_281 = arith.constant 0 : index
    %c0_282 = arith.constant 0 : index
    %331 = vector.load %arg5[%c0_279, %c3_280, %c0_281, %c0_282] : memref<2x4x4x128xf32, #tpu.memory_space<vmem>>, vector<1x1x4x128xf32>
    %332 = vector.shape_cast %331 : vector<1x1x4x128xf32> to vector<4x128xf32>
    %333 = vector.broadcast %294 : vector<1x128xf32> to vector<4x128xf32>
    %334 = arith.mulf %332, %333 : vector<4x128xf32>
    %335 = vector.broadcast %297 : vector<1x128xf32> to vector<4x128xf32>
    %336 = arith.addf %334, %335 : vector<4x128xf32>
    %cst_283 = arith.constant 0.000000e+00 : f32
    %337 = vector.broadcast %cst_283 : f32 to vector<4x128xf32>
    %338 = arith.maximumf %336, %337 : vector<4x128xf32>
    %c0_284 = arith.constant 0 : index
    %c3_285 = arith.constant 3 : index
    %c0_286 = arith.constant 0 : index
    %c0_287 = arith.constant 0 : index
    %339 = vector.load %arg5[%c0_284, %c3_285, %c0_286, %c0_287] : memref<2x4x4x128xf32, #tpu.memory_space<vmem>>, vector<1x1x4x128xf32>
    %340 = vector.shape_cast %339 : vector<1x1x4x128xf32> to vector<4x128xf32>
    %341 = vector.shape_cast %338 : vector<4x128xf32> to vector<1x1x4x128xf32>
    tpu.vector_store %arg5[%c0_284, %c3_285, %c0_286, %c0_287], %341 {strides = array<i32>} : memref<2x4x4x128xf32, #tpu.memory_space<vmem>>, vector<1x1x4x128xf32>,
    %c1_288 = arith.constant 1 : index
    %c0_289 = arith.constant 0 : index
    %c0_290 = arith.constant 0 : index
    %c0_291 = arith.constant 0 : index
    %342 = vector.load %arg5[%c1_288, %c0_289, %c0_290, %c0_291] : memref<2x4x4x128xf32, #tpu.memory_space<vmem>>, vector<1x1x4x128xf32>
    %343 = vector.shape_cast %342 : vector<1x1x4x128xf32> to vector<4x128xf32>
    %344 = vector.broadcast %294 : vector<1x128xf32> to vector<4x128xf32>
    %345 = arith.mulf %343, %344 : vector<4x128xf32>
    %346 = vector.broadcast %297 : vector<1x128xf32> to vector<4x128xf32>
    %347 = arith.addf %345, %346 : vector<4x128xf32>
    %cst_292 = arith.constant 0.000000e+00 : f32
    %348 = vector.broadcast %cst_292 : f32 to vector<4x128xf32>
    %349 = arith.maximumf %347, %348 : vector<4x128xf32>
    %c1_293 = arith.constant 1 : index
    %c0_294 = arith.constant 0 : index
    %c0_295 = arith.constant 0 : index
    %c0_296 = arith.constant 0 : index
    %350 = vector.load %arg5[%c1_293, %c0_294, %c0_295, %c0_296] : memref<2x4x4x128xf32, #tpu.memory_space<vmem>>, vector<1x1x4x128xf32>
    %351 = vector.shape_cast %350 : vector<1x1x4x128xf32> to vector<4x128xf32>
    %352 = vector.shape_cast %349 : vector<4x128xf32> to vector<1x1x4x128xf32>
    tpu.vector_store %arg5[%c1_293, %c0_294, %c0_295, %c0_296], %352 {strides = array<i32>} : memref<2x4x4x128xf32, #tpu.memory_space<vmem>>, vector<1x1x4x128xf32>,
    %c1_297 = arith.constant 1 : index
    %c1_298 = arith.constant 1 : index
    %c0_299 = arith.constant 0 : index
    %c0_300 = arith.constant 0 : index
    %353 = vector.load %arg5[%c1_297, %c1_298, %c0_299, %c0_300] : memref<2x4x4x128xf32, #tpu.memory_space<vmem>>, vector<1x1x4x128xf32>
    %354 = vector.shape_cast %353 : vector<1x1x4x128xf32> to vector<4x128xf32>
    %355 = vector.broadcast %294 : vector<1x128xf32> to vector<4x128xf32>
    %356 = arith.mulf %354, %355 : vector<4x128xf32>
    %357 = vector.broadcast %297 : vector<1x128xf32> to vector<4x128xf32>
    %358 = arith.addf %356, %357 : vector<4x128xf32>
    %cst_301 = arith.constant 0.000000e+00 : f32
    %359 = vector.broadcast %cst_301 : f32 to vector<4x128xf32>
    %360 = arith.maximumf %358, %359 : vector<4x128xf32>
    %c1_302 = arith.constant 1 : index
    %c1_303 = arith.constant 1 : index
    %c0_304 = arith.constant 0 : index
    %c0_305 = arith.constant 0 : index
    %361 = vector.load %arg5[%c1_302, %c1_303, %c0_304, %c0_305] : memref<2x4x4x128xf32, #tpu.memory_space<vmem>>, vector<1x1x4x128xf32>
    %362 = vector.shape_cast %361 : vector<1x1x4x128xf32> to vector<4x128xf32>
    %363 = vector.shape_cast %360 : vector<4x128xf32> to vector<1x1x4x128xf32>
    tpu.vector_store %arg5[%c1_302, %c1_303, %c0_304, %c0_305], %363 {strides = array<i32>} : memref<2x4x4x128xf32, #tpu.memory_space<vmem>>, vector<1x1x4x128xf32>,
    %c1_306 = arith.constant 1 : index
    %c2_307 = arith.constant 2 : index
    %c0_308 = arith.constant 0 : index
    %c0_309 = arith.constant 0 : index
    %364 = vector.load %arg5[%c1_306, %c2_307, %c0_308, %c0_309] : memref<2x4x4x128xf32, #tpu.memory_space<vmem>>, vector<1x1x4x128xf32>
    %365 = vector.shape_cast %364 : vector<1x1x4x128xf32> to vector<4x128xf32>
    %366 = vector.broadcast %294 : vector<1x128xf32> to vector<4x128xf32>
    %367 = arith.mulf %365, %366 : vector<4x128xf32>
    %368 = vector.broadcast %297 : vector<1x128xf32> to vector<4x128xf32>
    %369 = arith.addf %367, %368 : vector<4x128xf32>
    %cst_310 = arith.constant 0.000000e+00 : f32
    %370 = vector.broadcast %cst_310 : f32 to vector<4x128xf32>
    %371 = arith.maximumf %369, %370 : vector<4x128xf32>
    %c1_311 = arith.constant 1 : index
    %c2_312 = arith.constant 2 : index
    %c0_313 = arith.constant 0 : index
    %c0_314 = arith.constant 0 : index
    %372 = vector.load %arg5[%c1_311, %c2_312, %c0_313, %c0_314] : memref<2x4x4x128xf32, #tpu.memory_space<vmem>>, vector<1x1x4x128xf32>
    %373 = vector.shape_cast %372 : vector<1x1x4x128xf32> to vector<4x128xf32>
    %374 = vector.shape_cast %371 : vector<4x128xf32> to vector<1x1x4x128xf32>
    tpu.vector_store %arg5[%c1_311, %c2_312, %c0_313, %c0_314], %374 {strides = array<i32>} : memref<2x4x4x128xf32, #tpu.memory_space<vmem>>, vector<1x1x4x128xf32>,
    %c1_315 = arith.constant 1 : index
    %c3_316 = arith.constant 3 : index
    %c0_317 = arith.constant 0 : index
    %c0_318 = arith.constant 0 : index
    %375 = vector.load %arg5[%c1_315, %c3_316, %c0_317, %c0_318] : memref<2x4x4x128xf32, #tpu.memory_space<vmem>>, vector<1x1x4x128xf32>
    %376 = vector.shape_cast %375 : vector<1x1x4x128xf32> to vector<4x128xf32>
    %377 = vector.broadcast %294 : vector<1x128xf32> to vector<4x128xf32>
    %378 = arith.mulf %376, %377 : vector<4x128xf32>
    %379 = vector.broadcast %297 : vector<1x128xf32> to vector<4x128xf32>
    %380 = arith.addf %378, %379 : vector<4x128xf32>
    %cst_319 = arith.constant 0.000000e+00 : f32
    %381 = vector.broadcast %cst_319 : f32 to vector<4x128xf32>
    %382 = arith.maximumf %380, %381 : vector<4x128xf32>
    %c1_320 = arith.constant 1 : index
    %c3_321 = arith.constant 3 : index
    %c0_322 = arith.constant 0 : index
    %c0_323 = arith.constant 0 : index
    %383 = vector.load %arg5[%c1_320, %c3_321, %c0_322, %c0_323] : memref<2x4x4x128xf32, #tpu.memory_space<vmem>>, vector<1x1x4x128xf32>
    %384 = vector.shape_cast %383 : vector<1x1x4x128xf32> to vector<4x128xf32>
    %385 = vector.shape_cast %382 : vector<4x128xf32> to vector<1x1x4x128xf32>
    tpu.vector_store %arg5[%c1_320, %c3_321, %c0_322, %c0_323], %385 {strides = array<i32>} : memref<2x4x4x128xf32, #tpu.memory_space<vmem>>, vector<1x1x4x128xf32>,
    return
  }
  func.func @transform_0(%arg0: i32) -> (i32, i32, i32, i32) {
    %c0_i32 = arith.constant 0 : i32
    %c0_i32_0 = arith.constant 0 : i32
    %c0_i32_1 = arith.constant 0 : i32
    %c0_i32_2 = arith.constant 0 : i32
    %c0_i32_3 = arith.constant 0 : i32
    return %c0_i32, %c0_i32_0, %c0_i32_1, %c0_i32_2 : i32, i32, i32, i32
  }
  func.func @transform_1(%arg0: i32) -> (i32, i32, i32) {
    %c0_i32 = arith.constant 0 : i32
    %c0_i32_0 = arith.constant 0 : i32
    %c0_i32_1 = arith.constant 0 : i32
    %c0_i32_2 = arith.constant 0 : i32
    return %c0_i32, %c0_i32_0, %c0_i32_1 : i32, i32, i32
  }
  func.func @transform_2(%arg0: i32) -> (i32, i32) {
    %c0_i32 = arith.constant 0 : i32
    %c0_i32_0 = arith.constant 0 : i32
    %c0_i32_1 = arith.constant 0 : i32
    return %c0_i32, %c0_i32_0 : i32, i32
  }
  func.func @transform_3(%arg0: i32) -> (i32, i32) {
    %c0_i32 = arith.constant 0 : i32
    %c0_i32_0 = arith.constant 0 : i32
    %c0_i32_1 = arith.constant 0 : i32
    return %c0_i32, %c0_i32_0 : i32, i32
  }
  func.func @transform_4(%arg0: i32) -> (i32, i32, i32, i32) {
    %c0_i32 = arith.constant 0 : i32
    %c0_i32_0 = arith.constant 0 : i32
    %c0_i32_1 = arith.constant 0 : i32
    %c0_i32_2 = arith.constant 0 : i32
    %c0_i32_3 = arith.constant 0 : i32
    return %c0_i32, %c0_i32_0, %c0_i32_1, %c0_i32_2 : i32, i32, i32, i32
  }
}

module attributes {stable_mosaic.version = 11 : i64} {
  func.func @_fused_conv_bn_relu_kernel(%arg0: i32, %arg1: memref<2x3x3x384xbf16, #tpu.memory_space<vmem>>, %arg2: memref<4x384x256xbf16, #tpu.memory_space<vmem>>, %arg3: memref<1x256xf32, #tpu.memory_space<vmem>>, %arg4: memref<1x256xf32, #tpu.memory_space<vmem>>, %arg5: memref<2x2x2x256xf32, #tpu.memory_space<vmem>>) attributes {dimension_semantics = [#tpu.dimension_semantics<arbitrary>], iteration_bounds = array<i64: 1>, scalar_prefetch = 0 : i64, scratch_operands = 0 : i64, tpu.core_type = #tpu.core_type<tc>, window_params = [{pipeline_mode = #tpu.pipeline_mode<synchronous>, transform_indices = @transform_0, window_bounds = array<i64: 2, 3, 3, 384>}, {pipeline_mode = #tpu.pipeline_mode<synchronous>, transform_indices = @transform_1, window_bounds = array<i64: 4, 384, 256>}, {pipeline_mode = #tpu.pipeline_mode<synchronous>, transform_indices = @transform_2, window_bounds = array<i64: 1, 256>}, {pipeline_mode = #tpu.pipeline_mode<synchronous>, transform_indices = @transform_3, window_bounds = array<i64: 1, 256>}, {pipeline_mode = #tpu.pipeline_mode<synchronous>, transform_indices = @transform_4, window_bounds = array<i64: 2, 2, 2, 256>}]} {
    %cst = arith.constant 0.000000e+00 : f32
    %0 = vector.broadcast %cst : f32 to vector<1x256xf32>
    %cst_0 = arith.constant 0.000000e+00 : f32
    %1 = vector.broadcast %cst_0 : f32 to vector<1x256xf32>
    %cst_1 = arith.constant 0.000000e+00 : f32
    %2 = vector.broadcast %cst_1 : f32 to vector<2x256xf32>
    %c0 = arith.constant 0 : index
    %c0_2 = arith.constant 0 : index
    %c0_3 = arith.constant 0 : index
    %c0_4 = arith.constant 0 : index
    %3 = vector.load %arg1[%c0, %c0_2, %c0_3, %c0_4] : memref<2x3x3x384xbf16, #tpu.memory_space<vmem>>, vector<1x1x3x384xbf16>
    %4 = vector.shape_cast %3 : vector<1x1x3x384xbf16> to vector<3x384xbf16>
    %5 = vector.extract_strided_slice %4 {offsets = [0, 0], sizes = [2, 384], strides = [1, 1]} : vector<3x384xbf16> to vector<2x384xbf16>
    %c0_5 = arith.constant 0 : index
    %c0_6 = arith.constant 0 : index
    %c0_7 = arith.constant 0 : index
    %6 = vector.load %arg2[%c0_5, %c0_6, %c0_7] : memref<4x384x256xbf16, #tpu.memory_space<vmem>>, vector<1x384x256xbf16>
    %7 = vector.shape_cast %6 : vector<1x384x256xbf16> to vector<384x256xbf16>
    %cst_8 = arith.constant dense<0.000000e+00> : vector<2x256xf32>
    %8 = tpu.matmul %5, %7, %cst_8 {dimension_numbers = #tpu.dot_dimension_numbers<[1], [0], [0], [1], [0, 0, 1, 1], [], []>} : vector<2x384xbf16>, vector<384x256xbf16>, vector<2x256xf32> -> vector<2x256xf32>
    %9 = arith.addf %2, %8 : vector<2x256xf32>
    %10 = vector.extract_strided_slice %4 {offsets = [1, 0], sizes = [2, 384], strides = [1, 1]} : vector<3x384xbf16> to vector<2x384xbf16>
    %c1 = arith.constant 1 : index
    %c0_9 = arith.constant 0 : index
    %c0_10 = arith.constant 0 : index
    %11 = vector.load %arg2[%c1, %c0_9, %c0_10] : memref<4x384x256xbf16, #tpu.memory_space<vmem>>, vector<1x384x256xbf16>
    %12 = vector.shape_cast %11 : vector<1x384x256xbf16> to vector<384x256xbf16>
    %cst_11 = arith.constant dense<0.000000e+00> : vector<2x256xf32>
    %13 = tpu.matmul %10, %12, %cst_11 {dimension_numbers = #tpu.dot_dimension_numbers<[1], [0], [0], [1], [0, 0, 1, 1], [], []>} : vector<2x384xbf16>, vector<384x256xbf16>, vector<2x256xf32> -> vector<2x256xf32>
    %14 = arith.addf %9, %13 : vector<2x256xf32>
    %c0_12 = arith.constant 0 : index
    %c1_13 = arith.constant 1 : index
    %c0_14 = arith.constant 0 : index
    %c0_15 = arith.constant 0 : index
    %15 = vector.load %arg1[%c0_12, %c1_13, %c0_14, %c0_15] : memref<2x3x3x384xbf16, #tpu.memory_space<vmem>>, vector<1x1x3x384xbf16>
    %16 = vector.shape_cast %15 : vector<1x1x3x384xbf16> to vector<3x384xbf16>
    %17 = vector.extract_strided_slice %16 {offsets = [0, 0], sizes = [2, 384], strides = [1, 1]} : vector<3x384xbf16> to vector<2x384xbf16>
    %c2 = arith.constant 2 : index
    %c0_16 = arith.constant 0 : index
    %c0_17 = arith.constant 0 : index
    %18 = vector.load %arg2[%c2, %c0_16, %c0_17] : memref<4x384x256xbf16, #tpu.memory_space<vmem>>, vector<1x384x256xbf16>
    %19 = vector.shape_cast %18 : vector<1x384x256xbf16> to vector<384x256xbf16>
    %cst_18 = arith.constant dense<0.000000e+00> : vector<2x256xf32>
    %20 = tpu.matmul %17, %19, %cst_18 {dimension_numbers = #tpu.dot_dimension_numbers<[1], [0], [0], [1], [0, 0, 1, 1], [], []>} : vector<2x384xbf16>, vector<384x256xbf16>, vector<2x256xf32> -> vector<2x256xf32>
    %21 = arith.addf %14, %20 : vector<2x256xf32>
    %22 = vector.extract_strided_slice %16 {offsets = [1, 0], sizes = [2, 384], strides = [1, 1]} : vector<3x384xbf16> to vector<2x384xbf16>
    %c3 = arith.constant 3 : index
    %c0_19 = arith.constant 0 : index
    %c0_20 = arith.constant 0 : index
    %23 = vector.load %arg2[%c3, %c0_19, %c0_20] : memref<4x384x256xbf16, #tpu.memory_space<vmem>>, vector<1x384x256xbf16>
    %24 = vector.shape_cast %23 : vector<1x384x256xbf16> to vector<384x256xbf16>
    %cst_21 = arith.constant dense<0.000000e+00> : vector<2x256xf32>
    %25 = tpu.matmul %22, %24, %cst_21 {dimension_numbers = #tpu.dot_dimension_numbers<[1], [0], [0], [1], [0, 0, 1, 1], [], []>} : vector<2x384xbf16>, vector<384x256xbf16>, vector<2x256xf32> -> vector<2x256xf32>
    %26 = arith.addf %21, %25 : vector<2x256xf32>
    %c0_22 = arith.constant 0 : index
    %c0_23 = arith.constant 0 : index
    %c0_24 = arith.constant 0 : index
    %c0_25 = arith.constant 0 : index
    %27 = vector.load %arg5[%c0_22, %c0_23, %c0_24, %c0_25] : memref<2x2x2x256xf32, #tpu.memory_space<vmem>>, vector<1x1x2x256xf32>
    %28 = vector.shape_cast %27 : vector<1x1x2x256xf32> to vector<2x256xf32>
    %29 = vector.shape_cast %26 : vector<2x256xf32> to vector<1x1x2x256xf32>
    tpu.vector_store %arg5[%c0_22, %c0_23, %c0_24, %c0_25], %29 {strides = array<i32>} : memref<2x2x2x256xf32, #tpu.memory_space<vmem>>, vector<1x1x2x256xf32>,
    %cst_26 = arith.constant dense<0.000000e+00> : vector<256xf32>
    %30 = vector.multi_reduction <add>, %26, %cst_26 [0] : vector<2x256xf32> to vector<256xf32>
    %31 = vector.shape_cast %30 : vector<256xf32> to vector<1x256xf32>
    %32 = arith.addf %0, %31 : vector<1x256xf32>
    %33 = arith.mulf %26, %26 : vector<2x256xf32>
    %cst_27 = arith.constant dense<0.000000e+00> : vector<256xf32>
    %34 = vector.multi_reduction <add>, %33, %cst_27 [0] : vector<2x256xf32> to vector<256xf32>
    %35 = vector.shape_cast %34 : vector<256xf32> to vector<1x256xf32>
    %36 = arith.addf %1, %35 : vector<1x256xf32>
    %cst_28 = arith.constant 0.000000e+00 : f32
    %37 = vector.broadcast %cst_28 : f32 to vector<2x256xf32>
    %c0_29 = arith.constant 0 : index
    %c1_30 = arith.constant 1 : index
    %c0_31 = arith.constant 0 : index
    %c0_32 = arith.constant 0 : index
    %38 = vector.load %arg1[%c0_29, %c1_30, %c0_31, %c0_32] : memref<2x3x3x384xbf16, #tpu.memory_space<vmem>>, vector<1x1x3x384xbf16>
    %39 = vector.shape_cast %38 : vector<1x1x3x384xbf16> to vector<3x384xbf16>
    %40 = vector.extract_strided_slice %39 {offsets = [0, 0], sizes = [2, 384], strides = [1, 1]} : vector<3x384xbf16> to vector<2x384xbf16>
    %c0_33 = arith.constant 0 : index
    %c0_34 = arith.constant 0 : index
    %c0_35 = arith.constant 0 : index
    %41 = vector.load %arg2[%c0_33, %c0_34, %c0_35] : memref<4x384x256xbf16, #tpu.memory_space<vmem>>, vector<1x384x256xbf16>
    %42 = vector.shape_cast %41 : vector<1x384x256xbf16> to vector<384x256xbf16>
    %cst_36 = arith.constant dense<0.000000e+00> : vector<2x256xf32>
    %43 = tpu.matmul %40, %42, %cst_36 {dimension_numbers = #tpu.dot_dimension_numbers<[1], [0], [0], [1], [0, 0, 1, 1], [], []>} : vector<2x384xbf16>, vector<384x256xbf16>, vector<2x256xf32> -> vector<2x256xf32>
    %44 = arith.addf %37, %43 : vector<2x256xf32>
    %45 = vector.extract_strided_slice %39 {offsets = [1, 0], sizes = [2, 384], strides = [1, 1]} : vector<3x384xbf16> to vector<2x384xbf16>
    %c1_37 = arith.constant 1 : index
    %c0_38 = arith.constant 0 : index
    %c0_39 = arith.constant 0 : index
    %46 = vector.load %arg2[%c1_37, %c0_38, %c0_39] : memref<4x384x256xbf16, #tpu.memory_space<vmem>>, vector<1x384x256xbf16>
    %47 = vector.shape_cast %46 : vector<1x384x256xbf16> to vector<384x256xbf16>
    %cst_40 = arith.constant dense<0.000000e+00> : vector<2x256xf32>
    %48 = tpu.matmul %45, %47, %cst_40 {dimension_numbers = #tpu.dot_dimension_numbers<[1], [0], [0], [1], [0, 0, 1, 1], [], []>} : vector<2x384xbf16>, vector<384x256xbf16>, vector<2x256xf32> -> vector<2x256xf32>
    %49 = arith.addf %44, %48 : vector<2x256xf32>
    %c0_41 = arith.constant 0 : index
    %c2_42 = arith.constant 2 : index
    %c0_43 = arith.constant 0 : index
    %c0_44 = arith.constant 0 : index
    %50 = vector.load %arg1[%c0_41, %c2_42, %c0_43, %c0_44] : memref<2x3x3x384xbf16, #tpu.memory_space<vmem>>, vector<1x1x3x384xbf16>
    %51 = vector.shape_cast %50 : vector<1x1x3x384xbf16> to vector<3x384xbf16>
    %52 = vector.extract_strided_slice %51 {offsets = [0, 0], sizes = [2, 384], strides = [1, 1]} : vector<3x384xbf16> to vector<2x384xbf16>
    %c2_45 = arith.constant 2 : index
    %c0_46 = arith.constant 0 : index
    %c0_47 = arith.constant 0 : index
    %53 = vector.load %arg2[%c2_45, %c0_46, %c0_47] : memref<4x384x256xbf16, #tpu.memory_space<vmem>>, vector<1x384x256xbf16>
    %54 = vector.shape_cast %53 : vector<1x384x256xbf16> to vector<384x256xbf16>
    %cst_48 = arith.constant dense<0.000000e+00> : vector<2x256xf32>
    %55 = tpu.matmul %52, %54, %cst_48 {dimension_numbers = #tpu.dot_dimension_numbers<[1], [0], [0], [1], [0, 0, 1, 1], [], []>} : vector<2x384xbf16>, vector<384x256xbf16>, vector<2x256xf32> -> vector<2x256xf32>
    %56 = arith.addf %49, %55 : vector<2x256xf32>
    %57 = vector.extract_strided_slice %51 {offsets = [1, 0], sizes = [2, 384], strides = [1, 1]} : vector<3x384xbf16> to vector<2x384xbf16>
    %c3_49 = arith.constant 3 : index
    %c0_50 = arith.constant 0 : index
    %c0_51 = arith.constant 0 : index
    %58 = vector.load %arg2[%c3_49, %c0_50, %c0_51] : memref<4x384x256xbf16, #tpu.memory_space<vmem>>, vector<1x384x256xbf16>
    %59 = vector.shape_cast %58 : vector<1x384x256xbf16> to vector<384x256xbf16>
    %cst_52 = arith.constant dense<0.000000e+00> : vector<2x256xf32>
    %60 = tpu.matmul %57, %59, %cst_52 {dimension_numbers = #tpu.dot_dimension_numbers<[1], [0], [0], [1], [0, 0, 1, 1], [], []>} : vector<2x384xbf16>, vector<384x256xbf16>, vector<2x256xf32> -> vector<2x256xf32>
    %61 = arith.addf %56, %60 : vector<2x256xf32>
    %c0_53 = arith.constant 0 : index
    %c1_54 = arith.constant 1 : index
    %c0_55 = arith.constant 0 : index
    %c0_56 = arith.constant 0 : index
    %62 = vector.load %arg5[%c0_53, %c1_54, %c0_55, %c0_56] : memref<2x2x2x256xf32, #tpu.memory_space<vmem>>, vector<1x1x2x256xf32>
    %63 = vector.shape_cast %62 : vector<1x1x2x256xf32> to vector<2x256xf32>
    %64 = vector.shape_cast %61 : vector<2x256xf32> to vector<1x1x2x256xf32>
    tpu.vector_store %arg5[%c0_53, %c1_54, %c0_55, %c0_56], %64 {strides = array<i32>} : memref<2x2x2x256xf32, #tpu.memory_space<vmem>>, vector<1x1x2x256xf32>,
    %cst_57 = arith.constant dense<0.000000e+00> : vector<256xf32>
    %65 = vector.multi_reduction <add>, %61, %cst_57 [0] : vector<2x256xf32> to vector<256xf32>
    %66 = vector.shape_cast %65 : vector<256xf32> to vector<1x256xf32>
    %67 = arith.addf %32, %66 : vector<1x256xf32>
    %68 = arith.mulf %61, %61 : vector<2x256xf32>
    %cst_58 = arith.constant dense<0.000000e+00> : vector<256xf32>
    %69 = vector.multi_reduction <add>, %68, %cst_58 [0] : vector<2x256xf32> to vector<256xf32>
    %70 = vector.shape_cast %69 : vector<256xf32> to vector<1x256xf32>
    %71 = arith.addf %36, %70 : vector<1x256xf32>
    %cst_59 = arith.constant 0.000000e+00 : f32
    %72 = vector.broadcast %cst_59 : f32 to vector<2x256xf32>
    %c1_60 = arith.constant 1 : index
    %c0_61 = arith.constant 0 : index
    %c0_62 = arith.constant 0 : index
    %c0_63 = arith.constant 0 : index
    %73 = vector.load %arg1[%c1_60, %c0_61, %c0_62, %c0_63] : memref<2x3x3x384xbf16, #tpu.memory_space<vmem>>, vector<1x1x3x384xbf16>
    %74 = vector.shape_cast %73 : vector<1x1x3x384xbf16> to vector<3x384xbf16>
    %75 = vector.extract_strided_slice %74 {offsets = [0, 0], sizes = [2, 384], strides = [1, 1]} : vector<3x384xbf16> to vector<2x384xbf16>
    %c0_64 = arith.constant 0 : index
    %c0_65 = arith.constant 0 : index
    %c0_66 = arith.constant 0 : index
    %76 = vector.load %arg2[%c0_64, %c0_65, %c0_66] : memref<4x384x256xbf16, #tpu.memory_space<vmem>>, vector<1x384x256xbf16>
    %77 = vector.shape_cast %76 : vector<1x384x256xbf16> to vector<384x256xbf16>
    %cst_67 = arith.constant dense<0.000000e+00> : vector<2x256xf32>
    %78 = tpu.matmul %75, %77, %cst_67 {dimension_numbers = #tpu.dot_dimension_numbers<[1], [0], [0], [1], [0, 0, 1, 1], [], []>} : vector<2x384xbf16>, vector<384x256xbf16>, vector<2x256xf32> -> vector<2x256xf32>
    %79 = arith.addf %72, %78 : vector<2x256xf32>
    %80 = vector.extract_strided_slice %74 {offsets = [1, 0], sizes = [2, 384], strides = [1, 1]} : vector<3x384xbf16> to vector<2x384xbf16>
    %c1_68 = arith.constant 1 : index
    %c0_69 = arith.constant 0 : index
    %c0_70 = arith.constant 0 : index
    %81 = vector.load %arg2[%c1_68, %c0_69, %c0_70] : memref<4x384x256xbf16, #tpu.memory_space<vmem>>, vector<1x384x256xbf16>
    %82 = vector.shape_cast %81 : vector<1x384x256xbf16> to vector<384x256xbf16>
    %cst_71 = arith.constant dense<0.000000e+00> : vector<2x256xf32>
    %83 = tpu.matmul %80, %82, %cst_71 {dimension_numbers = #tpu.dot_dimension_numbers<[1], [0], [0], [1], [0, 0, 1, 1], [], []>} : vector<2x384xbf16>, vector<384x256xbf16>, vector<2x256xf32> -> vector<2x256xf32>
    %84 = arith.addf %79, %83 : vector<2x256xf32>
    %c1_72 = arith.constant 1 : index
    %c1_73 = arith.constant 1 : index
    %c0_74 = arith.constant 0 : index
    %c0_75 = arith.constant 0 : index
    %85 = vector.load %arg1[%c1_72, %c1_73, %c0_74, %c0_75] : memref<2x3x3x384xbf16, #tpu.memory_space<vmem>>, vector<1x1x3x384xbf16>
    %86 = vector.shape_cast %85 : vector<1x1x3x384xbf16> to vector<3x384xbf16>
    %87 = vector.extract_strided_slice %86 {offsets = [0, 0], sizes = [2, 384], strides = [1, 1]} : vector<3x384xbf16> to vector<2x384xbf16>
    %c2_76 = arith.constant 2 : index
    %c0_77 = arith.constant 0 : index
    %c0_78 = arith.constant 0 : index
    %88 = vector.load %arg2[%c2_76, %c0_77, %c0_78] : memref<4x384x256xbf16, #tpu.memory_space<vmem>>, vector<1x384x256xbf16>
    %89 = vector.shape_cast %88 : vector<1x384x256xbf16> to vector<384x256xbf16>
    %cst_79 = arith.constant dense<0.000000e+00> : vector<2x256xf32>
    %90 = tpu.matmul %87, %89, %cst_79 {dimension_numbers = #tpu.dot_dimension_numbers<[1], [0], [0], [1], [0, 0, 1, 1], [], []>} : vector<2x384xbf16>, vector<384x256xbf16>, vector<2x256xf32> -> vector<2x256xf32>
    %91 = arith.addf %84, %90 : vector<2x256xf32>
    %92 = vector.extract_strided_slice %86 {offsets = [1, 0], sizes = [2, 384], strides = [1, 1]} : vector<3x384xbf16> to vector<2x384xbf16>
    %c3_80 = arith.constant 3 : index
    %c0_81 = arith.constant 0 : index
    %c0_82 = arith.constant 0 : index
    %93 = vector.load %arg2[%c3_80, %c0_81, %c0_82] : memref<4x384x256xbf16, #tpu.memory_space<vmem>>, vector<1x384x256xbf16>
    %94 = vector.shape_cast %93 : vector<1x384x256xbf16> to vector<384x256xbf16>
    %cst_83 = arith.constant dense<0.000000e+00> : vector<2x256xf32>
    %95 = tpu.matmul %92, %94, %cst_83 {dimension_numbers = #tpu.dot_dimension_numbers<[1], [0], [0], [1], [0, 0, 1, 1], [], []>} : vector<2x384xbf16>, vector<384x256xbf16>, vector<2x256xf32> -> vector<2x256xf32>
    %96 = arith.addf %91, %95 : vector<2x256xf32>
    %c1_84 = arith.constant 1 : index
    %c0_85 = arith.constant 0 : index
    %c0_86 = arith.constant 0 : index
    %c0_87 = arith.constant 0 : index
    %97 = vector.load %arg5[%c1_84, %c0_85, %c0_86, %c0_87] : memref<2x2x2x256xf32, #tpu.memory_space<vmem>>, vector<1x1x2x256xf32>
    %98 = vector.shape_cast %97 : vector<1x1x2x256xf32> to vector<2x256xf32>
    %99 = vector.shape_cast %96 : vector<2x256xf32> to vector<1x1x2x256xf32>
    tpu.vector_store %arg5[%c1_84, %c0_85, %c0_86, %c0_87], %99 {strides = array<i32>} : memref<2x2x2x256xf32, #tpu.memory_space<vmem>>, vector<1x1x2x256xf32>,
    %cst_88 = arith.constant dense<0.000000e+00> : vector<256xf32>
    %100 = vector.multi_reduction <add>, %96, %cst_88 [0] : vector<2x256xf32> to vector<256xf32>
    %101 = vector.shape_cast %100 : vector<256xf32> to vector<1x256xf32>
    %102 = arith.addf %67, %101 : vector<1x256xf32>
    %103 = arith.mulf %96, %96 : vector<2x256xf32>
    %cst_89 = arith.constant dense<0.000000e+00> : vector<256xf32>
    %104 = vector.multi_reduction <add>, %103, %cst_89 [0] : vector<2x256xf32> to vector<256xf32>
    %105 = vector.shape_cast %104 : vector<256xf32> to vector<1x256xf32>
    %106 = arith.addf %71, %105 : vector<1x256xf32>
    %cst_90 = arith.constant 0.000000e+00 : f32
    %107 = vector.broadcast %cst_90 : f32 to vector<2x256xf32>
    %c1_91 = arith.constant 1 : index
    %c1_92 = arith.constant 1 : index
    %c0_93 = arith.constant 0 : index
    %c0_94 = arith.constant 0 : index
    %108 = vector.load %arg1[%c1_91, %c1_92, %c0_93, %c0_94] : memref<2x3x3x384xbf16, #tpu.memory_space<vmem>>, vector<1x1x3x384xbf16>
    %109 = vector.shape_cast %108 : vector<1x1x3x384xbf16> to vector<3x384xbf16>
    %110 = vector.extract_strided_slice %109 {offsets = [0, 0], sizes = [2, 384], strides = [1, 1]} : vector<3x384xbf16> to vector<2x384xbf16>
    %c0_95 = arith.constant 0 : index
    %c0_96 = arith.constant 0 : index
    %c0_97 = arith.constant 0 : index
    %111 = vector.load %arg2[%c0_95, %c0_96, %c0_97] : memref<4x384x256xbf16, #tpu.memory_space<vmem>>, vector<1x384x256xbf16>
    %112 = vector.shape_cast %111 : vector<1x384x256xbf16> to vector<384x256xbf16>
    %cst_98 = arith.constant dense<0.000000e+00> : vector<2x256xf32>
    %113 = tpu.matmul %110, %112, %cst_98 {dimension_numbers = #tpu.dot_dimension_numbers<[1], [0], [0], [1], [0, 0, 1, 1], [], []>} : vector<2x384xbf16>, vector<384x256xbf16>, vector<2x256xf32> -> vector<2x256xf32>
    %114 = arith.addf %107, %113 : vector<2x256xf32>
    %115 = vector.extract_strided_slice %109 {offsets = [1, 0], sizes = [2, 384], strides = [1, 1]} : vector<3x384xbf16> to vector<2x384xbf16>
    %c1_99 = arith.constant 1 : index
    %c0_100 = arith.constant 0 : index
    %c0_101 = arith.constant 0 : index
    %116 = vector.load %arg2[%c1_99, %c0_100, %c0_101] : memref<4x384x256xbf16, #tpu.memory_space<vmem>>, vector<1x384x256xbf16>
    %117 = vector.shape_cast %116 : vector<1x384x256xbf16> to vector<384x256xbf16>
    %cst_102 = arith.constant dense<0.000000e+00> : vector<2x256xf32>
    %118 = tpu.matmul %115, %117, %cst_102 {dimension_numbers = #tpu.dot_dimension_numbers<[1], [0], [0], [1], [0, 0, 1, 1], [], []>} : vector<2x384xbf16>, vector<384x256xbf16>, vector<2x256xf32> -> vector<2x256xf32>
    %119 = arith.addf %114, %118 : vector<2x256xf32>
    %c1_103 = arith.constant 1 : index
    %c2_104 = arith.constant 2 : index
    %c0_105 = arith.constant 0 : index
    %c0_106 = arith.constant 0 : index
    %120 = vector.load %arg1[%c1_103, %c2_104, %c0_105, %c0_106] : memref<2x3x3x384xbf16, #tpu.memory_space<vmem>>, vector<1x1x3x384xbf16>
    %121 = vector.shape_cast %120 : vector<1x1x3x384xbf16> to vector<3x384xbf16>
    %122 = vector.extract_strided_slice %121 {offsets = [0, 0], sizes = [2, 384], strides = [1, 1]} : vector<3x384xbf16> to vector<2x384xbf16>
    %c2_107 = arith.constant 2 : index
    %c0_108 = arith.constant 0 : index
    %c0_109 = arith.constant 0 : index
    %123 = vector.load %arg2[%c2_107, %c0_108, %c0_109] : memref<4x384x256xbf16, #tpu.memory_space<vmem>>, vector<1x384x256xbf16>
    %124 = vector.shape_cast %123 : vector<1x384x256xbf16> to vector<384x256xbf16>
    %cst_110 = arith.constant dense<0.000000e+00> : vector<2x256xf32>
    %125 = tpu.matmul %122, %124, %cst_110 {dimension_numbers = #tpu.dot_dimension_numbers<[1], [0], [0], [1], [0, 0, 1, 1], [], []>} : vector<2x384xbf16>, vector<384x256xbf16>, vector<2x256xf32> -> vector<2x256xf32>
    %126 = arith.addf %119, %125 : vector<2x256xf32>
    %127 = vector.extract_strided_slice %121 {offsets = [1, 0], sizes = [2, 384], strides = [1, 1]} : vector<3x384xbf16> to vector<2x384xbf16>
    %c3_111 = arith.constant 3 : index
    %c0_112 = arith.constant 0 : index
    %c0_113 = arith.constant 0 : index
    %128 = vector.load %arg2[%c3_111, %c0_112, %c0_113] : memref<4x384x256xbf16, #tpu.memory_space<vmem>>, vector<1x384x256xbf16>
    %129 = vector.shape_cast %128 : vector<1x384x256xbf16> to vector<384x256xbf16>
    %cst_114 = arith.constant dense<0.000000e+00> : vector<2x256xf32>
    %130 = tpu.matmul %127, %129, %cst_114 {dimension_numbers = #tpu.dot_dimension_numbers<[1], [0], [0], [1], [0, 0, 1, 1], [], []>} : vector<2x384xbf16>, vector<384x256xbf16>, vector<2x256xf32> -> vector<2x256xf32>
    %131 = arith.addf %126, %130 : vector<2x256xf32>
    %c1_115 = arith.constant 1 : index
    %c1_116 = arith.constant 1 : index
    %c0_117 = arith.constant 0 : index
    %c0_118 = arith.constant 0 : index
    %132 = vector.load %arg5[%c1_115, %c1_116, %c0_117, %c0_118] : memref<2x2x2x256xf32, #tpu.memory_space<vmem>>, vector<1x1x2x256xf32>
    %133 = vector.shape_cast %132 : vector<1x1x2x256xf32> to vector<2x256xf32>
    %134 = vector.shape_cast %131 : vector<2x256xf32> to vector<1x1x2x256xf32>
    tpu.vector_store %arg5[%c1_115, %c1_116, %c0_117, %c0_118], %134 {strides = array<i32>} : memref<2x2x2x256xf32, #tpu.memory_space<vmem>>, vector<1x1x2x256xf32>,
    %cst_119 = arith.constant dense<0.000000e+00> : vector<256xf32>
    %135 = vector.multi_reduction <add>, %131, %cst_119 [0] : vector<2x256xf32> to vector<256xf32>
    %136 = vector.shape_cast %135 : vector<256xf32> to vector<1x256xf32>
    %137 = arith.addf %102, %136 : vector<1x256xf32>
    %138 = arith.mulf %131, %131 : vector<2x256xf32>
    %cst_120 = arith.constant dense<0.000000e+00> : vector<256xf32>
    %139 = vector.multi_reduction <add>, %138, %cst_120 [0] : vector<2x256xf32> to vector<256xf32>
    %140 = vector.shape_cast %139 : vector<256xf32> to vector<1x256xf32>
    %141 = arith.addf %106, %140 : vector<1x256xf32>
    %cst_121 = arith.constant 8.000000e+00 : f32
    %142 = vector.broadcast %cst_121 : f32 to vector<1x256xf32>
    %143 = arith.divf %137, %142 : vector<1x256xf32>
    %cst_122 = arith.constant 8.000000e+00 : f32
    %144 = vector.broadcast %cst_122 : f32 to vector<1x256xf32>
    %145 = arith.divf %141, %144 : vector<1x256xf32>
    %146 = arith.mulf %143, %143 : vector<1x256xf32>
    %147 = arith.subf %145, %146 : vector<1x256xf32>
    %cst_123 = arith.constant 0.000000e+00 : f32
    %148 = vector.broadcast %cst_123 : f32 to vector<1x256xf32>
    %149 = arith.maximumf %147, %148 : vector<1x256xf32>
    %c0_124 = arith.constant 0 : index
    %c0_125 = arith.constant 0 : index
    %150 = vector.load %arg3[%c0_124, %c0_125] : memref<1x256xf32, #tpu.memory_space<vmem>>, vector<1x256xf32>
    %cst_126 = arith.constant 9.99999974E-6 : f32
    %151 = vector.broadcast %cst_126 : f32 to vector<1x256xf32>
    %152 = arith.addf %149, %151 : vector<1x256xf32>
    %153 = math.rsqrt %152 : vector<1x256xf32>
    %154 = arith.mulf %150, %153 : vector<1x256xf32>
    %c0_127 = arith.constant 0 : index
    %c0_128 = arith.constant 0 : index
    %155 = vector.load %arg4[%c0_127, %c0_128] : memref<1x256xf32, #tpu.memory_space<vmem>>, vector<1x256xf32>
    %156 = arith.mulf %143, %154 : vector<1x256xf32>
    %157 = arith.subf %155, %156 : vector<1x256xf32>
    %c0_129 = arith.constant 0 : index
    %c0_130 = arith.constant 0 : index
    %c0_131 = arith.constant 0 : index
    %c0_132 = arith.constant 0 : index
    %158 = vector.load %arg5[%c0_129, %c0_130, %c0_131, %c0_132] : memref<2x2x2x256xf32, #tpu.memory_space<vmem>>, vector<1x1x2x256xf32>
    %159 = vector.shape_cast %158 : vector<1x1x2x256xf32> to vector<2x256xf32>
    %160 = vector.broadcast %154 : vector<1x256xf32> to vector<2x256xf32>
    %161 = arith.mulf %159, %160 : vector<2x256xf32>
    %162 = vector.broadcast %157 : vector<1x256xf32> to vector<2x256xf32>
    %163 = arith.addf %161, %162 : vector<2x256xf32>
    %cst_133 = arith.constant 0.000000e+00 : f32
    %164 = vector.broadcast %cst_133 : f32 to vector<2x256xf32>
    %165 = arith.maximumf %163, %164 : vector<2x256xf32>
    %c0_134 = arith.constant 0 : index
    %c0_135 = arith.constant 0 : index
    %c0_136 = arith.constant 0 : index
    %c0_137 = arith.constant 0 : index
    %166 = vector.load %arg5[%c0_134, %c0_135, %c0_136, %c0_137] : memref<2x2x2x256xf32, #tpu.memory_space<vmem>>, vector<1x1x2x256xf32>
    %167 = vector.shape_cast %166 : vector<1x1x2x256xf32> to vector<2x256xf32>
    %168 = vector.shape_cast %165 : vector<2x256xf32> to vector<1x1x2x256xf32>
    tpu.vector_store %arg5[%c0_134, %c0_135, %c0_136, %c0_137], %168 {strides = array<i32>} : memref<2x2x2x256xf32, #tpu.memory_space<vmem>>, vector<1x1x2x256xf32>,
    %c0_138 = arith.constant 0 : index
    %c1_139 = arith.constant 1 : index
    %c0_140 = arith.constant 0 : index
    %c0_141 = arith.constant 0 : index
    %169 = vector.load %arg5[%c0_138, %c1_139, %c0_140, %c0_141] : memref<2x2x2x256xf32, #tpu.memory_space<vmem>>, vector<1x1x2x256xf32>
    %170 = vector.shape_cast %169 : vector<1x1x2x256xf32> to vector<2x256xf32>
    %171 = vector.broadcast %154 : vector<1x256xf32> to vector<2x256xf32>
    %172 = arith.mulf %170, %171 : vector<2x256xf32>
    %173 = vector.broadcast %157 : vector<1x256xf32> to vector<2x256xf32>
    %174 = arith.addf %172, %173 : vector<2x256xf32>
    %cst_142 = arith.constant 0.000000e+00 : f32
    %175 = vector.broadcast %cst_142 : f32 to vector<2x256xf32>
    %176 = arith.maximumf %174, %175 : vector<2x256xf32>
    %c0_143 = arith.constant 0 : index
    %c1_144 = arith.constant 1 : index
    %c0_145 = arith.constant 0 : index
    %c0_146 = arith.constant 0 : index
    %177 = vector.load %arg5[%c0_143, %c1_144, %c0_145, %c0_146] : memref<2x2x2x256xf32, #tpu.memory_space<vmem>>, vector<1x1x2x256xf32>
    %178 = vector.shape_cast %177 : vector<1x1x2x256xf32> to vector<2x256xf32>
    %179 = vector.shape_cast %176 : vector<2x256xf32> to vector<1x1x2x256xf32>
    tpu.vector_store %arg5[%c0_143, %c1_144, %c0_145, %c0_146], %179 {strides = array<i32>} : memref<2x2x2x256xf32, #tpu.memory_space<vmem>>, vector<1x1x2x256xf32>,
    %c1_147 = arith.constant 1 : index
    %c0_148 = arith.constant 0 : index
    %c0_149 = arith.constant 0 : index
    %c0_150 = arith.constant 0 : index
    %180 = vector.load %arg5[%c1_147, %c0_148, %c0_149, %c0_150] : memref<2x2x2x256xf32, #tpu.memory_space<vmem>>, vector<1x1x2x256xf32>
    %181 = vector.shape_cast %180 : vector<1x1x2x256xf32> to vector<2x256xf32>
    %182 = vector.broadcast %154 : vector<1x256xf32> to vector<2x256xf32>
    %183 = arith.mulf %181, %182 : vector<2x256xf32>
    %184 = vector.broadcast %157 : vector<1x256xf32> to vector<2x256xf32>
    %185 = arith.addf %183, %184 : vector<2x256xf32>
    %cst_151 = arith.constant 0.000000e+00 : f32
    %186 = vector.broadcast %cst_151 : f32 to vector<2x256xf32>
    %187 = arith.maximumf %185, %186 : vector<2x256xf32>
    %c1_152 = arith.constant 1 : index
    %c0_153 = arith.constant 0 : index
    %c0_154 = arith.constant 0 : index
    %c0_155 = arith.constant 0 : index
    %188 = vector.load %arg5[%c1_152, %c0_153, %c0_154, %c0_155] : memref<2x2x2x256xf32, #tpu.memory_space<vmem>>, vector<1x1x2x256xf32>
    %189 = vector.shape_cast %188 : vector<1x1x2x256xf32> to vector<2x256xf32>
    %190 = vector.shape_cast %187 : vector<2x256xf32> to vector<1x1x2x256xf32>
    tpu.vector_store %arg5[%c1_152, %c0_153, %c0_154, %c0_155], %190 {strides = array<i32>} : memref<2x2x2x256xf32, #tpu.memory_space<vmem>>, vector<1x1x2x256xf32>,
    %c1_156 = arith.constant 1 : index
    %c1_157 = arith.constant 1 : index
    %c0_158 = arith.constant 0 : index
    %c0_159 = arith.constant 0 : index
    %191 = vector.load %arg5[%c1_156, %c1_157, %c0_158, %c0_159] : memref<2x2x2x256xf32, #tpu.memory_space<vmem>>, vector<1x1x2x256xf32>
    %192 = vector.shape_cast %191 : vector<1x1x2x256xf32> to vector<2x256xf32>
    %193 = vector.broadcast %154 : vector<1x256xf32> to vector<2x256xf32>
    %194 = arith.mulf %192, %193 : vector<2x256xf32>
    %195 = vector.broadcast %157 : vector<1x256xf32> to vector<2x256xf32>
    %196 = arith.addf %194, %195 : vector<2x256xf32>
    %cst_160 = arith.constant 0.000000e+00 : f32
    %197 = vector.broadcast %cst_160 : f32 to vector<2x256xf32>
    %198 = arith.maximumf %196, %197 : vector<2x256xf32>
    %c1_161 = arith.constant 1 : index
    %c1_162 = arith.constant 1 : index
    %c0_163 = arith.constant 0 : index
    %c0_164 = arith.constant 0 : index
    %199 = vector.load %arg5[%c1_161, %c1_162, %c0_163, %c0_164] : memref<2x2x2x256xf32, #tpu.memory_space<vmem>>, vector<1x1x2x256xf32>
    %200 = vector.shape_cast %199 : vector<1x1x2x256xf32> to vector<2x256xf32>
    %201 = vector.shape_cast %198 : vector<2x256xf32> to vector<1x1x2x256xf32>
    tpu.vector_store %arg5[%c1_161, %c1_162, %c0_163, %c0_164], %201 {strides = array<i32>} : memref<2x2x2x256xf32, #tpu.memory_space<vmem>>, vector<1x1x2x256xf32>,
    return
  }
  func.func @transform_0(%arg0: i32) -> (i32, i32, i32, i32) {
    %c0_i32 = arith.constant 0 : i32
    %c0_i32_0 = arith.constant 0 : i32
    %c0_i32_1 = arith.constant 0 : i32
    %c0_i32_2 = arith.constant 0 : i32
    %c0_i32_3 = arith.constant 0 : i32
    return %c0_i32, %c0_i32_0, %c0_i32_1, %c0_i32_2 : i32, i32, i32, i32
  }
  func.func @transform_1(%arg0: i32) -> (i32, i32, i32) {
    %c0_i32 = arith.constant 0 : i32
    %c0_i32_0 = arith.constant 0 : i32
    %c0_i32_1 = arith.constant 0 : i32
    %c0_i32_2 = arith.constant 0 : i32
    return %c0_i32, %c0_i32_0, %c0_i32_1 : i32, i32, i32
  }
  func.func @transform_2(%arg0: i32) -> (i32, i32) {
    %c0_i32 = arith.constant 0 : i32
    %c0_i32_0 = arith.constant 0 : i32
    %c0_i32_1 = arith.constant 0 : i32
    return %c0_i32, %c0_i32_0 : i32, i32
  }
  func.func @transform_3(%arg0: i32) -> (i32, i32) {
    %c0_i32 = arith.constant 0 : i32
    %c0_i32_0 = arith.constant 0 : i32
    %c0_i32_1 = arith.constant 0 : i32
    return %c0_i32, %c0_i32_0 : i32, i32
  }
  func.func @transform_4(%arg0: i32) -> (i32, i32, i32, i32) {
    %c0_i32 = arith.constant 0 : i32
    %c0_i32_0 = arith.constant 0 : i32
    %c0_i32_1 = arith.constant 0 : i32
    %c0_i32_2 = arith.constant 0 : i32
    %c0_i32_3 = arith.constant 0 : i32
    return %c0_i32, %c0_i32_0, %c0_i32_1, %c0_i32_2 : i32, i32, i32, i32
  }
}

</mosaic_0001>

<bundles_post_ra>
// kernel: conv_stream_forward.3
= control target key start
LH: loop header
LB: loop body
LE: loop exit
PB: predicated region body
PF: predicated region fallthrough
CT: control target
= control target key end

     0   :  { %v5330_v0 = vmov 0.0   ;;  %vm5331_vm0 = vmmov 0   ;;  %vm43_vm1 = vcmask 130048   ;;  %s6191_s1 = inlined_call_operand.vmem [shape: bf16[4,16,128], index: 1, kind: input, shape index: {}]   ;;  %s6192_s0 = inlined_call_operand.vmem [shape: bf16[2,9,9,16], index: 0, kind: input, shape index: {}]   ;;  %s6193_s2 = inlined_call_operand.vmem [shape: f32[1,128], index: 2, kind: input, shape index: {}]   ;;  %s6194_s3 = inlined_call_operand.vmem [shape: f32[1,128], index: 3, kind: input, shape index: {}]   ;;  %s6195_s4 = inlined_call_operand.vmem [shape: f32[2,8,8,128], index: 4, kind: output, shape index: {}]  }
   0x1   :  { %4654 = vmatprep.subr.bf16.mxu0 %v5330_v0  ;;  %v5232_v1 = vld [vmem:[%s6191_s1 + $0x8] sm:$0xff]   ;;  %4678 = vmatprep.subr.bf16.mxu1 %v5330_v0  ;;  %v18_v3 = vld [vmem:[%s6192_s0] sm:$0xf]  ;;  %v19_v4 = vld [vmem:[%s6192_s0 + $0x4] sm:$0x1] }
   0x2   :  { %v5233_v2 = vld [vmem:[%s6191_s1 + $0x8] sm:$0xff]   ;;  %4656 = vmatprep.mubr.msk.bf16.mxu0 %vm5331_vm0, %v5330_v0  ;;  %4680 = vmatprep.mubr.msk.bf16.mxu1 %vm5331_vm0, %v5330_v0  ;;  %v4165_v5 = vcombine.low %v18_v3, %v19_v4  ;;  %v5235_v14 = vld [vmem:[%s6191_s1] sm:$0xff]   ;;  %v5238_v19 = vld [vmem:[%s6191_s1 + $0x10] sm:$0xff]  }
   0x3   :  { %4655 = vmatpush3.bf16.msra.mxu0 %v5232_v1  ;;  %4679 = vmatpush3.bf16.msra.mxu1 %v5233_v2  ;;  %v4181_v6 = vld [vmem:[%s6192_s0 + $0x8] sm:$0xf]  ;;  %v4182_v7 = vld [vmem:[%s6192_s0 + $0xc] sm:$0x1]  ;;  %v5237_v17 = vld [vmem:[%s6191_s1] sm:$0xff]  }
   0x4   :  { %4660 = vmatprep.subr.bf16.mxu0 %v5330_v0  ;;  %4684 = vmatprep.subr.bf16.mxu1 %v5330_v0  ;;  %v31_v8 = vshrl.u32 %v4165_v5, 16  ;;  %v33_v9 = vshll.u32 %v4165_v5, 16  ;;  %v4185_v10 = vcombine.low %v4181_v6, %v4182_v7  ;;  %v5239_v20 = vld [vmem:[%s6191_s1 + $0x10] sm:$0xff]   ;;  %v4171_v21 = vld [vmem:[%s6192_s0 + $0xc] sm:$0x1]  ;;  %v5241_v25 = vld [vmem:[%s6191_s1 + $0x18] sm:$0xff]  }
   0x5   :  { %v4170_v22 = vld [vmem:[%s6192_s0 + $0x8] sm:$0xf]  ;;  %v4191_v24 = vld [vmem:[%s6192_s0 + $0x14] sm:$0x1]  ;;  %v4190_v26 = vld [vmem:[%s6192_s0 + $0x10] sm:$0xf] }
   0x6   :  { %v35_v11 = vrot.slane %v33_v9, 1  ;;  %v285_v12 = vshrl.u32 %v4185_v10, 16  ;;  %v287_v13 = vshll.u32 %v4185_v10, 16  ;;  %v4178_v23 = vcombine.low %v4170_v22, %v4171_v21  ;;  %v5243_v29 = vld [vmem:[%s6191_s1 + $0x18] sm:$0xff]   ;;  %v4202_v30 = vld [vmem:[%s6192_s0 + $0x10] sm:$0xf] }
   0x7   :  { %v4198_v28 = vcombine.low %v4190_v26, %v4191_v24  ;;  %v4203_v31 = vld [vmem:[%s6192_s0 + $0x14] sm:$0x1]  ;;  %v4223_v35 = vld [vmem:[%s6192_s0 + $0x18] sm:$0xf]  ;;  %v4224_v36 = vld [vmem:[%s6192_s0 + $0x1c] sm:$0x1] }
   0x8   :  { %v36_v15 = vor.u32 %v35_v11, %v31_v8  ;;  %v289_v16 = vrot.slane %v287_v13, 1  ;;  %v203_v27 = vshll.u32 %v4178_v23, 16  ;;  %v201_v32 = vshrl.u32 %v4178_v23, 16  ;;  %v5244_v43 = vld [vmem:[%s6191_s1 + $0x8] sm:$0xff]   ;;  %v5247_v52 = vld [vmem:[%s6191_s1] sm:$0xff]   ;;  %v5250_v55 = vld [vmem:[%s6191_s1 + $0x10] sm:$0xff]  }
   0x9   :  { %v454_v34 = vshll.u32 %v4198_v28, 16  ;;  %v4206_v37 = vcombine.low %v4202_v30, %v4203_v31  ;;  %v452_v38 = vshrl.u32 %v4198_v28, 16  ;;  %v4227_v40 = vcombine.low %v4223_v35, %v4224_v36  ;;  %v5245_v45 = vld [vmem:[%s6191_s1 + $0x8] sm:$0xff]   ;;  %v5249_v54 = vld [vmem:[%s6191_s1] sm:$0xff]   ;;  %v5251_v56 = vld [vmem:[%s6191_s1 + $0x10] sm:$0xff]  }
   0xa   :  { %4657 = vmatmul.mubr.msk.bf16.vlgmr.msra.gmra.mrb[0].mxu0 %vm43_vm1, %v36_v15  ;;  %v290_v18 = vor.u32 %v289_v16, %v285_v12  ;;  %v205_v33 = vrot.slane %v203_v27, 1  ;;  %v4212_v57 = vld [vmem:[%s6192_s0 + $0x1c] sm:$0x1]  ;;  %v4211_v58 = vld [vmem:[%s6192_s0 + $0x18] sm:$0xf]  ;;  %v5256_v16 = vld [vmem:[%s6191_s1 + $0x8] sm:$0xff]  }
   0xb   :  { %4661 = vmatpush3.bf16.msra.mxu0 %v5235_v14  ;;  %4662 = vmatprep.mubr.msk.bf16.mxu0 %vm5331_vm0, %v5330_v0  ;;  %v456_v39 = vrot.slane %v454_v34, 1  ;;  %v539_v42 = vshll.u32 %v4206_v37, 16  ;;  %v791_v46 = vshll.u32 %v4227_v40, 16  ;;  %v537_v47 = vshrl.u32 %v4206_v37, 16  ;;  %v4233_v59 = vld [vmem:[%s6192_s0 + $0x24] sm:$0x1] }
   0xc   :  { %4681 = vmatmul.mubr.msk.bf16.vlgmr.msra.gmra.mrb[0].mxu1 %vm43_vm1, %v290_v18  ;;  %4666 = vmatprep.subr.bf16.mxu0 %v5330_v0  ;;  %v206_v41 = vor.u32 %v205_v33, %v201_v32  ;;  %v789_v49 = vshrl.u32 %v4227_v40, 16  ;;  %v4219_v60 = vcombine.low %v4211_v58, %v4212_v57  ;;  %v5253_v61 = vld [vmem:[%s6191_s1 + $0x18] sm:$0xff]   ;;  %v4232_v62 = vld [vmem:[%s6192_s0 + $0x20] sm:$0xf]  ;;  %v4245_v4 = vld [vmem:[%s6192_s0 + $0x24] sm:$0x1] }
   0xd   :  { %4685 = vmatpush3.bf16.msra.mxu1 %v5237_v17  ;;  %4686 = vmatprep.mubr.msk.bf16.mxu1 %vm5331_vm0, %v5330_v0  ;;  %v457_v44 = vor.u32 %v456_v39, %v452_v38  ;;  %v541_v48 = vrot.slane %v539_v42, 1  ;;  %v793_v50 = vrot.slane %v791_v46, 1  ;;  %v4240_v63 = vcombine.low %v4232_v62, %v4233_v59  ;;  %v5255_v1 = vld [vmem:[%s6191_s1 + $0x18] sm:$0xff]   ;;  %v4266_v7 = vld [vmem:[%s6192_s0 + $0x2c] sm:$0x1]  ;;  %v5261_v27 = vld [vmem:[%s6191_s1] sm:$0xff]  }
   0xe   :  { %4690 = vmatprep.subr.bf16.mxu1 %v5330_v0  ;;  %v706_v2 = vshll.u32 %v4219_v60, 16  ;;  %v704_v8 = vshrl.u32 %v4219_v60, 16  ;;  %v5262_v28 = vld [vmem:[%s6191_s1 + $0x10] sm:$0xff]   ;;  %v4253_v31 = vld [vmem:[%s6192_s0 + $0x28] sm:$0xf]  ;;  %v5265_v34 = vld [vmem:[%s6191_s1 + $0x18] sm:$0xff]  }
   0xf   :  { %v542_v51 = vor.u32 %v541_v48, %v537_v47  ;;  %v794_v53 = vor.u32 %v793_v50, %v789_v49  ;;  %v958_v5 = vshll.u32 %v4240_v63, 16  ;;  %v956_v11 = vshrl.u32 %v4240_v63, 16  ;;  %v4275_v32 = vld [vmem:[%s6192_s0 + $0x34] sm:$0x1]  ;;  %v5267_v37 = vld [vmem:[%s6191_s1 + $0x18] sm:$0xff]   ;;  %v5273_v63 = vld [vmem:[%s6191_s1] sm:$0xff]  }
  0x10   :  { %v708_v9 = vrot.slane %v706_v2, 1  ;;  %v4286_v39 = vld [vmem:[%s6192_s0 + $0x30] sm:$0xf]  ;;  %v4287_v40 = vld [vmem:[%s6192_s0 + $0x34] sm:$0x1] }
  0x11   :  { %v960_v12 = vrot.slane %v958_v5, 1  ;;  %v4307_v42 = vld [vmem:[%s6192_s0 + $0x38] sm:$0xf]  ;;  %v4290_v46 = vcombine.low %v4286_v39, %v4287_v40  ;;  %v5275_v2 = vld [vmem:[%s6191_s1 + $0x10] sm:$0xff]   ;;  %v4317_v5 = vld [vmem:[%s6192_s0 + $0x44] sm:$0x1] }
  0x12   :  { %v709_v14 = vor.u32 %v708_v9, %v704_v8  ;;  %v4316_v8 = vld [vmem:[%s6192_s0 + $0x40] sm:$0xf]  ;;  %v4337_v40 = vld [vmem:[%s6192_s0 + $0x50] sm:$0xf] }
  0x13   :  { %v961_v17 = vor.u32 %v960_v12, %v956_v11  ;;  %v4324_v9 = vcombine.low %v4316_v8, %v4317_v5  ;;  %v4328_v12 = vld [vmem:[%s6192_s0 + $0x48] sm:$0xf] }
  0x16   :  { %4663 = vmatmul.mubr.msk.bf16.vlgmr.msra.gmra.mrb[0].mxu0 %vm43_vm1, %v18_v3  ;;  %v4244_v3 = vld [vmem:[%s6192_s0 + $0x20] sm:$0xf] }
  0x17   :  { %4667 = vmatpush3.bf16.msra.mxu0 %v5238_v19  ;;  %4668 = vmatprep.mubr.msk.bf16.mxu0 %vm5331_vm0, %v5330_v0  ;;  %v4248_v10 = vcombine.low %v4244_v3, %v4245_v4  ;;  %v5257_v19 = vld [vmem:[%s6191_s1 + $0x8] sm:$0xff]   ;;  %v4295_v4 = vld [vmem:[%s6192_s0 + $0x38] sm:$0xf] }
  0x18   :  { %4687 = vmatmul.mubr.msk.bf16.vlgmr.msra.gmra.mrb[0].mxu1 %vm43_vm1, %v4181_v6  ;;  %4672 = vmatprep.subr.bf16.mxu0 %v5330_v0  ;;  %v4265_v6 = vld [vmem:[%s6192_s0 + $0x28] sm:$0xf] }
  0x19   :  { %4691 = vmatpush3.bf16.msra.mxu1 %v5239_v20  ;;  %4692 = vmatprep.mubr.msk.bf16.mxu1 %vm5331_vm0, %v5330_v0  ;;  %v4269_v13 = vcombine.low %v4265_v6, %v4266_v7  ;;  %v1043_v15 = vshll.u32 %v4248_v10, 16  ;;  %v1041_v20 = vshrl.u32 %v4248_v10, 16  ;;  %v5277_v7 = vld [vmem:[%s6191_s1 + $0x18] sm:$0xff]  }
  0x1a   :  { %4696 = vmatprep.subr.bf16.mxu1 %v5330_v0  ;;  %v5279_v10 = vld [vmem:[%s6191_s1 + $0x18] sm:$0xff]  }
  0x1b   :  { %v1295_v18 = vshll.u32 %v4269_v13, 16  ;;  %v1045_v21 = vrot.slane %v1043_v15, 1  ;;  %v4349_v15 = vld [vmem:[%s6192_s0 + $0x50] sm:$0xf] }
  0x1d   :  { %v1297_v23 = vrot.slane %v1295_v18, 1  ;;  %v1046_v24 = vor.u32 %v1045_v21, %v1041_v20  ;;  %v1964_v20 = vshrl.u32 %v4324_v9, 16 }
  0x22   :  { %4669 = vmatmul.mubr.msk.bf16.vlgmr.msra.gmra.mrb[0].mxu0 %vm43_vm1, %v4170_v22  ;;  %v1293_v22 = vshrl.u32 %v4269_v13, 16  ;;  %v4329_v13 = vld [vmem:[%s6192_s0 + $0x4c] sm:$0x1] }
  0x23   :  { %4673 = vmatpush3.bf16.msra.mxu0 %v5241_v25  ;;  %4674 = vmatprep.mubr.msk.bf16.mxu0 %vm5331_vm0, %v5330_v0  ;;  %v5259_v25 = vld [vmem:[%s6191_s1] sm:$0xff]  }
  0x24   :  { %4693 = vmatmul.mubr.msk.bf16.vlgmr.msra.gmra.mrb[0].mxu1 %vm43_vm1, %v4190_v26  ;;  %4702 = vmatprep.subr.bf16.mxu0 %v5330_v0  ;;  %v1298_v26 = vor.u32 %v1297_v23, %v1293_v22 }
  0x25   :  { %4697 = vmatpush3.bf16.msra.mxu1 %v5243_v29  ;;  %4698 = vmatprep.mubr.msk.bf16.mxu1 %vm5331_vm0, %v5330_v0  ;;  %v5263_v29 = vld [vmem:[%s6191_s1 + $0x10] sm:$0xff]  }
  0x26   :  { %4726 = vmatprep.subr.bf16.mxu1 %v5330_v0 }
  0x2e   :  { %4675 = vmatmul.mubr.msk.bf16.vlgmr.msra.gmra.mrb[0].mxu0 %vm43_vm1, %v206_v41 }
  0x2f   :  { %4703 = vmatpush3.bf16.msra.mxu0 %v5244_v43  ;;  %4704 = vmatprep.mubr.msk.bf16.mxu0 %vm5331_vm0, %v5330_v0  ;;  %v4308_v43 = vld [vmem:[%s6192_s0 + $0x3c] sm:$0x1] }
  0x30   :  { %4699 = vmatmul.mubr.msk.bf16.vlgmr.msra.gmra.mrb[0].mxu1 %vm43_vm1, %v457_v44  ;;  %4708 = vmatprep.subr.bf16.mxu0 %v5330_v0  ;;  %v4311_v49 = vcombine.low %v4307_v42, %v4308_v43  ;;  %v5289_v43 = vld [vmem:[%s6191_s1 + $0x18] sm:$0xff]  }
  0x31   :  { %4727 = vmatpush3.bf16.msra.mxu1 %v5245_v45  ;;  %4728 = vmatprep.mubr.msk.bf16.mxu1 %vm5331_vm0, %v5330_v0 }
  0x32   :  { %4732 = vmatprep.subr.bf16.mxu1 %v5330_v0 }
  0x36   :  { %4705 = vmatmul.mubr.msk.bf16.vlgmr.msra.gmra.mrb[4].mxu0 %vm43_vm1, %v542_v51  ;;  %v1547_v51 = vshll.u32 %v4290_v46, 16 }
  0x37   :  { %4709 = vmatpush3.bf16.msra.mxu0 %v5247_v52  ;;  %4710 = vmatprep.mubr.msk.bf16.mxu0 %vm5331_vm0, %v5330_v0  ;;  %v5268_v52 = vld [vmem:[%s6191_s1 + $0x8] sm:$0xff]  }
  0x38   :  { %4729 = vmatmul.mubr.msk.bf16.vlgmr.msra.gmra.mrb[4].mxu1 %vm43_vm1, %v794_v53  ;;  %4714 = vmatprep.subr.bf16.mxu0 %v5330_v0  ;;  %v1549_v57 = vrot.slane %v1547_v51, 1  ;;  %v4391_v51 = vld [vmem:[%s6192_s0 + $0x60] sm:$0xf] }
  0x39   :  { %4733 = vmatpush3.bf16.msra.mxu1 %v5249_v54  ;;  %4734 = vmatprep.mubr.msk.bf16.mxu1 %vm5331_vm0, %v5330_v0  ;;  %v1799_v54 = vshll.u32 %v4311_v49, 16 }
  0x3a   :  { %4738 = vmatprep.subr.bf16.mxu1 %v5330_v0 }
  0x3b   :  { %v1801_v59 = vrot.slane %v1799_v54, 1 }
  0x42   :  { %4711 = vmatmul.mubr.msk.bf16.vlgmr.msra.gmra.mrb[4].mxu0 %vm43_vm1, %v4202_v30  ;;  %v4254_v30 = vld [vmem:[%s6192_s0 + $0x2c] sm:$0x1] }
  0x43   :  { %4715 = vmatpush3.bf16.msra.mxu0 %v5250_v55  ;;  %4716 = vmatprep.mubr.msk.bf16.mxu0 %vm5331_vm0, %v5330_v0  ;;  %v4261_v33 = vcombine.low %v4253_v31, %v4254_v30  ;;  %v5269_v55 = vld [vmem:[%s6191_s1 + $0x8] sm:$0xff]  }
  0x44   :  { %4735 = vmatmul.mubr.msk.bf16.vlgmr.msra.gmra.mrb[4].mxu1 %vm43_vm1, %v4223_v35  ;;  %4720 = vmatprep.subr.bf16.mxu0 %v5330_v0  ;;  %v4274_v35 = vld [vmem:[%s6192_s0 + $0x30] sm:$0xf] }
  0x45   :  { %4739 = vmatpush3.bf16.msra.mxu1 %v5251_v56  ;;  %4740 = vmatprep.mubr.msk.bf16.mxu1 %vm5331_vm0, %v5330_v0  ;;  %v4282_v36 = vcombine.low %v4274_v35, %v4275_v32  ;;  %v1210_v38 = vshll.u32 %v4261_v33, 16  ;;  %v1208_v44 = vshrl.u32 %v4261_v33, 16  ;;  %v1545_v56 = vshrl.u32 %v4290_v46, 16  ;;  %v5291_v46 = vld [vmem:[%s6191_s1 + $0x18] sm:$0xff]  }
  0x46   :  { %4744 = vmatprep.subr.bf16.mxu1 %v5330_v0 }
  0x47   :  { %v1462_v41 = vshll.u32 %v4282_v36, 16  ;;  %v1212_v45 = vrot.slane %v1210_v38, 1  ;;  %v1460_v47 = vshrl.u32 %v4282_v36, 16  ;;  %v1550_v60 = vor.u32 %v1549_v57, %v1545_v56  ;;  %v5285_v36 = vld [vmem:[%s6191_s1] sm:$0xff]   ;;  %v5287_v38 = vld [vmem:[%s6191_s1 + $0x10] sm:$0xff]  }
  0x49   :  { %v1464_v48 = vrot.slane %v1462_v41, 1  ;;  %v1213_v50 = vor.u32 %v1212_v45, %v1208_v44  ;;  %v4359_v41 = vld [vmem:[%s6192_s0 + $0x5c] sm:$0x1]  ;;  %v4358_v44 = vld [vmem:[%s6192_s0 + $0x58] sm:$0xf] }
  0x4a   :  { %v4366_v45 = vcombine.low %v4358_v44, %v4359_v41 }
  0x4b   :  { %v1465_v53 = vor.u32 %v1464_v48, %v1460_v47  ;;  %v4370_v48 = vld [vmem:[%s6192_s0 + $0x58] sm:$0xf] }
  0x4c   :  { %v2469_v56 = vshrl.u32 %v4366_v45, 16 }
  0x4e   :  { %4717 = vmatmul.mubr.msk.bf16.vlgmr.msra.gmra.mrb[4].mxu0 %vm43_vm1, %v4211_v58  ;;  %v1797_v58 = vshrl.u32 %v4311_v49, 16  ;;  %v4371_v49 = vld [vmem:[%s6192_s0 + $0x5c] sm:$0x1] }
  0x4f   :  { %4721 = vmatpush3.bf16.msra.mxu0 %v5253_v61  ;;  %4722 = vmatprep.mubr.msk.bf16.mxu0 %vm5331_vm0, %v5330_v0  ;;  %v5271_v61 = vld [vmem:[%s6191_s1] sm:$0xff]  }
  0x50   :  { %4741 = vmatmul.mubr.msk.bf16.vlgmr.msra.gmra.mrb[4].mxu1 %vm43_vm1, %v4232_v62  ;;  %4750 = vmatprep.subr.bf16.mxu0 %v5330_v0  ;;  %v1802_v62 = vor.u32 %v1801_v59, %v1797_v58 }
  0x51   :  { %4745 = vmatpush3.bf16.msra.mxu1 %v5255_v1  ;;  %4746 = vmatprep.mubr.msk.bf16.mxu1 %vm5331_vm0, %v5330_v0  ;;  %v5274_v1 = vld [vmem:[%s6191_s1 + $0x10] sm:$0xff]  }
  0x52   :  { %4774 = vmatprep.subr.bf16.mxu1 %v5330_v0 }
  0x5a   :  { %4723 = vmatmul.mubr.msk.bf16.vlgmr.msra.gmra.mrb[4].mxu0 %vm43_vm1, %v709_v14  ;;  %v1966_v14 = vshll.u32 %v4324_v9, 16  ;;  %v5297_v9 = vld [vmem:[%s6191_s1] sm:$0xff]  }
  0x5b   :  { %4751 = vmatpush3.bf16.msra.mxu0 %v5256_v16  ;;  %4752 = vmatprep.mubr.msk.bf16.mxu0 %vm5331_vm0, %v5330_v0  ;;  %v4350_v16 = vld [vmem:[%s6192_s0 + $0x54] sm:$0x1] }
  0x5c   :  { %4747 = vmatmul.mubr.msk.bf16.vlgmr.msra.gmra.mrb[4].mxu1 %vm43_vm1, %v961_v17  ;;  %4756 = vmatprep.subr.bf16.mxu0 %v5330_v0  ;;  %v1968_v21 = vrot.slane %v1966_v14, 1  ;;  %v4353_v22 = vcombine.low %v4349_v15, %v4350_v16  ;;  %v4401_v14 = vld [vmem:[%s6192_s0 + $0x6c] sm:$0x1]  ;;  %v4400_v16 = vld [vmem:[%s6192_s0 + $0x68] sm:$0xf] }
  0x5d   :  { %4775 = vmatpush3.bf16.msra.mxu1 %v5257_v19  ;;  %4776 = vmatprep.mubr.msk.bf16.mxu1 %vm5331_vm0, %v5330_v0  ;;  %v4332_v19 = vcombine.low %v4328_v12, %v4329_v13  ;;  %v4379_v13 = vld [vmem:[%s6192_s0 + $0x60] sm:$0xf] }
  0x5e   :  { %4780 = vmatprep.subr.bf16.mxu1 %v5330_v0 }
  0x62   :  { %4753 = vmatmul.mubr.msk.bf16.vlgmr.msra.gmra.mrb[8].mxu0 %vm43_vm1, %v1046_v24  ;;  %v2052_v24 = vshll.u32 %v4332_v19, 16 }
  0x63   :  { %4757 = vmatpush3.bf16.msra.mxu0 %v5259_v25  ;;  %4758 = vmatprep.mubr.msk.bf16.mxu0 %vm5331_vm0, %v5330_v0  ;;  %v5280_v25 = vld [vmem:[%s6191_s1 + $0x8] sm:$0xff]  }
  0x64   :  { %4777 = vmatmul.mubr.msk.bf16.vlgmr.msra.gmra.mrb[8].mxu1 %vm43_vm1, %v1298_v26  ;;  %4762 = vmatprep.subr.bf16.mxu0 %v5330_v0  ;;  %v1969_v26 = vor.u32 %v1968_v21, %v1964_v20  ;;  %v2054_v30 = vrot.slane %v2052_v24, 1  ;;  %v5303_v20 = vld [vmem:[%s6191_s1 + $0x18] sm:$0xff]   ;;  %v5833_v21 = vld [vmem:[%s6192_s0 + $0x68] sm:$0xf]  ;;  %v5845_v24 = vld [vmem:[%s6192_s0 + $0x70] sm:$0xf] }
  0x65   :  { %4781 = vmatpush3.bf16.msra.mxu1 %v5261_v27  ;;  %4782 = vmatprep.mubr.msk.bf16.mxu1 %vm5331_vm0, %v5330_v0  ;;  %v2304_v27 = vshll.u32 %v4353_v22, 16 }
  0x66   :  { %4786 = vmatprep.subr.bf16.mxu1 %v5330_v0 }
  0x67   :  { %v2306_v32 = vrot.slane %v2304_v27, 1 }
  0x6e   :  { %4759 = vmatmul.mubr.msk.bf16.vlgmr.msra.gmra.mrb[8].mxu0 %vm43_vm1, %v4244_v3  ;;  %v4296_v3 = vld [vmem:[%s6192_s0 + $0x3c] sm:$0x1] }
  0x6f   :  { %4763 = vmatpush3.bf16.msra.mxu0 %v5262_v28  ;;  %4764 = vmatprep.mubr.msk.bf16.mxu0 %vm5331_vm0, %v5330_v0  ;;  %v5281_v28 = vld [vmem:[%s6191_s1 + $0x8] sm:$0xff]  }
  0x70   :  { %4783 = vmatmul.mubr.msk.bf16.vlgmr.msra.gmra.mrb[8].mxu1 %vm43_vm1, %v4265_v6  ;;  %4768 = vmatprep.subr.bf16.mxu0 %v5330_v0  ;;  %v4303_v6 = vcombine.low %v4295_v4, %v4296_v3 }
  0x71   :  { %4787 = vmatpush3.bf16.msra.mxu1 %v5263_v29  ;;  %4788 = vmatprep.mubr.msk.bf16.mxu1 %vm5331_vm0, %v5330_v0  ;;  %v2050_v29 = vshrl.u32 %v4332_v19, 16 }
  0x72   :  { %4792 = vmatprep.subr.bf16.mxu1 %v5330_v0  ;;  %v1714_v11 = vshll.u32 %v4303_v6, 16  ;;  %v1712_v17 = vshrl.u32 %v4303_v6, 16 }
  0x73   :  { %v2055_v33 = vor.u32 %v2054_v30, %v2050_v29 }
  0x74   :  { %v1716_v18 = vrot.slane %v1714_v11, 1  ;;  %v5299_v11 = vld [vmem:[%s6191_s1 + $0x10] sm:$0xff]  }
  0x76   :  { %v1717_v23 = vor.u32 %v1716_v18, %v1712_v17  ;;  %v5301_v17 = vld [vmem:[%s6191_s1 + $0x18] sm:$0xff]   ;;  %v4408_v18 = vcombine.low %v4400_v16, %v4401_v14 }
  0x7a   :  { %4765 = vmatmul.mubr.msk.bf16.vlgmr.msra.gmra.mrb[8].mxu0 %vm43_vm1, %v4253_v31  ;;  %v2302_v31 = vshrl.u32 %v4353_v22, 16  ;;  %v4413_v22 = vld [vmem:[%s6192_s0 + $0x6c] sm:$0x1] }
  0x7b   :  { %4769 = vmatpush3.bf16.msra.mxu0 %v5265_v34  ;;  %4770 = vmatprep.mubr.msk.bf16.mxu0 %vm5331_vm0, %v5330_v0  ;;  %v5283_v34 = vld [vmem:[%s6191_s1] sm:$0xff]   ;;  %v4416_v29 = vcombine.low %v5833_v21, %v4413_v22  ;;  %v4422_v22 = vld [vmem:[%s6192_s0 + $0x74] sm:$0x1] }
  0x7c   :  { %4789 = vmatmul.mubr.msk.bf16.vlgmr.msra.gmra.mrb[8].mxu1 %vm43_vm1, %v4274_v35  ;;  %4798 = vmatprep.subr.bf16.mxu0 %v5330_v0  ;;  %v2307_v35 = vor.u32 %v2306_v32, %v2302_v31 }
  0x7d   :  { %4793 = vmatpush3.bf16.msra.mxu1 %v5267_v37  ;;  %4794 = vmatprep.mubr.msk.bf16.mxu1 %vm5331_vm0, %v5330_v0  ;;  %v5286_v37 = vld [vmem:[%s6191_s1 + $0x10] sm:$0xff]  }
  0x7e   :  { %4822 = vmatprep.subr.bf16.mxu1 %v5330_v0 }
  0x86   :  { %4771 = vmatmul.mubr.msk.bf16.vlgmr.msra.gmra.mrb[8].mxu0 %vm43_vm1, %v1213_v50  ;;  %v2471_v50 = vshll.u32 %v4366_v45, 16 }
  0x87   :  { %4799 = vmatpush3.bf16.msra.mxu0 %v5268_v52  ;;  %4800 = vmatprep.mubr.msk.bf16.mxu0 %vm5331_vm0, %v5330_v0  ;;  %v4392_v52 = vld [vmem:[%s6192_s0 + $0x64] sm:$0x1] }
  0x88   :  { %4795 = vmatmul.mubr.msk.bf16.vlgmr.msra.gmra.mrb[8].mxu1 %vm43_vm1, %v1465_v53  ;;  %4804 = vmatprep.subr.bf16.mxu0 %v5330_v0  ;;  %v2473_v57 = vrot.slane %v2471_v50, 1  ;;  %v4395_v58 = vcombine.low %v4391_v51, %v4392_v52 }
  0x89   :  { %4823 = vmatpush3.bf16.msra.mxu1 %v5269_v55  ;;  %4824 = vmatprep.mubr.msk.bf16.mxu1 %vm5331_vm0, %v5330_v0  ;;  %v4374_v55 = vcombine.low %v4370_v48, %v4371_v49 }
  0x8a   :  { %4828 = vmatprep.subr.bf16.mxu1 %v5330_v0 }
  0x8e   :  { %4801 = vmatmul.mubr.msk.bf16.vlgmr.msra.gmra.mrb[12].mxu0 %vm43_vm1, %v1550_v60  ;;  %v2556_v60 = vshll.u32 %v4374_v55, 16 }
  0x8f   :  { %4805 = vmatpush3.bf16.msra.mxu0 %v5271_v61  ;;  %4806 = vmatprep.mubr.msk.bf16.mxu0 %vm5331_vm0, %v5330_v0  ;;  %v5292_v61 = vld [vmem:[%s6191_s1 + $0x8] sm:$0xff]  }
  0x90   :  { %4825 = vmatmul.mubr.msk.bf16.vlgmr.msra.gmra.mrb[12].mxu1 %vm43_vm1, %v1802_v62  ;;  %4810 = vmatprep.subr.bf16.mxu0 %v5330_v0  ;;  %v2474_v62 = vor.u32 %v2473_v57, %v2469_v56  ;;  %v2558_v3 = vrot.slane %v2556_v60, 1  ;;  %v3058_v60 = vshrl.u32 %v4416_v29, 16 }
  0x91   :  { %4829 = vmatpush3.bf16.msra.mxu1 %v5273_v63  ;;  %4830 = vmatprep.mubr.msk.bf16.mxu1 %vm5331_vm0, %v5330_v0  ;;  %v2808_v63 = vshll.u32 %v4395_v58, 16 }
  0x92   :  { %4834 = vmatprep.subr.bf16.mxu1 %v5330_v0 }
  0x93   :  { %v2810_v5 = vrot.slane %v2808_v63, 1 }
  0x9a   :  { %4807 = vmatmul.mubr.msk.bf16.vlgmr.msra.gmra.mrb[12].mxu0 %vm43_vm1, %v4286_v39  ;;  %v4338_v39 = vld [vmem:[%s6192_s0 + $0x54] sm:$0x1] }
  0x9b   :  { %4811 = vmatpush3.bf16.msra.mxu0 %v5274_v1  ;;  %4812 = vmatprep.mubr.msk.bf16.mxu0 %vm5331_vm0, %v5330_v0  ;;  %v5293_v1 = vld [vmem:[%s6191_s1 + $0x8] sm:$0xff]  }
  0x9c   :  { %4831 = vmatmul.mubr.msk.bf16.vlgmr.msra.gmra.mrb[12].mxu1 %vm43_vm1, %v4307_v42  ;;  %4816 = vmatprep.subr.bf16.mxu0 %v5330_v0  ;;  %v4345_v42 = vcombine.low %v4337_v40, %v4338_v39 }
  0x9d   :  { %4835 = vmatpush3.bf16.msra.mxu1 %v5275_v2  ;;  %4836 = vmatprep.mubr.msk.bf16.mxu1 %vm5331_vm0, %v5330_v0  ;;  %v2554_v2 = vshrl.u32 %v4374_v55, 16 }
  0x9e   :  { %4840 = vmatprep.subr.bf16.mxu1 %v5330_v0  ;;  %v2219_v47 = vshll.u32 %v4345_v42, 16  ;;  %v2217_v53 = vshrl.u32 %v4345_v42, 16 }
  0x9f   :  { %v2559_v6 = vor.u32 %v2558_v3, %v2554_v2 }
  0xa0   :  { %v2221_v54 = vrot.slane %v2219_v47, 1 }
  0xa2   :  { %v2222_v59 = vor.u32 %v2221_v54, %v2217_v53  ;;  %v5304_v53 = vld [vmem:[%s6191_s1 + $0x8] sm:$0xff]  }
  0xa6   :  { %4813 = vmatmul.mubr.msk.bf16.vlgmr.msra.gmra.mrb[12].mxu0 %vm43_vm1, %v4295_v4  ;;  %v2806_v4 = vshrl.u32 %v4395_v58, 16 }
  0xa7   :  { %4817 = vmatpush3.bf16.msra.mxu0 %v5277_v7  ;;  %4818 = vmatprep.mubr.msk.bf16.mxu0 %vm5331_vm0, %v5330_v0  ;;  %v5295_v7 = vld [vmem:[%s6191_s1] sm:$0xff]  }
  0xa8   :  { %4837 = vmatmul.mubr.msk.bf16.vlgmr.msra.gmra.mrb[12].mxu1 %vm43_vm1, %v4316_v8  ;;  %4846 = vmatprep.subr.bf16.mxu0 %v5330_v0  ;;  %v2811_v8 = vor.u32 %v2810_v5, %v2806_v4 }
  0xa9   :  { %4841 = vmatpush3.bf16.msra.mxu1 %v5279_v10  ;;  %4842 = vmatprep.mubr.msk.bf16.mxu1 %vm5331_vm0, %v5330_v0  ;;  %v5298_v10 = vld [vmem:[%s6191_s1 + $0x10] sm:$0xff]  }
  0xaa   :  { %4870 = vmatprep.subr.bf16.mxu1 %v5330_v0 }
  0xb2   :  { %4819 = vmatmul.mubr.msk.bf16.vlgmr.msra.gmra.mrb[12].mxu0 %vm43_vm1, %v1717_v23  ;;  %v2975_v23 = vshll.u32 %v4408_v18, 16 }
  0xb3   :  { %4847 = vmatpush3.bf16.msra.mxu0 %v5280_v25  ;;  %4848 = vmatprep.mubr.msk.bf16.mxu0 %vm5331_vm0, %v5330_v0  ;;  %v4434_v25 = vld [vmem:[%s6192_s0 + $0x74] sm:$0x1] }
  0xb4   :  { %4843 = vmatmul.mubr.msk.bf16.vlgmr.msra.gmra.mrb[12].mxu1 %vm43_vm1, %v1969_v26  ;;  %4852 = vmatprep.subr.bf16.mxu0 %v5330_v0 }
  0xb5   :  { %4871 = vmatpush3.bf16.msra.mxu1 %v5281_v28  ;;  %4872 = vmatprep.mubr.msk.bf16.mxu1 %vm5331_vm0, %v5330_v0 }
  0xb6   :  { %4876 = vmatprep.subr.bf16.mxu1 %v5330_v0 }
  0xba   :  { %4849 = vmatmul.mubr.msk.bf16.vlgmr.msra.gmra.mrb[16].mxu0 %vm43_vm1, %v2055_v33  ;;  %v2973_v33 = vshrl.u32 %v4408_v18, 16 }
  0xbb   :  { %4853 = vmatpush3.bf16.msra.mxu0 %v5283_v34  ;;  %4854 = vmatprep.mubr.msk.bf16.mxu0 %vm5331_vm0, %v5330_v0  ;;  %v2977_v34 = vrot.slane %v2975_v23, 1  ;;  %v4443_v23 = vld [vmem:[%s6192_s0 + $0x7c] sm:$0x1] }
  0xbc   :  { %4873 = vmatmul.mubr.msk.bf16.vlgmr.msra.gmra.mrb[16].mxu1 %vm43_vm1, %v2307_v35  ;;  %4858 = vmatprep.subr.bf16.mxu0 %v5330_v0 }
  0xbd   :  { %4877 = vmatpush3.bf16.msra.mxu1 %v5285_v36  ;;  %4878 = vmatprep.mubr.msk.bf16.mxu1 %vm5331_vm0, %v5330_v0  ;;  %v2978_v52 = vor.u32 %v2977_v34, %v2973_v33  ;;  %v5949_v34 = vld [vmem:[%s6192_s0 + $0x80] sm:$0xf] }
  0xbe   :  { %4882 = vmatprep.subr.bf16.mxu1 %v5330_v0 }
  0xc6   :  { %4855 = vmatmul.mubr.msk.bf16.vlgmr.msra.gmra.mrb[16].mxu0 %vm43_vm1, %v4328_v12  ;;  %v4380_v12 = vld [vmem:[%s6192_s0 + $0x64] sm:$0x1] }
  0xc7   :  { %4859 = vmatpush3.bf16.msra.mxu0 %v5286_v37  ;;  %4860 = vmatprep.mubr.msk.bf16.mxu0 %vm5331_vm0, %v5330_v0  ;;  %v4437_v37 = vcombine.low %v5845_v24, %v4434_v25  ;;  %v4442_v25 = vld [vmem:[%s6192_s0 + $0x78] sm:$0xf] }
  0xc8   :  { %4879 = vmatmul.mubr.msk.bf16.vlgmr.msra.gmra.mrb[16].mxu1 %vm43_vm1, %v4349_v15  ;;  %4864 = vmatprep.subr.bf16.mxu0 %v5330_v0  ;;  %v4387_v15 = vcombine.low %v4379_v13, %v4380_v12 }
  0xc9   :  { %4883 = vmatpush3.bf16.msra.mxu1 %v5287_v38  ;;  %4884 = vmatprep.mubr.msk.bf16.mxu1 %vm5331_vm0, %v5330_v0  ;;  %v3312_v54 = vshll.u32 %v4437_v37, 16  ;;  %v3310_v3 = vshrl.u32 %v4437_v37, 16 }
  0xca   :  { %4888 = vmatprep.subr.bf16.mxu1 %v5330_v0  ;;  %v2723_v19 = vshll.u32 %v4387_v15, 16  ;;  %v2721_v26 = vshrl.u32 %v4387_v15, 16 }
  0xcb   :  { %v3314_v4 = vrot.slane %v3312_v54, 1 }
  0xcc   :  { %v2725_v27 = vrot.slane %v2723_v19, 1  ;;  %v5310_v19 = vld [vmem:[%s6191_s1 + $0x10] sm:$0xff]  }
  0xd2   :  { %4861 = vmatmul.mubr.msk.bf16.vlgmr.msra.gmra.mrb[16].mxu0 %vm43_vm1, %v4337_v40 }
  0xd3   :  { %4865 = vmatpush3.bf16.msra.mxu0 %v5289_v43  ;;  %4866 = vmatprep.mubr.msk.bf16.mxu0 %vm5331_vm0, %v5330_v0 }
  0xd4   :  { %4885 = vmatmul.mubr.msk.bf16.vlgmr.msra.gmra.mrb[16].mxu1 %vm43_vm1, %v4358_v44  ;;  %4894 = vmatprep.subr.bf16.mxu0 %v5330_v0  ;;  %v2726_v44 = vor.u32 %v2725_v27, %v2721_v26  ;;  %v5313_v26 = vld [vmem:[%s6191_s1 + $0x18] sm:$0xff]   ;;  %v4450_v27 = vcombine.low %v4442_v25, %v4443_v23 }
  0xd5   :  { %4889 = vmatpush3.bf16.msra.mxu1 %v5291_v46  ;;  %4890 = vmatprep.mubr.msk.bf16.mxu1 %vm5331_vm0, %v5330_v0  ;;  %v3060_v46 = vshll.u32 %v4416_v29, 16 }
  0xd6   :  { %4918 = vmatprep.subr.bf16.mxu1 %v5330_v0  ;;  %v3479_v33 = vshll.u32 %v4450_v27, 16 }
  0xde   :  { %4867 = vmatmul.mubr.msk.bf16.vlgmr.msra.gmra.mrb[16].mxu0 %vm43_vm1, %v2222_v59  ;;  %v5305_v59 = vld [vmem:[%s6191_s1 + $0x8] sm:$0xff]  }
  0xdf   :  { %4895 = vmatpush3.bf16.msra.mxu0 %v5292_v61  ;;  %4896 = vmatprep.mubr.msk.bf16.mxu0 %vm5331_vm0, %v5330_v0  ;;  %v3062_v61 = vrot.slane %v3060_v46, 1 }
  0xe0   :  { %4891 = vmatmul.mubr.msk.bf16.vlgmr.msra.gmra.mrb[16].mxu1 %vm43_vm1, %v2474_v62  ;;  %4900 = vmatprep.subr.bf16.mxu0 %v5330_v0 }
  0xe1   :  { %4919 = vmatpush3.bf16.msra.mxu1 %v5293_v1  ;;  %4920 = vmatprep.mubr.msk.bf16.mxu1 %vm5331_vm0, %v5330_v0  ;;  %v3063_v12 = vor.u32 %v3062_v61, %v3058_v60 }
  0xe2   :  { %4924 = vmatprep.subr.bf16.mxu1 %v5330_v0 }
  0xe6   :  { %4897 = vmatmul.mubr.msk.bf16.vlgmr.msra.gmra.mrb[20].mxu0 %vm43_vm1, %v2559_v6 }
  0xe7   :  { %4901 = vmatpush3.bf16.msra.mxu0 %v5295_v7  ;;  %4902 = vmatprep.mubr.msk.bf16.mxu0 %vm5331_vm0, %v5330_v0 }
  0xe8   :  { %4921 = vmatmul.mubr.msk.bf16.vlgmr.msra.gmra.mrb[20].mxu1 %vm43_vm1, %v2811_v8  ;;  %4906 = vmatprep.subr.bf16.mxu0 %v5330_v0 }
  0xe9   :  { %4925 = vmatpush3.bf16.msra.mxu1 %v5297_v9  ;;  %4926 = vmatprep.mubr.msk.bf16.mxu1 %vm5331_vm0, %v5330_v0 }
  0xea   :  { %4930 = vmatprep.subr.bf16.mxu1 %v5330_v0 }
  0xf2   :  { %4903 = vmatmul.mubr.msk.bf16.vlgmr.msra.gmra.mrb[20].mxu0 %vm43_vm1, %v4370_v48 }
  0xf3   :  { %4907 = vmatpush3.bf16.msra.mxu0 %v5298_v10  ;;  %4908 = vmatprep.mubr.msk.bf16.mxu0 %vm5331_vm0, %v5330_v0 }
  0xf4   :  { %4927 = vmatmul.mubr.msk.bf16.vlgmr.msra.gmra.mrb[20].mxu1 %vm43_vm1, %v4391_v51  ;;  %4912 = vmatprep.subr.bf16.mxu0 %v5330_v0 }
  0xf5   :  { %4931 = vmatpush3.bf16.msra.mxu1 %v5299_v11  ;;  %4932 = vmatprep.mubr.msk.bf16.mxu1 %vm5331_vm0, %v5330_v0 }
  0xf6   :  { %4936 = vmatprep.subr.bf16.mxu1 %v5330_v0 }
  0xfe   :  { %4909 = vmatmul.mubr.msk.bf16.vlgmr.msra.gmra.mrb[20].mxu0 %vm43_vm1, %v4379_v13  ;;  %v5307_v13 = vld [vmem:[%s6191_s1] sm:$0xff]  }
  0xff   :  { %4913 = vmatpush3.bf16.msra.mxu0 %v5301_v17  ;;  %4914 = vmatprep.mubr.msk.bf16.mxu0 %vm5331_vm0, %v5330_v0  ;;  %v5309_v17 = vld [vmem:[%s6191_s1] sm:$0xff]  }
 0x100   :  { %4933 = vmatmul.mubr.msk.bf16.vlgmr.msra.gmra.mrb[20].mxu1 %vm43_vm1, %v4400_v16  ;;  %4942 = vmatprep.subr.bf16.mxu0 %v5330_v0  ;;  %v3315_v16 = vor.u32 %v3314_v4, %v3310_v3 }
 0x101   :  { %4937 = vmatpush3.bf16.msra.mxu1 %v5303_v20  ;;  %v5850_v28 = vpop.f32.mrb[0].mxu0  ;;  %4938 = vmatprep.mubr.msk.bf16.mxu1 %vm5331_vm0, %v5330_v0  ;;  %v5311_v20 = vld [vmem:[%s6191_s1 + $0x10] sm:$0xff]  }
 0x102   :  { %v258_v30 = vrot.slane %v5850_v28, 4  ;;  %v265_v31 = vmul.f32 %v5850_v28, %v5850_v28  ;;  %v4676_v32 = vpop.f32.mrb[1].mxu0  ;;  %4966 = vmatprep.subr.bf16.mxu1 %v5330_v0 }
 0x103   :  { %v5859_v35 = vpop.f32.mrb[0].mxu1  ;;  %v253_v36 = vpop.f32.mrb[2].mxu0  ;;  %v4455_v32 = vld [vmem:[%s6192_s0 + $0x7c] sm:$0x1] }
 0x104   :  { %v259_v38 = vadd.f32 %v258_v30, %v5850_v28  ;;  %v266_v39 = vrot.slane %v265_v31, 4  ;;  %v510_v40 = vrot.slane %v5859_v35, 4  ;;  %v517_v41 = vmul.f32 %v5859_v35, %v5859_v35  ;;  %v4700_v42 = vpop.f32.mrb[1].mxu1  ;;  %v4677_v43 = vpop.f32.mrb[3].mxu0  ;;  %v5315_v30 = vld [vmem:[%s6191_s1 + $0x18] sm:$0xff]  }
 0x105   :  { %v504_v45 = vpop.f32.mrb[2].mxu1  ;;  %v4476_v36 = vld [vmem:[%s6192_s0 + $0x84] sm:$0x1] }
 0x106   :  { %v260_v47 = vrot.slane %v259_v38, 2  ;;  %v267_v48 = vadd.f32 %v266_v39, %v265_v31  ;;  %v511_v49 = vadd.f32 %v510_v40, %v5859_v35  ;;  %v518_v50 = vrot.slane %v517_v41, 4  ;;  %v4701_v51 = vpop.f32.mrb[3].mxu1  ;;  %v5937_v31 = vld [vmem:[%s6192_s0 + $0x78] sm:$0xf] }
 0x107   :  { %v4458_v40 = vcombine.low %v5937_v31, %v4455_v32  ;;  %v3481_v45 = vrot.slane %v3479_v33, 1 }
 0x108   :  { %v261_v55 = vadd.f32 %v260_v47, %v259_v38  ;;  %v268_v56 = vrot.slane %v267_v48, 2  ;;  %v512_v57 = vrot.slane %v511_v49, 2  ;;  %v519_v58 = vadd.f32 %v518_v50, %v517_v41 }
 0x10a   :  { %v262_v62 = vrot.slane %v261_v55, 1  ;;  %v269_v63 = vadd.f32 %v268_v56, %v267_v48  ;;  %v513_v1 = vadd.f32 %v512_v57, %v511_v49  ;;  %v520_v2 = vrot.slane %v519_v58, 2  ;;  %4915 = vmatmul.mubr.msk.bf16.vlgmr.msra.gmra.mrb[20].mxu0 %vm43_vm1, %v2726_v44 }
 0x10b   :  { %4943 = vmatpush3.bf16.msra.mxu0 %v5304_v53  ;;  %4944 = vmatprep.mubr.msk.bf16.mxu0 %vm5331_vm0, %v5330_v0  ;;  %v3477_v44 = vshrl.u32 %v4450_v27, 16  ;;  %v4479_v48 = vcombine.low %v5949_v34, %v4476_v36  ;;  %v3564_v57 = vshll.u32 %v4458_v40, 16  ;;  %v5319_v27 = vld [vmem:[%s6191_s1] sm:$0xff]  }
 0x10c   :  { %v263_v5 = vadd.f32 %v262_v62, %v261_v55  ;;  %v270_v6 = vrot.slane %v269_v63, 1  ;;  %v514_v7 = vrot.slane %v513_v1, 1  ;;  %v521_v8 = vadd.f32 %v520_v2, %v519_v58  ;;  %4939 = vmatmul.mubr.msk.bf16.vlgmr.msra.gmra.mrb[20].mxu1 %vm43_vm1, %v2978_v52  ;;  %4948 = vmatprep.subr.bf16.mxu0 %v5330_v0  ;;  %v5321_v36 = vld [vmem:[%s6191_s1] sm:$0xff]  }
 0x10d   :  { %4967 = vmatpush3.bf16.msra.mxu1 %v5305_v59  ;;  %4968 = vmatprep.mubr.msk.bf16.mxu1 %vm5331_vm0, %v5330_v0  ;;  %v3816_v2 = vshll.u32 %v4479_v48, 16 }
 0x10e   :  { %v271_v9 = vadd.f32 %v270_v6, %v269_v63  ;;  %v515_v10 = vadd.f32 %v514_v7, %v513_v1  ;;  %v522_v11 = vrot.slane %v521_v8, 1  ;;  %4972 = vmatprep.subr.bf16.mxu1 %v5330_v0  ;;  %v3482_v63 = vor.u32 %v3481_v45, %v3477_v44  ;;  %v5316_v1 = vld [vmem:[%s6191_s1 + $0x8] sm:$0xff]   ;;  %v5327_v45 = vld [vmem:[%s6191_s1 + $0x18] sm:$0xff]  }
 0x10f   :  { %v5317_v7 = vld [vmem:[%s6191_s1 + $0x8] sm:$0xff]  }
 0x110   :  { %v5884_v14 = vadd.f32 %v515_v10, %v263_v5  ;;  %v523_v15 = vadd.f32 %v522_v11, %v521_v8  ;;  %v3562_v8 = vshrl.u32 %v4458_v40, 16 }
 0x112   :  { %v5889_v18 = vadd.f32 %v523_v15, %v271_v9  ;;  %4945 = vmatmul.mubr.msk.bf16.vlgmr.msra.gmra.mrb[24].mxu0 %vm43_vm1, %v3063_v12  ;;  %v3566_v9 = vrot.slane %v3564_v57, 1  ;;  %v3814_v15 = vshrl.u32 %v4479_v48, 16 }
 0x113   :  { %4949 = vmatpush3.bf16.msra.mxu0 %v5307_v13  ;;  %4950 = vmatprep.mubr.msk.bf16.mxu0 %vm5331_vm0, %v5330_v0 }
 0x114   :  { %4969 = vmatmul.mubr.msk.bf16.vlgmr.msra.gmra.mrb[24].mxu1 %vm43_vm1, %v3315_v16  ;;  %4954 = vmatprep.subr.bf16.mxu0 %v5330_v0  ;;  %v3818_v16 = vrot.slane %v3816_v2, 1 }
 0x115   :  { %4973 = vmatpush3.bf16.msra.mxu1 %v5309_v17  ;;  %4974 = vmatprep.mubr.msk.bf16.mxu1 %vm5331_vm0, %v5330_v0 }
 0x116   :  { %4978 = vmatprep.subr.bf16.mxu1 %v5330_v0  ;;  %v3819_v33 = vor.u32 %v3818_v16, %v3814_v15 }
 0x11e   :  { %4951 = vmatmul.mubr.msk.bf16.vlgmr.msra.gmra.mrb[24].mxu0 %vm43_vm1, %v5833_v21  ;;  %v4421_v21 = vld [vmem:[%s6192_s0 + $0x70] sm:$0xf] }
 0x11f   :  { %4955 = vmatpush3.bf16.msra.mxu0 %v5310_v19  ;;  %4956 = vmatprep.mubr.msk.bf16.mxu0 %vm5331_vm0, %v5330_v0 }
 0x120   :  { %4975 = vmatmul.mubr.msk.bf16.vlgmr.msra.gmra.mrb[24].mxu1 %vm43_vm1, %v5845_v24  ;;  %4960 = vmatprep.subr.bf16.mxu0 %v5330_v0  ;;  %v4429_v24 = vcombine.low %v4421_v21, %v4422_v22 }
 0x121   :  { %4979 = vmatpush3.bf16.msra.mxu1 %v5311_v20  ;;  %4980 = vmatprep.mubr.msk.bf16.mxu1 %vm5331_vm0, %v5330_v0 }
 0x122   :  { %4984 = vmatprep.subr.bf16.mxu1 %v5330_v0  ;;  %v3227_v29 = vshll.u32 %v4429_v24, 16  ;;  %v3225_v37 = vshrl.u32 %v4429_v24, 16 }
 0x124   :  { %v3229_v38 = vrot.slane %v3227_v29, 1 }
 0x126   :  { %v3230_v55 = vor.u32 %v3229_v38, %v3225_v37  ;;  %v5323_v37 = vld [vmem:[%s6191_s1 + $0x10] sm:$0xff]   ;;  %v4464_v38 = vld [vmem:[%s6192_s0 + $0x84] sm:$0x1] }
 0x12a   :  { %4957 = vmatmul.mubr.msk.bf16.vlgmr.msra.gmra.mrb[24].mxu0 %vm43_vm1, %v4421_v21  ;;  %v3567_v21 = vor.u32 %v3566_v9, %v3562_v8 }
 0x12b   :  { %4961 = vmatpush3.bf16.msra.mxu0 %v5313_v26  ;;  %4962 = vmatprep.mubr.msk.bf16.mxu0 %vm5331_vm0, %v5330_v0 }
 0x12c   :  { %4981 = vmatmul.mubr.msk.bf16.vlgmr.msra.gmra.mrb[24].mxu1 %vm43_vm1, %v4442_v25  ;;  %4990 = vmatprep.subr.bf16.mxu0 %v5330_v0 }
 0x12d   :  { %4985 = vmatpush3.bf16.msra.mxu1 %v5315_v30  ;;  %v5954_v39 = vpop.f32.mrb[4].mxu0  ;;  %4986 = vmatprep.mubr.msk.bf16.mxu1 %vm5331_vm0, %v5330_v0 }
 0x12e   :  { %v762_v41 = vrot.slane %v5954_v39, 4  ;;  %v769_v42 = vmul.f32 %v5954_v39, %v5954_v39  ;;  %v4724_v43 = vpop.f32.mrb[5].mxu0  ;;  %5014 = vmatprep.subr.bf16.mxu1 %v5330_v0 }
 0x12f   :  { %v5963_v46 = vpop.f32.mrb[4].mxu1  ;;  %v756_v47 = vpop.f32.mrb[6].mxu0 }
 0x130   :  { %v763_v49 = vadd.f32 %v762_v41, %v5954_v39  ;;  %v770_v50 = vrot.slane %v769_v42, 4  ;;  %v1014_v51 = vrot.slane %v5963_v46, 4  ;;  %v1021_v52 = vmul.f32 %v5963_v46, %v5963_v46  ;;  %v4748_v53 = vpop.f32.mrb[5].mxu1  ;;  %v4725_v54 = vpop.f32.mrb[7].mxu0  ;;  %v4484_v41 = vld [vmem:[%s6192_s0 + $0x88] sm:$0xf] }
 0x131   :  { %v1008_v56 = vpop.f32.mrb[6].mxu1 }
 0x132   :  { %v764_v58 = vrot.slane %v763_v49, 2  ;;  %v771_v59 = vadd.f32 %v770_v50, %v769_v42  ;;  %v1015_v60 = vadd.f32 %v1014_v51, %v5963_v46  ;;  %v1022_v61 = vrot.slane %v1021_v52, 4  ;;  %v4749_v62 = vpop.f32.mrb[7].mxu1  ;;  %v5325_v42 = vld [vmem:[%s6191_s1 + $0x18] sm:$0xff]  }
 0x134   :  { %v765_v3 = vadd.f32 %v764_v58, %v763_v49  ;;  %v772_v4 = vrot.slane %v771_v59, 2  ;;  %v1016_v5 = vrot.slane %v1015_v60, 2  ;;  %v1023_v6 = vadd.f32 %v1022_v61, %v1021_v52 }
 0x136   :  { %v766_v10 = vrot.slane %v765_v3, 1  ;;  %v773_v11 = vadd.f32 %v772_v4, %v771_v59  ;;  %v1017_v12 = vadd.f32 %v1016_v5, %v1015_v60  ;;  %v1024_v13 = vrot.slane %v1023_v6, 2  ;;  %4963 = vmatmul.mubr.msk.bf16.vlgmr.msra.gmra.mrb[24].mxu0 %vm43_vm1, %v3230_v55 }
 0x137   :  { %4991 = vmatpush3.bf16.msra.mxu0 %v5316_v1  ;;  %4992 = vmatprep.mubr.msk.bf16.mxu0 %vm5331_vm0, %v5330_v0 }
 0x138   :  { %v767_v17 = vadd.f32 %v766_v10, %v765_v3  ;;  %v774_v19 = vrot.slane %v773_v11, 1  ;;  %v1018_v20 = vrot.slane %v1017_v12, 1  ;;  %v1025_v22 = vadd.f32 %v1024_v13, %v1023_v6  ;;  %4987 = vmatmul.mubr.msk.bf16.vlgmr.msra.gmra.mrb[24].mxu1 %vm43_vm1, %v3482_v63  ;;  %4996 = vmatprep.subr.bf16.mxu0 %v5330_v0 }
 0x139   :  { %5015 = vmatpush3.bf16.msra.mxu1 %v5317_v7  ;;  %5016 = vmatprep.mubr.msk.bf16.mxu1 %vm5331_vm0, %v5330_v0 }
 0x13a   :  { %v768_v23 = vadd.f32 %v767_v17, %v5884_v14  ;;  %v775_v24 = vadd.f32 %v774_v19, %v773_v11  ;;  %v1019_v25 = vadd.f32 %v1018_v20, %v1017_v12  ;;  %v1026_v26 = vrot.slane %v1025_v22, 1  ;;  %5020 = vmatprep.subr.bf16.mxu1 %v5330_v0 }
 0x13c   :  { %v776_v29 = vadd.f32 %v775_v24, %v5889_v18  ;;  %v5990_v30 = vadd.f32 %v1019_v25, %v768_v23  ;;  %v1027_v32 = vadd.f32 %v1026_v26, %v1025_v22  ;;  %v5322_v18 = vld [vmem:[%s6191_s1 + $0x10] sm:$0xff]  }
 0x13e   :  { %v5995_v14 = vadd.f32 %v1027_v32, %v776_v29  ;;  %4993 = vmatmul.mubr.msk.bf16.vlgmr.msra.gmra.mrb[28].mxu0 %vm43_vm1, %v3567_v21 }
 0x13f   :  { %4997 = vmatpush3.bf16.msra.mxu0 %v5319_v27  ;;  %4998 = vmatprep.mubr.msk.bf16.mxu0 %vm5331_vm0, %v5330_v0 }
 0x140   :  { %5017 = vmatmul.mubr.msk.bf16.vlgmr.msra.gmra.mrb[28].mxu1 %vm43_vm1, %v3819_v33  ;;  %5002 = vmatprep.subr.bf16.mxu0 %v5330_v0 }
 0x141   :  { %5021 = vmatpush3.bf16.msra.mxu1 %v5321_v36  ;;  %5022 = vmatprep.mubr.msk.bf16.mxu1 %vm5331_vm0, %v5330_v0 }
 0x142   :  { %5026 = vmatprep.subr.bf16.mxu1 %v5330_v0 }
 0x14a   :  { %4999 = vmatmul.mubr.msk.bf16.vlgmr.msra.gmra.mrb[28].mxu0 %vm43_vm1, %v5937_v31  ;;  %v4463_v31 = vld [vmem:[%s6192_s0 + $0x80] sm:$0xf] }
 0x14b   :  { %5003 = vmatpush3.bf16.msra.mxu0 %v5322_v18  ;;  %5004 = vmatprep.mubr.msk.bf16.mxu0 %vm5331_vm0, %v5330_v0  ;;  %v4471_v40 = vcombine.low %v4463_v31, %v4464_v38 }
 0x14c   :  { %5023 = vmatmul.mubr.msk.bf16.vlgmr.msra.gmra.mrb[28].mxu1 %vm43_vm1, %v5949_v34  ;;  %5008 = vmatprep.subr.bf16.mxu0 %v5330_v0  ;;  %v4485_v34 = vld [vmem:[%s6192_s0 + $0x8c] sm:$0x1] }
 0x14d   :  { %5027 = vmatpush3.bf16.msra.mxu1 %v5323_v37  ;;  %5028 = vmatprep.mubr.msk.bf16.mxu1 %vm5331_vm0, %v5330_v0  ;;  %v4492_v43 = vcombine.low %v4484_v41, %v4485_v34  ;;  %v3731_v44 = vshll.u32 %v4471_v40, 16  ;;  %v3729_v48 = vshrl.u32 %v4471_v40, 16 }
 0x14e   :  { %5032 = vmatprep.subr.bf16.mxu1 %v5330_v0 }
 0x14f   :  { %v3983_v47 = vshll.u32 %v4492_v43, 16  ;;  %v3733_v49 = vrot.slane %v3731_v44, 1  ;;  %v3981_v54 = vshrl.u32 %v4492_v43, 16 }
 0x151   :  { %v3985_v55 = vrot.slane %v3983_v47, 1  ;;  %v3734_v63 = vor.u32 %v3733_v49, %v3729_v48 }
 0x153   :  { %v3986_v7 = vor.u32 %v3985_v55, %v3981_v54 }
 0x156   :  { %5005 = vmatmul.mubr.msk.bf16.vlgmr.msra.gmra.mrb[28].mxu0 %vm43_vm1, %v4463_v31 }
 0x157   :  { %5009 = vmatpush3.bf16.msra.mxu0 %v5325_v42  ;;  %5010 = vmatprep.mubr.msk.bf16.mxu0 %vm5331_vm0, %v5330_v0 }
 0x158   :  { %5029 = vmatmul.mubr.msk.bf16.vlgmr.msra.gmra.mrb[28].mxu1 %vm43_vm1, %v4484_v41 }
 0x159   :  { %5033 = vmatpush3.bf16.msra.mxu1 %v5327_v45  ;;  %v6043_v50 = vpop.f32.mrb[8].mxu0  ;;  %5034 = vmatprep.mubr.msk.bf16.mxu1 %vm5331_vm0, %v5330_v0 }
 0x15a   :  { %v1266_v51 = vrot.slane %v6043_v50, 4  ;;  %v1273_v52 = vmul.f32 %v6043_v50, %v6043_v50  ;;  %v4772_v53 = vpop.f32.mrb[9].mxu0 }
 0x15b   :  { %v6050_v56 = vpop.f32.mrb[8].mxu1  ;;  %v1260_v57 = vpop.f32.mrb[10].mxu0 }
 0x15c   :  { %v1267_v58 = vadd.f32 %v1266_v51, %v6043_v50  ;;  %v1274_v59 = vrot.slane %v1273_v52, 4  ;;  %v1518_v60 = vrot.slane %v6050_v56, 4  ;;  %v1525_v61 = vmul.f32 %v6050_v56, %v6050_v56  ;;  %v4796_v0 = vpop.f32.mrb[9].mxu1  ;;  %v4773_v62 = vpop.f32.mrb[11].mxu0 }
 0x15d   :  { %v1512_v1 = vpop.f32.mrb[10].mxu1 }
 0x15e   :  { %v1268_v2 = vrot.slane %v1267_v58, 2  ;;  %v1275_v3 = vadd.f32 %v1274_v59, %v1273_v52  ;;  %v1519_v4 = vadd.f32 %v1518_v60, %v6050_v56  ;;  %v1526_v5 = vrot.slane %v1525_v61, 4  ;;  %v4797_v6 = vpop.f32.mrb[11].mxu1 }
 0x160   :  { %v1269_v8 = vadd.f32 %v1268_v2, %v1267_v58  ;;  %v1276_v9 = vrot.slane %v1275_v3, 2  ;;  %v1520_v10 = vrot.slane %v1519_v4, 2  ;;  %v1527_v11 = vadd.f32 %v1526_v5, %v1525_v61 }
 0x162   :  { %v1270_v12 = vrot.slane %v1269_v8, 1  ;;  %v1277_v13 = vadd.f32 %v1276_v9, %v1275_v3  ;;  %v1521_v15 = vadd.f32 %v1520_v10, %v1519_v4  ;;  %v1528_v16 = vrot.slane %v1527_v11, 2  ;;  %5011 = vmatmul.mubr.msk.bf16.vlgmr.msra.gmra.mrb[28].mxu0 %vm43_vm1, %v3734_v63 }
 0x164   :  { %v1271_v17 = vadd.f32 %v1270_v12, %v1269_v8  ;;  %v1278_v19 = vrot.slane %v1277_v13, 1  ;;  %v1522_v20 = vrot.slane %v1521_v15, 1  ;;  %v1529_v22 = vadd.f32 %v1528_v16, %v1527_v11  ;;  %5035 = vmatmul.mubr.msk.bf16.vlgmr.msra.gmra.mrb[28].mxu1 %vm43_vm1, %v3986_v7 }
 0x166   :  { %v1272_v21 = vadd.f32 %v1271_v17, %v5990_v30  ;;  %v1279_v23 = vadd.f32 %v1278_v19, %v1277_v13  ;;  %v1523_v24 = vadd.f32 %v1522_v20, %v1521_v15  ;;  %v1530_v25 = vrot.slane %v1529_v22, 1 }
 0x168   :  { %v1280_v26 = vadd.f32 %v1279_v23, %v5995_v14  ;;  %v1524_v27 = vadd.f32 %v1523_v24, %v1272_v21  ;;  %v1531_v29 = vadd.f32 %v1530_v25, %v1529_v22 }
 0x16a   :  { %v1532_v32 = vadd.f32 %v1531_v29, %v1280_v26 }
 0x185   :  { %v6061_v33 = vpop.f32.mrb[12].mxu0 }
 0x186   :  { %v1770_v36 = vrot.slane %v6061_v33, 4  ;;  %v1777_v18 = vmul.f32 %v6061_v33, %v6061_v33  ;;  %v4820_v37 = vpop.f32.mrb[13].mxu0 }
 0x187   :  { %v6066_v38 = vpop.f32.mrb[12].mxu1  ;;  %v1764_v31 = vpop.f32.mrb[14].mxu0 }
 0x188   :  { %v1771_v30 = vadd.f32 %v1770_v36, %v6061_v33  ;;  %v1778_v34 = vrot.slane %v1777_v18, 4  ;;  %v2022_v40 = vrot.slane %v6066_v38, 4  ;;  %v2029_v14 = vmul.f32 %v6066_v38, %v6066_v38  ;;  %v4844_v41 = vpop.f32.mrb[13].mxu1  ;;  %v4821_v42 = vpop.f32.mrb[15].mxu0 }
 0x189   :  { %v2016_v43 = vpop.f32.mrb[14].mxu1 }
 0x18a   :  { %v1772_v44 = vrot.slane %v1771_v30, 2  ;;  %v1779_v45 = vadd.f32 %v1778_v34, %v1777_v18  ;;  %v2023_v47 = vadd.f32 %v2022_v40, %v6066_v38  ;;  %v2030_v48 = vrot.slane %v2029_v14, 4  ;;  %v4845_v49 = vpop.f32.mrb[15].mxu1 }
 0x18c   :  { %v1773_v51 = vadd.f32 %v1772_v44, %v1771_v30  ;;  %v1780_v52 = vrot.slane %v1779_v45, 2  ;;  %v2024_v53 = vrot.slane %v2023_v47, 2  ;;  %v2031_v54 = vadd.f32 %v2030_v48, %v2029_v14 }
 0x18e   :  { %v1774_v55 = vrot.slane %v1773_v51, 1  ;;  %v1781_v57 = vadd.f32 %v1780_v52, %v1779_v45  ;;  %v2025_v58 = vadd.f32 %v2024_v53, %v2023_v47  ;;  %v2032_v59 = vrot.slane %v2031_v54, 2 }
 0x190   :  { %v1775_v60 = vadd.f32 %v1774_v55, %v1773_v51  ;;  %v1782_v61 = vrot.slane %v1781_v57, 1  ;;  %v2026_v0 = vrot.slane %v2025_v58, 1  ;;  %v2033_v62 = vadd.f32 %v2032_v59, %v2031_v54 }
 0x192   :  { %v1776_v63 = vadd.f32 %v1775_v60, %v1524_v27  ;;  %v1783_v1 = vadd.f32 %v1782_v61, %v1781_v57  ;;  %v2027_v2 = vadd.f32 %v2026_v0, %v2025_v58  ;;  %v2034_v3 = vrot.slane %v2033_v62, 1 }
 0x194   :  { %v1784_v4 = vadd.f32 %v1783_v1, %v1532_v32  ;;  %v2028_v5 = vadd.f32 %v2027_v2, %v1776_v63  ;;  %v2035_v6 = vadd.f32 %v2034_v3, %v2033_v62 }
 0x196   :  { %v2036_v7 = vadd.f32 %v2035_v6, %v1784_v4 }
 0x1b1   :  { %v6073_v8 = vpop.f32.mrb[16].mxu0 }
 0x1b2   :  { %v2275_v9 = vrot.slane %v6073_v8, 4  ;;  %v2282_v10 = vmul.f32 %v6073_v8, %v6073_v8  ;;  %v4868_v11 = vpop.f32.mrb[17].mxu0 }
 0x1b3   :  { %v6078_v12 = vpop.f32.mrb[16].mxu1  ;;  %v2269_v13 = vpop.f32.mrb[18].mxu0 }
 0x1b4   :  { %v2276_v15 = vadd.f32 %v2275_v9, %v6073_v8  ;;  %v2283_v16 = vrot.slane %v2282_v10, 4  ;;  %v2527_v17 = vrot.slane %v6078_v12, 4  ;;  %v2534_v19 = vmul.f32 %v6078_v12, %v6078_v12  ;;  %v4892_v20 = vpop.f32.mrb[17].mxu1  ;;  %v4869_v22 = vpop.f32.mrb[19].mxu0 }
 0x1b5   :  { %v2521_v21 = vpop.f32.mrb[18].mxu1 }
 0x1b6   :  { %v2277_v23 = vrot.slane %v2276_v15, 2  ;;  %v2284_v24 = vadd.f32 %v2283_v16, %v2282_v10  ;;  %v2528_v25 = vadd.f32 %v2527_v17, %v6078_v12  ;;  %v2535_v26 = vrot.slane %v2534_v19, 4  ;;  %v4893_v27 = vpop.f32.mrb[19].mxu1 }
 0x1b8   :  { %v2278_v29 = vadd.f32 %v2277_v23, %v2276_v15  ;;  %v2285_v32 = vrot.slane %v2284_v24, 2  ;;  %v2529_v36 = vrot.slane %v2528_v25, 2  ;;  %v2536_v18 = vadd.f32 %v2535_v26, %v2534_v19 }
 0x1ba   :  { %v2279_v37 = vrot.slane %v2278_v29, 1  ;;  %v2286_v31 = vadd.f32 %v2285_v32, %v2284_v24  ;;  %v2530_v30 = vadd.f32 %v2529_v36, %v2528_v25  ;;  %v2537_v34 = vrot.slane %v2536_v18, 2 }
 0x1bc   :  { %v2280_v40 = vadd.f32 %v2279_v37, %v2278_v29  ;;  %v2287_v14 = vrot.slane %v2286_v31, 1  ;;  %v2531_v41 = vrot.slane %v2530_v30, 1  ;;  %v2538_v42 = vadd.f32 %v2537_v34, %v2536_v18 }
 0x1be   :  { %v2281_v43 = vadd.f32 %v2280_v40, %v2028_v5  ;;  %v2288_v44 = vadd.f32 %v2287_v14, %v2286_v31  ;;  %v2532_v45 = vadd.f32 %v2531_v41, %v2530_v30  ;;  %v2539_v47 = vrot.slane %v2538_v42, 1 }
 0x1c0   :  { %v2289_v48 = vadd.f32 %v2288_v44, %v2036_v7  ;;  %v2533_v49 = vadd.f32 %v2532_v45, %v2281_v43  ;;  %v2540_v51 = vadd.f32 %v2539_v47, %v2538_v42 }
 0x1c2   :  { %v2541_v52 = vadd.f32 %v2540_v51, %v2289_v48 }
 0x1dd   :  { %v6085_v53 = vpop.f32.mrb[20].mxu0 }
 0x1de   :  { %v2779_v54 = vrot.slane %v6085_v53, 4  ;;  %v2786_v55 = vmul.f32 %v6085_v53, %v6085_v53  ;;  %v4916_v57 = vpop.f32.mrb[21].mxu0 }
 0x1df   :  { %v6090_v58 = vpop.f32.mrb[20].mxu1  ;;  %v2773_v59 = vpop.f32.mrb[22].mxu0 }
 0x1e0   :  { %v2780_v60 = vadd.f32 %v2779_v54, %v6085_v53  ;;  %v2787_v61 = vrot.slane %v2786_v55, 4  ;;  %v3031_v0 = vrot.slane %v6090_v58, 4  ;;  %v3038_v62 = vmul.f32 %v6090_v58, %v6090_v58  ;;  %v4940_v63 = vpop.f32.mrb[21].mxu1  ;;  %v4917_v1 = vpop.f32.mrb[23].mxu0 }
 0x1e1   :  { %v3025_v2 = vpop.f32.mrb[22].mxu1 }
 0x1e2   :  { %v2781_v3 = vrot.slane %v2780_v60, 2  ;;  %v2788_v4 = vadd.f32 %v2787_v61, %v2786_v55  ;;  %v3032_v5 = vadd.f32 %v3031_v0, %v6090_v58  ;;  %v3039_v6 = vrot.slane %v3038_v62, 4  ;;  %v4941_v7 = vpop.f32.mrb[23].mxu1 }
 0x1e4   :  { %v2782_v9 = vadd.f32 %v2781_v3, %v2780_v60  ;;  %v2789_v10 = vrot.slane %v2788_v4, 2  ;;  %v3033_v11 = vrot.slane %v3032_v5, 2  ;;  %v3040_v13 = vadd.f32 %v3039_v6, %v3038_v62 }
 0x1e6   :  { %v2783_v15 = vrot.slane %v2782_v9, 1  ;;  %v2790_v16 = vadd.f32 %v2789_v10, %v2788_v4  ;;  %v3034_v17 = vadd.f32 %v3033_v11, %v3032_v5  ;;  %v3041_v19 = vrot.slane %v3040_v13, 2 }
 0x1e8   :  { %v2784_v20 = vadd.f32 %v2783_v15, %v2782_v9  ;;  %v2791_v22 = vrot.slane %v2790_v16, 1  ;;  %v3035_v21 = vrot.slane %v3034_v17, 1  ;;  %v3042_v23 = vadd.f32 %v3041_v19, %v3040_v13 }
 0x1ea   :  { %v2785_v24 = vadd.f32 %v2784_v20, %v2533_v49  ;;  %v2792_v25 = vadd.f32 %v2791_v22, %v2790_v16  ;;  %v3036_v26 = vadd.f32 %v3035_v21, %v3034_v17  ;;  %v3043_v27 = vrot.slane %v3042_v23, 1 }
 0x1ec   :  { %v2793_v29 = vadd.f32 %v2792_v25, %v2541_v52  ;;  %v3037_v32 = vadd.f32 %v3036_v26, %v2785_v24  ;;  %v3044_v36 = vadd.f32 %v3043_v27, %v3042_v23 }
 0x1ee   :  { %v3045_v18 = vadd.f32 %v3044_v36, %v2793_v29 }
 0x209   :  { %v6097_v37 = vpop.f32.mrb[24].mxu0 }
 0x20a   :  { %v3283_v31 = vrot.slane %v6097_v37, 4  ;;  %v3290_v30 = vmul.f32 %v6097_v37, %v6097_v37  ;;  %v4964_v34 = vpop.f32.mrb[25].mxu0 }
 0x20b   :  { %v6102_v40 = vpop.f32.mrb[24].mxu1  ;;  %v3277_v14 = vpop.f32.mrb[26].mxu0 }
 0x20c   :  { %v3284_v41 = vadd.f32 %v3283_v31, %v6097_v37  ;;  %v3291_v42 = vrot.slane %v3290_v30, 4  ;;  %v3535_v43 = vrot.slane %v6102_v40, 4  ;;  %v3542_v44 = vmul.f32 %v6102_v40, %v6102_v40  ;;  %v4988_v45 = vpop.f32.mrb[25].mxu1  ;;  %v4965_v47 = vpop.f32.mrb[27].mxu0 }
 0x20d   :  { %v3529_v48 = vpop.f32.mrb[26].mxu1 }
 0x20e   :  { %v3285_v49 = vrot.slane %v3284_v41, 2  ;;  %v3292_v51 = vadd.f32 %v3291_v42, %v3290_v30  ;;  %v3536_v52 = vadd.f32 %v3535_v43, %v6102_v40  ;;  %v3543_v54 = vrot.slane %v3542_v44, 4  ;;  %v4989_v55 = vpop.f32.mrb[27].mxu1 }
 0x210   :  { %v3286_v57 = vadd.f32 %v3285_v49, %v3284_v41  ;;  %v3293_v59 = vrot.slane %v3292_v51, 2  ;;  %v3537_v60 = vrot.slane %v3536_v52, 2  ;;  %v3544_v61 = vadd.f32 %v3543_v54, %v3542_v44 }
 0x212   :  { %v3287_v0 = vrot.slane %v3286_v57, 1  ;;  %v3294_v62 = vadd.f32 %v3293_v59, %v3292_v51  ;;  %v3538_v63 = vadd.f32 %v3537_v60, %v3536_v52  ;;  %v3545_v1 = vrot.slane %v3544_v61, 2 }
 0x214   :  { %v3288_v2 = vadd.f32 %v3287_v0, %v3286_v57  ;;  %v3295_v3 = vrot.slane %v3294_v62, 1  ;;  %v3539_v4 = vrot.slane %v3538_v63, 1  ;;  %v3546_v5 = vadd.f32 %v3545_v1, %v3544_v61 }
 0x216   :  { %v3289_v6 = vadd.f32 %v3288_v2, %v3037_v32  ;;  %v3296_v7 = vadd.f32 %v3295_v3, %v3294_v62  ;;  %v3540_v9 = vadd.f32 %v3539_v4, %v3538_v63  ;;  %v3547_v10 = vrot.slane %v3546_v5, 1 }
 0x218   :  { %v3297_v11 = vadd.f32 %v3296_v7, %v3045_v18  ;;  %v3541_v13 = vadd.f32 %v3540_v9, %v3289_v6  ;;  %v3548_v15 = vadd.f32 %v3547_v10, %v3546_v5  ;;  %v4069_v9 = vlaneseq }
 0x21a   :  { %v3549_v16 = vadd.f32 %v3548_v15, %v3297_v11  ;;  %v4070_v10 = vshrl.u32 %v4069_v9, 7  ;;  %v4060_v11 = vld [vmem:[%s6193_s2] sm:$0x1] }
 0x235   :  { %v6109_v17 = vpop.f32.mrb[28].mxu0 }
 0x236   :  { %v3787_v19 = vrot.slane %v6109_v17, 4  ;;  %v3794_v20 = vmul.f32 %v6109_v17, %v6109_v17  ;;  %v5012_v22 = vpop.f32.mrb[29].mxu0 }
 0x237   :  { %v6114_v21 = vpop.f32.mrb[28].mxu1  ;;  %v3781_v23 = vpop.f32.mrb[30].mxu0 }
 0x238   :  { %v3788_v24 = vadd.f32 %v3787_v19, %v6109_v17  ;;  %v3795_v25 = vrot.slane %v3794_v20, 4  ;;  %v4039_v26 = vrot.slane %v6114_v21, 4  ;;  %v4046_v27 = vmul.f32 %v6114_v21, %v6114_v21  ;;  %v5036_v29 = vpop.f32.mrb[29].mxu1  ;;  %v5013_v32 = vpop.f32.mrb[31].mxu0 }
 0x239   :  { %v4033_v36 = vpop.f32.mrb[30].mxu1 }
 0x23a   :  { %v3789_v18 = vrot.slane %v3788_v24, 2  ;;  %v3796_v31 = vadd.f32 %v3795_v25, %v3794_v20  ;;  %v4040_v30 = vadd.f32 %v4039_v26, %v6114_v21  ;;  %v4047_v34 = vrot.slane %v4046_v27, 4  ;;  %v5037_v14 = vpop.f32.mrb[31].mxu1 }
 0x23c   :  { %v3790_v41 = vadd.f32 %v3789_v18, %v3788_v24  ;;  %v3797_v42 = vrot.slane %v3796_v31, 2  ;;  %v4041_v43 = vrot.slane %v4040_v30, 2  ;;  %v4048_v44 = vadd.f32 %v4047_v34, %v4046_v27 }
 0x23e   :  { %v3791_v45 = vrot.slane %v3790_v41, 1  ;;  %v3798_v47 = vadd.f32 %v3797_v42, %v3796_v31  ;;  %v4042_v48 = vadd.f32 %v4041_v43, %v4040_v30  ;;  %v4049_v49 = vrot.slane %v4048_v44, 2 }
 0x240   :  { %v3792_v51 = vadd.f32 %v3791_v45, %v3790_v41  ;;  %v3799_v52 = vrot.slane %v3798_v47, 1  ;;  %v4043_v54 = vrot.slane %v4042_v48, 1  ;;  %v4050_v55 = vadd.f32 %v4049_v49, %v4048_v44 }
 0x242   :  { %v3793_v57 = vadd.f32 %v3792_v51, %v3541_v13  ;;  %v3800_v59 = vadd.f32 %v3799_v52, %v3798_v47  ;;  %v4044_v60 = vadd.f32 %v4043_v54, %v4042_v48  ;;  %v4051_v61 = vrot.slane %v4050_v55, 1 }
 0x243   :  { %v4071_v13 = vsub.s32 0, %v4070_v10 }
 0x244   :  { %v3801_v0 = vadd.f32 %v3800_v59, %v3549_v16  ;;  %v4045_v62 = vadd.f32 %v4044_v60, %v3793_v57  ;;  %v4052_v63 = vadd.f32 %v4051_v61, %v4050_v55  ;;  %v4064_v16 = vld [vmem:[%s6194_s3] sm:$0x1] }
 0x246   :  { %v4053_v1 = vadd.f32 %v4052_v63, %v3801_v0  ;;  %v4055_v2 = vmul.f32 0.0078125, %v4045_v62 }
 0x248   :  { %v4056_v3 = vmul.f32 0.0078125, %v4053_v1  ;;  %v4057_v4 = vmul.f32 %v4055_v2, %v4055_v2 }
 0x24a   :  { %v4058_v5 = vsub.f32 %v4056_v3, %v4057_v4 }
 0x24c   :  { %v4059_v6 = vmax.f32 %v4058_v5, 0.0 }
 0x24e   :  { %v4061_v7 = vadd.f32 1e-05, %v4059_v6 }
 0x250   :  { %5328 = vrsqrt.f32 %v4061_v7 }
 0x25a   :  { %v5329_v15 = vpop.eup %5328 }
 0x25b   :  { %v4063_v19 = vmul.f32 %v5329_v15, %v4060_v11 }
 0x25d   :  { %v4065_v20 = vmul.f32 %v4063_v19, %v4055_v2  ;;  %v4072_v22 = vrot.slane %v4063_v19, %v4071_v13 }
 0x25f   :  { %v4066_v23 = vsub.f32 %v4064_v16, %v4065_v20  ;;  %v4074_v24 = vmul.f32 %v4072_v22, %v5850_v28  ;;  %v4085_v25 = vmul.f32 %v4072_v22, %v5859_v35  ;;  %v4090_v26 = vmul.f32 %v4072_v22, %v5954_v39 }
 0x260   :  { %v4095_v27 = vmul.f32 %v4072_v22, %v5963_v46  ;;  %v4100_v29 = vmul.f32 %v4072_v22, %v6043_v50  ;;  %v4105_v32 = vmul.f32 %v4072_v22, %v6050_v56  ;;  %v4110_v36 = vmul.f32 %v4072_v22, %v6061_v33 }
 0x261   :  { %v4079_v18 = vrot.slane %v4066_v23, %v4071_v13  ;;  %v4115_v31 = vmul.f32 %v4072_v22, %v6066_v38  ;;  %v4120_v30 = vmul.f32 %v4072_v22, %v6073_v8  ;;  %v4125_v34 = vmul.f32 %v4072_v22, %v6078_v12 }
 0x262   :  { %v4130_v28 = vmul.f32 %v4072_v22, %v6085_v53  ;;  %v4135_v35 = vmul.f32 %v4072_v22, %v6090_v58  ;;  %v4140_v39 = vmul.f32 %v4072_v22, %v6097_v37  ;;  %v4145_v46 = vmul.f32 %v4072_v22, %v6102_v40 }
 0x263   :  { %v4081_v50 = vadd.f32 %v4079_v18, %v4074_v24  ;;  %v4086_v14 = vadd.f32 %v4085_v25, %v4079_v18  ;;  %v4091_v56 = vadd.f32 %v4090_v26, %v4079_v18  ;;  %v4096_v41 = vadd.f32 %v4095_v27, %v4079_v18 }
 0x264   :  { %v4101_v33 = vadd.f32 %v4100_v29, %v4079_v18  ;;  %v4106_v42 = vadd.f32 %v4105_v32, %v4079_v18  ;;  %v4111_v43 = vadd.f32 %v4110_v36, %v4079_v18  ;;  %v4116_v38 = vadd.f32 %v4115_v31, %v4079_v18 }
 0x265   :  { %v4082_v44 = vmax.f32 %v4081_v50, 0.0  ;;  %v4087_v8 = vmax.f32 %v4086_v14, 0.0  ;;  %v4092_v45 = vmax.f32 %v4091_v56, 0.0  ;;  %v4097_v12 = vmax.f32 %v4096_v41, 0.0 }
 0x266   :  { %v4102_v47 = vmax.f32 %v4101_v33, 0.0  ;;  %v4107_v53 = vmax.f32 %v4106_v42, 0.0  ;;  %v4112_v48 = vmax.f32 %v4111_v43, 0.0  ;;  %v4117_v58 = vmax.f32 %v4116_v38, 0.0 }
 0x267   :  { %4083 = vst [vmem:[%s6195_s4] sm:$0xff] %v4082_v44  ;;  %4497 = vst [vmem:[%s6195_s4 + $0x8] sm:$0xff] %v4087_v8  ;;  %v4121_v37 = vadd.f32 %v4120_v30, %v4079_v18  ;;  %v4126_v40 = vadd.f32 %v4125_v34, %v4079_v18  ;;  %v4131_v49 = vadd.f32 %v4130_v28, %v4079_v18 }
 0x268   :  { %4499 = vst [vmem:[%s6195_s4 + $0x10] sm:$0xff] %v4092_v45  ;;  %4501 = vst [vmem:[%s6195_s4 + $0x18] sm:$0xff] %v4097_v12  ;;  %v4136_v51 = vadd.f32 %v4135_v35, %v4079_v18  ;;  %v4141_v52 = vadd.f32 %v4140_v39, %v4079_v18  ;;  %v4146_v54 = vadd.f32 %v4145_v46, %v4079_v18 }
 0x269   :  { %4503 = vst [vmem:[%s6195_s4 + $0x20] sm:$0xff] %v4102_v47  ;;  %4505 = vst [vmem:[%s6195_s4 + $0x28] sm:$0xff] %v4107_v53  ;;  %v4150_v55 = vmul.f32 %v4072_v22, %v6109_v17  ;;  %v4155_v57 = vmul.f32 %v4072_v22, %v6114_v21  ;;  %v4122_v59 = vmax.f32 %v4121_v37, 0.0  ;;  %v4127_v60 = vmax.f32 %v4126_v40, 0.0 }
 0x26a   :  { %4507 = vst [vmem:[%s6195_s4 + $0x30] sm:$0xff] %v4112_v48  ;;  %4509 = vst [vmem:[%s6195_s4 + $0x38] sm:$0xff] %v4117_v58  ;;  %v4132_v61 = vmax.f32 %v4131_v49, 0.0  ;;  %v4137_v0 = vmax.f32 %v4136_v51, 0.0  ;;  %v4142_v62 = vmax.f32 %v4141_v52, 0.0  ;;  %v4147_v63 = vmax.f32 %v4146_v54, 0.0 }
 0x26b   :  { %v4151_v1 = vadd.f32 %v4150_v55, %v4079_v18  ;;  %v4156_v2 = vadd.f32 %v4155_v57, %v4079_v18  ;;  %4511 = vst [vmem:[%s6195_s4 + $0x40] sm:$0xff] %v4122_v59  ;;  %4513 = vst [vmem:[%s6195_s4 + $0x48] sm:$0xff] %v4127_v60 }
 0x26c   :  { %4515 = vst [vmem:[%s6195_s4 + $0x50] sm:$0xff] %v4132_v61  ;;  %4517 = vst [vmem:[%s6195_s4 + $0x58] sm:$0xff] %v4137_v0 }
 0x26d   :  { %4519 = vst [vmem:[%s6195_s4 + $0x60] sm:$0xff] %v4142_v62  ;;  %4521 = vst [vmem:[%s6195_s4 + $0x68] sm:$0xff] %v4147_v63  ;;  %v4152_v17 = vmax.f32 %v4151_v1, 0.0  ;;  %v4157_v21 = vmax.f32 %v4156_v2, 0.0 }
 0x26f   :  { %4523 = vst [vmem:[%s6195_s4 + $0x70] sm:$0xff] %v4152_v17  ;;  %4525 = vst [vmem:[%s6195_s4 + $0x78] sm:$0xff] %v4157_v21 }

// kernel: conv_stream_forward.4
= control target key start
LH: loop header
LB: loop body
LE: loop exit
PB: predicated region body
PF: predicated region fallthrough
CT: control target
= control target key end

     0   :  { %v6627_v0 = vmov 0   ;;  %vm160_vm0 = vcmask 523264   ;;  %vm624_vm1 = vcmask 1043456   ;;  %s8619_s1 = inlined_call_operand.vmem [shape: bf16[4,192,128], index: 1, kind: input, shape index: {}]   ;;  %s8620_s0 = inlined_call_operand.vmem [shape: bf16[2,5,5,192], index: 0, kind: input, shape index: {}]   ;;  %s8621_s4 = inlined_call_operand.vmem [shape: f32[2,4,4,128], index: 4, kind: output, shape index: {}]   ;;  %s8622_s2 = inlined_call_operand.vmem [shape: f32[1,128], index: 2, kind: input, shape index: {}]   ;;  %s8623_s3 = inlined_call_operand.vmem [shape: f32[1,128], index: 3, kind: input, shape index: {}]  }
   0x1   :  { %164 = vmatprep.subr.bf16.mxu0 %v6627_v0  ;;  %786 = vmatprep.subr.bf16.mxu1 %v6627_v0  ;;  %v6209_v1 = vld [vmem:[%s8619_s1 + $0x60] sm:$0xff]   ;;  %v6211_v3 = vld [vmem:[%s8619_s1 + $0x68] sm:$0xff]   ;;  %v6213_v5 = vld [vmem:[%s8619_s1 + $0x70] sm:$0xff]  }
   0x2   :  { %v6210_v2 = vld [vmem:[%s8619_s1 + $0x60] sm:$0xff]   ;;  %165 = vmatpush1.bf16.msra.mxu0 %v6209_v1  ;;  %v6212_v4 = vld [vmem:[%s8619_s1 + $0x68] sm:$0xff]   ;;  %v6214_v6 = vld [vmem:[%s8619_s1 + $0x70] sm:$0xff]  }
   0x3   :  { %787 = vmatpush1.bf16.msra.mxu1 %v6210_v2  ;;  %166 = vmatprep.subr.bf16.mxu0 %v6627_v0  ;;  %v6215_v7 = vld [vmem:[%s8619_s1 + $0x78] sm:$0xff]   ;;  %v6217_v9 = vld [vmem:[%s8619_s1 + $0x80] sm:$0xff]   ;;  %v6219_v11 = vld [vmem:[%s8619_s1 + $0x88] sm:$0xff]  }
   0x4   :  { %788 = vmatprep.subr.bf16.mxu1 %v6627_v0  ;;  %v6216_v8 = vld [vmem:[%s8619_s1 + $0x78] sm:$0xff]   ;;  %v6218_v10 = vld [vmem:[%s8619_s1 + $0x80] sm:$0xff]   ;;  %v6220_v12 = vld [vmem:[%s8619_s1 + $0x88] sm:$0xff]  }
   0x5   :  { %v6221_v13 = vld [vmem:[%s8619_s1 + $0x90] sm:$0xff]   ;;  %v18_v15 = vld [vmem:[%s8620_s0] sm:$0x77]  ;;  %v5181_v16 = vld [vmem:[%s8620_s0 + $0x8] sm:$0x77] }
   0x6   :  { %167 = vmatpush1.bf16.msra.mxu0 %v6211_v3  ;;  %v6222_v14 = vld [vmem:[%s8619_s1 + $0x90] sm:$0xff]   ;;  %v6223_v17 = vld [vmem:[%s8619_s1 + $0x98] sm:$0xff]   ;;  %v6718_v18 = vcombine.high %v18_v15, %v18_v15  ;;  %v6720_v19 = vcombine.high %v5181_v16, %v5181_v16  ;;  %v6225_v27 = vld [vmem:[%s8619_s1 + $0xa0] sm:$0xff]   ;;  %v6739_v31 = vcombine.low %v18_v15, %v18_v15  ;;  %v6746_v33 = vcombine.low %v5181_v16, %v5181_v16 }
   0x7   :  { %789 = vmatpush1.bf16.msra.mxu1 %v6212_v4  ;;  %168 = vmatprep.subr.bf16.mxu0 %v6627_v0  ;;  %v6224_v20 = vld [vmem:[%s8619_s1 + $0x98] sm:$0xff]   ;;  %v6226_v28 = vld [vmem:[%s8619_s1 + $0xa0] sm:$0xff]   ;;  %v6227_v32 = vld [vmem:[%s8619_s1 + $0xa8] sm:$0xff]  }
   0x8   :  { %790 = vmatprep.subr.bf16.mxu1 %v6627_v0  ;;  %v81_v21 = vshrl.u32 %v6718_v18, 16  ;;  %v83_v22 = vshll.u32 %v6718_v18, 16  ;;  %v704_v23 = vshrl.u32 %v6720_v19, 16  ;;  %v706_v24 = vshll.u32 %v6720_v19, 16  ;;  %v6228_v34 = vld [vmem:[%s8619_s1 + $0xa8] sm:$0xff]   ;;  %v6229_v36 = vld [vmem:[%s8619_s1 + $0xb0] sm:$0xff]  }
   0x9   :  { %v76_v35 = vshll.u32 %v6739_v31, 16  ;;  %v699_v37 = vshll.u32 %v6746_v33, 16  ;;  %v6230_v38 = vld [vmem:[%s8619_s1 + $0xb0] sm:$0xff]   ;;  %v6231_v39 = vld [vmem:[%s8619_s1 + $0xb8] sm:$0xff]   ;;  %v74_v40 = vshrl.u32 %v6739_v31, 16  ;;  %v697_v42 = vshrl.u32 %v6746_v33, 16 }
   0xa   :  { %169 = vmatpush1.bf16.msra.mxu0 %v6213_v5  ;;  %v85_v25 = vrot.slane %v83_v22, 1  ;;  %v708_v26 = vrot.slane %v706_v24, 1  ;;  %v6232_v44 = vld [vmem:[%s8619_s1 + $0xb8] sm:$0xff]   ;;  %v6237_v46 = vld [vmem:[%s8619_s1] sm:$0xff]   ;;  %v6239_v49 = vld [vmem:[%s8619_s1 + $0x8] sm:$0xff]  }
   0xb   :  { %791 = vmatpush1.bf16.msra.mxu1 %v6214_v6  ;;  %170 = vmatprep.subr.bf16.mxu0 %v6627_v0  ;;  %v78_v41 = vrot.slane %v76_v35, 1  ;;  %v701_v43 = vrot.slane %v699_v37, 1  ;;  %v6238_v48 = vld [vmem:[%s8619_s1] sm:$0xff]   ;;  %v6240_v50 = vld [vmem:[%s8619_s1 + $0x8] sm:$0xff]   ;;  %v6241_v51 = vld [vmem:[%s8619_s1 + $0x10] sm:$0xff]  }
   0xc   :  { %792 = vmatprep.subr.bf16.mxu1 %v6627_v0  ;;  %v86_v29 = vor.u32 %v85_v25, %v81_v21  ;;  %v709_v30 = vor.u32 %v708_v26, %v704_v23  ;;  %v6242_v52 = vld [vmem:[%s8619_s1 + $0x10] sm:$0xff]   ;;  %v6243_v53 = vld [vmem:[%s8619_s1 + $0x18] sm:$0xff]   ;;  %v6245_v55 = vld [vmem:[%s8619_s1 + $0x20] sm:$0xff]  }
   0xd   :  { %v79_v45 = vor.u32 %v78_v41, %v74_v40  ;;  %v702_v47 = vor.u32 %v701_v43, %v697_v42  ;;  %v6244_v54 = vld [vmem:[%s8619_s1 + $0x18] sm:$0xff]   ;;  %v6246_v56 = vld [vmem:[%s8619_s1 + $0x20] sm:$0xff]   ;;  %v6247_v57 = vld [vmem:[%s8619_s1 + $0x28] sm:$0xff]  }
   0xe   :  { %171 = vmatpush1.bf16.msra.mxu0 %v6215_v7  ;;  %5090 = vmatprep.mubr.msk.bf16.mxu0 %vm160_vm0, %v86_v29  ;;  %v6248_v58 = vld [vmem:[%s8619_s1 + $0x28] sm:$0xff]   ;;  %v6249_v59 = vld [vmem:[%s8619_s1 + $0x30] sm:$0xff]   ;;  %v6251_v61 = vld [vmem:[%s8619_s1 + $0x38] sm:$0xff]  }
   0xf   :  { %793 = vmatpush1.bf16.msra.mxu1 %v6216_v8  ;;  %172 = vmatprep.subr.bf16.mxu0 %v6627_v0  ;;  %v6250_v60 = vld [vmem:[%s8619_s1 + $0x30] sm:$0xff]   ;;  %v6252_v62 = vld [vmem:[%s8619_s1 + $0x38] sm:$0xff]   ;;  %v6253_v63 = vld [vmem:[%s8619_s1 + $0x40] sm:$0xff]  }
  0x10   :  { %794 = vmatprep.subr.bf16.mxu1 %v6627_v0  ;;  %5220 = vmatprep.mubr.msk.bf16.mxu1 %vm160_vm0, %v709_v30  ;;  %v6254_v1 = vld [vmem:[%s8619_s1 + $0x40] sm:$0xff]   ;;  %v6255_v2 = vld [vmem:[%s8619_s1 + $0x48] sm:$0xff]   ;;  %v6257_v4 = vld [vmem:[%s8619_s1 + $0x50] sm:$0xff]  }
  0x11   :  { %v6256_v3 = vld [vmem:[%s8619_s1 + $0x48] sm:$0xff]   ;;  %v6258_v5 = vld [vmem:[%s8619_s1 + $0x50] sm:$0xff]   ;;  %v6259_v6 = vld [vmem:[%s8619_s1 + $0x58] sm:$0xff]  }
  0x12   :  { %173 = vmatpush1.bf16.msra.mxu0 %v6217_v9  ;;  %v6260_v7 = vld [vmem:[%s8619_s1 + $0x58] sm:$0xff]   ;;  %v6261_v8 = vld [vmem:[%s8619_s1 + $0xc0] sm:$0xff]   ;;  %v6879_v9 = vld [vmem:[%s8620_s0 + $0x8] sm:$0x77] }
  0x13   :  { %795 = vmatpush1.bf16.msra.mxu1 %v6218_v10  ;;  %174 = vmatprep.subr.bf16.mxu0 %v6627_v0  ;;  %v6884_v10 = vld [vmem:[%s8620_s0 + $0x10] sm:$0x77]  ;;  %v6264_v15 = vld [vmem:[%s8619_s1 + $0xc8] sm:$0xff]   ;;  %v6270_v21 = vld [vmem:[%s8619_s1 + $0xe0] sm:$0xff]   ;;  %v7001_v41 = vcombine.low %v6879_v9, %v6879_v9 }
  0x14   :  { %796 = vmatprep.subr.bf16.mxu1 %v6627_v0  ;;  %v6265_v16 = vld [vmem:[%s8619_s1 + $0xd0] sm:$0xff]   ;;  %v6271_v22 = vld [vmem:[%s8619_s1 + $0xe8] sm:$0xff]   ;;  %v6275_v26 = vld [vmem:[%s8619_s1 + $0xf8] sm:$0xff]  }
  0x15   :  { %v6272_v23 = vld [vmem:[%s8619_s1 + $0xe8] sm:$0xff]   ;;  %v6273_v24 = vld [vmem:[%s8619_s1 + $0xf0] sm:$0xff]   ;;  %v6278_v29 = vld [vmem:[%s8619_s1 + $0x100] sm:$0xff]  }
  0x16   :  { %175 = vmatpush1.bf16.msra.mxu0 %v6219_v11  ;;  %v6262_v11 = vld [vmem:[%s8619_s1 + $0xc0] sm:$0xff]   ;;  %v6274_v25 = vld [vmem:[%s8619_s1 + $0xf0] sm:$0xff]   ;;  %v6279_v30 = vld [vmem:[%s8619_s1 + $0x108] sm:$0xff]  }
  0x17   :  { %797 = vmatpush1.bf16.msra.mxu1 %v6220_v12  ;;  %176 = vmatprep.subr.bf16.mxu0 %v6627_v0  ;;  %v6893_v12 = vcombine.high %v6879_v9, %v6879_v9  ;;  %v6284_v37 = vld [vmem:[%s8619_s1 + $0x118] sm:$0xff]   ;;  %v6290_v42 = vld [vmem:[%s8619_s1 + $0x120] sm:$0xff]   ;;  %v6309_v9 = vld [vmem:[%s8619_s1 + $0x170] sm:$0xff]  }
  0x18   :  { %798 = vmatprep.subr.bf16.mxu1 %v6627_v0 }
  0x1a   :  { %177 = vmatpush1.bf16.msra.mxu0 %v6221_v13  ;;  %v6898_v13 = vcombine.high %v6884_v10, %v6884_v10 }
  0x1b   :  { %799 = vmatpush1.bf16.msra.mxu1 %v6222_v14  ;;  %178 = vmatprep.subr.bf16.mxu0 %v6627_v0  ;;  %v6263_v14 = vld [vmem:[%s8619_s1 + $0xc8] sm:$0xff]  }
  0x1c   :  { %800 = vmatprep.subr.bf16.mxu1 %v6627_v0  ;;  %v1122_v35 = vshll.u32 %v6898_v13, 16  ;;  %v1120_v43 = vshrl.u32 %v6898_v13, 16 }
  0x1e   :  { %179 = vmatpush1.bf16.msra.mxu0 %v6223_v17  ;;  %v6266_v17 = vld [vmem:[%s8619_s1 + $0xd0] sm:$0xff]  }
  0x1f   :  { %801 = vmatpush1.bf16.msra.mxu1 %v6224_v20  ;;  %180 = vmatprep.subr.bf16.mxu0 %v6627_v0  ;;  %v6269_v20 = vld [vmem:[%s8619_s1 + $0xe0] sm:$0xff]  }
  0x20   :  { %802 = vmatprep.subr.bf16.mxu1 %v6627_v0 }
  0x22   :  { %181 = vmatpush1.bf16.msra.mxu0 %v6225_v27  ;;  %v6276_v27 = vld [vmem:[%s8619_s1 + $0xf8] sm:$0xff]  }
  0x23   :  { %803 = vmatpush1.bf16.msra.mxu1 %v6226_v28  ;;  %182 = vmatprep.subr.bf16.mxu0 %v6627_v0  ;;  %v6277_v28 = vld [vmem:[%s8619_s1 + $0x100] sm:$0xff]  }
  0x24   :  { %804 = vmatprep.subr.bf16.mxu1 %v6627_v0 }
  0x26   :  { %183 = vmatpush1.bf16.msra.mxu0 %v6227_v32  ;;  %v6281_v32 = vld [vmem:[%s8619_s1 + $0x110] sm:$0xff]  }
  0x27   :  { %805 = vmatpush1.bf16.msra.mxu1 %v6228_v34  ;;  %184 = vmatprep.subr.bf16.mxu0 %v6627_v0  ;;  %v502_v34 = vshll.u32 %v6893_v12, 16 }
  0x28   :  { %806 = vmatprep.subr.bf16.mxu1 %v6627_v0 }
  0x29   :  { %v504_v40 = vrot.slane %v502_v34, 1  ;;  %v6320_v34 = vld [vmem:[%s8619_s1 + $0x78] sm:$0xff]  }
  0x2a   :  { %185 = vmatpush1.bf16.msra.mxu0 %v6229_v36  ;;  %v6283_v36 = vld [vmem:[%s8619_s1 + $0x118] sm:$0xff]  }
  0x2b   :  { %807 = vmatpush1.bf16.msra.mxu1 %v6230_v38  ;;  %186 = vmatprep.subr.bf16.mxu0 %v6627_v0  ;;  %v6288_v38 = vld [vmem:[%s8619_s1 + $0x120] sm:$0xff]  }
  0x2c   :  { %808 = vmatprep.subr.bf16.mxu1 %v6627_v0 }
  0x2e   :  { %187 = vmatpush1.bf16.msra.mxu0 %v6231_v39  ;;  %v500_v39 = vshrl.u32 %v6893_v12, 16 }
  0x2f   :  { %809 = vmatpush1.bf16.msra.mxu1 %v6232_v44  ;;  %279 = vmatprep.subr.bf16.mxu0 %v6627_v0  ;;  %v1124_v44 = vrot.slane %v1122_v35, 1  ;;  %v6321_v35 = vld [vmem:[%s8619_s1 + $0x80] sm:$0xff]  }
  0x30   :  { %901 = vmatprep.subr.bf16.mxu1 %v6627_v0 }
  0x31   :  { %197 = vmatmul.mubr.bf16.vlgmr.msra.gmra.mrb[0].mxu0 %v79_v45  ;;  %v7009_v45 = vcombine.low %v6884_v10, %v6884_v10 }
  0x32   :  { %280 = vmatpush1.bf16.msra.mxu0 %v6237_v46  ;;  %819 = vmatmul.mubr.bf16.vlgmr.msra.gmra.mrb[0].mxu1 %v702_v47  ;;  %v6291_v46 = vld [vmem:[%s8619_s1 + $0x128] sm:$0xff]   ;;  %v505_v47 = vor.u32 %v504_v40, %v500_v39  ;;  %v6325_v39 = vld [vmem:[%s8619_s1 + $0x90] sm:$0xff]  }
  0x33   :  { %902 = vmatpush1.bf16.msra.mxu1 %v6238_v48  ;;  %281 = vmatprep.subr.bf16.mxu0 %v6627_v0  ;;  %v6292_v48 = vld [vmem:[%s8619_s1 + $0x128] sm:$0xff]   ;;  %v6326_v40 = vld [vmem:[%s8619_s1 + $0x90] sm:$0xff]  }
  0x34   :  { %903 = vmatprep.subr.bf16.mxu1 %v6627_v0  ;;  %5103 = vmatprep.mubr.msk.bf16.mxu0 %vm160_vm0, %v6718_v18  ;;  %v6267_v18 = vld [vmem:[%s8619_s1 + $0xd8] sm:$0xff]  }
  0x35   :  { %5233 = vmatprep.mubr.msk.bf16.mxu1 %vm160_vm0, %v6720_v19  ;;  %v6268_v19 = vld [vmem:[%s8619_s1 + $0xd8] sm:$0xff]  }
  0x36   :  { %282 = vmatpush1.bf16.msra.mxu0 %v6239_v49  ;;  %v1125_v49 = vor.u32 %v1124_v44, %v1120_v43  ;;  %v6329_v43 = vld [vmem:[%s8619_s1 + $0xa0] sm:$0xff]  }
  0x37   :  { %904 = vmatpush1.bf16.msra.mxu1 %v6240_v50  ;;  %283 = vmatprep.subr.bf16.mxu0 %v6627_v0  ;;  %v6293_v50 = vld [vmem:[%s8619_s1 + $0x130] sm:$0xff]   ;;  %v6330_v44 = vld [vmem:[%s8619_s1 + $0xa0] sm:$0xff]  }
  0x38   :  { %905 = vmatprep.subr.bf16.mxu1 %v6627_v0 }
  0x3a   :  { %284 = vmatpush1.bf16.msra.mxu0 %v6241_v51  ;;  %v6294_v51 = vld [vmem:[%s8619_s1 + $0x130] sm:$0xff]  }
  0x3b   :  { %906 = vmatpush1.bf16.msra.mxu1 %v6242_v52  ;;  %285 = vmatprep.subr.bf16.mxu0 %v6627_v0  ;;  %v6295_v52 = vld [vmem:[%s8619_s1 + $0x138] sm:$0xff]  }
  0x3c   :  { %907 = vmatprep.subr.bf16.mxu1 %v6627_v0 }
  0x3e   :  { %286 = vmatpush1.bf16.msra.mxu0 %v6243_v53  ;;  %v6296_v53 = vld [vmem:[%s8619_s1 + $0x138] sm:$0xff]  }
  0x3f   :  { %908 = vmatpush1.bf16.msra.mxu1 %v6244_v54  ;;  %287 = vmatprep.subr.bf16.mxu0 %v6627_v0  ;;  %v6297_v54 = vld [vmem:[%s8619_s1 + $0x140] sm:$0xff]  }
  0x40   :  { %909 = vmatprep.subr.bf16.mxu1 %v6627_v0 }
  0x42   :  { %288 = vmatpush1.bf16.msra.mxu0 %v6245_v55  ;;  %v6298_v55 = vld [vmem:[%s8619_s1 + $0x140] sm:$0xff]  }
  0x43   :  { %910 = vmatpush1.bf16.msra.mxu1 %v6246_v56  ;;  %289 = vmatprep.subr.bf16.mxu0 %v6627_v0  ;;  %v6299_v56 = vld [vmem:[%s8619_s1 + $0x148] sm:$0xff]  }
  0x44   :  { %911 = vmatprep.subr.bf16.mxu1 %v6627_v0 }
  0x46   :  { %290 = vmatpush1.bf16.msra.mxu0 %v6247_v57  ;;  %v6300_v57 = vld [vmem:[%s8619_s1 + $0x148] sm:$0xff]  }
  0x47   :  { %912 = vmatpush1.bf16.msra.mxu1 %v6248_v58  ;;  %291 = vmatprep.subr.bf16.mxu0 %v6627_v0  ;;  %v6301_v58 = vld [vmem:[%s8619_s1 + $0x150] sm:$0xff]  }
  0x48   :  { %913 = vmatprep.subr.bf16.mxu1 %v6627_v0 }
  0x4a   :  { %292 = vmatpush1.bf16.msra.mxu0 %v6249_v59  ;;  %v6302_v59 = vld [vmem:[%s8619_s1 + $0x150] sm:$0xff]  }
  0x4b   :  { %914 = vmatpush1.bf16.msra.mxu1 %v6250_v60  ;;  %293 = vmatprep.subr.bf16.mxu0 %v6627_v0  ;;  %v6303_v60 = vld [vmem:[%s8619_s1 + $0x158] sm:$0xff]  }
  0x4c   :  { %915 = vmatprep.subr.bf16.mxu1 %v6627_v0 }
  0x4e   :  { %294 = vmatpush1.bf16.msra.mxu0 %v6251_v61  ;;  %v494_v61 = vshrl.u32 %v7001_v41, 16 }
  0x4f   :  { %916 = vmatpush1.bf16.msra.mxu1 %v6252_v62  ;;  %295 = vmatprep.subr.bf16.mxu0 %v6627_v0  ;;  %v6304_v62 = vld [vmem:[%s8619_s1 + $0x158] sm:$0xff]  }
  0x50   :  { %917 = vmatprep.subr.bf16.mxu1 %v6627_v0 }
  0x52   :  { %296 = vmatpush1.bf16.msra.mxu0 %v6253_v63  ;;  %v496_v63 = vshll.u32 %v7001_v41, 16 }
  0x53   :  { %918 = vmatpush1.bf16.msra.mxu1 %v6254_v1  ;;  %297 = vmatprep.subr.bf16.mxu0 %v6627_v0  ;;  %v6305_v1 = vld [vmem:[%s8619_s1 + $0x160] sm:$0xff]  }
  0x54   :  { %919 = vmatprep.subr.bf16.mxu1 %v6627_v0  ;;  %v498_v10 = vrot.slane %v496_v63, 1  ;;  %v6343_v63 = vld [vmem:[%s8619_s1 + $0x8] sm:$0xff]  }
  0x56   :  { %298 = vmatpush1.bf16.msra.mxu0 %v6255_v2  ;;  %v1114_v2 = vshrl.u32 %v7009_v45, 16 }
  0x57   :  { %920 = vmatpush1.bf16.msra.mxu1 %v6256_v3  ;;  %299 = vmatprep.subr.bf16.mxu0 %v6627_v0  ;;  %v6306_v3 = vld [vmem:[%s8619_s1 + $0x160] sm:$0xff]  }
  0x58   :  { %921 = vmatprep.subr.bf16.mxu1 %v6627_v0 }
  0x5a   :  { %300 = vmatpush1.bf16.msra.mxu0 %v6257_v4  ;;  %v1116_v4 = vshll.u32 %v7009_v45, 16 }
  0x5b   :  { %922 = vmatpush1.bf16.msra.mxu1 %v6258_v5  ;;  %301 = vmatprep.subr.bf16.mxu0 %v6627_v0  ;;  %v6307_v5 = vld [vmem:[%s8619_s1 + $0x168] sm:$0xff]  }
  0x5c   :  { %923 = vmatprep.subr.bf16.mxu1 %v6627_v0 }
  0x5e   :  { %302 = vmatpush1.bf16.msra.mxu0 %v6259_v6  ;;  %v7091_v6 = vld [vmem:[%s8620_s0 + $0x10] sm:$0x77] }
  0x5f   :  { %924 = vmatpush1.bf16.msra.mxu1 %v6260_v7  ;;  %427 = vmatprep.subr.bf16.mxu0 %v6627_v0  ;;  %v6308_v7 = vld [vmem:[%s8619_s1 + $0x168] sm:$0xff]  }
  0x60   :  { %1048 = vmatprep.subr.bf16.mxu1 %v6627_v0 }
  0x61   :  { %312 = vmatmul.mubr.bf16.vlgmr.msra.gmra.mrb[0].mxu0 %v6739_v31  ;;  %v6280_v31 = vld [vmem:[%s8619_s1 + $0x108] sm:$0xff]  }
  0x62   :  { %428 = vmatpush1.bf16.msra.mxu0 %v6261_v8  ;;  %934 = vmatmul.mubr.bf16.vlgmr.msra.gmra.mrb[0].mxu1 %v6746_v33  ;;  %v6282_v33 = vld [vmem:[%s8619_s1 + $0x110] sm:$0xff]   ;;  %v7099_v8 = vld [vmem:[%s8620_s0 + $0x18] sm:$0x77] }
  0x63   :  { %1049 = vmatpush1.bf16.msra.mxu1 %v6262_v11  ;;  %429 = vmatprep.subr.bf16.mxu0 %v6627_v0  ;;  %v7108_v11 = vcombine.high %v7091_v6, %v7091_v6 }
  0x64   :  { %1050 = vmatprep.subr.bf16.mxu1 %v6627_v0  ;;  %5143 = vmatprep.mubr.msk.bf16.mxu0 %vm160_vm0, %v6893_v12  ;;  %v6310_v12 = vld [vmem:[%s8619_s1 + $0x170] sm:$0xff]  }
  0x65   :  { %5273 = vmatprep.mubr.msk.bf16.mxu1 %vm160_vm0, %v6898_v13  ;;  %v1118_v13 = vrot.slane %v1116_v4, 1  ;;  %v6347_v4 = vld [vmem:[%s8619_s1 + $0x18] sm:$0xff]  }
  0x66   :  { %430 = vmatpush1.bf16.msra.mxu0 %v6263_v14  ;;  %v7115_v14 = vcombine.high %v7099_v8, %v7099_v8 }
  0x67   :  { %1051 = vmatpush1.bf16.msra.mxu1 %v6264_v15  ;;  %431 = vmatprep.subr.bf16.mxu0 %v6627_v0  ;;  %v6311_v15 = vld [vmem:[%s8619_s1 + $0x178] sm:$0xff]  }
  0x68   :  { %1052 = vmatprep.subr.bf16.mxu1 %v6627_v0 }
  0x6a   :  { %432 = vmatpush1.bf16.msra.mxu0 %v6265_v16  ;;  %v1326_v16 = vshll.u32 %v7108_v11, 16 }
  0x6b   :  { %1053 = vmatpush1.bf16.msra.mxu1 %v6266_v17  ;;  %433 = vmatprep.subr.bf16.mxu0 %v6627_v0  ;;  %v6312_v17 = vld [vmem:[%s8619_s1 + $0x178] sm:$0xff]  }
  0x6c   :  { %1054 = vmatprep.subr.bf16.mxu1 %v6627_v0 }
  0x6e   :  { %434 = vmatpush1.bf16.msra.mxu0 %v6267_v18  ;;  %v1946_v18 = vshll.u32 %v7115_v14, 16 }
  0x6f   :  { %1055 = vmatpush1.bf16.msra.mxu1 %v6268_v19  ;;  %435 = vmatprep.subr.bf16.mxu0 %v6627_v0  ;;  %v6313_v19 = vld [vmem:[%s8619_s1 + $0x60] sm:$0xff]  }
  0x70   :  { %1056 = vmatprep.subr.bf16.mxu1 %v6627_v0 }
  0x72   :  { %436 = vmatpush1.bf16.msra.mxu0 %v6269_v20  ;;  %v1324_v20 = vshrl.u32 %v7108_v11, 16 }
  0x73   :  { %1057 = vmatpush1.bf16.msra.mxu1 %v6270_v21  ;;  %437 = vmatprep.subr.bf16.mxu0 %v6627_v0  ;;  %v1328_v21 = vrot.slane %v1326_v16, 1  ;;  %v6359_v16 = vld [vmem:[%s8619_s1 + $0x48] sm:$0xff]  }
  0x74   :  { %1058 = vmatprep.subr.bf16.mxu1 %v6627_v0 }
  0x76   :  { %438 = vmatpush1.bf16.msra.mxu0 %v6271_v22  ;;  %v499_v22 = vor.u32 %v498_v10, %v494_v61  ;;  %v6342_v61 = vld [vmem:[%s8619_s1] sm:$0xff]   ;;  %v6353_v10 = vld [vmem:[%s8619_s1 + $0x30] sm:$0xff]  }
  0x77   :  { %1059 = vmatpush1.bf16.msra.mxu1 %v6272_v23  ;;  %439 = vmatprep.subr.bf16.mxu0 %v6627_v0  ;;  %v6314_v23 = vld [vmem:[%s8619_s1 + $0x60] sm:$0xff]  }
  0x78   :  { %1060 = vmatprep.subr.bf16.mxu1 %v6627_v0 }
  0x7a   :  { %440 = vmatpush1.bf16.msra.mxu0 %v6273_v24  ;;  %v1944_v24 = vshrl.u32 %v7115_v14, 16 }
  0x7b   :  { %1061 = vmatpush1.bf16.msra.mxu1 %v6274_v25  ;;  %441 = vmatprep.subr.bf16.mxu0 %v6627_v0  ;;  %v1948_v25 = vrot.slane %v1946_v18, 1  ;;  %v6361_v18 = vld [vmem:[%s8619_s1 + $0x50] sm:$0xff]  }
  0x7c   :  { %1062 = vmatprep.subr.bf16.mxu1 %v6627_v0 }
  0x7e   :  { %442 = vmatpush1.bf16.msra.mxu0 %v6275_v26  ;;  %v1119_v26 = vor.u32 %v1118_v13, %v1114_v2  ;;  %v6345_v2 = vld [vmem:[%s8619_s1 + $0x10] sm:$0xff]   ;;  %v6356_v13 = vld [vmem:[%s8619_s1 + $0x38] sm:$0xff]  }
  0x7f   :  { %1063 = vmatpush1.bf16.msra.mxu1 %v6276_v27  ;;  %443 = vmatprep.subr.bf16.mxu0 %v6627_v0  ;;  %v6315_v27 = vld [vmem:[%s8619_s1 + $0x68] sm:$0xff]  }
  0x80   :  { %1064 = vmatprep.subr.bf16.mxu1 %v6627_v0 }
  0x82   :  { %444 = vmatpush1.bf16.msra.mxu0 %v6277_v28  ;;  %v1329_v28 = vor.u32 %v1328_v21, %v1324_v20  ;;  %v6363_v20 = vld [vmem:[%s8619_s1 + $0x58] sm:$0xff]  }
  0x83   :  { %1065 = vmatpush1.bf16.msra.mxu1 %v6278_v29  ;;  %445 = vmatprep.subr.bf16.mxu0 %v6627_v0  ;;  %v6316_v29 = vld [vmem:[%s8619_s1 + $0x68] sm:$0xff]   ;;  %v6364_v21 = vld [vmem:[%s8619_s1 + $0x58] sm:$0xff]  }
  0x84   :  { %1066 = vmatprep.subr.bf16.mxu1 %v6627_v0 }
  0x86   :  { %446 = vmatpush1.bf16.msra.mxu0 %v6279_v30  ;;  %v1949_v30 = vor.u32 %v1948_v25, %v1944_v24  ;;  %v7350_v24 = vld [vmem:[%s8620_s0 + $0x18] sm:$0x77]  ;;  %v7355_v25 = vld [vmem:[%s8620_s0 + $0x20] sm:$0x77] }
  0x87   :  { %1067 = vmatpush1.bf16.msra.mxu1 %v6280_v31  ;;  %447 = vmatprep.subr.bf16.mxu0 %v6627_v0  ;;  %v6317_v31 = vld [vmem:[%s8619_s1 + $0x70] sm:$0xff]  }
  0x88   :  { %1068 = vmatprep.subr.bf16.mxu1 %v6627_v0 }
  0x8a   :  { %448 = vmatpush1.bf16.msra.mxu0 %v6281_v32  ;;  %v6318_v32 = vld [vmem:[%s8619_s1 + $0x70] sm:$0xff]  }
  0x8b   :  { %1069 = vmatpush1.bf16.msra.mxu1 %v6282_v33  ;;  %449 = vmatprep.subr.bf16.mxu0 %v6627_v0  ;;  %v6319_v33 = vld [vmem:[%s8619_s1 + $0x78] sm:$0xff]  }
  0x8c   :  { %1070 = vmatprep.subr.bf16.mxu1 %v6627_v0 }
  0x8e   :  { %450 = vmatpush1.bf16.msra.mxu0 %v6283_v36  ;;  %v6322_v36 = vld [vmem:[%s8619_s1 + $0x80] sm:$0xff]  }
  0x8f   :  { %1071 = vmatpush1.bf16.msra.mxu1 %v6284_v37  ;;  %582 = vmatprep.subr.bf16.mxu0 %v6627_v0  ;;  %v6323_v37 = vld [vmem:[%s8619_s1 + $0x88] sm:$0xff]  }
  0x90   :  { %1202 = vmatprep.subr.bf16.mxu1 %v6627_v0 }
  0x91   :  { %460 = vmatmul.mubr.bf16.vlgmr.msra.gmra.mrb[0].mxu0 %v7001_v41  ;;  %v6327_v41 = vld [vmem:[%s8619_s1 + $0x98] sm:$0xff]  }
  0x92   :  { %583 = vmatpush1.bf16.msra.mxu0 %v6288_v38  ;;  %1081 = vmatmul.mubr.bf16.vlgmr.msra.gmra.mrb[0].mxu1 %v7009_v45  ;;  %v6324_v38 = vld [vmem:[%s8619_s1 + $0x88] sm:$0xff]  }
  0x93   :  { %1203 = vmatpush1.bf16.msra.mxu1 %v6290_v42  ;;  %584 = vmatprep.subr.bf16.mxu0 %v6627_v0  ;;  %v6328_v42 = vld [vmem:[%s8619_s1 + $0x98] sm:$0xff]   ;;  %v6331_v45 = vld [vmem:[%s8619_s1 + $0xa8] sm:$0xff]  }
  0x94   :  { %1204 = vmatprep.subr.bf16.mxu1 %v6627_v0  ;;  %5180 = vmatprep.mubr.msk.bf16.mxu0 %vm160_vm0, %v505_v47  ;;  %v7213_v47 = vcombine.low %v7091_v6, %v7091_v6  ;;  %v6349_v6 = vld [vmem:[%s8619_s1 + $0x20] sm:$0xff]  }
  0x95   :  { %5310 = vmatprep.mubr.msk.bf16.mxu1 %vm160_vm0, %v1125_v49  ;;  %v6333_v49 = vld [vmem:[%s8619_s1 + $0xb0] sm:$0xff]  }
  0x96   :  { %585 = vmatpush1.bf16.msra.mxu0 %v6291_v46  ;;  %v6332_v46 = vld [vmem:[%s8619_s1 + $0xa8] sm:$0xff]  }
  0x97   :  { %1205 = vmatpush1.bf16.msra.mxu1 %v6292_v48  ;;  %586 = vmatprep.subr.bf16.mxu0 %v6627_v0  ;;  %v7217_v48 = vcombine.low %v7099_v8, %v7099_v8  ;;  %v6351_v8 = vld [vmem:[%s8619_s1 + $0x28] sm:$0xff]  }
  0x98   :  { %1206 = vmatprep.subr.bf16.mxu1 %v6627_v0 }
  0x9a   :  { %587 = vmatpush1.bf16.msra.mxu0 %v6293_v50  ;;  %v6334_v50 = vld [vmem:[%s8619_s1 + $0xb0] sm:$0xff]  }
  0x9b   :  { %1207 = vmatpush1.bf16.msra.mxu1 %v6294_v51  ;;  %588 = vmatprep.subr.bf16.mxu0 %v6627_v0  ;;  %v1319_v51 = vshll.u32 %v7213_v47, 16 }
  0x9c   :  { %1208 = vmatprep.subr.bf16.mxu1 %v6627_v0 }
  0x9e   :  { %589 = vmatpush1.bf16.msra.mxu0 %v6295_v52  ;;  %v1939_v52 = vshll.u32 %v7217_v48, 16 }
  0x9f   :  { %1209 = vmatpush1.bf16.msra.mxu1 %v6296_v53  ;;  %590 = vmatprep.subr.bf16.mxu0 %v6627_v0  ;;  %v6335_v53 = vld [vmem:[%s8619_s1 + $0xb8] sm:$0xff]  }
  0xa0   :  { %1210 = vmatprep.subr.bf16.mxu1 %v6627_v0 }
  0xa2   :  { %591 = vmatpush1.bf16.msra.mxu0 %v6297_v54  ;;  %v1317_v54 = vshrl.u32 %v7213_v47, 16 }
  0xa3   :  { %1211 = vmatpush1.bf16.msra.mxu1 %v6298_v55  ;;  %592 = vmatprep.subr.bf16.mxu0 %v6627_v0  ;;  %v1937_v55 = vshrl.u32 %v7217_v48, 16 }
  0xa4   :  { %1212 = vmatprep.subr.bf16.mxu1 %v6627_v0 }
  0xa6   :  { %593 = vmatpush1.bf16.msra.mxu0 %v6299_v56  ;;  %v6336_v56 = vld [vmem:[%s8619_s1 + $0xb8] sm:$0xff]  }
  0xa7   :  { %1213 = vmatpush1.bf16.msra.mxu1 %v6300_v57  ;;  %594 = vmatprep.subr.bf16.mxu0 %v6627_v0  ;;  %v1321_v57 = vrot.slane %v1319_v51, 1 }
  0xa8   :  { %1214 = vmatprep.subr.bf16.mxu1 %v6627_v0 }
  0xaa   :  { %595 = vmatpush1.bf16.msra.mxu0 %v6301_v58  ;;  %v1941_v58 = vrot.slane %v1939_v52, 1  ;;  %v6392_v52 = vld [vmem:[%s8619_s1 + $0x120] sm:$0xff]  }
  0xab   :  { %1215 = vmatpush1.bf16.msra.mxu1 %v6302_v59  ;;  %596 = vmatprep.subr.bf16.mxu0 %v6627_v0  ;;  %v6340_v59 = vld [vmem:[%s8619_s1] sm:$0xff]  }
  0xac   :  { %1216 = vmatprep.subr.bf16.mxu1 %v6627_v0 }
  0xae   :  { %597 = vmatpush1.bf16.msra.mxu0 %v6303_v60  ;;  %v1322_v60 = vor.u32 %v1321_v57, %v1317_v54 }
  0xaf   :  { %1217 = vmatpush1.bf16.msra.mxu1 %v6304_v62  ;;  %598 = vmatprep.subr.bf16.mxu0 %v6627_v0  ;;  %v1942_v62 = vor.u32 %v1941_v58, %v1937_v55  ;;  %v7469_v55 = vcombine.low %v7350_v24, %v7350_v24 }
  0xb0   :  { %1218 = vmatprep.subr.bf16.mxu1 %v6627_v0 }
  0xb2   :  { %599 = vmatpush1.bf16.msra.mxu0 %v6305_v1  ;;  %v6344_v1 = vld [vmem:[%s8619_s1 + $0x8] sm:$0xff]  }
  0xb3   :  { %1219 = vmatpush1.bf16.msra.mxu1 %v6306_v3  ;;  %600 = vmatprep.subr.bf16.mxu0 %v6627_v0  ;;  %v6346_v3 = vld [vmem:[%s8619_s1 + $0x10] sm:$0xff]  }
  0xb4   :  { %1220 = vmatprep.subr.bf16.mxu1 %v6627_v0 }
  0xb6   :  { %601 = vmatpush1.bf16.msra.mxu0 %v6307_v5  ;;  %v6348_v5 = vld [vmem:[%s8619_s1 + $0x18] sm:$0xff]  }
  0xb7   :  { %1221 = vmatpush1.bf16.msra.mxu1 %v6308_v7  ;;  %602 = vmatprep.subr.bf16.mxu0 %v6627_v0  ;;  %v6350_v7 = vld [vmem:[%s8619_s1 + $0x20] sm:$0xff]  }
  0xb8   :  { %1222 = vmatprep.subr.bf16.mxu1 %v6627_v0 }
  0xba   :  { %603 = vmatpush1.bf16.msra.mxu0 %v6309_v9  ;;  %v6352_v9 = vld [vmem:[%s8619_s1 + $0x28] sm:$0xff]  }
  0xbb   :  { %1223 = vmatpush1.bf16.msra.mxu1 %v6310_v12  ;;  %604 = vmatprep.subr.bf16.mxu0 %v6627_v0  ;;  %v6355_v12 = vld [vmem:[%s8619_s1 + $0x38] sm:$0xff]  }
  0xbc   :  { %1224 = vmatprep.subr.bf16.mxu1 %v6627_v0 }
  0xbe   :  { %605 = vmatpush1.bf16.msra.mxu0 %v6311_v15  ;;  %v6358_v15 = vld [vmem:[%s8619_s1 + $0x40] sm:$0xff]  }
  0xbf   :  { %1225 = vmatpush1.bf16.msra.mxu1 %v6312_v17  ;;  %1406 = vmatprep.subr.bf16.mxu0 %v6627_v0  ;;  %v6360_v17 = vld [vmem:[%s8619_s1 + $0x48] sm:$0xff]  }
  0xc0   :  { %2026 = vmatprep.subr.bf16.mxu1 %v6627_v0 }
  0xc1   :  { %615 = vmatmul.mubr.bf16.vlgmr.msra.gmra.mrb[0].mxu0 %v499_v22  ;;  %v6365_v22 = vld [vmem:[%s8619_s1 + $0xc0] sm:$0xff]  }
  0xc2   :  { %1235 = vmatmul.mubr.bf16.vlgmr.msra.gmra.mrb[0].mxu1 %v1119_v26  ;;  %1407 = vmatpush1.bf16.msra.mxu0 %v6313_v19  ;;  %v6362_v19 = vld [vmem:[%s8619_s1 + $0x50] sm:$0xff]   ;;  %v7361_v26 = vcombine.high %v7350_v24, %v7350_v24 }
  0xc3   :  { %2027 = vmatpush1.bf16.msra.mxu1 %v6314_v23  ;;  %1408 = vmatprep.subr.bf16.mxu0 %v6627_v0  ;;  %v6366_v23 = vld [vmem:[%s8619_s1 + $0xc0] sm:$0xff]   ;;  %v6414_v24 = vld [vmem:[%s8619_s1 + $0x170] sm:$0xff]  }
  0xc4   :  { %2028 = vmatprep.subr.bf16.mxu1 %v6627_v0  ;;  %5351 = vmatprep.mubr.msk.bf16.mxu0 %vm160_vm0, %v1329_v28  ;;  %v6368_v28 = vld [vmem:[%s8619_s1 + $0xc8] sm:$0xff]  }
  0xc5   :  { %5482 = vmatprep.mubr.msk.bf16.mxu1 %vm160_vm0, %v1949_v30  ;;  %v6369_v30 = vld [vmem:[%s8619_s1 + $0xd0] sm:$0xff]  }
  0xc6   :  { %1409 = vmatpush1.bf16.msra.mxu0 %v6315_v27  ;;  %v6367_v27 = vld [vmem:[%s8619_s1 + $0xc8] sm:$0xff]  }
  0xc7   :  { %2029 = vmatpush1.bf16.msra.mxu1 %v6316_v29  ;;  %1410 = vmatprep.subr.bf16.mxu0 %v6627_v0  ;;  %v7372_v29 = vcombine.high %v7355_v25, %v7355_v25 }
  0xc8   :  { %2030 = vmatprep.subr.bf16.mxu1 %v6627_v0 }
  0xc9   :  { %v2362_v51 = vshll.u32 %v7372_v29, 16  ;;  %v2360_v57 = vshrl.u32 %v7372_v29, 16 }
  0xca   :  { %1411 = vmatpush1.bf16.msra.mxu0 %v6317_v31  ;;  %v6370_v31 = vld [vmem:[%s8619_s1 + $0xd0] sm:$0xff]  }
  0xcb   :  { %2031 = vmatpush1.bf16.msra.mxu1 %v6318_v32  ;;  %1412 = vmatprep.subr.bf16.mxu0 %v6627_v0  ;;  %v6371_v32 = vld [vmem:[%s8619_s1 + $0xd8] sm:$0xff]   ;;  %v2364_v58 = vrot.slane %v2362_v51, 1  ;;  %v6427_v51 = vld [vmem:[%s8619_s1 + $0x88] sm:$0xff]  }
  0xcc   :  { %2032 = vmatprep.subr.bf16.mxu1 %v6627_v0 }
  0xce   :  { %1413 = vmatpush1.bf16.msra.mxu0 %v6319_v33  ;;  %v6372_v33 = vld [vmem:[%s8619_s1 + $0xd8] sm:$0xff]  }
  0xcf   :  { %2033 = vmatpush1.bf16.msra.mxu1 %v6320_v34  ;;  %1414 = vmatprep.subr.bf16.mxu0 %v6627_v0  ;;  %v6373_v34 = vld [vmem:[%s8619_s1 + $0xe0] sm:$0xff]  }
  0xd0   :  { %2034 = vmatprep.subr.bf16.mxu1 %v6627_v0 }
  0xd2   :  { %1415 = vmatpush1.bf16.msra.mxu0 %v6321_v35  ;;  %v6374_v35 = vld [vmem:[%s8619_s1 + $0xe0] sm:$0xff]  }
  0xd3   :  { %2035 = vmatpush1.bf16.msra.mxu1 %v6322_v36  ;;  %1416 = vmatprep.subr.bf16.mxu0 %v6627_v0  ;;  %v6375_v36 = vld [vmem:[%s8619_s1 + $0xe8] sm:$0xff]  }
  0xd4   :  { %2036 = vmatprep.subr.bf16.mxu1 %v6627_v0 }
  0xd6   :  { %1417 = vmatpush1.bf16.msra.mxu0 %v6323_v37  ;;  %v6376_v37 = vld [vmem:[%s8619_s1 + $0xe8] sm:$0xff]  }
  0xd7   :  { %2037 = vmatpush1.bf16.msra.mxu1 %v6324_v38  ;;  %1418 = vmatprep.subr.bf16.mxu0 %v6627_v0  ;;  %v6377_v38 = vld [vmem:[%s8619_s1 + $0xf0] sm:$0xff]  }
  0xd8   :  { %2038 = vmatprep.subr.bf16.mxu1 %v6627_v0 }
  0xda   :  { %1419 = vmatpush1.bf16.msra.mxu0 %v6325_v39  ;;  %v6378_v39 = vld [vmem:[%s8619_s1 + $0xf0] sm:$0xff]  }
  0xdb   :  { %2039 = vmatpush1.bf16.msra.mxu1 %v6326_v40  ;;  %1420 = vmatprep.subr.bf16.mxu0 %v6627_v0  ;;  %v6379_v40 = vld [vmem:[%s8619_s1 + $0xf8] sm:$0xff]  }
  0xdc   :  { %2040 = vmatprep.subr.bf16.mxu1 %v6627_v0 }
  0xde   :  { %1421 = vmatpush1.bf16.msra.mxu0 %v6327_v41  ;;  %v6380_v41 = vld [vmem:[%s8619_s1 + $0xf8] sm:$0xff]  }
  0xdf   :  { %2041 = vmatpush1.bf16.msra.mxu1 %v6328_v42  ;;  %1422 = vmatprep.subr.bf16.mxu0 %v6627_v0  ;;  %v6381_v42 = vld [vmem:[%s8619_s1 + $0x100] sm:$0xff]  }
  0xe0   :  { %2042 = vmatprep.subr.bf16.mxu1 %v6627_v0 }
  0xe2   :  { %1423 = vmatpush1.bf16.msra.mxu0 %v6329_v43  ;;  %v6382_v43 = vld [vmem:[%s8619_s1 + $0x100] sm:$0xff]  }
  0xe3   :  { %2043 = vmatpush1.bf16.msra.mxu1 %v6330_v44  ;;  %1424 = vmatprep.subr.bf16.mxu0 %v6627_v0  ;;  %v6383_v44 = vld [vmem:[%s8619_s1 + $0x108] sm:$0xff]  }
  0xe4   :  { %2044 = vmatprep.subr.bf16.mxu1 %v6627_v0 }
  0xe6   :  { %1425 = vmatpush1.bf16.msra.mxu0 %v6331_v45  ;;  %v6384_v45 = vld [vmem:[%s8619_s1 + $0x108] sm:$0xff]  }
  0xe7   :  { %2045 = vmatpush1.bf16.msra.mxu1 %v6332_v46  ;;  %1426 = vmatprep.subr.bf16.mxu0 %v6627_v0  ;;  %v6385_v46 = vld [vmem:[%s8619_s1 + $0x110] sm:$0xff]  }
  0xe8   :  { %2046 = vmatprep.subr.bf16.mxu1 %v6627_v0 }
  0xea   :  { %1427 = vmatpush1.bf16.msra.mxu0 %v6333_v49  ;;  %v1742_v49 = vshll.u32 %v7361_v26, 16 }
  0xeb   :  { %2047 = vmatpush1.bf16.msra.mxu1 %v6334_v50  ;;  %1428 = vmatprep.subr.bf16.mxu0 %v6627_v0  ;;  %v6388_v50 = vld [vmem:[%s8619_s1 + $0x118] sm:$0xff]  }
  0xec   :  { %2048 = vmatprep.subr.bf16.mxu1 %v6627_v0  ;;  %v1744_v54 = vrot.slane %v1742_v49, 1  ;;  %v6425_v49 = vld [vmem:[%s8619_s1 + $0x80] sm:$0xff]  }
  0xee   :  { %1429 = vmatpush1.bf16.msra.mxu0 %v6335_v53  ;;  %v1740_v53 = vshrl.u32 %v7361_v26, 16 }
  0xef   :  { %2049 = vmatpush1.bf16.msra.mxu1 %v6336_v56  ;;  %1521 = vmatprep.subr.bf16.mxu0 %v6627_v0  ;;  %v6394_v56 = vld [vmem:[%s8619_s1 + $0x120] sm:$0xff]  }
  0xf0   :  { %2141 = vmatprep.subr.bf16.mxu1 %v6627_v0 }
  0xf1   :  { %1439 = vmatmul.mubr.bf16.vlgmr.msra.gmra.mrb[4].mxu0 %v1322_v60  ;;  %v6395_v60 = vld [vmem:[%s8619_s1 + $0x128] sm:$0xff]  }
  0xf2   :  { %1522 = vmatpush1.bf16.msra.mxu0 %v6340_v59  ;;  %2059 = vmatmul.mubr.bf16.vlgmr.msra.gmra.mrb[4].mxu1 %v1942_v62  ;;  %v7477_v59 = vcombine.low %v7355_v25, %v7355_v25  ;;  %v6396_v62 = vld [vmem:[%s8619_s1 + $0x128] sm:$0xff]  }
  0xf3   :  { %2142 = vmatpush1.bf16.msra.mxu1 %v6342_v61  ;;  %1523 = vmatprep.subr.bf16.mxu0 %v6627_v0  ;;  %v1745_v61 = vor.u32 %v1744_v54, %v1740_v53 }
  0xf4   :  { %2143 = vmatprep.subr.bf16.mxu1 %v6627_v0  ;;  %5364 = vmatprep.mubr.msk.bf16.mxu0 %vm160_vm0, %v7108_v11  ;;  %v6354_v11 = vld [vmem:[%s8619_s1 + $0x30] sm:$0xff]  }
  0xf5   :  { %5495 = vmatprep.mubr.msk.bf16.mxu1 %vm160_vm0, %v7115_v14  ;;  %v6357_v14 = vld [vmem:[%s8619_s1 + $0x40] sm:$0xff]  }
  0xf6   :  { %1524 = vmatpush1.bf16.msra.mxu0 %v6343_v63  ;;  %v2365_v63 = vor.u32 %v2364_v58, %v2360_v57 }
  0xf7   :  { %2144 = vmatpush1.bf16.msra.mxu1 %v6344_v1  ;;  %1525 = vmatprep.subr.bf16.mxu0 %v6627_v0  ;;  %v6397_v1 = vld [vmem:[%s8619_s1 + $0x130] sm:$0xff]  }
  0xf8   :  { %2145 = vmatprep.subr.bf16.mxu1 %v6627_v0 }
  0xfa   :  { %1526 = vmatpush1.bf16.msra.mxu0 %v6345_v2  ;;  %v6398_v2 = vld [vmem:[%s8619_s1 + $0x130] sm:$0xff]  }
  0xfb   :  { %2146 = vmatpush1.bf16.msra.mxu1 %v6346_v3  ;;  %1527 = vmatprep.subr.bf16.mxu0 %v6627_v0  ;;  %v6399_v3 = vld [vmem:[%s8619_s1 + $0x138] sm:$0xff]  }
  0xfc   :  { %2147 = vmatprep.subr.bf16.mxu1 %v6627_v0 }
  0xfe   :  { %1528 = vmatpush1.bf16.msra.mxu0 %v6347_v4  ;;  %v6400_v4 = vld [vmem:[%s8619_s1 + $0x138] sm:$0xff]  }
  0xff   :  { %2148 = vmatpush1.bf16.msra.mxu1 %v6348_v5  ;;  %1529 = vmatprep.subr.bf16.mxu0 %v6627_v0  ;;  %v6401_v5 = vld [vmem:[%s8619_s1 + $0x140] sm:$0xff]  }
 0x100   :  { %2149 = vmatprep.subr.bf16.mxu1 %v6627_v0 }
 0x102   :  { %1530 = vmatpush1.bf16.msra.mxu0 %v6349_v6  ;;  %v6402_v6 = vld [vmem:[%s8619_s1 + $0x140] sm:$0xff]  }
 0x103   :  { %2150 = vmatpush1.bf16.msra.mxu1 %v6350_v7  ;;  %1531 = vmatprep.subr.bf16.mxu0 %v6627_v0  ;;  %v6403_v7 = vld [vmem:[%s8619_s1 + $0x148] sm:$0xff]  }
 0x104   :  { %2151 = vmatprep.subr.bf16.mxu1 %v6627_v0 }
 0x106   :  { %1532 = vmatpush1.bf16.msra.mxu0 %v6351_v8  ;;  %v6404_v8 = vld [vmem:[%s8619_s1 + $0x148] sm:$0xff]  }
 0x107   :  { %2152 = vmatpush1.bf16.msra.mxu1 %v6352_v9  ;;  %1533 = vmatprep.subr.bf16.mxu0 %v6627_v0  ;;  %v6405_v9 = vld [vmem:[%s8619_s1 + $0x150] sm:$0xff]  }
 0x108   :  { %2153 = vmatprep.subr.bf16.mxu1 %v6627_v0 }
 0x10a   :  { %1534 = vmatpush1.bf16.msra.mxu0 %v6353_v10  ;;  %v6406_v10 = vld [vmem:[%s8619_s1 + $0x150] sm:$0xff]  }
 0x10b   :  { %2154 = vmatpush1.bf16.msra.mxu1 %v6354_v11  ;;  %1535 = vmatprep.subr.bf16.mxu0 %v6627_v0  ;;  %v6407_v11 = vld [vmem:[%s8619_s1 + $0x158] sm:$0xff]  }
 0x10c   :  { %2155 = vmatprep.subr.bf16.mxu1 %v6627_v0 }
 0x10e   :  { %1536 = vmatpush1.bf16.msra.mxu0 %v6355_v12  ;;  %v6408_v12 = vld [vmem:[%s8619_s1 + $0x158] sm:$0xff]  }
 0x10f   :  { %2156 = vmatpush1.bf16.msra.mxu1 %v6356_v13  ;;  %1537 = vmatprep.subr.bf16.mxu0 %v6627_v0  ;;  %v6409_v13 = vld [vmem:[%s8619_s1 + $0x160] sm:$0xff]  }
 0x110   :  { %2157 = vmatprep.subr.bf16.mxu1 %v6627_v0 }
 0x112   :  { %1538 = vmatpush1.bf16.msra.mxu0 %v6357_v14  ;;  %v6410_v14 = vld [vmem:[%s8619_s1 + $0x160] sm:$0xff]  }
 0x113   :  { %2158 = vmatpush1.bf16.msra.mxu1 %v6358_v15  ;;  %1539 = vmatprep.subr.bf16.mxu0 %v6627_v0  ;;  %v7552_v15 = vld [vmem:[%s8620_s0 + $0x28] sm:$0x77] }
 0x114   :  { %2159 = vmatprep.subr.bf16.mxu1 %v6627_v0 }
 0x116   :  { %1540 = vmatpush1.bf16.msra.mxu0 %v6359_v16  ;;  %v6411_v16 = vld [vmem:[%s8619_s1 + $0x168] sm:$0xff]  }
 0x117   :  { %2160 = vmatpush1.bf16.msra.mxu1 %v6360_v17  ;;  %1541 = vmatprep.subr.bf16.mxu0 %v6627_v0  ;;  %v7560_v17 = vld [vmem:[%s8620_s0 + $0x30] sm:$0x77] }
 0x118   :  { %2161 = vmatprep.subr.bf16.mxu1 %v6627_v0 }
 0x11a   :  { %1542 = vmatpush1.bf16.msra.mxu0 %v6361_v18  ;;  %v6412_v18 = vld [vmem:[%s8619_s1 + $0x168] sm:$0xff]  }
 0x11b   :  { %2162 = vmatpush1.bf16.msra.mxu1 %v6362_v19  ;;  %1543 = vmatprep.subr.bf16.mxu0 %v6627_v0  ;;  %v7569_v19 = vcombine.high %v7552_v15, %v7552_v15 }
 0x11c   :  { %2163 = vmatprep.subr.bf16.mxu1 %v6627_v0 }
 0x11d   :  { %v2567_v25 = vshll.u32 %v7569_v19, 16 }
 0x11e   :  { %1544 = vmatpush1.bf16.msra.mxu0 %v6363_v20  ;;  %v1736_v20 = vshll.u32 %v7469_v55, 16 }
 0x11f   :  { %2164 = vmatpush1.bf16.msra.mxu1 %v6364_v21  ;;  %1668 = vmatprep.subr.bf16.mxu0 %v6627_v0  ;;  %v7574_v21 = vcombine.high %v7560_v17, %v7560_v17 }
 0x120   :  { %2288 = vmatprep.subr.bf16.mxu1 %v6627_v0 }
 0x121   :  { %1554 = vmatmul.mubr.bf16.vlgmr.msra.gmra.mrb[4].mxu0 %v7213_v47  ;;  %v6386_v47 = vld [vmem:[%s8619_s1 + $0x110] sm:$0xff]  }
 0x122   :  { %1669 = vmatpush1.bf16.msra.mxu0 %v6365_v22  ;;  %2174 = vmatmul.mubr.bf16.vlgmr.msra.gmra.mrb[4].mxu1 %v7217_v48  ;;  %v6387_v48 = vld [vmem:[%s8619_s1 + $0x118] sm:$0xff]   ;;  %v6413_v22 = vld [vmem:[%s8619_s1 + $0x170] sm:$0xff]  }
 0x123   :  { %2289 = vmatpush1.bf16.msra.mxu1 %v6366_v23  ;;  %1670 = vmatprep.subr.bf16.mxu0 %v6627_v0  ;;  %v2356_v23 = vshll.u32 %v7477_v59, 16 }
 0x124   :  { %2290 = vmatprep.subr.bf16.mxu1 %v6627_v0  ;;  %5404 = vmatprep.mubr.msk.bf16.mxu0 %vm160_vm0, %v7361_v26  ;;  %v1734_v26 = vshrl.u32 %v7469_v55, 16 }
 0x125   :  { %5535 = vmatprep.mubr.msk.bf16.mxu1 %vm160_vm0, %v7372_v29  ;;  %v6415_v29 = vld [vmem:[%s8619_s1 + $0x178] sm:$0xff]  }
 0x126   :  { %1671 = vmatpush1.bf16.msra.mxu0 %v6367_v27  ;;  %v1738_v27 = vrot.slane %v1736_v20, 1  ;;  %v6432_v20 = vld [vmem:[%s8619_s1 + $0x98] sm:$0xff]  }
 0x127   :  { %2291 = vmatpush1.bf16.msra.mxu1 %v6368_v28  ;;  %1672 = vmatprep.subr.bf16.mxu0 %v6627_v0  ;;  %v3187_v28 = vshll.u32 %v7574_v21, 16 }
 0x128   :  { %2292 = vmatprep.subr.bf16.mxu1 %v6627_v0 }
 0x12a   :  { %1673 = vmatpush1.bf16.msra.mxu0 %v6369_v30  ;;  %v2354_v30 = vshrl.u32 %v7477_v59, 16 }
 0x12b   :  { %2293 = vmatpush1.bf16.msra.mxu1 %v6370_v31  ;;  %1674 = vmatprep.subr.bf16.mxu0 %v6627_v0  ;;  %v2358_v31 = vrot.slane %v2356_v23, 1 }
 0x12c   :  { %2294 = vmatprep.subr.bf16.mxu1 %v6627_v0 }
 0x12e   :  { %1675 = vmatpush1.bf16.msra.mxu0 %v6371_v32  ;;  %v6416_v32 = vld [vmem:[%s8619_s1 + $0x178] sm:$0xff]  }
 0x12f   :  { %2295 = vmatpush1.bf16.msra.mxu1 %v6372_v33  ;;  %1676 = vmatprep.subr.bf16.mxu0 %v6627_v0  ;;  %v2565_v33 = vshrl.u32 %v7569_v19, 16 }
 0x130   :  { %2296 = vmatprep.subr.bf16.mxu1 %v6627_v0 }
 0x132   :  { %1677 = vmatpush1.bf16.msra.mxu0 %v6373_v34  ;;  %v2569_v34 = vrot.slane %v2567_v25, 1 }
 0x133   :  { %2297 = vmatpush1.bf16.msra.mxu1 %v6374_v35  ;;  %1678 = vmatprep.subr.bf16.mxu0 %v6627_v0  ;;  %v1739_v35 = vor.u32 %v1738_v27, %v1734_v26 }
 0x134   :  { %2298 = vmatprep.subr.bf16.mxu1 %v6627_v0 }
 0x136   :  { %1679 = vmatpush1.bf16.msra.mxu0 %v6375_v36  ;;  %v3185_v36 = vshrl.u32 %v7574_v21, 16 }
 0x137   :  { %2299 = vmatpush1.bf16.msra.mxu1 %v6376_v37  ;;  %1680 = vmatprep.subr.bf16.mxu0 %v6627_v0  ;;  %v3189_v37 = vrot.slane %v3187_v28, 1  ;;  %v6433_v28 = vld [vmem:[%s8619_s1 + $0xa0] sm:$0xff]  }
 0x138   :  { %2300 = vmatprep.subr.bf16.mxu1 %v6627_v0 }
 0x13a   :  { %1681 = vmatpush1.bf16.msra.mxu0 %v6377_v38  ;;  %v2359_v38 = vor.u32 %v2358_v31, %v2354_v30  ;;  %v6434_v31 = vld [vmem:[%s8619_s1 + $0xa0] sm:$0xff]  }
 0x13b   :  { %2301 = vmatpush1.bf16.msra.mxu1 %v6378_v39  ;;  %1682 = vmatprep.subr.bf16.mxu0 %v6627_v0  ;;  %v6417_v39 = vld [vmem:[%s8619_s1 + $0x60] sm:$0xff]  }
 0x13c   :  { %2302 = vmatprep.subr.bf16.mxu1 %v6627_v0 }
 0x13e   :  { %1683 = vmatpush1.bf16.msra.mxu0 %v6379_v40  ;;  %v6418_v40 = vld [vmem:[%s8619_s1 + $0x60] sm:$0xff]  }
 0x13f   :  { %2303 = vmatpush1.bf16.msra.mxu1 %v6380_v41  ;;  %1684 = vmatprep.subr.bf16.mxu0 %v6627_v0  ;;  %v2570_v41 = vor.u32 %v2569_v34, %v2565_v33 }
 0x140   :  { %2304 = vmatprep.subr.bf16.mxu1 %v6627_v0 }
 0x142   :  { %1685 = vmatpush1.bf16.msra.mxu0 %v6381_v42  ;;  %v3190_v42 = vor.u32 %v3189_v37, %v3185_v36  ;;  %v7685_v36 = vcombine.low %v7552_v15, %v7552_v15  ;;  %v6436_v15 = vld [vmem:[%s8619_s1 + $0xa8] sm:$0xff]  }
 0x143   :  { %2305 = vmatpush1.bf16.msra.mxu1 %v6382_v43  ;;  %1686 = vmatprep.subr.bf16.mxu0 %v6627_v0  ;;  %v6419_v43 = vld [vmem:[%s8619_s1 + $0x68] sm:$0xff]  }
 0x144   :  { %2306 = vmatprep.subr.bf16.mxu1 %v6627_v0 }
 0x146   :  { %1687 = vmatpush1.bf16.msra.mxu0 %v6383_v44  ;;  %v6420_v44 = vld [vmem:[%s8619_s1 + $0x68] sm:$0xff]  }
 0x147   :  { %2307 = vmatpush1.bf16.msra.mxu1 %v6384_v45  ;;  %1688 = vmatprep.subr.bf16.mxu0 %v6627_v0  ;;  %v6421_v45 = vld [vmem:[%s8619_s1 + $0x70] sm:$0xff]  }
 0x148   :  { %2308 = vmatprep.subr.bf16.mxu1 %v6627_v0 }
 0x14a   :  { %1689 = vmatpush1.bf16.msra.mxu0 %v6385_v46  ;;  %v6422_v46 = vld [vmem:[%s8619_s1 + $0x70] sm:$0xff]  }
 0x14b   :  { %2309 = vmatpush1.bf16.msra.mxu1 %v6386_v47  ;;  %1690 = vmatprep.subr.bf16.mxu0 %v6627_v0  ;;  %v6423_v47 = vld [vmem:[%s8619_s1 + $0x78] sm:$0xff]  }
 0x14c   :  { %2310 = vmatprep.subr.bf16.mxu1 %v6627_v0 }
 0x14e   :  { %1691 = vmatpush1.bf16.msra.mxu0 %v6387_v48  ;;  %v6424_v48 = vld [vmem:[%s8619_s1 + $0x78] sm:$0xff]  }
 0x14f   :  { %2311 = vmatpush1.bf16.msra.mxu1 %v6388_v50  ;;  %1822 = vmatprep.subr.bf16.mxu0 %v6627_v0  ;;  %v6426_v50 = vld [vmem:[%s8619_s1 + $0x80] sm:$0xff]  }
 0x150   :  { %2442 = vmatprep.subr.bf16.mxu1 %v6627_v0 }
 0x151   :  { %1701 = vmatmul.mubr.bf16.vlgmr.msra.gmra.mrb[4].mxu0 %v7469_v55 }
 0x152   :  { %1823 = vmatpush1.bf16.msra.mxu0 %v6392_v52  ;;  %2321 = vmatmul.mubr.bf16.vlgmr.msra.gmra.mrb[4].mxu1 %v7477_v59  ;;  %v6428_v52 = vld [vmem:[%s8619_s1 + $0x88] sm:$0xff]  }
 0x153   :  { %2443 = vmatpush1.bf16.msra.mxu1 %v6394_v56  ;;  %1824 = vmatprep.subr.bf16.mxu0 %v6627_v0 }
 0x154   :  { %2444 = vmatprep.subr.bf16.mxu1 %v6627_v0  ;;  %5441 = vmatprep.mubr.msk.bf16.mxu0 %vm160_vm0, %v1745_v61 }
 0x155   :  { %5572 = vmatprep.mubr.msk.bf16.mxu1 %vm160_vm0, %v2365_v63  ;;  %v6429_v63 = vld [vmem:[%s8619_s1 + $0x90] sm:$0xff]  }
 0x156   :  { %1825 = vmatpush1.bf16.msra.mxu0 %v6395_v60 }
 0x157   :  { %2445 = vmatpush1.bf16.msra.mxu1 %v6396_v62  ;;  %1826 = vmatprep.subr.bf16.mxu0 %v6627_v0 }
 0x158   :  { %2446 = vmatprep.subr.bf16.mxu1 %v6627_v0 }
 0x15a   :  { %1827 = vmatpush1.bf16.msra.mxu0 %v6397_v1 }
 0x15b   :  { %2447 = vmatpush1.bf16.msra.mxu1 %v6398_v2  ;;  %1828 = vmatprep.subr.bf16.mxu0 %v6627_v0 }
 0x15c   :  { %2448 = vmatprep.subr.bf16.mxu1 %v6627_v0 }
 0x15e   :  { %1829 = vmatpush1.bf16.msra.mxu0 %v6399_v3 }
 0x15f   :  { %2449 = vmatpush1.bf16.msra.mxu1 %v6400_v4  ;;  %1830 = vmatprep.subr.bf16.mxu0 %v6627_v0 }
 0x160   :  { %2450 = vmatprep.subr.bf16.mxu1 %v6627_v0 }
 0x162   :  { %1831 = vmatpush1.bf16.msra.mxu0 %v6401_v5  ;;  %v6430_v5 = vld [vmem:[%s8619_s1 + $0x90] sm:$0xff]  }
 0x163   :  { %2451 = vmatpush1.bf16.msra.mxu1 %v6402_v6  ;;  %1832 = vmatprep.subr.bf16.mxu0 %v6627_v0 }
 0x164   :  { %2452 = vmatprep.subr.bf16.mxu1 %v6627_v0 }
 0x166   :  { %1833 = vmatpush1.bf16.msra.mxu0 %v6403_v7 }
 0x167   :  { %2453 = vmatpush1.bf16.msra.mxu1 %v6404_v8  ;;  %1834 = vmatprep.subr.bf16.mxu0 %v6627_v0 }
 0x168   :  { %2454 = vmatprep.subr.bf16.mxu1 %v6627_v0 }
 0x16a   :  { %1835 = vmatpush1.bf16.msra.mxu0 %v6405_v9 }
 0x16b   :  { %2455 = vmatpush1.bf16.msra.mxu1 %v6406_v10  ;;  %1836 = vmatprep.subr.bf16.mxu0 %v6627_v0 }
 0x16c   :  { %2456 = vmatprep.subr.bf16.mxu1 %v6627_v0 }
 0x16e   :  { %1837 = vmatpush1.bf16.msra.mxu0 %v6407_v11 }
 0x16f   :  { %2457 = vmatpush1.bf16.msra.mxu1 %v6408_v12  ;;  %1838 = vmatprep.subr.bf16.mxu0 %v6627_v0 }
 0x170   :  { %2458 = vmatprep.subr.bf16.mxu1 %v6627_v0 }
 0x172   :  { %1839 = vmatpush1.bf16.msra.mxu0 %v6409_v13 }
 0x173   :  { %2459 = vmatpush1.bf16.msra.mxu1 %v6410_v14  ;;  %1840 = vmatprep.subr.bf16.mxu0 %v6627_v0  ;;  %v6431_v14 = vld [vmem:[%s8619_s1 + $0x98] sm:$0xff]  }
 0x174   :  { %2460 = vmatprep.subr.bf16.mxu1 %v6627_v0 }
 0x176   :  { %1841 = vmatpush1.bf16.msra.mxu0 %v6411_v16 }
 0x177   :  { %2461 = vmatpush1.bf16.msra.mxu1 %v6412_v18  ;;  %1842 = vmatprep.subr.bf16.mxu0 %v6627_v0 }
 0x178   :  { %2462 = vmatprep.subr.bf16.mxu1 %v6627_v0 }
 0x17a   :  { %1843 = vmatpush1.bf16.msra.mxu0 %v6413_v22 }
 0x17b   :  { %2463 = vmatpush1.bf16.msra.mxu1 %v6414_v24  ;;  %1844 = vmatprep.subr.bf16.mxu0 %v6627_v0 }
 0x17c   :  { %2464 = vmatprep.subr.bf16.mxu1 %v6627_v0 }
 0x17e   :  { %1845 = vmatpush1.bf16.msra.mxu0 %v6415_v29 }
 0x17f   :  { %2465 = vmatpush1.bf16.msra.mxu1 %v6416_v32  ;;  %2647 = vmatprep.subr.bf16.mxu0 %v6627_v0 }
 0x180   :  { %3267 = vmatprep.subr.bf16.mxu1 %v6627_v0 }
 0x181   :  { %1855 = vmatmul.mubr.bf16.vlgmr.msra.gmra.mrb[4].mxu0 %v1739_v35 }
 0x182   :  { %2475 = vmatmul.mubr.bf16.vlgmr.msra.gmra.mrb[4].mxu1 %v2359_v38  ;;  %2648 = vmatpush1.bf16.msra.mxu0 %v6417_v39  ;;  %v6435_v38 = vld [vmem:[%s8619_s1 + $0xa8] sm:$0xff]   ;;  %v7692_v39 = vcombine.low %v7560_v17, %v7560_v17  ;;  %v6437_v17 = vld [vmem:[%s8619_s1 + $0xb0] sm:$0xff]  }
 0x183   :  { %3268 = vmatpush1.bf16.msra.mxu1 %v6418_v40  ;;  %2649 = vmatprep.subr.bf16.mxu0 %v6627_v0 }
 0x184   :  { %3269 = vmatprep.subr.bf16.mxu1 %v6627_v0  ;;  %5613 = vmatprep.mubr.msk.bf16.mxu0 %vm160_vm0, %v2570_v41 }
 0x185   :  { %5744 = vmatprep.mubr.msk.bf16.mxu1 %vm160_vm0, %v3190_v42 }
 0x186   :  { %2650 = vmatpush1.bf16.msra.mxu0 %v6419_v43  ;;  %v2560_v43 = vshll.u32 %v7685_v36, 16 }
 0x187   :  { %3270 = vmatpush1.bf16.msra.mxu1 %v6420_v44  ;;  %2651 = vmatprep.subr.bf16.mxu0 %v6627_v0  ;;  %v3180_v44 = vshll.u32 %v7692_v39, 16 }
 0x188   :  { %3271 = vmatprep.subr.bf16.mxu1 %v6627_v0 }
 0x18a   :  { %2652 = vmatpush1.bf16.msra.mxu0 %v6421_v45  ;;  %v6438_v45 = vld [vmem:[%s8619_s1 + $0xb0] sm:$0xff]  }
 0x18b   :  { %3272 = vmatpush1.bf16.msra.mxu1 %v6422_v46  ;;  %2653 = vmatprep.subr.bf16.mxu0 %v6627_v0  ;;  %v2558_v46 = vshrl.u32 %v7685_v36, 16 }
 0x18c   :  { %3273 = vmatprep.subr.bf16.mxu1 %v6627_v0 }
 0x18e   :  { %2654 = vmatpush1.bf16.msra.mxu0 %v6423_v47  ;;  %v2562_v47 = vrot.slane %v2560_v43, 1  ;;  %v6490_v43 = vld [vmem:[%s8619_s1 + $0x110] sm:$0xff]  }
 0x18f   :  { %3274 = vmatpush1.bf16.msra.mxu1 %v6424_v48  ;;  %2655 = vmatprep.subr.bf16.mxu0 %v6627_v0  ;;  %v6439_v48 = vld [vmem:[%s8619_s1 + $0xb8] sm:$0xff]  }
 0x190   :  { %3275 = vmatprep.subr.bf16.mxu1 %v6627_v0 }
 0x192   :  { %2656 = vmatpush1.bf16.msra.mxu0 %v6425_v49  ;;  %v3178_v49 = vshrl.u32 %v7692_v39, 16 }
 0x193   :  { %3276 = vmatpush1.bf16.msra.mxu1 %v6426_v50  ;;  %2657 = vmatprep.subr.bf16.mxu0 %v6627_v0  ;;  %v3182_v50 = vrot.slane %v3180_v44, 1 }
 0x194   :  { %v616_v53 = vpop.f32.mrb[0].mxu0  ;;  %3277 = vmatprep.subr.bf16.mxu1 %v6627_v0 }
 0x195   :  { %623 = vst [vmem:[%s8621_s4] sm:$0xf] %v616_v53  ;;  %v625_v54 = vsel %vm624_vm1, %v616_v53, 0.0  ;;  %v633_v55 = vmul.f32 %v616_v53, %v616_v53  ;;  %v1236_v56 = vpop.f32.mrb[0].mxu1  ;;  %v618_v57 = vpop.f32.mrb[1].mxu0  ;;  %v6444_v53 = vld [vmem:[%s8619_s1] sm:$0xff]  }
 0x196   :  { %v626_v58 = vrot.slane %v625_v54, 4  ;;  %5311 = vst [vmem:[%s8621_s4 + $0x4] sm:$0xf] %v1236_v56  ;;  %v1245_v59 = vsel %vm624_vm1, %v1236_v56, 0.0  ;;  %v1253_v60 = vmul.f32 %v1236_v56, %v1236_v56  ;;  %v1238_v61 = vpop.f32.mrb[1].mxu1  ;;  %v619_v62 = vpop.f32.mrb[2].mxu0  ;;  %2658 = vmatpush1.bf16.msra.mxu0 %v6427_v51 }
 0x197   :  { %v634_v1 = vsel %vm624_vm1, %v633_v55, 0.0  ;;  %v1246_v2 = vrot.slane %v1245_v59, 4  ;;  %v1239_v3 = vpop.f32.mrb[2].mxu1  ;;  %3278 = vmatpush1.bf16.msra.mxu1 %v6428_v52  ;;  %v620_v4 = vpop.f32.mrb[3].mxu0  ;;  %2659 = vmatprep.subr.bf16.mxu0 %v6627_v0  ;;  %v6440_v51 = vld [vmem:[%s8619_s1 + $0xb8] sm:$0xff]   ;;  %v2563_v52 = vor.u32 %v2562_v47, %v2558_v46  ;;  %v6446_v55 = vld [vmem:[%s8619_s1] sm:$0xff]  }
 0x198   :  { %v627_v6 = vadd.f32 %v626_v58, %v625_v54  ;;  %v635_v7 = vrot.slane %v634_v1, 4  ;;  %v1254_v8 = vsel %vm624_vm1, %v1253_v60, 0.0  ;;  %v1240_v9 = vpop.f32.mrb[3].mxu1  ;;  %3279 = vmatprep.subr.bf16.mxu1 %v6627_v0  ;;  %v3183_v54 = vor.u32 %v3182_v50, %v3178_v49  ;;  %v6447_v56 = vld [vmem:[%s8619_s1 + $0x8] sm:$0xff]   ;;  %v6449_v58 = vld [vmem:[%s8619_s1 + $0x10] sm:$0xff]   ;;  %v6453_v60 = vld [vmem:[%s8619_s1 + $0x20] sm:$0xff]  }
 0x199   :  { %v1247_v10 = vadd.f32 %v1246_v2, %v1245_v59  ;;  %v1255_v11 = vrot.slane %v1254_v8, 4  ;;  %v6448_v57 = vld [vmem:[%s8619_s1 + $0x8] sm:$0xff]   ;;  %v6450_v59 = vld [vmem:[%s8619_s1 + $0x10] sm:$0xff]   ;;  %v6454_v61 = vld [vmem:[%s8619_s1 + $0x20] sm:$0xff]  }
 0x19a   :  { %v628_v12 = vrot.slane %v627_v6, 2  ;;  %v636_v13 = vadd.f32 %v635_v7, %v634_v1  ;;  %2660 = vmatpush1.bf16.msra.mxu0 %v6429_v63  ;;  %v6455_v62 = vld [vmem:[%s8619_s1 + $0x28] sm:$0xff]   ;;  %v6457_v1 = vld [vmem:[%s8619_s1 + $0x30] sm:$0xff]   ;;  %v6459_v3 = vld [vmem:[%s8619_s1 + $0x38] sm:$0xff]  }
 0x19b   :  { %v1248_v16 = vrot.slane %v1247_v10, 2  ;;  %v1256_v18 = vadd.f32 %v1255_v11, %v1254_v8  ;;  %3280 = vmatpush1.bf16.msra.mxu1 %v6430_v5  ;;  %2661 = vmatprep.subr.bf16.mxu0 %v6627_v0  ;;  %v6456_v63 = vld [vmem:[%s8619_s1 + $0x28] sm:$0xff]   ;;  %v6458_v2 = vld [vmem:[%s8619_s1 + $0x30] sm:$0xff]   ;;  %v6460_v4 = vld [vmem:[%s8619_s1 + $0x38] sm:$0xff]  }
 0x19c   :  { %v629_v22 = vadd.f32 %v628_v12, %v627_v6  ;;  %v637_v23 = vrot.slane %v636_v13, 2  ;;  %3281 = vmatprep.subr.bf16.mxu1 %v6627_v0  ;;  %v6461_v5 = vld [vmem:[%s8619_s1 + $0x40] sm:$0xff]   ;;  %v6463_v7 = vld [vmem:[%s8619_s1 + $0x48] sm:$0xff]   ;;  %v6465_v9 = vld [vmem:[%s8619_s1 + $0x50] sm:$0xff]  }
 0x19d   :  { %v1249_v24 = vadd.f32 %v1248_v16, %v1247_v10  ;;  %v1257_v25 = vrot.slane %v1256_v18, 2  ;;  %v6462_v6 = vld [vmem:[%s8619_s1 + $0x40] sm:$0xff]   ;;  %v6464_v8 = vld [vmem:[%s8619_s1 + $0x48] sm:$0xff]   ;;  %v6466_v10 = vld [vmem:[%s8619_s1 + $0x50] sm:$0xff]  }
 0x19e   :  { %v630_v26 = vrot.slane %v629_v22, 1  ;;  %v638_v27 = vadd.f32 %v637_v23, %v636_v13  ;;  %2662 = vmatpush1.bf16.msra.mxu0 %v6431_v14  ;;  %v6467_v11 = vld [vmem:[%s8619_s1 + $0x58] sm:$0xff]   ;;  %v7826_v13 = vld [vmem:[%s8620_s0 + $0x30] sm:$0x77]  ;;  %v6469_v14 = vld [vmem:[%s8619_s1 + $0xc0] sm:$0xff]  }
 0x19f   :  { %v1250_v29 = vrot.slane %v1249_v24, 1  ;;  %v1258_v30 = vadd.f32 %v1257_v25, %v1256_v18  ;;  %3282 = vmatpush1.bf16.msra.mxu1 %v6432_v20  ;;  %2663 = vmatprep.subr.bf16.mxu0 %v6627_v0  ;;  %v6468_v12 = vld [vmem:[%s8619_s1 + $0x58] sm:$0xff]   ;;  %v6470_v18 = vld [vmem:[%s8619_s1 + $0xc0] sm:$0xff]   ;;  %v7843_v20 = vcombine.high %v7826_v13, %v7826_v13  ;;  %v6471_v23 = vld [vmem:[%s8619_s1 + $0xc8] sm:$0xff]   ;;  %v7948_v49 = vcombine.low %v7826_v13, %v7826_v13 }
 0x1a0   :  { %v631_v32 = vadd.f32 %v630_v26, %v629_v22  ;;  %v639_v33 = vrot.slane %v638_v27, 1  ;;  %3283 = vmatprep.subr.bf16.mxu1 %v6627_v0  ;;  %v7834_v16 = vld [vmem:[%s8620_s0 + $0x38] sm:$0x77]  ;;  %v6473_v25 = vld [vmem:[%s8619_s1 + $0xd0] sm:$0xff]  }
 0x1a1   :  { %v1251_v34 = vadd.f32 %v1250_v29, %v1249_v24  ;;  %v1259_v35 = vrot.slane %v1258_v30, 1  ;;  %v7848_v22 = vcombine.high %v7834_v16, %v7834_v16  ;;  %v6472_v24 = vld [vmem:[%s8619_s1 + $0xc8] sm:$0xff]   ;;  %v6474_v26 = vld [vmem:[%s8619_s1 + $0xd0] sm:$0xff]   ;;  %v6477_v29 = vld [vmem:[%s8619_s1 + $0xe0] sm:$0xff]   ;;  %v2981_v47 = vshrl.u32 %v7843_v20, 16 }
 0x1a2   :  { %v640_v37 = vadd.f32 %v639_v33, %v638_v27  ;;  %2664 = vmatpush1.bf16.msra.mxu0 %v6433_v28  ;;  %v6475_v27 = vld [vmem:[%s8619_s1 + $0xd8] sm:$0xff]   ;;  %v6481_v33 = vld [vmem:[%s8619_s1 + $0xf0] sm:$0xff]   ;;  %v2977_v13 = vshll.u32 %v7948_v49, 16 }
 0x1a3   :  { %v7694_v40 = vadd.f32 %v1251_v34, %v631_v32  ;;  %v1260_v41 = vadd.f32 %v1259_v35, %v1258_v30  ;;  %3284 = vmatpush1.bf16.msra.mxu1 %v6434_v31  ;;  %2665 = vmatprep.subr.bf16.mxu0 %v6627_v0  ;;  %v6476_v28 = vld [vmem:[%s8619_s1 + $0xd8] sm:$0xff]   ;;  %v6478_v30 = vld [vmem:[%s8619_s1 + $0xe0] sm:$0xff]   ;;  %v6479_v31 = vld [vmem:[%s8619_s1 + $0xe8] sm:$0xff]   ;;  %v3603_v44 = vshll.u32 %v7848_v22, 16  ;;  %v3601_v50 = vshrl.u32 %v7848_v22, 16 }
 0x1a4   :  { %3285 = vmatprep.subr.bf16.mxu1 %v6627_v0  ;;  %v6480_v32 = vld [vmem:[%s8619_s1 + $0xe8] sm:$0xff]   ;;  %v6482_v34 = vld [vmem:[%s8619_s1 + $0xf0] sm:$0xff]   ;;  %v6483_v35 = vld [vmem:[%s8619_s1 + $0xf8] sm:$0xff]  }
 0x1a5   :  { %v7701_v42 = vadd.f32 %v1260_v41, %v640_v37  ;;  %v6485_v37 = vld [vmem:[%s8619_s1 + $0x100] sm:$0xff]   ;;  %v6488_v41 = vld [vmem:[%s8619_s1 + $0x108] sm:$0xff]   ;;  %v6492_v46 = vld [vmem:[%s8619_s1 + $0x118] sm:$0xff]  }
 0x1a6   :  { %2666 = vmatpush1.bf16.msra.mxu0 %v6435_v38  ;;  %v6486_v38 = vld [vmem:[%s8619_s1 + $0x100] sm:$0xff]  }
 0x1a7   :  { %3286 = vmatpush1.bf16.msra.mxu1 %v6436_v15  ;;  %2667 = vmatprep.subr.bf16.mxu0 %v6627_v0  ;;  %v6489_v15 = vld [vmem:[%s8619_s1 + $0x110] sm:$0xff]  }
 0x1a8   :  { %3287 = vmatprep.subr.bf16.mxu1 %v6627_v0 }
 0x1aa   :  { %2668 = vmatpush1.bf16.msra.mxu0 %v6437_v17  ;;  %v2983_v17 = vshll.u32 %v7843_v20, 16 }
 0x1ab   :  { %3288 = vmatpush1.bf16.msra.mxu1 %v6438_v45  ;;  %2669 = vmatprep.subr.bf16.mxu0 %v6627_v0  ;;  %v6491_v45 = vld [vmem:[%s8619_s1 + $0x118] sm:$0xff]  }
 0x1ac   :  { %3289 = vmatprep.subr.bf16.mxu1 %v6627_v0 }
 0x1ae   :  { %2670 = vmatpush1.bf16.msra.mxu0 %v6439_v48  ;;  %v2985_v48 = vrot.slane %v2983_v17, 1  ;;  %v6526_v17 = vld [vmem:[%s8619_s1 + $0x70] sm:$0xff]  }
 0x1af   :  { %3290 = vmatpush1.bf16.msra.mxu1 %v6440_v51  ;;  %2762 = vmatprep.subr.bf16.mxu0 %v6627_v0  ;;  %v3605_v51 = vrot.slane %v3603_v44, 1  ;;  %v6527_v44 = vld [vmem:[%s8619_s1 + $0x78] sm:$0xff]  }
 0x1b0   :  { %3382 = vmatprep.subr.bf16.mxu1 %v6627_v0 }
 0x1b1   :  { %2680 = vmatmul.mubr.bf16.vlgmr.msra.gmra.mrb[8].mxu0 %v2563_v52  ;;  %v6496_v52 = vld [vmem:[%s8619_s1 + $0x120] sm:$0xff]  }
 0x1b2   :  { %2763 = vmatpush1.bf16.msra.mxu0 %v6444_v53  ;;  %3300 = vmatmul.mubr.bf16.vlgmr.msra.gmra.mrb[8].mxu1 %v3183_v54  ;;  %v7956_v53 = vcombine.low %v7834_v16, %v7834_v16  ;;  %v6498_v54 = vld [vmem:[%s8619_s1 + $0x120] sm:$0xff]   ;;  %v6517_v16 = vld [vmem:[%s8619_s1 + $0x170] sm:$0xff]  }
 0x1b3   :  { %3383 = vmatpush1.bf16.msra.mxu1 %v6446_v55  ;;  %2764 = vmatprep.subr.bf16.mxu0 %v6627_v0  ;;  %v2986_v55 = vor.u32 %v2985_v48, %v2981_v47  ;;  %v6530_v47 = vld [vmem:[%s8619_s1 + $0x80] sm:$0xff]   ;;  %v6531_v48 = vld [vmem:[%s8619_s1 + $0x88] sm:$0xff]  }
 0x1b4   :  { %3384 = vmatprep.subr.bf16.mxu1 %v6627_v0  ;;  %5626 = vmatprep.mubr.msk.bf16.mxu0 %vm160_vm0, %v7569_v19  ;;  %v6451_v19 = vld [vmem:[%s8619_s1 + $0x18] sm:$0xff]  }
 0x1b5   :  { %5757 = vmatprep.mubr.msk.bf16.mxu1 %vm160_vm0, %v7574_v21  ;;  %v6452_v21 = vld [vmem:[%s8619_s1 + $0x18] sm:$0xff]  }
 0x1b6   :  { %2765 = vmatpush1.bf16.msra.mxu0 %v6447_v56  ;;  %v3606_v56 = vor.u32 %v3605_v51, %v3601_v50 }
 0x1b7   :  { %3385 = vmatpush1.bf16.msra.mxu1 %v6448_v57  ;;  %2766 = vmatprep.subr.bf16.mxu0 %v6627_v0  ;;  %v6499_v57 = vld [vmem:[%s8619_s1 + $0x128] sm:$0xff]  }
 0x1b8   :  { %3386 = vmatprep.subr.bf16.mxu1 %v6627_v0 }
 0x1ba   :  { %2767 = vmatpush1.bf16.msra.mxu0 %v6449_v58  ;;  %v6500_v58 = vld [vmem:[%s8619_s1 + $0x128] sm:$0xff]  }
 0x1bb   :  { %3387 = vmatpush1.bf16.msra.mxu1 %v6450_v59  ;;  %2768 = vmatprep.subr.bf16.mxu0 %v6627_v0  ;;  %v6501_v59 = vld [vmem:[%s8619_s1 + $0x130] sm:$0xff]  }
 0x1bc   :  { %3388 = vmatprep.subr.bf16.mxu1 %v6627_v0 }
 0x1be   :  { %2769 = vmatpush1.bf16.msra.mxu0 %v6451_v19  ;;  %v6502_v19 = vld [vmem:[%s8619_s1 + $0x130] sm:$0xff]  }
 0x1bf   :  { %3389 = vmatpush1.bf16.msra.mxu1 %v6452_v21  ;;  %2770 = vmatprep.subr.bf16.mxu0 %v6627_v0  ;;  %v6503_v21 = vld [vmem:[%s8619_s1 + $0x138] sm:$0xff]  }
 0x1c0   :  { %3390 = vmatprep.subr.bf16.mxu1 %v6627_v0 }
 0x1c2   :  { %2771 = vmatpush1.bf16.msra.mxu0 %v6453_v60  ;;  %v6504_v60 = vld [vmem:[%s8619_s1 + $0x138] sm:$0xff]  }
 0x1c3   :  { %3391 = vmatpush1.bf16.msra.mxu1 %v6454_v61  ;;  %2772 = vmatprep.subr.bf16.mxu0 %v6627_v0  ;;  %v6505_v61 = vld [vmem:[%s8619_s1 + $0x140] sm:$0xff]  }
 0x1c4   :  { %3392 = vmatprep.subr.bf16.mxu1 %v6627_v0 }
 0x1c6   :  { %2773 = vmatpush1.bf16.msra.mxu0 %v6455_v62  ;;  %v6506_v62 = vld [vmem:[%s8619_s1 + $0x140] sm:$0xff]  }
 0x1c7   :  { %3393 = vmatpush1.bf16.msra.mxu1 %v6456_v63  ;;  %2774 = vmatprep.subr.bf16.mxu0 %v6627_v0  ;;  %v6507_v63 = vld [vmem:[%s8619_s1 + $0x148] sm:$0xff]  }
 0x1c8   :  { %3394 = vmatprep.subr.bf16.mxu1 %v6627_v0 }
 0x1ca   :  { %2775 = vmatpush1.bf16.msra.mxu0 %v6457_v1  ;;  %v6508_v1 = vld [vmem:[%s8619_s1 + $0x148] sm:$0xff]  }
 0x1cb   :  { %3395 = vmatpush1.bf16.msra.mxu1 %v6458_v2  ;;  %2776 = vmatprep.subr.bf16.mxu0 %v6627_v0  ;;  %v6509_v2 = vld [vmem:[%s8619_s1 + $0x150] sm:$0xff]  }
 0x1cc   :  { %3396 = vmatprep.subr.bf16.mxu1 %v6627_v0 }
 0x1ce   :  { %2777 = vmatpush1.bf16.msra.mxu0 %v6459_v3  ;;  %v6510_v3 = vld [vmem:[%s8619_s1 + $0x150] sm:$0xff]  }
 0x1cf   :  { %3397 = vmatpush1.bf16.msra.mxu1 %v6460_v4  ;;  %2778 = vmatprep.subr.bf16.mxu0 %v6627_v0  ;;  %v6511_v4 = vld [vmem:[%s8619_s1 + $0x158] sm:$0xff]  }
 0x1d0   :  { %3398 = vmatprep.subr.bf16.mxu1 %v6627_v0 }
 0x1d2   :  { %2779 = vmatpush1.bf16.msra.mxu0 %v6461_v5  ;;  %v6512_v5 = vld [vmem:[%s8619_s1 + $0x158] sm:$0xff]  }
 0x1d3   :  { %3399 = vmatpush1.bf16.msra.mxu1 %v6462_v6  ;;  %2780 = vmatprep.subr.bf16.mxu0 %v6627_v0  ;;  %v6513_v6 = vld [vmem:[%s8619_s1 + $0x160] sm:$0xff]  }
 0x1d4   :  { %3400 = vmatprep.subr.bf16.mxu1 %v6627_v0 }
 0x1d6   :  { %2781 = vmatpush1.bf16.msra.mxu0 %v6463_v7  ;;  %v6514_v7 = vld [vmem:[%s8619_s1 + $0x160] sm:$0xff]  }
 0x1d7   :  { %3401 = vmatpush1.bf16.msra.mxu1 %v6464_v8  ;;  %2782 = vmatprep.subr.bf16.mxu0 %v6627_v0  ;;  %v8034_v8 = vld [vmem:[%s8620_s0 + $0x38] sm:$0x77] }
 0x1d8   :  { %3402 = vmatprep.subr.bf16.mxu1 %v6627_v0 }
 0x1da   :  { %2783 = vmatpush1.bf16.msra.mxu0 %v6465_v9  ;;  %v6515_v9 = vld [vmem:[%s8619_s1 + $0x168] sm:$0xff]  }
 0x1db   :  { %3403 = vmatpush1.bf16.msra.mxu1 %v6466_v10  ;;  %2784 = vmatprep.subr.bf16.mxu0 %v6627_v0  ;;  %v8042_v10 = vld [vmem:[%s8620_s0 + $0x40] sm:$0x77] }
 0x1dc   :  { %3404 = vmatprep.subr.bf16.mxu1 %v6627_v0 }
 0x1de   :  { %2785 = vmatpush1.bf16.msra.mxu0 %v6467_v11  ;;  %v6516_v11 = vld [vmem:[%s8619_s1 + $0x168] sm:$0xff]  }
 0x1df   :  { %3405 = vmatpush1.bf16.msra.mxu1 %v6468_v12  ;;  %2909 = vmatprep.subr.bf16.mxu0 %v6627_v0  ;;  %v8051_v12 = vcombine.high %v8034_v8, %v8034_v8 }
 0x1e0   :  { %3529 = vmatprep.subr.bf16.mxu1 %v6627_v0 }
 0x1e1   :  { %2795 = vmatmul.mubr.bf16.vlgmr.msra.gmra.mrb[8].mxu0 %v7685_v36  ;;  %v6484_v36 = vld [vmem:[%s8619_s1 + $0xf8] sm:$0xff]  }
 0x1e2   :  { %2910 = vmatpush1.bf16.msra.mxu0 %v6469_v14  ;;  %3415 = vmatmul.mubr.bf16.vlgmr.msra.gmra.mrb[8].mxu1 %v7692_v39  ;;  %v6487_v39 = vld [vmem:[%s8619_s1 + $0x108] sm:$0xff]   ;;  %v8056_v14 = vcombine.high %v8042_v10, %v8042_v10 }
 0x1e3   :  { %3530 = vmatpush1.bf16.msra.mxu1 %v6470_v18  ;;  %2911 = vmatprep.subr.bf16.mxu0 %v6627_v0  ;;  %v3597_v18 = vshll.u32 %v7956_v53, 16 }
 0x1e4   :  { %3531 = vmatprep.subr.bf16.mxu1 %v6627_v0  ;;  %5666 = vmatprep.mubr.msk.bf16.mxu0 %vm160_vm0, %v7843_v20  ;;  %v6518_v20 = vld [vmem:[%s8619_s1 + $0x170] sm:$0xff]  }
 0x1e5   :  { %5797 = vmatprep.mubr.msk.bf16.mxu1 %vm160_vm0, %v7848_v22  ;;  %v3807_v22 = vshll.u32 %v8051_v12, 16 }
 0x1e6   :  { %2912 = vmatpush1.bf16.msra.mxu0 %v6471_v23  ;;  %v2975_v23 = vshrl.u32 %v7948_v49, 16 }
 0x1e7   :  { %3532 = vmatpush1.bf16.msra.mxu1 %v6472_v24  ;;  %2913 = vmatprep.subr.bf16.mxu0 %v6627_v0  ;;  %v2979_v24 = vrot.slane %v2977_v13, 1 }
 0x1e8   :  { %3533 = vmatprep.subr.bf16.mxu1 %v6627_v0 }
 0x1ea   :  { %2914 = vmatpush1.bf16.msra.mxu0 %v6473_v25  ;;  %v4427_v25 = vshll.u32 %v8056_v14, 16 }
 0x1eb   :  { %3534 = vmatpush1.bf16.msra.mxu1 %v6474_v26  ;;  %2915 = vmatprep.subr.bf16.mxu0 %v6627_v0  ;;  %v6519_v26 = vld [vmem:[%s8619_s1 + $0x178] sm:$0xff]  }
 0x1ec   :  { %3535 = vmatprep.subr.bf16.mxu1 %v6627_v0 }
 0x1ee   :  { %2916 = vmatpush1.bf16.msra.mxu0 %v6475_v27  ;;  %v3595_v27 = vshrl.u32 %v7956_v53, 16 }
 0x1ef   :  { %3536 = vmatpush1.bf16.msra.mxu1 %v6476_v28  ;;  %2917 = vmatprep.subr.bf16.mxu0 %v6627_v0  ;;  %v3599_v28 = vrot.slane %v3597_v18, 1  ;;  %v6536_v18 = vld [vmem:[%s8619_s1 + $0x98] sm:$0xff]  }
 0x1f0   :  { %3537 = vmatprep.subr.bf16.mxu1 %v6627_v0 }
 0x1f2   :  { %2918 = vmatpush1.bf16.msra.mxu0 %v6477_v29  ;;  %v6520_v29 = vld [vmem:[%s8619_s1 + $0x178] sm:$0xff]  }
 0x1f3   :  { %3538 = vmatpush1.bf16.msra.mxu1 %v6478_v30  ;;  %2919 = vmatprep.subr.bf16.mxu0 %v6627_v0  ;;  %v3805_v30 = vshrl.u32 %v8051_v12, 16 }
 0x1f4   :  { %3539 = vmatprep.subr.bf16.mxu1 %v6627_v0 }
 0x1f6   :  { %2920 = vmatpush1.bf16.msra.mxu0 %v6479_v31  ;;  %v3809_v31 = vrot.slane %v3807_v22, 1 }
 0x1f7   :  { %3540 = vmatpush1.bf16.msra.mxu1 %v6480_v32  ;;  %2921 = vmatprep.subr.bf16.mxu0 %v6627_v0  ;;  %v2980_v32 = vor.u32 %v2979_v24, %v2975_v23 }
 0x1f8   :  { %3541 = vmatprep.subr.bf16.mxu1 %v6627_v0 }
 0x1fa   :  { %2922 = vmatpush1.bf16.msra.mxu0 %v6481_v33  ;;  %v4425_v33 = vshrl.u32 %v8056_v14, 16 }
 0x1fb   :  { %3542 = vmatpush1.bf16.msra.mxu1 %v6482_v34  ;;  %2923 = vmatprep.subr.bf16.mxu0 %v6627_v0  ;;  %v4429_v34 = vrot.slane %v4427_v25, 1 }
 0x1fc   :  { %3543 = vmatprep.subr.bf16.mxu1 %v6627_v0 }
 0x1fe   :  { %2924 = vmatpush1.bf16.msra.mxu0 %v6483_v35  ;;  %v3600_v35 = vor.u32 %v3599_v28, %v3595_v27  ;;  %v6537_v27 = vld [vmem:[%s8619_s1 + $0xa0] sm:$0xff]  }
 0x1ff   :  { %3544 = vmatpush1.bf16.msra.mxu1 %v6484_v36  ;;  %2925 = vmatprep.subr.bf16.mxu0 %v6627_v0  ;;  %v6521_v36 = vld [vmem:[%s8619_s1 + $0x60] sm:$0xff]  }
 0x200   :  { %3545 = vmatprep.subr.bf16.mxu1 %v6627_v0 }
 0x202   :  { %2926 = vmatpush1.bf16.msra.mxu0 %v6485_v37  ;;  %v6522_v37 = vld [vmem:[%s8619_s1 + $0x60] sm:$0xff]  }
 0x203   :  { %3546 = vmatpush1.bf16.msra.mxu1 %v6486_v38  ;;  %2927 = vmatprep.subr.bf16.mxu0 %v6627_v0  ;;  %v3810_v38 = vor.u32 %v3809_v31, %v3805_v30  ;;  %v6538_v30 = vld [vmem:[%s8619_s1 + $0xa0] sm:$0xff]  }
 0x204   :  { %3547 = vmatprep.subr.bf16.mxu1 %v6627_v0 }
 0x206   :  { %2928 = vmatpush1.bf16.msra.mxu0 %v6487_v39  ;;  %v4430_v39 = vor.u32 %v4429_v34, %v4425_v33  ;;  %v8167_v34 = vcombine.low %v8034_v8, %v8034_v8  ;;  %v6540_v8 = vld [vmem:[%s8619_s1 + $0xa8] sm:$0xff]  }
 0x207   :  { %3548 = vmatpush1.bf16.msra.mxu1 %v6488_v41  ;;  %2929 = vmatprep.subr.bf16.mxu0 %v6627_v0  ;;  %v6523_v41 = vld [vmem:[%s8619_s1 + $0x68] sm:$0xff]  }
 0x208   :  { %3549 = vmatprep.subr.bf16.mxu1 %v6627_v0 }
 0x20a   :  { %2930 = vmatpush1.bf16.msra.mxu0 %v6489_v15  ;;  %v6524_v15 = vld [vmem:[%s8619_s1 + $0x68] sm:$0xff]  }
 0x20b   :  { %3550 = vmatpush1.bf16.msra.mxu1 %v6490_v43  ;;  %2931 = vmatprep.subr.bf16.mxu0 %v6627_v0  ;;  %v6525_v43 = vld [vmem:[%s8619_s1 + $0x70] sm:$0xff]  }
 0x20c   :  { %3551 = vmatprep.subr.bf16.mxu1 %v6627_v0 }
 0x20e   :  { %2932 = vmatpush1.bf16.msra.mxu0 %v6491_v45  ;;  %v6528_v45 = vld [vmem:[%s8619_s1 + $0x78] sm:$0xff]  }
 0x20f   :  { %3552 = vmatpush1.bf16.msra.mxu1 %v6492_v46  ;;  %3063 = vmatprep.subr.bf16.mxu0 %v6627_v0  ;;  %v6529_v46 = vld [vmem:[%s8619_s1 + $0x80] sm:$0xff]  }
 0x210   :  { %3683 = vmatprep.subr.bf16.mxu1 %v6627_v0 }
 0x211   :  { %2942 = vmatmul.mubr.bf16.vlgmr.msra.gmra.mrb[8].mxu0 %v7948_v49  ;;  %v6532_v49 = vld [vmem:[%s8619_s1 + $0x88] sm:$0xff]  }
 0x212   :  { %3064 = vmatpush1.bf16.msra.mxu0 %v6496_v52  ;;  %3562 = vmatmul.mubr.bf16.vlgmr.msra.gmra.mrb[8].mxu1 %v7956_v53 }
 0x213   :  { %3684 = vmatpush1.bf16.msra.mxu1 %v6498_v54  ;;  %3065 = vmatprep.subr.bf16.mxu0 %v6627_v0 }
 0x214   :  { %3685 = vmatprep.subr.bf16.mxu1 %v6627_v0  ;;  %5703 = vmatprep.mubr.msk.bf16.mxu0 %vm160_vm0, %v2986_v55 }
 0x215   :  { %5834 = vmatprep.mubr.msk.bf16.mxu1 %vm160_vm0, %v3606_v56 }
 0x216   :  { %3066 = vmatpush1.bf16.msra.mxu0 %v6499_v57 }
 0x217   :  { %3686 = vmatpush1.bf16.msra.mxu1 %v6500_v58  ;;  %3067 = vmatprep.subr.bf16.mxu0 %v6627_v0 }
 0x218   :  { %3687 = vmatprep.subr.bf16.mxu1 %v6627_v0 }
 0x21a   :  { %3068 = vmatpush1.bf16.msra.mxu0 %v6501_v59 }
 0x21b   :  { %3688 = vmatpush1.bf16.msra.mxu1 %v6502_v19  ;;  %3069 = vmatprep.subr.bf16.mxu0 %v6627_v0  ;;  %v6533_v19 = vld [vmem:[%s8619_s1 + $0x90] sm:$0xff]  }
 0x21c   :  { %3689 = vmatprep.subr.bf16.mxu1 %v6627_v0 }
 0x21e   :  { %3070 = vmatpush1.bf16.msra.mxu0 %v6503_v21 }
 0x21f   :  { %3690 = vmatpush1.bf16.msra.mxu1 %v6504_v60  ;;  %3071 = vmatprep.subr.bf16.mxu0 %v6627_v0 }
 0x220   :  { %3691 = vmatprep.subr.bf16.mxu1 %v6627_v0 }
 0x222   :  { %3072 = vmatpush1.bf16.msra.mxu0 %v6505_v61 }
 0x223   :  { %3692 = vmatpush1.bf16.msra.mxu1 %v6506_v62  ;;  %3073 = vmatprep.subr.bf16.mxu0 %v6627_v0 }
 0x224   :  { %3693 = vmatprep.subr.bf16.mxu1 %v6627_v0 }
 0x226   :  { %3074 = vmatpush1.bf16.msra.mxu0 %v6507_v63  ;;  %v6534_v63 = vld [vmem:[%s8619_s1 + $0x90] sm:$0xff]  }
 0x227   :  { %3694 = vmatpush1.bf16.msra.mxu1 %v6508_v1  ;;  %3075 = vmatprep.subr.bf16.mxu0 %v6627_v0 }
 0x228   :  { %3695 = vmatprep.subr.bf16.mxu1 %v6627_v0 }
 0x22a   :  { %3076 = vmatpush1.bf16.msra.mxu0 %v6509_v2 }
 0x22b   :  { %3696 = vmatpush1.bf16.msra.mxu1 %v6510_v3  ;;  %3077 = vmatprep.subr.bf16.mxu0 %v6627_v0 }
 0x22c   :  { %3697 = vmatprep.subr.bf16.mxu1 %v6627_v0 }
 0x22e   :  { %3078 = vmatpush1.bf16.msra.mxu0 %v6511_v4 }
 0x22f   :  { %3698 = vmatpush1.bf16.msra.mxu1 %v6512_v5  ;;  %3079 = vmatprep.subr.bf16.mxu0 %v6627_v0 }
 0x230   :  { %3699 = vmatprep.subr.bf16.mxu1 %v6627_v0 }
 0x232   :  { %3080 = vmatpush1.bf16.msra.mxu0 %v6513_v6 }
 0x233   :  { %3700 = vmatpush1.bf16.msra.mxu1 %v6514_v7  ;;  %3081 = vmatprep.subr.bf16.mxu0 %v6627_v0 }
 0x234   :  { %3701 = vmatprep.subr.bf16.mxu1 %v6627_v0 }
 0x236   :  { %3082 = vmatpush1.bf16.msra.mxu0 %v6515_v9 }
 0x237   :  { %3702 = vmatpush1.bf16.msra.mxu1 %v6516_v11  ;;  %3083 = vmatprep.subr.bf16.mxu0 %v6627_v0  ;;  %v6535_v11 = vld [vmem:[%s8619_s1 + $0x98] sm:$0xff]  }
 0x238   :  { %3703 = vmatprep.subr.bf16.mxu1 %v6627_v0 }
 0x23a   :  { %3084 = vmatpush1.bf16.msra.mxu0 %v6517_v16 }
 0x23b   :  { %3704 = vmatpush1.bf16.msra.mxu1 %v6518_v20  ;;  %3085 = vmatprep.subr.bf16.mxu0 %v6627_v0 }
 0x23c   :  { %3705 = vmatprep.subr.bf16.mxu1 %v6627_v0 }
 0x23e   :  { %3086 = vmatpush1.bf16.msra.mxu0 %v6519_v26 }
 0x23f   :  { %3706 = vmatpush1.bf16.msra.mxu1 %v6520_v29  ;;  %3887 = vmatprep.subr.bf16.mxu0 %v6627_v0 }
 0x240   :  { %4507 = vmatprep.subr.bf16.mxu1 %v6627_v0 }
 0x241   :  { %3096 = vmatmul.mubr.bf16.vlgmr.msra.gmra.mrb[8].mxu0 %v2980_v32 }
 0x242   :  { %3716 = vmatmul.mubr.bf16.vlgmr.msra.gmra.mrb[8].mxu1 %v3600_v35  ;;  %3888 = vmatpush1.bf16.msra.mxu0 %v6521_v36 }
 0x243   :  { %4508 = vmatpush1.bf16.msra.mxu1 %v6522_v37  ;;  %3889 = vmatprep.subr.bf16.mxu0 %v6627_v0 }
 0x244   :  { %4509 = vmatprep.subr.bf16.mxu1 %v6627_v0  ;;  %5875 = vmatprep.mubr.msk.bf16.mxu0 %vm160_vm0, %v3810_v38  ;;  %v6539_v38 = vld [vmem:[%s8619_s1 + $0xa8] sm:$0xff]  }
 0x245   :  { %6006 = vmatprep.mubr.msk.bf16.mxu1 %vm160_vm0, %v4430_v39  ;;  %v8175_v39 = vcombine.low %v8042_v10, %v8042_v10  ;;  %v6541_v10 = vld [vmem:[%s8619_s1 + $0xb0] sm:$0xff]  }
 0x246   :  { %3890 = vmatpush1.bf16.msra.mxu0 %v6523_v41 }
 0x247   :  { %4510 = vmatpush1.bf16.msra.mxu1 %v6524_v15  ;;  %3891 = vmatprep.subr.bf16.mxu0 %v6627_v0 }
 0x248   :  { %4511 = vmatprep.subr.bf16.mxu1 %v6627_v0 }
 0x24a   :  { %3892 = vmatpush1.bf16.msra.mxu0 %v6525_v43  ;;  %v3800_v43 = vshll.u32 %v8167_v34, 16 }
 0x24b   :  { %4512 = vmatpush1.bf16.msra.mxu1 %v6526_v17  ;;  %3893 = vmatprep.subr.bf16.mxu0 %v6627_v0 }
 0x24c   :  { %4513 = vmatprep.subr.bf16.mxu1 %v6627_v0 }
 0x24e   :  { %3894 = vmatpush1.bf16.msra.mxu0 %v6527_v44  ;;  %v4420_v44 = vshll.u32 %v8175_v39, 16 }
 0x24f   :  { %4514 = vmatpush1.bf16.msra.mxu1 %v6528_v45  ;;  %3895 = vmatprep.subr.bf16.mxu0 %v6627_v0  ;;  %v3798_v45 = vshrl.u32 %v8167_v34, 16 }
 0x250   :  { %4515 = vmatprep.subr.bf16.mxu1 %v6627_v0 }
 0x252   :  { %3896 = vmatpush1.bf16.msra.mxu0 %v6529_v46  ;;  %v3802_v46 = vrot.slane %v3800_v43, 1  ;;  %v6594_v43 = vld [vmem:[%s8619_s1 + $0x110] sm:$0xff]  }
 0x253   :  { %4516 = vmatpush1.bf16.msra.mxu1 %v6530_v47  ;;  %3897 = vmatprep.subr.bf16.mxu0 %v6627_v0  ;;  %v6543_v47 = vld [vmem:[%s8619_s1 + $0xb8] sm:$0xff]  }
 0x254   :  { %v1856_v50 = vpop.f32.mrb[4].mxu0  ;;  %4517 = vmatprep.subr.bf16.mxu1 %v6627_v0 }
 0x255   :  { %5442 = vst [vmem:[%s8621_s4 + $0x8] sm:$0xf] %v1856_v50  ;;  %v1865_v51 = vsel %vm624_vm1, %v1856_v50, 0.0  ;;  %v1873_v52 = vmul.f32 %v1856_v50, %v1856_v50  ;;  %v2476_v53 = vpop.f32.mrb[4].mxu1  ;;  %v1858_v54 = vpop.f32.mrb[5].mxu0  ;;  %v6544_v50 = vld [vmem:[%s8619_s1 + $0xb8] sm:$0xff]  }
 0x256   :  { %v1866_v55 = vrot.slane %v1865_v51, 4  ;;  %5573 = vst [vmem:[%s8621_s4 + $0xc] sm:$0xf] %v2476_v53  ;;  %v2485_v56 = vsel %vm624_vm1, %v2476_v53, 0.0  ;;  %v2493_v57 = vmul.f32 %v2476_v53, %v2476_v53  ;;  %v2478_v58 = vpop.f32.mrb[5].mxu1  ;;  %v1859_v59 = vpop.f32.mrb[6].mxu0  ;;  %3898 = vmatpush1.bf16.msra.mxu0 %v6531_v48 }
 0x257   :  { %v1874_v21 = vsel %vm624_vm1, %v1873_v52, 0.0  ;;  %v2486_v60 = vrot.slane %v2485_v56, 4  ;;  %v2479_v61 = vpop.f32.mrb[6].mxu1  ;;  %4518 = vmatpush1.bf16.msra.mxu1 %v6532_v49  ;;  %v1860_v62 = vpop.f32.mrb[7].mxu0  ;;  %3899 = vmatprep.subr.bf16.mxu0 %v6627_v0  ;;  %v4418_v48 = vshrl.u32 %v8175_v39, 16  ;;  %v4422_v49 = vrot.slane %v4420_v44, 1 }
 0x258   :  { %v1867_v1 = vadd.f32 %v1866_v55, %v1865_v51  ;;  %v1875_v2 = vrot.slane %v1874_v21, 4  ;;  %v2494_v3 = vsel %vm624_vm1, %v2493_v57, 0.0  ;;  %v2480_v4 = vpop.f32.mrb[7].mxu1  ;;  %4519 = vmatprep.subr.bf16.mxu1 %v6627_v0  ;;  %v3803_v51 = vor.u32 %v3802_v46, %v3798_v45  ;;  %v6548_v52 = vld [vmem:[%s8619_s1] sm:$0xff]   ;;  %v6551_v55 = vld [vmem:[%s8619_s1 + $0x8] sm:$0xff]   ;;  %v6553_v57 = vld [vmem:[%s8619_s1 + $0x10] sm:$0xff]  }
 0x259   :  { %v2487_v5 = vadd.f32 %v2486_v60, %v2485_v56  ;;  %v2495_v6 = vrot.slane %v2494_v3, 4  ;;  %v4423_v53 = vor.u32 %v4422_v49, %v4418_v48  ;;  %v6550_v54 = vld [vmem:[%s8619_s1] sm:$0xff]   ;;  %v6552_v56 = vld [vmem:[%s8619_s1 + $0x8] sm:$0xff]   ;;  %v6554_v58 = vld [vmem:[%s8619_s1 + $0x10] sm:$0xff]  }
 0x25a   :  { %v1868_v7 = vrot.slane %v1867_v1, 2  ;;  %v1876_v9 = vadd.f32 %v1875_v2, %v1874_v21  ;;  %3900 = vmatpush1.bf16.msra.mxu0 %v6533_v19  ;;  %v6557_v59 = vld [vmem:[%s8619_s1 + $0x20] sm:$0xff]   ;;  %v6559_v21 = vld [vmem:[%s8619_s1 + $0x28] sm:$0xff]   ;;  %v6561_v61 = vld [vmem:[%s8619_s1 + $0x30] sm:$0xff]  }
 0x25b   :  { %v2488_v13 = vrot.slane %v2487_v5, 2  ;;  %v2496_v16 = vadd.f32 %v2495_v6, %v2494_v3  ;;  %4520 = vmatpush1.bf16.msra.mxu1 %v6534_v63  ;;  %3901 = vmatprep.subr.bf16.mxu0 %v6627_v0  ;;  %v6558_v19 = vld [vmem:[%s8619_s1 + $0x20] sm:$0xff]   ;;  %v6560_v60 = vld [vmem:[%s8619_s1 + $0x28] sm:$0xff]   ;;  %v6562_v62 = vld [vmem:[%s8619_s1 + $0x30] sm:$0xff]  }
 0x25c   :  { %v1869_v20 = vadd.f32 %v1868_v7, %v1867_v1  ;;  %v1877_v22 = vrot.slane %v1876_v9, 2  ;;  %4521 = vmatprep.subr.bf16.mxu1 %v6627_v0  ;;  %v6563_v63 = vld [vmem:[%s8619_s1 + $0x38] sm:$0xff]   ;;  %v6565_v2 = vld [vmem:[%s8619_s1 + $0x40] sm:$0xff]   ;;  %v6567_v4 = vld [vmem:[%s8619_s1 + $0x48] sm:$0xff]  }
 0x25d   :  { %v2489_v23 = vadd.f32 %v2488_v13, %v2487_v5  ;;  %v2497_v24 = vrot.slane %v2496_v16, 2  ;;  %v6564_v1 = vld [vmem:[%s8619_s1 + $0x38] sm:$0xff]   ;;  %v6566_v3 = vld [vmem:[%s8619_s1 + $0x40] sm:$0xff]   ;;  %v6568_v5 = vld [vmem:[%s8619_s1 + $0x48] sm:$0xff]  }
 0x25e   :  { %v1870_v25 = vrot.slane %v1869_v20, 1  ;;  %v1878_v26 = vadd.f32 %v1877_v22, %v1876_v9  ;;  %3902 = vmatpush1.bf16.msra.mxu0 %v6535_v11  ;;  %v6569_v6 = vld [vmem:[%s8619_s1 + $0x50] sm:$0xff]   ;;  %v6571_v9 = vld [vmem:[%s8619_s1 + $0x58] sm:$0xff]   ;;  %v8310_v13 = vld [vmem:[%s8620_s0 + $0x40] sm:$0x77] }
 0x25f   :  { %v2490_v28 = vrot.slane %v2489_v23, 1  ;;  %v2498_v29 = vadd.f32 %v2497_v24, %v2496_v16  ;;  %4522 = vmatpush1.bf16.msra.mxu1 %v6536_v18  ;;  %3903 = vmatprep.subr.bf16.mxu0 %v6627_v0  ;;  %v6570_v7 = vld [vmem:[%s8619_s1 + $0x50] sm:$0xff]   ;;  %v6572_v11 = vld [vmem:[%s8619_s1 + $0x58] sm:$0xff]   ;;  %v6573_v16 = vld [vmem:[%s8619_s1 + $0xc0] sm:$0xff]   ;;  %v8327_v22 = vcombine.high %v8310_v13, %v8310_v13  ;;  %v8432_v48 = vcombine.low %v8310_v13, %v8310_v13 }
 0x260   :  { %v1871_v31 = vadd.f32 %v1870_v25, %v1869_v20  ;;  %v1879_v32 = vrot.slane %v1878_v26, 1  ;;  %4523 = vmatprep.subr.bf16.mxu1 %v6627_v0  ;;  %v8318_v18 = vld [vmem:[%s8620_s0 + $0x48] sm:$0x77]  ;;  %v6574_v20 = vld [vmem:[%s8619_s1 + $0xc0] sm:$0xff]   ;;  %v6596_v45 = vld [vmem:[%s8619_s1 + $0x118] sm:$0xff]  }
 0x261   :  { %v2499_v33 = vrot.slane %v2498_v29, 1  ;;  %v2491_v37 = vadd.f32 %v2490_v28, %v2489_v23  ;;  %v8332_v23 = vcombine.high %v8318_v18, %v8318_v18  ;;  %v6575_v24 = vld [vmem:[%s8619_s1 + $0xc8] sm:$0xff]   ;;  %v6579_v28 = vld [vmem:[%s8619_s1 + $0xd8] sm:$0xff]   ;;  %v4221_v46 = vshrl.u32 %v8327_v22, 16  ;;  %v6622_v13 = vld [vmem:[%s8619_s1 + $0x170] sm:$0xff]  }
 0x262   :  { %v1872_v35 = vadd.f32 %v1871_v31, %v7694_v40  ;;  %v1880_v36 = vadd.f32 %v1879_v32, %v1878_v26  ;;  %3904 = vmatpush1.bf16.msra.mxu0 %v6537_v27  ;;  %v6576_v25 = vld [vmem:[%s8619_s1 + $0xc8] sm:$0xff]   ;;  %v6577_v26 = vld [vmem:[%s8619_s1 + $0xd0] sm:$0xff]   ;;  %v6582_v31 = vld [vmem:[%s8619_s1 + $0xe0] sm:$0xff]  }
 0x263   :  { %4524 = vmatpush1.bf16.msra.mxu1 %v6538_v30  ;;  %3905 = vmatprep.subr.bf16.mxu0 %v6627_v0  ;;  %v2500_v15 = vadd.f32 %v2499_v33, %v2498_v29  ;;  %v6578_v27 = vld [vmem:[%s8619_s1 + $0xd0] sm:$0xff]   ;;  %v6580_v29 = vld [vmem:[%s8619_s1 + $0xd8] sm:$0xff]   ;;  %v6581_v30 = vld [vmem:[%s8619_s1 + $0xe0] sm:$0xff]   ;;  %v4843_v44 = vshll.u32 %v8332_v23, 16  ;;  %v4841_v49 = vshrl.u32 %v8332_v23, 16 }
 0x264   :  { %v1881_v40 = vadd.f32 %v1880_v36, %v7701_v42  ;;  %v8182_v41 = vadd.f32 %v2491_v37, %v1872_v35  ;;  %4525 = vmatprep.subr.bf16.mxu1 %v6627_v0  ;;  %v6542_v42 = vld [vmem:[%s8619_s1 + $0xb0] sm:$0xff]   ;;  %v6583_v32 = vld [vmem:[%s8619_s1 + $0xe8] sm:$0xff]   ;;  %v6587_v36 = vld [vmem:[%s8619_s1 + $0xf8] sm:$0xff]  }
 0x265   :  { %v6584_v33 = vld [vmem:[%s8619_s1 + $0xe8] sm:$0xff]   ;;  %v6586_v35 = vld [vmem:[%s8619_s1 + $0xf0] sm:$0xff]   ;;  %v6588_v37 = vld [vmem:[%s8619_s1 + $0xf8] sm:$0xff]  }
 0x266   :  { %v8186_v17 = vadd.f32 %v2500_v15, %v1881_v40  ;;  %3906 = vmatpush1.bf16.msra.mxu0 %v6539_v38  ;;  %v6589_v38 = vld [vmem:[%s8619_s1 + $0x100] sm:$0xff]   ;;  %v6592_v40 = vld [vmem:[%s8619_s1 + $0x108] sm:$0xff]   ;;  %v6593_v15 = vld [vmem:[%s8619_s1 + $0x110] sm:$0xff]  }
 0x267   :  { %4526 = vmatpush1.bf16.msra.mxu1 %v6540_v8  ;;  %3907 = vmatprep.subr.bf16.mxu0 %v6627_v0  ;;  %v6591_v8 = vld [vmem:[%s8619_s1 + $0x108] sm:$0xff]  }
 0x268   :  { %4527 = vmatprep.subr.bf16.mxu1 %v6627_v0 }
 0x26a   :  { %3908 = vmatpush1.bf16.msra.mxu0 %v6541_v10  ;;  %v4223_v10 = vshll.u32 %v8327_v22, 16 }
 0x26b   :  { %4528 = vmatpush1.bf16.msra.mxu1 %v6542_v42  ;;  %3909 = vmatprep.subr.bf16.mxu0 %v6627_v0  ;;  %v6595_v42 = vld [vmem:[%s8619_s1 + $0x118] sm:$0xff]  }
 0x26c   :  { %4529 = vmatprep.subr.bf16.mxu1 %v6627_v0 }
 0x26e   :  { %3910 = vmatpush1.bf16.msra.mxu0 %v6543_v47  ;;  %v4225_v47 = vrot.slane %v4223_v10, 1 }
 0x26f   :  { %4530 = vmatpush1.bf16.msra.mxu1 %v6544_v50  ;;  %4002 = vmatprep.subr.bf16.mxu0 %v6627_v0  ;;  %v4845_v50 = vrot.slane %v4843_v44, 1 }
 0x270   :  { %4622 = vmatprep.subr.bf16.mxu1 %v6627_v0 }
 0x271   :  { %3920 = vmatmul.mubr.bf16.vlgmr.msra.gmra.mrb[12].mxu0 %v3803_v51  ;;  %v6600_v51 = vld [vmem:[%s8619_s1 + $0x120] sm:$0xff]  }
 0x272   :  { %4003 = vmatpush1.bf16.msra.mxu0 %v6548_v52  ;;  %4540 = vmatmul.mubr.bf16.vlgmr.msra.gmra.mrb[12].mxu1 %v4423_v53  ;;  %v8440_v52 = vcombine.low %v8318_v18, %v8318_v18  ;;  %v6602_v53 = vld [vmem:[%s8619_s1 + $0x120] sm:$0xff]  }
 0x273   :  { %4623 = vmatpush1.bf16.msra.mxu1 %v6550_v54  ;;  %4004 = vmatprep.subr.bf16.mxu0 %v6627_v0  ;;  %v4226_v54 = vor.u32 %v4225_v47, %v4221_v46 }
 0x274   :  { %4624 = vmatprep.subr.bf16.mxu1 %v6627_v0  ;;  %5888 = vmatprep.mubr.msk.bf16.mxu0 %vm160_vm0, %v8051_v12  ;;  %v6555_v12 = vld [vmem:[%s8619_s1 + $0x18] sm:$0xff]  }
 0x275   :  { %6019 = vmatprep.mubr.msk.bf16.mxu1 %vm160_vm0, %v8056_v14  ;;  %v6556_v14 = vld [vmem:[%s8619_s1 + $0x18] sm:$0xff]  }
 0x276   :  { %4005 = vmatpush1.bf16.msra.mxu0 %v6551_v55  ;;  %v4846_v55 = vor.u32 %v4845_v50, %v4841_v49 }
 0x277   :  { %4625 = vmatpush1.bf16.msra.mxu1 %v6552_v56  ;;  %4006 = vmatprep.subr.bf16.mxu0 %v6627_v0  ;;  %v6603_v56 = vld [vmem:[%s8619_s1 + $0x128] sm:$0xff]  }
 0x278   :  { %4626 = vmatprep.subr.bf16.mxu1 %v6627_v0 }
 0x27a   :  { %4007 = vmatpush1.bf16.msra.mxu0 %v6553_v57  ;;  %v6604_v57 = vld [vmem:[%s8619_s1 + $0x128] sm:$0xff]  }
 0x27b   :  { %4627 = vmatpush1.bf16.msra.mxu1 %v6554_v58  ;;  %4008 = vmatprep.subr.bf16.mxu0 %v6627_v0  ;;  %v6605_v58 = vld [vmem:[%s8619_s1 + $0x130] sm:$0xff]  }
 0x27c   :  { %4628 = vmatprep.subr.bf16.mxu1 %v6627_v0 }
 0x27e   :  { %4009 = vmatpush1.bf16.msra.mxu0 %v6555_v12  ;;  %v6606_v12 = vld [vmem:[%s8619_s1 + $0x130] sm:$0xff]  }
 0x27f   :  { %4629 = vmatpush1.bf16.msra.mxu1 %v6556_v14  ;;  %4010 = vmatprep.subr.bf16.mxu0 %v6627_v0  ;;  %v6607_v14 = vld [vmem:[%s8619_s1 + $0x138] sm:$0xff]  }
 0x280   :  { %4630 = vmatprep.subr.bf16.mxu1 %v6627_v0 }
 0x282   :  { %4011 = vmatpush1.bf16.msra.mxu0 %v6557_v59  ;;  %v6608_v59 = vld [vmem:[%s8619_s1 + $0x138] sm:$0xff]  }
 0x283   :  { %4631 = vmatpush1.bf16.msra.mxu1 %v6558_v19  ;;  %4012 = vmatprep.subr.bf16.mxu0 %v6627_v0  ;;  %v6609_v19 = vld [vmem:[%s8619_s1 + $0x140] sm:$0xff]  }
 0x284   :  { %4632 = vmatprep.subr.bf16.mxu1 %v6627_v0 }
 0x286   :  { %4013 = vmatpush1.bf16.msra.mxu0 %v6559_v21  ;;  %v6610_v21 = vld [vmem:[%s8619_s1 + $0x140] sm:$0xff]  }
 0x287   :  { %4633 = vmatpush1.bf16.msra.mxu1 %v6560_v60  ;;  %4014 = vmatprep.subr.bf16.mxu0 %v6627_v0  ;;  %v6611_v60 = vld [vmem:[%s8619_s1 + $0x148] sm:$0xff]  }
 0x288   :  { %4634 = vmatprep.subr.bf16.mxu1 %v6627_v0 }
 0x28a   :  { %4015 = vmatpush1.bf16.msra.mxu0 %v6561_v61  ;;  %v6612_v61 = vld [vmem:[%s8619_s1 + $0x148] sm:$0xff]  }
 0x28b   :  { %4635 = vmatpush1.bf16.msra.mxu1 %v6562_v62  ;;  %4016 = vmatprep.subr.bf16.mxu0 %v6627_v0  ;;  %v6613_v62 = vld [vmem:[%s8619_s1 + $0x150] sm:$0xff]  }
 0x28c   :  { %4636 = vmatprep.subr.bf16.mxu1 %v6627_v0 }
 0x28e   :  { %4017 = vmatpush1.bf16.msra.mxu0 %v6563_v63  ;;  %v6614_v63 = vld [vmem:[%s8619_s1 + $0x150] sm:$0xff]  }
 0x28f   :  { %4637 = vmatpush1.bf16.msra.mxu1 %v6564_v1  ;;  %4018 = vmatprep.subr.bf16.mxu0 %v6627_v0  ;;  %v6615_v1 = vld [vmem:[%s8619_s1 + $0x158] sm:$0xff]  }
 0x290   :  { %4638 = vmatprep.subr.bf16.mxu1 %v6627_v0 }
 0x292   :  { %4019 = vmatpush1.bf16.msra.mxu0 %v6565_v2  ;;  %v6616_v2 = vld [vmem:[%s8619_s1 + $0x158] sm:$0xff]  }
 0x293   :  { %4639 = vmatpush1.bf16.msra.mxu1 %v6566_v3  ;;  %4020 = vmatprep.subr.bf16.mxu0 %v6627_v0  ;;  %v6617_v3 = vld [vmem:[%s8619_s1 + $0x160] sm:$0xff]  }
 0x294   :  { %4640 = vmatprep.subr.bf16.mxu1 %v6627_v0 }
 0x296   :  { %4021 = vmatpush1.bf16.msra.mxu0 %v6567_v4  ;;  %v6618_v4 = vld [vmem:[%s8619_s1 + $0x160] sm:$0xff]  }
 0x297   :  { %4641 = vmatpush1.bf16.msra.mxu1 %v6568_v5  ;;  %4022 = vmatprep.subr.bf16.mxu0 %v6627_v0  ;;  %v6619_v5 = vld [vmem:[%s8619_s1 + $0x168] sm:$0xff]  }
 0x298   :  { %4642 = vmatprep.subr.bf16.mxu1 %v6627_v0 }
 0x29a   :  { %4023 = vmatpush1.bf16.msra.mxu0 %v6569_v6  ;;  %v6620_v6 = vld [vmem:[%s8619_s1 + $0x168] sm:$0xff]  }
 0x29b   :  { %4643 = vmatpush1.bf16.msra.mxu1 %v6570_v7  ;;  %4024 = vmatprep.subr.bf16.mxu0 %v6627_v0  ;;  %v4217_v7 = vshll.u32 %v8432_v48, 16 }
 0x29c   :  { %4644 = vmatprep.subr.bf16.mxu1 %v6627_v0 }
 0x29d   :  { %v4219_v18 = vrot.slane %v4217_v7, 1 }
 0x29e   :  { %4025 = vmatpush1.bf16.msra.mxu0 %v6571_v9  ;;  %v6621_v9 = vld [vmem:[%s8619_s1 + $0x170] sm:$0xff]  }
 0x29f   :  { %4645 = vmatpush1.bf16.msra.mxu1 %v6572_v11  ;;  %4149 = vmatprep.subr.bf16.mxu0 %v6627_v0  ;;  %v4837_v11 = vshll.u32 %v8440_v52, 16 }
 0x2a0   :  { %4769 = vmatprep.subr.bf16.mxu1 %v6627_v0 }
 0x2a1   :  { %4035 = vmatmul.mubr.bf16.vlgmr.msra.gmra.mrb[12].mxu0 %v8167_v34  ;;  %v6585_v34 = vld [vmem:[%s8619_s1 + $0xf0] sm:$0xff]  }
 0x2a2   :  { %4150 = vmatpush1.bf16.msra.mxu0 %v6573_v16  ;;  %4655 = vmatmul.mubr.bf16.vlgmr.msra.gmra.mrb[12].mxu1 %v8175_v39  ;;  %v6590_v39 = vld [vmem:[%s8619_s1 + $0x100] sm:$0xff]   ;;  %v4215_v16 = vshrl.u32 %v8432_v48, 16 }
 0x2a3   :  { %4770 = vmatpush1.bf16.msra.mxu1 %v6574_v20  ;;  %4151 = vmatprep.subr.bf16.mxu0 %v6627_v0  ;;  %v6623_v20 = vld [vmem:[%s8619_s1 + $0x178] sm:$0xff]  }
 0x2a4   :  { %4771 = vmatprep.subr.bf16.mxu1 %v6627_v0  ;;  %5928 = vmatprep.mubr.msk.bf16.mxu0 %vm160_vm0, %v8327_v22  ;;  %v4835_v22 = vshrl.u32 %v8440_v52, 16 }
 0x2a5   :  { %6059 = vmatprep.mubr.msk.bf16.mxu1 %vm160_vm0, %v8332_v23  ;;  %v4839_v23 = vrot.slane %v4837_v11, 1 }
 0x2a6   :  { %4152 = vmatpush1.bf16.msra.mxu0 %v6575_v24  ;;  %v6624_v24 = vld [vmem:[%s8619_s1 + $0x178] sm:$0xff]  }
 0x2a7   :  { %4772 = vmatpush1.bf16.msra.mxu1 %v6576_v25  ;;  %4153 = vmatprep.subr.bf16.mxu0 %v6627_v0  ;;  %v4220_v25 = vor.u32 %v4219_v18, %v4215_v16 }
 0x2a8   :  { %4773 = vmatprep.subr.bf16.mxu1 %v6627_v0 }
 0x2aa   :  { %4154 = vmatpush1.bf16.msra.mxu0 %v6577_v26  ;;  %v4840_v26 = vor.u32 %v4839_v23, %v4835_v22 }
 0x2ab   :  { %4774 = vmatpush1.bf16.msra.mxu1 %v6578_v27  ;;  %4155 = vmatprep.subr.bf16.mxu0 %v6627_v0 }
 0x2ac   :  { %4775 = vmatprep.subr.bf16.mxu1 %v6627_v0 }
 0x2ae   :  { %4156 = vmatpush1.bf16.msra.mxu0 %v6579_v28 }
 0x2af   :  { %4776 = vmatpush1.bf16.msra.mxu1 %v6580_v29  ;;  %4157 = vmatprep.subr.bf16.mxu0 %v6627_v0 }
 0x2b0   :  { %4777 = vmatprep.subr.bf16.mxu1 %v6627_v0 }
 0x2b2   :  { %4158 = vmatpush1.bf16.msra.mxu0 %v6581_v30 }
 0x2b3   :  { %4778 = vmatpush1.bf16.msra.mxu1 %v6582_v31  ;;  %4159 = vmatprep.subr.bf16.mxu0 %v6627_v0 }
 0x2b4   :  { %4779 = vmatprep.subr.bf16.mxu1 %v6627_v0 }
 0x2b6   :  { %4160 = vmatpush1.bf16.msra.mxu0 %v6583_v32 }
 0x2b7   :  { %4780 = vmatpush1.bf16.msra.mxu1 %v6584_v33  ;;  %4161 = vmatprep.subr.bf16.mxu0 %v6627_v0 }
 0x2b8   :  { %4781 = vmatprep.subr.bf16.mxu1 %v6627_v0 }
 0x2ba   :  { %4162 = vmatpush1.bf16.msra.mxu0 %v6585_v34 }
 0x2bb   :  { %4782 = vmatpush1.bf16.msra.mxu1 %v6586_v35  ;;  %4163 = vmatprep.subr.bf16.mxu0 %v6627_v0 }
 0x2bc   :  { %4783 = vmatprep.subr.bf16.mxu1 %v6627_v0 }
 0x2be   :  { %4164 = vmatpush1.bf16.msra.mxu0 %v6587_v36 }
 0x2bf   :  { %4784 = vmatpush1.bf16.msra.mxu1 %v6588_v37  ;;  %4165 = vmatprep.subr.bf16.mxu0 %v6627_v0 }
 0x2c0   :  { %4785 = vmatprep.subr.bf16.mxu1 %v6627_v0 }
 0x2c2   :  { %4166 = vmatpush1.bf16.msra.mxu0 %v6589_v38 }
 0x2c3   :  { %4786 = vmatpush1.bf16.msra.mxu1 %v6590_v39  ;;  %4167 = vmatprep.subr.bf16.mxu0 %v6627_v0 }
 0x2c4   :  { %4787 = vmatprep.subr.bf16.mxu1 %v6627_v0 }
 0x2c6   :  { %4168 = vmatpush1.bf16.msra.mxu0 %v6591_v8 }
 0x2c7   :  { %4788 = vmatpush1.bf16.msra.mxu1 %v6592_v40  ;;  %4169 = vmatprep.subr.bf16.mxu0 %v6627_v0 }
 0x2c8   :  { %4789 = vmatprep.subr.bf16.mxu1 %v6627_v0 }
 0x2ca   :  { %4170 = vmatpush1.bf16.msra.mxu0 %v6593_v15 }
 0x2cb   :  { %4790 = vmatpush1.bf16.msra.mxu1 %v6594_v43  ;;  %4171 = vmatprep.subr.bf16.mxu0 %v6627_v0 }
 0x2cc   :  { %4791 = vmatprep.subr.bf16.mxu1 %v6627_v0 }
 0x2ce   :  { %4172 = vmatpush1.bf16.msra.mxu0 %v6595_v42 }
 0x2cf   :  { %4792 = vmatpush1.bf16.msra.mxu1 %v6596_v45  ;;  %4303 = vmatprep.subr.bf16.mxu0 %v6627_v0 }
 0x2d0   :  { %4923 = vmatprep.subr.bf16.mxu1 %v6627_v0 }
 0x2d1   :  { %4182 = vmatmul.mubr.bf16.vlgmr.msra.gmra.mrb[12].mxu0 %v8432_v48 }
 0x2d2   :  { %4304 = vmatpush1.bf16.msra.mxu0 %v6600_v51  ;;  %4802 = vmatmul.mubr.bf16.vlgmr.msra.gmra.mrb[12].mxu1 %v8440_v52 }
 0x2d3   :  { %4924 = vmatpush1.bf16.msra.mxu1 %v6602_v53  ;;  %4305 = vmatprep.subr.bf16.mxu0 %v6627_v0 }
 0x2d4   :  { %4925 = vmatprep.subr.bf16.mxu1 %v6627_v0  ;;  %5965 = vmatprep.mubr.msk.bf16.mxu0 %vm160_vm0, %v4226_v54 }
 0x2d5   :  { %6096 = vmatprep.mubr.msk.bf16.mxu1 %vm160_vm0, %v4846_v55 }
 0x2d6   :  { %4306 = vmatpush1.bf16.msra.mxu0 %v6603_v56 }
 0x2d7   :  { %4926 = vmatpush1.bf16.msra.mxu1 %v6604_v57  ;;  %4307 = vmatprep.subr.bf16.mxu0 %v6627_v0 }
 0x2d8   :  { %4927 = vmatprep.subr.bf16.mxu1 %v6627_v0 }
 0x2da   :  { %4308 = vmatpush1.bf16.msra.mxu0 %v6605_v58 }
 0x2db   :  { %4928 = vmatpush1.bf16.msra.mxu1 %v6606_v12  ;;  %4309 = vmatprep.subr.bf16.mxu0 %v6627_v0 }
 0x2dc   :  { %4929 = vmatprep.subr.bf16.mxu1 %v6627_v0 }
 0x2de   :  { %4310 = vmatpush1.bf16.msra.mxu0 %v6607_v14 }
 0x2df   :  { %4930 = vmatpush1.bf16.msra.mxu1 %v6608_v59  ;;  %4311 = vmatprep.subr.bf16.mxu0 %v6627_v0 }
 0x2e0   :  { %4931 = vmatprep.subr.bf16.mxu1 %v6627_v0 }
 0x2e2   :  { %4312 = vmatpush1.bf16.msra.mxu0 %v6609_v19 }
 0x2e3   :  { %4932 = vmatpush1.bf16.msra.mxu1 %v6610_v21  ;;  %4313 = vmatprep.subr.bf16.mxu0 %v6627_v0 }
 0x2e4   :  { %4933 = vmatprep.subr.bf16.mxu1 %v6627_v0 }
 0x2e6   :  { %4314 = vmatpush1.bf16.msra.mxu0 %v6611_v60 }
 0x2e7   :  { %4934 = vmatpush1.bf16.msra.mxu1 %v6612_v61  ;;  %4315 = vmatprep.subr.bf16.mxu0 %v6627_v0 }
 0x2e8   :  { %4935 = vmatprep.subr.bf16.mxu1 %v6627_v0 }
 0x2ea   :  { %4316 = vmatpush1.bf16.msra.mxu0 %v6613_v62 }
 0x2eb   :  { %4936 = vmatpush1.bf16.msra.mxu1 %v6614_v63  ;;  %4317 = vmatprep.subr.bf16.mxu0 %v6627_v0 }
 0x2ec   :  { %4937 = vmatprep.subr.bf16.mxu1 %v6627_v0 }
 0x2ee   :  { %4318 = vmatpush1.bf16.msra.mxu0 %v6615_v1 }
 0x2ef   :  { %4938 = vmatpush1.bf16.msra.mxu1 %v6616_v2  ;;  %4319 = vmatprep.subr.bf16.mxu0 %v6627_v0 }
 0x2f0   :  { %4939 = vmatprep.subr.bf16.mxu1 %v6627_v0 }
 0x2f2   :  { %4320 = vmatpush1.bf16.msra.mxu0 %v6617_v3 }
 0x2f3   :  { %4940 = vmatpush1.bf16.msra.mxu1 %v6618_v4  ;;  %4321 = vmatprep.subr.bf16.mxu0 %v6627_v0 }
 0x2f4   :  { %4941 = vmatprep.subr.bf16.mxu1 %v6627_v0 }
 0x2f6   :  { %4322 = vmatpush1.bf16.msra.mxu0 %v6619_v5 }
 0x2f7   :  { %4942 = vmatpush1.bf16.msra.mxu1 %v6620_v6  ;;  %4323 = vmatprep.subr.bf16.mxu0 %v6627_v0 }
 0x2f8   :  { %4943 = vmatprep.subr.bf16.mxu1 %v6627_v0 }
 0x2fa   :  { %4324 = vmatpush1.bf16.msra.mxu0 %v6621_v9 }
 0x2fb   :  { %4944 = vmatpush1.bf16.msra.mxu1 %v6622_v13  ;;  %4325 = vmatprep.subr.bf16.mxu0 %v6627_v0 }
 0x2fc   :  { %4945 = vmatprep.subr.bf16.mxu1 %v6627_v0 }
 0x2fe   :  { %4326 = vmatpush1.bf16.msra.mxu0 %v6623_v20 }
 0x2ff   :  { %4946 = vmatpush1.bf16.msra.mxu1 %v6624_v24 }
 0x301   :  { %4336 = vmatmul.mubr.bf16.vlgmr.msra.gmra.mrb[12].mxu0 %v4220_v25 }
 0x302   :  { %4956 = vmatmul.mubr.bf16.vlgmr.msra.gmra.mrb[12].mxu1 %v4840_v26 }
 0x314   :  { %v3097_v27 = vpop.f32.mrb[8].mxu0 }
 0x315   :  { %5704 = vst [vmem:[%s8621_s4 + $0x10] sm:$0xf] %v3097_v27  ;;  %v3106_v28 = vsel %vm624_vm1, %v3097_v27, 0.0  ;;  %v3114_v29 = vmul.f32 %v3097_v27, %v3097_v27  ;;  %v3717_v30 = vpop.f32.mrb[8].mxu1  ;;  %v3099_v31 = vpop.f32.mrb[9].mxu0 }
 0x316   :  { %v3107_v32 = vrot.slane %v3106_v28, 4  ;;  %5835 = vst [vmem:[%s8621_s4 + $0x14] sm:$0xf] %v3717_v30  ;;  %v3726_v0 = vsel %vm624_vm1, %v3717_v30, 0.0  ;;  %v3734_v33 = vmul.f32 %v3717_v30, %v3717_v30  ;;  %v3719_v34 = vpop.f32.mrb[9].mxu1  ;;  %v3100_v35 = vpop.f32.mrb[10].mxu0 }
 0x317   :  { %v3115_v36 = vsel %vm624_vm1, %v3114_v29, 0.0  ;;  %v3727_v37 = vrot.slane %v3726_v0, 4  ;;  %v3720_v38 = vpop.f32.mrb[10].mxu1  ;;  %v3101_v39 = vpop.f32.mrb[11].mxu0 }
 0x318   :  { %v3108_v8 = vadd.f32 %v3107_v32, %v3106_v28  ;;  %v3116_v40 = vrot.slane %v3115_v36, 4  ;;  %v3735_v15 = vsel %vm624_vm1, %v3734_v33, 0.0  ;;  %v3721_v43 = vpop.f32.mrb[11].mxu1 }
 0x319   :  { %v3728_v10 = vadd.f32 %v3727_v37, %v3726_v0  ;;  %v3736_v44 = vrot.slane %v3735_v15, 4 }
 0x31a   :  { %v3109_v42 = vrot.slane %v3108_v8, 2  ;;  %v3117_v45 = vadd.f32 %v3116_v40, %v3115_v36 }
 0x31b   :  { %v3729_v46 = vrot.slane %v3728_v10, 2  ;;  %v3737_v47 = vadd.f32 %v3736_v44, %v3735_v15 }
 0x31c   :  { %v3110_v48 = vadd.f32 %v3109_v42, %v3108_v8  ;;  %v3118_v49 = vrot.slane %v3117_v45, 2 }
 0x31d   :  { %v3730_v50 = vadd.f32 %v3729_v46, %v3728_v10  ;;  %v3738_v51 = vrot.slane %v3737_v47, 2 }
 0x31e   :  { %v3111_v52 = vrot.slane %v3110_v48, 1  ;;  %v3119_v53 = vadd.f32 %v3118_v49, %v3117_v45 }
 0x31f   :  { %v3731_v54 = vrot.slane %v3730_v50, 1  ;;  %v3739_v55 = vadd.f32 %v3738_v51, %v3737_v47 }
 0x320   :  { %v3112_v56 = vadd.f32 %v3111_v52, %v3110_v48  ;;  %v3120_v57 = vrot.slane %v3119_v53, 1  ;;  %v4989_v52 = vld [vmem:[%s8622_s2] sm:$0x1] }
 0x321   :  { %v3740_v58 = vrot.slane %v3739_v55, 1  ;;  %v3732_v59 = vadd.f32 %v3731_v54, %v3730_v50  ;;  %v4998_v50 = vlaneseq }
 0x322   :  { %v3113_v12 = vadd.f32 %v3112_v56, %v8182_v41  ;;  %v3121_v14 = vadd.f32 %v3120_v57, %v3119_v53  ;;  %v4993_v56 = vld [vmem:[%s8623_s3] sm:$0x1] }
 0x323   :  { %v3741_v60 = vadd.f32 %v3740_v58, %v3739_v55  ;;  %v4999_v51 = vshrl.u32 %v4998_v50, 7 }
 0x324   :  { %v3122_v19 = vadd.f32 %v3121_v14, %v8186_v17  ;;  %v3733_v21 = vadd.f32 %v3732_v59, %v3113_v12  ;;  %v4996_v12 = vld [vmem:[%s8621_s4] sm:$0xf]  ;;  %v6098_v14 = vld [vmem:[%s8621_s4 + $0x4] sm:$0xf] }
 0x325   :  { %v5000_v53 = vsub.s32 0, %v4999_v51 }
 0x326   :  { %v3742_v61 = vadd.f32 %v3741_v60, %v3122_v19  ;;  %v6100_v19 = vld [vmem:[%s8621_s4 + $0x8] sm:$0xf]  ;;  %v6104_v60 = vld [vmem:[%s8621_s4 + $0x10] sm:$0xf] }
 0x3d4   :  { %v4337_v62 = vpop.f32.mrb[12].mxu0 }
 0x3d5   :  { %5966 = vst [vmem:[%s8621_s4 + $0x18] sm:$0xf] %v4337_v62  ;;  %v4346_v63 = vsel %vm624_vm1, %v4337_v62, 0.0  ;;  %v4354_v1 = vmul.f32 %v4337_v62, %v4337_v62  ;;  %v4957_v2 = vpop.f32.mrb[12].mxu1  ;;  %v4339_v3 = vpop.f32.mrb[13].mxu0 }
 0x3d6   :  { %v4347_v4 = vrot.slane %v4346_v63, 4  ;;  %6097 = vst [vmem:[%s8621_s4 + $0x1c] sm:$0xf] %v4957_v2  ;;  %v4966_v41 = vsel %vm624_vm1, %v4957_v2, 0.0  ;;  %v4974_v17 = vmul.f32 %v4957_v2, %v4957_v2  ;;  %v4959_v5 = vpop.f32.mrb[13].mxu1  ;;  %v4340_v6 = vpop.f32.mrb[14].mxu0 }
 0x3d7   :  { %v4355_v7 = vsel %vm624_vm1, %v4354_v1, 0.0  ;;  %v4967_v9 = vrot.slane %v4966_v41, 4  ;;  %v4960_v11 = vpop.f32.mrb[14].mxu1  ;;  %v4341_v13 = vpop.f32.mrb[15].mxu0  ;;  %v6106_v62 = vld [vmem:[%s8621_s4 + $0x14] sm:$0xf] }
 0x3d8   :  { %v4348_v16 = vadd.f32 %v4347_v4, %v4346_v63  ;;  %v4356_v18 = vrot.slane %v4355_v7, 4  ;;  %v4975_v20 = vsel %vm624_vm1, %v4974_v17, 0.0  ;;  %v4961_v22 = vpop.f32.mrb[15].mxu1 }
 0x3d9   :  { %v4968_v23 = vadd.f32 %v4967_v9, %v4966_v41  ;;  %v4976_v24 = vrot.slane %v4975_v20, 4 }
 0x3da   :  { %v4349_v25 = vrot.slane %v4348_v16, 2  ;;  %v4357_v26 = vadd.f32 %v4356_v18, %v4355_v7 }
 0x3db   :  { %v4969_v27 = vrot.slane %v4968_v23, 2  ;;  %v4977_v28 = vadd.f32 %v4976_v24, %v4975_v20 }
 0x3dc   :  { %v4350_v29 = vadd.f32 %v4349_v25, %v4348_v16  ;;  %v4358_v30 = vrot.slane %v4357_v26, 2  ;;  %v6108_v63 = vld [vmem:[%s8621_s4 + $0x18] sm:$0xf] }
 0x3dd   :  { %v4970_v31 = vadd.f32 %v4969_v27, %v4968_v23  ;;  %v4978_v32 = vrot.slane %v4977_v28, 2  ;;  %v6110_v41 = vld [vmem:[%s8621_s4 + $0x1c] sm:$0xf] }
 0x3de   :  { %v4351_v0 = vrot.slane %v4350_v29, 1  ;;  %v4359_v33 = vadd.f32 %v4358_v30, %v4357_v26 }
 0x3df   :  { %v4971_v34 = vrot.slane %v4970_v31, 1  ;;  %v4979_v35 = vadd.f32 %v4978_v32, %v4977_v28 }
 0x3e0   :  { %v4352_v36 = vadd.f32 %v4351_v0, %v4350_v29  ;;  %v4360_v37 = vrot.slane %v4359_v33, 1 }
 0x3e1   :  { %v4980_v38 = vrot.slane %v4979_v35, 1  ;;  %v4972_v40 = vadd.f32 %v4971_v34, %v4970_v31 }
 0x3e2   :  { %v4353_v39 = vadd.f32 %v4352_v36, %v3733_v21  ;;  %v4361_v8 = vadd.f32 %v4360_v37, %v4359_v33  ;;  %v6102_v21 = vld [vmem:[%s8621_s4 + $0xc] sm:$0xf] }
 0x3e3   :  { %v4981_v10 = vadd.f32 %v4980_v38, %v4979_v35 }
 0x3e4   :  { %v4362_v15 = vadd.f32 %v4361_v8, %v3742_v61  ;;  %v4973_v43 = vadd.f32 %v4972_v40, %v4353_v39 }
 0x3e6   :  { %v4982_v44 = vadd.f32 %v4981_v10, %v4362_v15  ;;  %v4984_v42 = vmul.f32 0.03125, %v4973_v43 }
 0x3e8   :  { %v4985_v45 = vmul.f32 0.03125, %v4982_v44  ;;  %v4986_v46 = vmul.f32 %v4984_v42, %v4984_v42 }
 0x3ea   :  { %v4987_v47 = vsub.f32 %v4985_v45, %v4986_v46 }
 0x3ec   :  { %v4988_v48 = vmax.f32 %v4987_v47, 0.0 }
 0x3ee   :  { %v4990_v49 = vadd.f32 1e-05, %v4988_v48 }
 0x3f0   :  { %6625 = vrsqrt.f32 %v4990_v49 }
 0x3fa   :  { %v6626_v54 = vpop.eup %6625 }
 0x3fb   :  { %v4992_v55 = vmul.f32 %v6626_v54, %v4989_v52 }
 0x3fd   :  { %v4994_v57 = vmul.f32 %v4992_v55, %v4984_v42  ;;  %v5001_v58 = vrot.slane %v4992_v55, %v5000_v53 }
 0x3ff   :  { %v4995_v59 = vsub.f32 %v4993_v56, %v4994_v57  ;;  %v5003_v61 = vmul.f32 %v5001_v58, %v4996_v12  ;;  %v5014_v2 = vmul.f32 %v6098_v14, %v5001_v58  ;;  %v5019_v3 = vmul.f32 %v6100_v19, %v5001_v58 }
 0x400   :  { %v5024_v4 = vmul.f32 %v6102_v21, %v5001_v58  ;;  %v5029_v17 = vmul.f32 %v6104_v60, %v5001_v58  ;;  %v5034_v5 = vmul.f32 %v6106_v62, %v5001_v58  ;;  %v5039_v6 = vmul.f32 %v6108_v63, %v5001_v58 }
 0x401   :  { %v5008_v1 = vrot.slane %v4995_v59, %v5000_v53  ;;  %v5044_v7 = vmul.f32 %v6110_v41, %v5001_v58 }
 0x403   :  { %v5010_v9 = vadd.f32 %v5008_v1, %v5003_v61  ;;  %v5015_v11 = vadd.f32 %v5014_v2, %v5008_v1  ;;  %v5020_v13 = vadd.f32 %v5019_v3, %v5008_v1  ;;  %v5025_v16 = vadd.f32 %v5024_v4, %v5008_v1 }
 0x404   :  { %v5030_v18 = vadd.f32 %v5029_v17, %v5008_v1  ;;  %v5035_v20 = vadd.f32 %v5034_v5, %v5008_v1  ;;  %v5040_v22 = vadd.f32 %v5039_v6, %v5008_v1  ;;  %v5045_v23 = vadd.f32 %v5044_v7, %v5008_v1 }
 0x405   :  { %v5011_v24 = vmax.f32 %v5010_v9, 0.0  ;;  %v5016_v25 = vmax.f32 %v5015_v11, 0.0  ;;  %v5021_v26 = vmax.f32 %v5020_v13, 0.0  ;;  %v5026_v27 = vmax.f32 %v5025_v16, 0.0 }
 0x406   :  { %v5031_v28 = vmax.f32 %v5030_v18, 0.0  ;;  %v5036_v29 = vmax.f32 %v5035_v20, 0.0  ;;  %v5041_v30 = vmax.f32 %v5040_v22, 0.0  ;;  %v5046_v31 = vmax.f32 %v5045_v23, 0.0 }
 0x407   :  { %5012 = vst [vmem:[%s8621_s4] sm:$0xf] %v5011_v24  ;;  %6099 = vst [vmem:[%s8621_s4 + $0x4] sm:$0xf] %v5016_v25 }
 0x408   :  { %6101 = vst [vmem:[%s8621_s4 + $0x8] sm:$0xf] %v5021_v26  ;;  %6103 = vst [vmem:[%s8621_s4 + $0xc] sm:$0xf] %v5026_v27 }
 0x409   :  { %6105 = vst [vmem:[%s8621_s4 + $0x10] sm:$0xf] %v5031_v28  ;;  %6107 = vst [vmem:[%s8621_s4 + $0x14] sm:$0xf] %v5036_v29 }
 0x40a   :  { %6109 = vst [vmem:[%s8621_s4 + $0x18] sm:$0xf] %v5041_v30  ;;  %6111 = vst [vmem:[%s8621_s4 + $0x1c] sm:$0xf] %v5046_v31 }

// kernel: conv_stream_forward.5
= control target key start
LH: loop header
LB: loop body
LE: loop exit
PB: predicated region body
PF: predicated region fallthrough
CT: control target
= control target key end

     0   :  { %v8696_v7 = vmov 1983009808   ;;  %v121_v9 = vlaneseq  ;;  %vm1608_vm0 = vcmask 1041408   ;;  %s10188_s1 = inlined_call_operand.vmem [shape: bf16[4,384,256], index: 1, kind: input, shape index: {}]   ;;  %s10189_s0 = inlined_call_operand.vmem [shape: bf16[2,3,3,384], index: 0, kind: input, shape index: {}]   ;;  %s10190_s4 = inlined_call_operand.vmem [shape: f32[2,2,2,256], index: 4, kind: output, shape index: {}]   ;;  %s10191_s2 = inlined_call_operand.vmem [shape: f32[1,256], index: 2, kind: input, shape index: {}]   ;;  %s10192_s3 = inlined_call_operand.vmem [shape: f32[1,256], index: 3, kind: input, shape index: {}]  }
   0x1   :  { %v8108_v0 = vld [vmem:[%s10188_s1 + $0x184] ss:$8 sps:$4 sm:$0xff]   ;;  %v8110_v1 = vld [vmem:[%s10188_s1 + $0x180] ss:$8 sps:$4 sm:$0xff]   ;;  %v8111_v2 = vld [vmem:[%s10188_s1 + $0x194] ss:$8 sps:$4 sm:$0xff]   ;;  %v119_v8 = vunpack.c.l.s4 %v8696_v7 }
   0x2   :  { %397 = vmatprep.subr.bf16.mxu0 %v8108_v0  ;;  %2021 = vmatprep.subr.bf16.mxu1 %v8108_v0  ;;  %v8113_v3 = vld [vmem:[%s10188_s1 + $0x190] ss:$8 sps:$4 sm:$0xff]   ;;  %v8114_v4 = vld [vmem:[%s10188_s1 + $0x1a4] ss:$8 sps:$4 sm:$0xff]   ;;  %v8116_v5 = vld [vmem:[%s10188_s1 + $0x1a0] ss:$8 sps:$4 sm:$0xff]  }
   0x3   :  { %398 = vmatpush1.bf16.msra.mxu0 %v8110_v1  ;;  %2022 = vmatpush1.bf16.msra.mxu1 %v8110_v1  ;;  %v8117_v6 = vld [vmem:[%s10188_s1 + $0x1b4] ss:$8 sps:$4 sm:$0xff]   ;;  %v8119_v10 = vld [vmem:[%s10188_s1 + $0x1b0] ss:$8 sps:$4 sm:$0xff]   ;;  %v8120_v11 = vld [vmem:[%s10188_s1 + $0x1c4] ss:$8 sps:$4 sm:$0xff]   ;;  %v120_v12 = vunpack.c.0.s8 %v119_v8 }
   0x4   :  { %399 = vmatprep.subr.bf16.mxu0 %v8111_v2  ;;  %2023 = vmatprep.subr.bf16.mxu1 %v8111_v2  ;;  %v8751_v13 = vshrl.u32 %v121_v9, 7  ;;  %v8122_v14 = vld [vmem:[%s10188_s1 + $0x1c0] ss:$8 sps:$4 sm:$0xff]   ;;  %v8123_v15 = vld [vmem:[%s10188_s1 + $0x1d4] ss:$8 sps:$4 sm:$0xff]   ;;  %v8697_v1 = vmov 0  }
   0x5   :  { %v8125_v17 = vld [vmem:[%s10188_s1 + $0x1d0] ss:$8 sps:$4 sm:$0xff]   ;;  %v8126_v18 = vld [vmem:[%s10188_s1 + $0x1e4] ss:$8 sps:$4 sm:$0xff]   ;;  %v8128_v20 = vld [vmem:[%s10188_s1 + $0x1e0] ss:$8 sps:$4 sm:$0xff]  }
   0x6   :  { %v8760_v16 = vsub.s32 %v120_v12, %v8751_v13  ;;  %v8771_v19 = vld [vmem:[%s10189_s0] sm:$0x3f]  ;;  %v8783_v22 = vld [vmem:[%s10189_s0 + $0x6] sm:$0x3f]  ;;  %v8129_v23 = vld [vmem:[%s10188_s1 + $0x1f4] ss:$8 sps:$4 sm:$0xff]  }
   0x7   :  { %400 = vmatpush1.bf16.msra.mxu0 %v8113_v3  ;;  %2024 = vmatpush1.bf16.msra.mxu1 %v8113_v3  ;;  %v8131_v29 = vld [vmem:[%s10188_s1 + $0x1f0] ss:$8 sps:$4 sm:$0xff]   ;;  %v8132_v30 = vld [vmem:[%s10188_s1 + $0x204] ss:$8 sps:$4 sm:$0xff]   ;;  %v8134_v36 = vld [vmem:[%s10188_s1 + $0x200] ss:$8 sps:$4 sm:$0xff]   ;;  %v1741_v7 = vcombine.high %v8783_v22, %v8783_v22 }
   0x8   :  { %401 = vmatprep.subr.bf16.mxu0 %v8114_v4  ;;  %2025 = vmatprep.subr.bf16.mxu1 %v8114_v4  ;;  %v8778_v21 = vrot.slane %v8771_v19, %v8760_v16  ;;  %v8794_v25 = vrot.slane %v8783_v22, %v8760_v16  ;;  %v8135_v37 = vld [vmem:[%s10188_s1 + $0x214] ss:$8 sps:$4 sm:$0xff]   ;;  %v8137_v39 = vld [vmem:[%s10188_s1 + $0x210] ss:$8 sps:$4 sm:$0xff]   ;;  %v8138_v40 = vld [vmem:[%s10188_s1 + $0x224] ss:$8 sps:$4 sm:$0xff]  }
   0x9   :  { %v8140_v41 = vld [vmem:[%s10188_s1 + $0x220] ss:$8 sps:$4 sm:$0xff]   ;;  %v8141_v42 = vld [vmem:[%s10188_s1 + $0x234] ss:$8 sps:$4 sm:$0xff]   ;;  %v8143_v43 = vld [vmem:[%s10188_s1 + $0x230] ss:$8 sps:$4 sm:$0xff]  }
   0xa   :  { %v8790_v24 = vcombine.high %v8778_v21, %v8778_v21  ;;  %v8800_v28 = vcombine.high %v8794_v25, %v8794_v25  ;;  %v8144_v44 = vld [vmem:[%s10188_s1 + $0x244] ss:$8 sps:$4 sm:$0xff]   ;;  %v8146_v45 = vld [vmem:[%s10188_s1 + $0x240] ss:$8 sps:$4 sm:$0xff]   ;;  %v8147_v46 = vld [vmem:[%s10188_s1 + $0x254] ss:$8 sps:$4 sm:$0xff]  }
   0xb   :  { %402 = vmatpush1.bf16.msra.mxu0 %v8116_v5  ;;  %2026 = vmatpush1.bf16.msra.mxu1 %v8116_v5  ;;  %v8149_v47 = vld [vmem:[%s10188_s1 + $0x250] ss:$8 sps:$4 sm:$0xff]   ;;  %v8150_v48 = vld [vmem:[%s10188_s1 + $0x264] ss:$8 sps:$4 sm:$0xff]   ;;  %v136_v49 = vshll.u32 %v8778_v21, 16  ;;  %v1760_v50 = vshll.u32 %v8794_v25, 16 }
   0xc   :  { %403 = vmatprep.subr.bf16.mxu0 %v8117_v6  ;;  %2027 = vmatprep.subr.bf16.mxu1 %v8117_v6  ;;  %v141_v26 = vshrl.u32 %v8790_v24, 16  ;;  %v143_v27 = vshll.u32 %v8790_v24, 16  ;;  %v1765_v32 = vshrl.u32 %v8800_v28, 16  ;;  %v1767_v33 = vshll.u32 %v8800_v28, 16  ;;  %v8152_v51 = vld [vmem:[%s10188_s1 + $0x260] ss:$8 sps:$4 sm:$0xff]  }
   0xd   :  { %v8153_v52 = vld [vmem:[%s10188_s1 + $0x274] ss:$8 sps:$4 sm:$0xff]   ;;  %v134_v53 = vshrl.u32 %v8778_v21, 16  ;;  %v138_v54 = vrot.slane %v136_v49, 1  ;;  %v1758_v55 = vshrl.u32 %v8794_v25, 16  ;;  %v1762_v56 = vrot.slane %v1760_v50, 1 }
   0xe   :  { %v145_v31 = vrot.slane %v143_v27, 1  ;;  %v1769_v35 = vrot.slane %v1767_v33, 1  ;;  %v8155_v57 = vld [vmem:[%s10188_s1 + $0x270] ss:$8 sps:$4 sm:$0xff]   ;;  %v8158_v58 = vld [vmem:[%s10188_s1 + $0x284] ss:$8 sps:$4 sm:$0xff]   ;;  %v117_v6 = vcombine.high %v8771_v19, %v8771_v19 }
   0xf   :  { %404 = vmatpush1.bf16.msra.mxu0 %v8119_v10  ;;  %2028 = vmatpush1.bf16.msra.mxu1 %v8119_v10  ;;  %v139_v59 = vor.u32 %v138_v54, %v134_v53  ;;  %v1763_v60 = vor.u32 %v1762_v56, %v1758_v55  ;;  %v8156_v61 = vld [vmem:[%s10188_s1 + $0x280] ss:$8 sps:$4 sm:$0xff]   ;;  %v8161_v62 = vld [vmem:[%s10188_s1 + $0x294] ss:$8 sps:$4 sm:$0xff]   ;;  %v8159_v63 = vld [vmem:[%s10188_s1 + $0x290] ss:$8 sps:$4 sm:$0xff]  }
  0x10   :  { %405 = vmatprep.subr.bf16.mxu0 %v8120_v11  ;;  %2029 = vmatprep.subr.bf16.mxu1 %v8120_v11  ;;  %v146_v34 = vor.u32 %v145_v31, %v141_v26  ;;  %v1770_v38 = vor.u32 %v1769_v35, %v1765_v32  ;;  %v8164_v0 = vld [vmem:[%s10188_s1 + $0x2a4] ss:$8 sps:$4 sm:$0xff]   ;;  %v8162_v2 = vld [vmem:[%s10188_s1 + $0x2a0] ss:$8 sps:$4 sm:$0xff]   ;;  %v8167_v3 = vld [vmem:[%s10188_s1 + $0x2b4] ss:$8 sps:$4 sm:$0xff]   ;;  %v8899_v10 = vrot.slane %v117_v6, %v8760_v16 }
  0x11   :  { %v8165_v4 = vld [vmem:[%s10188_s1 + $0x2b0] ss:$8 sps:$4 sm:$0xff]   ;;  %v8170_v5 = vld [vmem:[%s10188_s1 + $0x2c4] ss:$8 sps:$4 sm:$0xff]   ;;  %v8168_v8 = vld [vmem:[%s10188_s1 + $0x2c0] ss:$8 sps:$4 sm:$0xff]   ;;  %v8902_v11 = vrot.slane %v1741_v7, %v8760_v16 }
  0x12   :  { %429 = vmatprep.mubr.bf16.mxu0 %v146_v34  ;;  %2053 = vmatprep.mubr.bf16.mxu1 %v1770_v38  ;;  %v8173_v9 = vld [vmem:[%s10188_s1 + $0x2d4] ss:$8 sps:$4 sm:$0xff]   ;;  %v8171_v12 = vld [vmem:[%s10188_s1 + $0x2d0] ss:$8 sps:$4 sm:$0xff]   ;;  %v8180_v32 = vld [vmem:[%s10188_s1] ss:$8 sps:$4 sm:$0xff]  }
  0x13   :  { %406 = vmatpush1.bf16.msra.mxu0 %v8122_v14  ;;  %2030 = vmatpush1.bf16.msra.mxu1 %v8122_v14  ;;  %v8176_v14 = vld [vmem:[%s10188_s1 + $0x2e4] ss:$8 sps:$4 sm:$0xff]   ;;  %v8179_v19 = vld [vmem:[%s10188_s1 + $0x2f4] ss:$8 sps:$4 sm:$0xff]   ;;  %v8177_v27 = vld [vmem:[%s10188_s1 + $0x2f0] ss:$8 sps:$4 sm:$0xff]  }
  0x14   :  { %407 = vmatprep.subr.bf16.mxu0 %v8123_v15  ;;  %2031 = vmatprep.subr.bf16.mxu1 %v8123_v15  ;;  %v150_v15 = vshll.u32 %v8899_v10, 16  ;;  %v8187_v33 = vld [vmem:[%s10188_s1 + $0x14] ss:$8 sps:$4 sm:$0xff]   ;;  %v8185_v34 = vld [vmem:[%s10188_s1 + $0x10] ss:$8 sps:$4 sm:$0xff]  }
  0x15   :  { %v8190_v35 = vld [vmem:[%s10188_s1 + $0x24] ss:$8 sps:$4 sm:$0xff]   ;;  %v8194_v38 = vld [vmem:[%s10188_s1 + $0x40] ss:$8 sps:$4 sm:$0xff]   ;;  %v8223_v55 = vld [vmem:[%s10188_s1 + $0xd4] ss:$8 sps:$4 sm:$0xff]  }
  0x16   :  { %v152_v22 = vrot.slane %v150_v15, 1  ;;  %v8214_v49 = vld [vmem:[%s10188_s1 + $0xa4] ss:$8 sps:$4 sm:$0xff]   ;;  %v8212_v50 = vld [vmem:[%s10188_s1 + $0xa0] ss:$8 sps:$4 sm:$0xff]  }
  0x17   :  { %408 = vmatpush1.bf16.msra.mxu0 %v8125_v17  ;;  %2032 = vmatpush1.bf16.msra.mxu1 %v8125_v17  ;;  %v1774_v17 = vshll.u32 %v8902_v11, 16  ;;  %v8220_v53 = vld [vmem:[%s10188_s1 + $0xc4] ss:$8 sps:$4 sm:$0xff]   ;;  %v8218_v54 = vld [vmem:[%s10188_s1 + $0xc0] ss:$8 sps:$4 sm:$0xff]  }
  0x18   :  { %409 = vmatprep.subr.bf16.mxu0 %v8126_v18  ;;  %2033 = vmatprep.subr.bf16.mxu1 %v8126_v18  ;;  %v8174_v18 = vld [vmem:[%s10188_s1 + $0x2e0] ss:$8 sps:$4 sm:$0xff]   ;;  %v8221_v56 = vld [vmem:[%s10188_s1 + $0xd0] ss:$8 sps:$4 sm:$0xff]   ;;  %v8247_v6 = vld [vmem:[%s10188_s1 + $0x154] ss:$8 sps:$4 sm:$0xff]  }
  0x19   :  { %v1776_v26 = vrot.slane %v1774_v17, 1  ;;  %v8245_v7 = vld [vmem:[%s10188_s1 + $0x150] ss:$8 sps:$4 sm:$0xff]  }
  0x1a   :  { %v9078_v15 = vld [vmem:[%s10189_s0 + $0xc] sm:$0x3f] }
  0x1b   :  { %410 = vmatpush1.bf16.msra.mxu0 %v8128_v20  ;;  %2034 = vmatpush1.bf16.msra.mxu1 %v8128_v20  ;;  %v148_v20 = vshrl.u32 %v8899_v10, 16  ;;  %v8251_v17 = vld [vmem:[%s10188_s1 + $0x170] ss:$8 sps:$4 sm:$0xff]  }
  0x1c   :  { %411 = vmatprep.subr.bf16.mxu0 %v8129_v23  ;;  %2035 = vmatprep.subr.bf16.mxu1 %v8129_v23  ;;  %v1772_v23 = vshrl.u32 %v8902_v11, 16 }
  0x1e   :  { %v1777_v31 = vor.u32 %v1776_v26, %v1772_v23  ;;  %v8259_v23 = vld [vmem:[%s10188_s1 + $0x314] ss:$8 sps:$4 sm:$0xff]  }
  0x1f   :  { %412 = vmatpush1.bf16.msra.mxu0 %v8131_v29  ;;  %2036 = vmatpush1.bf16.msra.mxu1 %v8131_v29  ;;  %v8182_v29 = vld [vmem:[%s10188_s1 + $0x4] ss:$8 sps:$4 sm:$0xff]  }
  0x20   :  { %413 = vmatprep.subr.bf16.mxu0 %v8132_v30  ;;  %2037 = vmatprep.subr.bf16.mxu1 %v8132_v30  ;;  %v153_v30 = vor.u32 %v152_v22, %v148_v20  ;;  %v9092_v20 = vrot.slane %v9078_v15, %v8760_v16  ;;  %v8254_v22 = vld [vmem:[%s10188_s1 + $0x300] ss:$8 sps:$4 sm:$0xff]  }
  0x23   :  { %414 = vmatpush1.bf16.msra.mxu0 %v8134_v36  ;;  %2038 = vmatpush1.bf16.msra.mxu1 %v8134_v36  ;;  %v8188_v36 = vld [vmem:[%s10188_s1 + $0x20] ss:$8 sps:$4 sm:$0xff]  }
  0x24   :  { %415 = vmatprep.subr.bf16.mxu0 %v8135_v37  ;;  %2039 = vmatprep.subr.bf16.mxu1 %v8135_v37  ;;  %v8193_v37 = vld [vmem:[%s10188_s1 + $0x34] ss:$8 sps:$4 sm:$0xff]  }
  0x27   :  { %416 = vmatpush1.bf16.msra.mxu0 %v8137_v39  ;;  %2040 = vmatpush1.bf16.msra.mxu1 %v8137_v39  ;;  %v8199_v39 = vld [vmem:[%s10188_s1 + $0x54] ss:$8 sps:$4 sm:$0xff]  }
  0x28   :  { %417 = vmatprep.subr.bf16.mxu0 %v8138_v40  ;;  %2041 = vmatprep.subr.bf16.mxu1 %v8138_v40  ;;  %v8197_v40 = vld [vmem:[%s10188_s1 + $0x50] ss:$8 sps:$4 sm:$0xff]  }
  0x2b   :  { %418 = vmatpush1.bf16.msra.mxu0 %v8140_v41  ;;  %2042 = vmatpush1.bf16.msra.mxu1 %v8140_v41  ;;  %v8202_v41 = vld [vmem:[%s10188_s1 + $0x64] ss:$8 sps:$4 sm:$0xff]  }
  0x2c   :  { %419 = vmatprep.subr.bf16.mxu0 %v8141_v42  ;;  %2043 = vmatprep.subr.bf16.mxu1 %v8141_v42  ;;  %v8200_v42 = vld [vmem:[%s10188_s1 + $0x60] ss:$8 sps:$4 sm:$0xff]  }
  0x2f   :  { %420 = vmatpush1.bf16.msra.mxu0 %v8143_v43  ;;  %2044 = vmatpush1.bf16.msra.mxu1 %v8143_v43  ;;  %v8205_v43 = vld [vmem:[%s10188_s1 + $0x74] ss:$8 sps:$4 sm:$0xff]  }
  0x30   :  { %421 = vmatprep.subr.bf16.mxu0 %v8144_v44  ;;  %2045 = vmatprep.subr.bf16.mxu1 %v8144_v44  ;;  %v8203_v44 = vld [vmem:[%s10188_s1 + $0x70] ss:$8 sps:$4 sm:$0xff]  }
  0x33   :  { %422 = vmatpush1.bf16.msra.mxu0 %v8146_v45  ;;  %2046 = vmatpush1.bf16.msra.mxu1 %v8146_v45  ;;  %v8208_v45 = vld [vmem:[%s10188_s1 + $0x84] ss:$8 sps:$4 sm:$0xff]  }
  0x34   :  { %423 = vmatprep.subr.bf16.mxu0 %v8147_v46  ;;  %2047 = vmatprep.subr.bf16.mxu1 %v8147_v46  ;;  %v8206_v46 = vld [vmem:[%s10188_s1 + $0x80] ss:$8 sps:$4 sm:$0xff]  }
  0x37   :  { %424 = vmatpush1.bf16.msra.mxu0 %v8149_v47  ;;  %2048 = vmatpush1.bf16.msra.mxu1 %v8149_v47  ;;  %v8211_v47 = vld [vmem:[%s10188_s1 + $0x94] ss:$8 sps:$4 sm:$0xff]  }
  0x38   :  { %425 = vmatprep.subr.bf16.mxu0 %v8150_v48  ;;  %2049 = vmatprep.subr.bf16.mxu1 %v8150_v48  ;;  %v8209_v48 = vld [vmem:[%s10188_s1 + $0x90] ss:$8 sps:$4 sm:$0xff]  }
  0x3b   :  { %426 = vmatpush1.bf16.msra.mxu0 %v8152_v51  ;;  %2050 = vmatpush1.bf16.msra.mxu1 %v8152_v51  ;;  %v8217_v51 = vld [vmem:[%s10188_s1 + $0xb4] ss:$8 sps:$4 sm:$0xff]  }
  0x3c   :  { %427 = vmatprep.subr.bf16.mxu0 %v8153_v52  ;;  %2051 = vmatprep.subr.bf16.mxu1 %v8153_v52  ;;  %v8215_v52 = vld [vmem:[%s10188_s1 + $0xb0] ss:$8 sps:$4 sm:$0xff]  }
  0x3f   :  { %428 = vmatpush1.bf16.msra.mxu0 %v8155_v57  ;;  %2052 = vmatpush1.bf16.msra.mxu1 %v8155_v57  ;;  %v8226_v57 = vld [vmem:[%s10188_s1 + $0xe4] ss:$8 sps:$4 sm:$0xff]  }
  0x40   :  { %438 = vmatprep.subr.bf16.mxu0 %v8158_v58  ;;  %2062 = vmatprep.subr.bf16.mxu1 %v8158_v58  ;;  %v8224_v58 = vld [vmem:[%s10188_s1 + $0xe0] ss:$8 sps:$4 sm:$0xff]  }
  0x42   :  { %430 = vmatmul.mubr.bf16.vlgmr.msra.gmra.mrb[0].mxu0 %v139_v59  ;;  %2054 = vmatmul.mubr.bf16.vlgmr.msra.gmra.mrb[0].mxu1 %v1763_v60  ;;  %v8229_v59 = vld [vmem:[%s10188_s1 + $0xf4] ss:$8 sps:$4 sm:$0xff]   ;;  %v8227_v60 = vld [vmem:[%s10188_s1 + $0xf0] ss:$8 sps:$4 sm:$0xff]  }
  0x43   :  { %439 = vmatpush1.bf16.msra.mxu0 %v8156_v61  ;;  %2063 = vmatpush1.bf16.msra.mxu1 %v8156_v61  ;;  %v8232_v61 = vld [vmem:[%s10188_s1 + $0x104] ss:$8 sps:$4 sm:$0xff]  }
  0x44   :  { %440 = vmatprep.subr.bf16.mxu0 %v8161_v62  ;;  %2064 = vmatprep.subr.bf16.mxu1 %v8161_v62  ;;  %v8230_v62 = vld [vmem:[%s10188_s1 + $0x100] ss:$8 sps:$4 sm:$0xff]  }
  0x45   :  { %470 = vmatprep.mubr.bf16.mxu0 %v8697_v1  ;;  %2094 = vmatprep.mubr.bf16.mxu1 %v8697_v1 }
  0x47   :  { %441 = vmatpush1.bf16.msra.mxu0 %v8159_v63  ;;  %2065 = vmatpush1.bf16.msra.mxu1 %v8159_v63  ;;  %v8235_v63 = vld [vmem:[%s10188_s1 + $0x114] ss:$8 sps:$4 sm:$0xff]  }
  0x48   :  { %442 = vmatprep.subr.bf16.mxu0 %v8164_v0  ;;  %2066 = vmatprep.subr.bf16.mxu1 %v8164_v0  ;;  %v8233_v0 = vld [vmem:[%s10188_s1 + $0x110] ss:$8 sps:$4 sm:$0xff]  }
  0x4b   :  { %443 = vmatpush1.bf16.msra.mxu0 %v8162_v2  ;;  %2067 = vmatpush1.bf16.msra.mxu1 %v8162_v2  ;;  %v8238_v2 = vld [vmem:[%s10188_s1 + $0x124] ss:$8 sps:$4 sm:$0xff]  }
  0x4c   :  { %444 = vmatprep.subr.bf16.mxu0 %v8167_v3  ;;  %2068 = vmatprep.subr.bf16.mxu1 %v8167_v3  ;;  %v8239_v3 = vld [vmem:[%s10188_s1 + $0x130] ss:$8 sps:$4 sm:$0xff]  }
  0x4f   :  { %445 = vmatpush1.bf16.msra.mxu0 %v8165_v4  ;;  %2069 = vmatpush1.bf16.msra.mxu1 %v8165_v4  ;;  %v8244_v4 = vld [vmem:[%s10188_s1 + $0x144] ss:$8 sps:$4 sm:$0xff]  }
  0x50   :  { %446 = vmatprep.subr.bf16.mxu0 %v8170_v5  ;;  %2070 = vmatprep.subr.bf16.mxu1 %v8170_v5  ;;  %v8242_v5 = vld [vmem:[%s10188_s1 + $0x140] ss:$8 sps:$4 sm:$0xff]  }
  0x53   :  { %447 = vmatpush1.bf16.msra.mxu0 %v8168_v8  ;;  %2071 = vmatpush1.bf16.msra.mxu1 %v8168_v8  ;;  %v8250_v8 = vld [vmem:[%s10188_s1 + $0x164] ss:$8 sps:$4 sm:$0xff]  }
  0x54   :  { %448 = vmatprep.subr.bf16.mxu0 %v8173_v9  ;;  %2072 = vmatprep.subr.bf16.mxu1 %v8173_v9  ;;  %v8248_v9 = vld [vmem:[%s10188_s1 + $0x160] ss:$8 sps:$4 sm:$0xff]  }
  0x57   :  { %449 = vmatpush1.bf16.msra.mxu0 %v8171_v12  ;;  %2073 = vmatpush1.bf16.msra.mxu1 %v8171_v12  ;;  %v8253_v12 = vld [vmem:[%s10188_s1 + $0x174] ss:$8 sps:$4 sm:$0xff]  }
  0x58   :  { %450 = vmatprep.subr.bf16.mxu0 %v8176_v14  ;;  %2074 = vmatprep.subr.bf16.mxu1 %v8176_v14  ;;  %v9073_v14 = vld [vmem:[%s10189_s0 + $0x6] sm:$0x3f] }
  0x5b   :  { %451 = vmatpush1.bf16.msra.mxu0 %v8174_v18  ;;  %2075 = vmatpush1.bf16.msra.mxu1 %v8174_v18  ;;  %v8256_v18 = vld [vmem:[%s10188_s1 + $0x304] ss:$8 sps:$4 sm:$0xff]  }
  0x5c   :  { %452 = vmatprep.subr.bf16.mxu0 %v8179_v19  ;;  %2076 = vmatprep.subr.bf16.mxu1 %v8179_v19  ;;  %v9088_v19 = vrot.slane %v9073_v14, %v8760_v16 }
  0x5e   :  { %v9102_v26 = vcombine.high %v9088_v19, %v9088_v19 }
  0x5f   :  { %453 = vmatpush1.bf16.msra.mxu0 %v8177_v27  ;;  %2077 = vmatpush1.bf16.msra.mxu1 %v8177_v27  ;;  %v9106_v27 = vcombine.high %v9092_v20, %v9092_v20 }
  0x60   :  { %722 = vmatprep.subr.bf16.mxu0 %v8182_v29  ;;  %2346 = vmatprep.subr.bf16.mxu1 %v8182_v29  ;;  %v8257_v29 = vld [vmem:[%s10188_s1 + $0x310] ss:$8 sps:$4 sm:$0xff]  }
  0x62   :  { %471 = vmatmul.mubr.bf16.vlgmr.msra.gmra.mrb[0].mxu0 %v153_v30  ;;  %2095 = vmatmul.mubr.bf16.vlgmr.msra.gmra.mrb[0].mxu1 %v1777_v31  ;;  %v8262_v30 = vld [vmem:[%s10188_s1 + $0x324] ss:$8 sps:$4 sm:$0xff]   ;;  %v8263_v31 = vld [vmem:[%s10188_s1 + $0x330] ss:$8 sps:$4 sm:$0xff]  }
  0x63   :  { %723 = vmatpush1.bf16.msra.mxu0 %v8180_v32  ;;  %2347 = vmatpush1.bf16.msra.mxu1 %v8180_v32  ;;  %v8268_v32 = vld [vmem:[%s10188_s1 + $0x344] ss:$8 sps:$4 sm:$0xff]  }
  0x64   :  { %724 = vmatprep.subr.bf16.mxu0 %v8187_v33  ;;  %2348 = vmatprep.subr.bf16.mxu1 %v8187_v33  ;;  %v8266_v33 = vld [vmem:[%s10188_s1 + $0x340] ss:$8 sps:$4 sm:$0xff]  }
  0x65   :  { %754 = vmatprep.mubr.bf16.mxu0 %v8790_v24  ;;  %2378 = vmatprep.mubr.bf16.mxu1 %v8800_v28  ;;  %v8191_v24 = vld [vmem:[%s10188_s1 + $0x30] ss:$8 sps:$4 sm:$0xff]   ;;  %v8196_v28 = vld [vmem:[%s10188_s1 + $0x44] ss:$8 sps:$4 sm:$0xff]  }
  0x67   :  { %725 = vmatpush1.bf16.msra.mxu0 %v8185_v34  ;;  %2349 = vmatpush1.bf16.msra.mxu1 %v8185_v34  ;;  %v8271_v34 = vld [vmem:[%s10188_s1 + $0x354] ss:$8 sps:$4 sm:$0xff]  }
  0x68   :  { %726 = vmatprep.subr.bf16.mxu0 %v8190_v35  ;;  %2350 = vmatprep.subr.bf16.mxu1 %v8190_v35  ;;  %v8269_v35 = vld [vmem:[%s10188_s1 + $0x350] ss:$8 sps:$4 sm:$0xff]  }
  0x6b   :  { %727 = vmatpush1.bf16.msra.mxu0 %v8188_v36  ;;  %2351 = vmatpush1.bf16.msra.mxu1 %v8188_v36  ;;  %v8274_v36 = vld [vmem:[%s10188_s1 + $0x364] ss:$8 sps:$4 sm:$0xff]  }
  0x6c   :  { %728 = vmatprep.subr.bf16.mxu0 %v8193_v37  ;;  %2352 = vmatprep.subr.bf16.mxu1 %v8193_v37  ;;  %v8272_v37 = vld [vmem:[%s10188_s1 + $0x360] ss:$8 sps:$4 sm:$0xff]  }
  0x6f   :  { %729 = vmatpush1.bf16.msra.mxu0 %v8191_v24  ;;  %2353 = vmatpush1.bf16.msra.mxu1 %v8191_v24  ;;  %v8277_v24 = vld [vmem:[%s10188_s1 + $0x374] ss:$8 sps:$4 sm:$0xff]  }
  0x70   :  { %730 = vmatprep.subr.bf16.mxu0 %v8196_v28  ;;  %2354 = vmatprep.subr.bf16.mxu1 %v8196_v28  ;;  %v8275_v28 = vld [vmem:[%s10188_s1 + $0x370] ss:$8 sps:$4 sm:$0xff]  }
  0x73   :  { %731 = vmatpush1.bf16.msra.mxu0 %v8194_v38  ;;  %2355 = vmatpush1.bf16.msra.mxu1 %v8194_v38  ;;  %v8280_v38 = vld [vmem:[%s10188_s1 + $0x384] ss:$8 sps:$4 sm:$0xff]  }
  0x74   :  { %732 = vmatprep.subr.bf16.mxu0 %v8199_v39  ;;  %2356 = vmatprep.subr.bf16.mxu1 %v8199_v39  ;;  %v8278_v39 = vld [vmem:[%s10188_s1 + $0x380] ss:$8 sps:$4 sm:$0xff]  }
  0x77   :  { %733 = vmatpush1.bf16.msra.mxu0 %v8197_v40  ;;  %2357 = vmatpush1.bf16.msra.mxu1 %v8197_v40  ;;  %v8283_v40 = vld [vmem:[%s10188_s1 + $0x394] ss:$8 sps:$4 sm:$0xff]  }
  0x78   :  { %734 = vmatprep.subr.bf16.mxu0 %v8202_v41  ;;  %2358 = vmatprep.subr.bf16.mxu1 %v8202_v41  ;;  %v8281_v41 = vld [vmem:[%s10188_s1 + $0x390] ss:$8 sps:$4 sm:$0xff]  }
  0x7b   :  { %735 = vmatpush1.bf16.msra.mxu0 %v8200_v42  ;;  %2359 = vmatpush1.bf16.msra.mxu1 %v8200_v42  ;;  %v8286_v42 = vld [vmem:[%s10188_s1 + $0x3a4] ss:$8 sps:$4 sm:$0xff]  }
  0x7c   :  { %736 = vmatprep.subr.bf16.mxu0 %v8205_v43  ;;  %2360 = vmatprep.subr.bf16.mxu1 %v8205_v43  ;;  %v8284_v43 = vld [vmem:[%s10188_s1 + $0x3a0] ss:$8 sps:$4 sm:$0xff]  }
  0x7f   :  { %737 = vmatpush1.bf16.msra.mxu0 %v8203_v44  ;;  %2361 = vmatpush1.bf16.msra.mxu1 %v8203_v44  ;;  %v8289_v44 = vld [vmem:[%s10188_s1 + $0x3b4] ss:$8 sps:$4 sm:$0xff]  }
  0x80   :  { %738 = vmatprep.subr.bf16.mxu0 %v8208_v45  ;;  %2362 = vmatprep.subr.bf16.mxu1 %v8208_v45  ;;  %v8287_v45 = vld [vmem:[%s10188_s1 + $0x3b0] ss:$8 sps:$4 sm:$0xff]  }
  0x83   :  { %739 = vmatpush1.bf16.msra.mxu0 %v8206_v46  ;;  %2363 = vmatpush1.bf16.msra.mxu1 %v8206_v46  ;;  %v8292_v46 = vld [vmem:[%s10188_s1 + $0x3c4] ss:$8 sps:$4 sm:$0xff]  }
  0x84   :  { %740 = vmatprep.subr.bf16.mxu0 %v8211_v47  ;;  %2364 = vmatprep.subr.bf16.mxu1 %v8211_v47  ;;  %v8290_v47 = vld [vmem:[%s10188_s1 + $0x3c0] ss:$8 sps:$4 sm:$0xff]  }
  0x87   :  { %741 = vmatpush1.bf16.msra.mxu0 %v8209_v48  ;;  %2365 = vmatpush1.bf16.msra.mxu1 %v8209_v48  ;;  %v8295_v48 = vld [vmem:[%s10188_s1 + $0x3d4] ss:$8 sps:$4 sm:$0xff]  }
  0x88   :  { %742 = vmatprep.subr.bf16.mxu0 %v8214_v49  ;;  %2366 = vmatprep.subr.bf16.mxu1 %v8214_v49  ;;  %v8293_v49 = vld [vmem:[%s10188_s1 + $0x3d0] ss:$8 sps:$4 sm:$0xff]  }
  0x8b   :  { %743 = vmatpush1.bf16.msra.mxu0 %v8212_v50  ;;  %2367 = vmatpush1.bf16.msra.mxu1 %v8212_v50  ;;  %v8298_v50 = vld [vmem:[%s10188_s1 + $0x3e4] ss:$8 sps:$4 sm:$0xff]  }
  0x8c   :  { %744 = vmatprep.subr.bf16.mxu0 %v8217_v51  ;;  %2368 = vmatprep.subr.bf16.mxu1 %v8217_v51  ;;  %v8296_v51 = vld [vmem:[%s10188_s1 + $0x3e0] ss:$8 sps:$4 sm:$0xff]  }
  0x8f   :  { %745 = vmatpush1.bf16.msra.mxu0 %v8215_v52  ;;  %2369 = vmatpush1.bf16.msra.mxu1 %v8215_v52  ;;  %v8301_v52 = vld [vmem:[%s10188_s1 + $0x3f4] ss:$8 sps:$4 sm:$0xff]  }
  0x90   :  { %746 = vmatprep.subr.bf16.mxu0 %v8220_v53  ;;  %2370 = vmatprep.subr.bf16.mxu1 %v8220_v53  ;;  %v8299_v53 = vld [vmem:[%s10188_s1 + $0x3f0] ss:$8 sps:$4 sm:$0xff]  }
  0x93   :  { %747 = vmatpush1.bf16.msra.mxu0 %v8218_v54  ;;  %2371 = vmatpush1.bf16.msra.mxu1 %v8218_v54  ;;  %v8304_v54 = vld [vmem:[%s10188_s1 + $0x404] ss:$8 sps:$4 sm:$0xff]  }
  0x94   :  { %748 = vmatprep.subr.bf16.mxu0 %v8223_v55  ;;  %2372 = vmatprep.subr.bf16.mxu1 %v8223_v55  ;;  %v8302_v55 = vld [vmem:[%s10188_s1 + $0x400] ss:$8 sps:$4 sm:$0xff]  }
  0x97   :  { %749 = vmatpush1.bf16.msra.mxu0 %v8221_v56  ;;  %2373 = vmatpush1.bf16.msra.mxu1 %v8221_v56  ;;  %v8307_v56 = vld [vmem:[%s10188_s1 + $0x414] ss:$8 sps:$4 sm:$0xff]  }
  0x98   :  { %750 = vmatprep.subr.bf16.mxu0 %v8226_v57  ;;  %2374 = vmatprep.subr.bf16.mxu1 %v8226_v57  ;;  %v8305_v57 = vld [vmem:[%s10188_s1 + $0x410] ss:$8 sps:$4 sm:$0xff]  }
  0x9b   :  { %751 = vmatpush1.bf16.msra.mxu0 %v8224_v58  ;;  %2375 = vmatpush1.bf16.msra.mxu1 %v8224_v58  ;;  %v8310_v58 = vld [vmem:[%s10188_s1 + $0x424] ss:$8 sps:$4 sm:$0xff]  }
  0x9c   :  { %752 = vmatprep.subr.bf16.mxu0 %v8229_v59  ;;  %2376 = vmatprep.subr.bf16.mxu1 %v8229_v59  ;;  %v8308_v59 = vld [vmem:[%s10188_s1 + $0x420] ss:$8 sps:$4 sm:$0xff]  }
  0x9f   :  { %753 = vmatpush1.bf16.msra.mxu0 %v8227_v60  ;;  %2377 = vmatpush1.bf16.msra.mxu1 %v8227_v60  ;;  %v8313_v60 = vld [vmem:[%s10188_s1 + $0x434] ss:$8 sps:$4 sm:$0xff]  }
  0xa0   :  { %763 = vmatprep.subr.bf16.mxu0 %v8232_v61  ;;  %2387 = vmatprep.subr.bf16.mxu1 %v8232_v61  ;;  %v8311_v61 = vld [vmem:[%s10188_s1 + $0x430] ss:$8 sps:$4 sm:$0xff]  }
  0xa2   :  { %755 = vmatmul.mubr.bf16.vlgmr.msra.gmra.mrb[0].mxu0 %v8778_v21  ;;  %2379 = vmatmul.mubr.bf16.vlgmr.msra.gmra.mrb[0].mxu1 %v8794_v25  ;;  %v8236_v21 = vld [vmem:[%s10188_s1 + $0x120] ss:$8 sps:$4 sm:$0xff]   ;;  %v8241_v25 = vld [vmem:[%s10188_s1 + $0x134] ss:$8 sps:$4 sm:$0xff]  }
  0xa3   :  { %764 = vmatpush1.bf16.msra.mxu0 %v8230_v62  ;;  %2388 = vmatpush1.bf16.msra.mxu1 %v8230_v62  ;;  %v8316_v62 = vld [vmem:[%s10188_s1 + $0x444] ss:$8 sps:$4 sm:$0xff]  }
  0xa4   :  { %765 = vmatprep.subr.bf16.mxu0 %v8235_v63  ;;  %2389 = vmatprep.subr.bf16.mxu1 %v8235_v63  ;;  %v8314_v63 = vld [vmem:[%s10188_s1 + $0x440] ss:$8 sps:$4 sm:$0xff]  }
  0xa5   :  { %795 = vmatprep.mubr.bf16.mxu0 %v8697_v1  ;;  %2419 = vmatprep.mubr.bf16.mxu1 %v8697_v1 }
  0xa7   :  { %766 = vmatpush1.bf16.msra.mxu0 %v8233_v0  ;;  %2390 = vmatpush1.bf16.msra.mxu1 %v8233_v0  ;;  %v8319_v0 = vld [vmem:[%s10188_s1 + $0x454] ss:$8 sps:$4 sm:$0xff]  }
  0xa8   :  { %767 = vmatprep.subr.bf16.mxu0 %v8238_v2  ;;  %2391 = vmatprep.subr.bf16.mxu1 %v8238_v2  ;;  %v8317_v2 = vld [vmem:[%s10188_s1 + $0x450] ss:$8 sps:$4 sm:$0xff]  }
  0xab   :  { %768 = vmatpush1.bf16.msra.mxu0 %v8236_v21  ;;  %2392 = vmatpush1.bf16.msra.mxu1 %v8236_v21  ;;  %v8322_v21 = vld [vmem:[%s10188_s1 + $0x464] ss:$8 sps:$4 sm:$0xff]  }
  0xac   :  { %769 = vmatprep.subr.bf16.mxu0 %v8241_v25  ;;  %2393 = vmatprep.subr.bf16.mxu1 %v8241_v25  ;;  %v8320_v25 = vld [vmem:[%s10188_s1 + $0x460] ss:$8 sps:$4 sm:$0xff]  }
  0xaf   :  { %770 = vmatpush1.bf16.msra.mxu0 %v8239_v3  ;;  %2394 = vmatpush1.bf16.msra.mxu1 %v8239_v3  ;;  %v8325_v3 = vld [vmem:[%s10188_s1 + $0x474] ss:$8 sps:$4 sm:$0xff]  }
  0xb0   :  { %771 = vmatprep.subr.bf16.mxu0 %v8244_v4  ;;  %2395 = vmatprep.subr.bf16.mxu1 %v8244_v4  ;;  %v1258_v4 = vshll.u32 %v9102_v26, 16 }
  0xb3   :  { %772 = vmatpush1.bf16.msra.mxu0 %v8242_v5  ;;  %2396 = vmatpush1.bf16.msra.mxu1 %v8242_v5  ;;  %v2880_v5 = vshll.u32 %v9106_v27, 16 }
  0xb4   :  { %773 = vmatprep.subr.bf16.mxu0 %v8247_v6  ;;  %2397 = vmatprep.subr.bf16.mxu1 %v8247_v6  ;;  %v856_v6 = vcombine.high %v9073_v14, %v9073_v14  ;;  %v2878_v14 = vshrl.u32 %v9106_v27, 16 }
  0xb7   :  { %774 = vmatpush1.bf16.msra.mxu0 %v8245_v7  ;;  %2398 = vmatpush1.bf16.msra.mxu1 %v8245_v7  ;;  %v2479_v7 = vcombine.high %v9078_v15, %v9078_v15  ;;  %v9263_v15 = vrot.slane %v856_v6, %v8760_v16  ;;  %v9404_v6 = vld [vmem:[%s10189_s0 + $0x18] sm:$0x3f] }
  0xb8   :  { %775 = vmatprep.subr.bf16.mxu0 %v8250_v8  ;;  %2399 = vmatprep.subr.bf16.mxu1 %v8250_v8  ;;  %v8323_v8 = vld [vmem:[%s10188_s1 + $0x470] ss:$8 sps:$4 sm:$0xff]  }
  0xbb   :  { %776 = vmatpush1.bf16.msra.mxu0 %v8248_v9  ;;  %2400 = vmatpush1.bf16.msra.mxu1 %v8248_v9  ;;  %v8328_v9 = vld [vmem:[%s10188_s1 + $0x484] ss:$8 sps:$4 sm:$0xff]  }
  0xbc   :  { %777 = vmatprep.subr.bf16.mxu0 %v8253_v12  ;;  %2401 = vmatprep.subr.bf16.mxu1 %v8253_v12  ;;  %v1256_v12 = vshrl.u32 %v9102_v26, 16 }
  0xbf   :  { %778 = vmatpush1.bf16.msra.mxu0 %v8251_v17  ;;  %2402 = vmatpush1.bf16.msra.mxu1 %v8251_v17  ;;  %v1260_v17 = vrot.slane %v1258_v4, 1  ;;  %v8390_v4 = vld [vmem:[%s10188_s1 + $0x5c4] ss:$8 sps:$4 sm:$0xff]  }
  0xc0   :  { %1115 = vmatprep.subr.bf16.mxu0 %v8256_v18  ;;  %2738 = vmatprep.subr.bf16.mxu1 %v8256_v18  ;;  %v2882_v18 = vrot.slane %v2880_v5, 1  ;;  %v9399_v5 = vld [vmem:[%s10189_s0 + $0x12] sm:$0x3f] }
  0xc2   :  { %796 = vmatmul.mubr.bf16.vlgmr.msra.gmra.mrb[0].mxu0 %v8899_v10  ;;  %2420 = vmatmul.mubr.bf16.vlgmr.msra.gmra.mrb[0].mxu1 %v8902_v11  ;;  %v8260_v10 = vld [vmem:[%s10188_s1 + $0x320] ss:$8 sps:$4 sm:$0xff]   ;;  %v8265_v11 = vld [vmem:[%s10188_s1 + $0x334] ss:$8 sps:$4 sm:$0xff]  }
  0xc3   :  { %1116 = vmatpush1.bf16.msra.mxu0 %v8254_v22  ;;  %2739 = vmatpush1.bf16.msra.mxu1 %v8254_v22  ;;  %v9266_v22 = vrot.slane %v2479_v7, %v8760_v16  ;;  %v8388_v7 = vld [vmem:[%s10188_s1 + $0x5c0] ss:$8 sps:$4 sm:$0xff]  }
  0xc4   :  { %1117 = vmatprep.subr.bf16.mxu0 %v8259_v23  ;;  %2740 = vmatprep.subr.bf16.mxu1 %v8259_v23  ;;  %v8326_v23 = vld [vmem:[%s10188_s1 + $0x480] ss:$8 sps:$4 sm:$0xff]  }
  0xc5   :  { %1147 = vmatprep.mubr.bf16.mxu0 %v9102_v26  ;;  %2770 = vmatprep.mubr.bf16.mxu1 %v9106_v27  ;;  %v8333_v26 = vld [vmem:[%s10188_s1 + $0x494] ss:$8 sps:$4 sm:$0xff]   ;;  %v1261_v27 = vor.u32 %v1260_v17, %v1256_v12  ;;  %v9418_v12 = vrot.slane %v9404_v6, %v8760_v16  ;;  %v8391_v17 = vld [vmem:[%s10188_s1 + $0x5d0] ss:$8 sps:$4 sm:$0xff]  }
  0xc7   :  { %1118 = vmatpush1.bf16.msra.mxu0 %v8257_v29  ;;  %2741 = vmatpush1.bf16.msra.mxu1 %v8257_v29  ;;  %v2883_v29 = vor.u32 %v2882_v18, %v2878_v14  ;;  %v8396_v14 = vld [vmem:[%s10188_s1 + $0x5e4] ss:$8 sps:$4 sm:$0xff]  }
  0xc8   :  { %1119 = vmatprep.subr.bf16.mxu0 %v8262_v30  ;;  %2742 = vmatprep.subr.bf16.mxu1 %v8262_v30  ;;  %v8331_v30 = vld [vmem:[%s10188_s1 + $0x490] ss:$8 sps:$4 sm:$0xff]  }
  0xcb   :  { %1120 = vmatpush1.bf16.msra.mxu0 %v8260_v10  ;;  %2743 = vmatpush1.bf16.msra.mxu1 %v8260_v10  ;;  %v8336_v10 = vld [vmem:[%s10188_s1 + $0x4a4] ss:$8 sps:$4 sm:$0xff]  }
  0xcc   :  { %1121 = vmatprep.subr.bf16.mxu0 %v8265_v11  ;;  %2744 = vmatprep.subr.bf16.mxu1 %v8265_v11  ;;  %v8334_v11 = vld [vmem:[%s10188_s1 + $0x4a0] ss:$8 sps:$4 sm:$0xff]  }
  0xcf   :  { %1122 = vmatpush1.bf16.msra.mxu0 %v8263_v31  ;;  %2745 = vmatpush1.bf16.msra.mxu1 %v8263_v31  ;;  %v8339_v31 = vld [vmem:[%s10188_s1 + $0x4b4] ss:$8 sps:$4 sm:$0xff]  }
  0xd0   :  { %1123 = vmatprep.subr.bf16.mxu0 %v8268_v32  ;;  %2746 = vmatprep.subr.bf16.mxu1 %v8268_v32  ;;  %v8337_v32 = vld [vmem:[%s10188_s1 + $0x4b0] ss:$8 sps:$4 sm:$0xff]  }
  0xd3   :  { %1124 = vmatpush1.bf16.msra.mxu0 %v8266_v33  ;;  %2747 = vmatpush1.bf16.msra.mxu1 %v8266_v33  ;;  %v8342_v33 = vld [vmem:[%s10188_s1 + $0x4c4] ss:$8 sps:$4 sm:$0xff]  }
  0xd4   :  { %1125 = vmatprep.subr.bf16.mxu0 %v8271_v34  ;;  %2748 = vmatprep.subr.bf16.mxu1 %v8271_v34  ;;  %v8340_v34 = vld [vmem:[%s10188_s1 + $0x4c0] ss:$8 sps:$4 sm:$0xff]  }
  0xd7   :  { %1126 = vmatpush1.bf16.msra.mxu0 %v8269_v35  ;;  %2749 = vmatpush1.bf16.msra.mxu1 %v8269_v35  ;;  %v8345_v35 = vld [vmem:[%s10188_s1 + $0x4d4] ss:$8 sps:$4 sm:$0xff]  }
  0xd8   :  { %1127 = vmatprep.subr.bf16.mxu0 %v8274_v36  ;;  %2750 = vmatprep.subr.bf16.mxu1 %v8274_v36  ;;  %v8343_v36 = vld [vmem:[%s10188_s1 + $0x4d0] ss:$8 sps:$4 sm:$0xff]  }
  0xdb   :  { %1128 = vmatpush1.bf16.msra.mxu0 %v8272_v37  ;;  %2751 = vmatpush1.bf16.msra.mxu1 %v8272_v37  ;;  %v8348_v37 = vld [vmem:[%s10188_s1 + $0x4e4] ss:$8 sps:$4 sm:$0xff]  }
  0xdc   :  { %1129 = vmatprep.subr.bf16.mxu0 %v8277_v24  ;;  %2752 = vmatprep.subr.bf16.mxu1 %v8277_v24  ;;  %v8346_v24 = vld [vmem:[%s10188_s1 + $0x4e0] ss:$8 sps:$4 sm:$0xff]  }
  0xdf   :  { %1130 = vmatpush1.bf16.msra.mxu0 %v8275_v28  ;;  %2753 = vmatpush1.bf16.msra.mxu1 %v8275_v28  ;;  %v8351_v28 = vld [vmem:[%s10188_s1 + $0x4f4] ss:$8 sps:$4 sm:$0xff]  }
  0xe0   :  { %1131 = vmatprep.subr.bf16.mxu0 %v8280_v38  ;;  %2754 = vmatprep.subr.bf16.mxu1 %v8280_v38  ;;  %v8349_v38 = vld [vmem:[%s10188_s1 + $0x4f0] ss:$8 sps:$4 sm:$0xff]  }
  0xe3   :  { %1132 = vmatpush1.bf16.msra.mxu0 %v8278_v39  ;;  %2755 = vmatpush1.bf16.msra.mxu1 %v8278_v39  ;;  %v8354_v39 = vld [vmem:[%s10188_s1 + $0x504] ss:$8 sps:$4 sm:$0xff]  }
  0xe4   :  { %1133 = vmatprep.subr.bf16.mxu0 %v8283_v40  ;;  %2756 = vmatprep.subr.bf16.mxu1 %v8283_v40  ;;  %v8352_v40 = vld [vmem:[%s10188_s1 + $0x500] ss:$8 sps:$4 sm:$0xff]  }
  0xe7   :  { %1134 = vmatpush1.bf16.msra.mxu0 %v8281_v41  ;;  %2757 = vmatpush1.bf16.msra.mxu1 %v8281_v41  ;;  %v8357_v41 = vld [vmem:[%s10188_s1 + $0x514] ss:$8 sps:$4 sm:$0xff]  }
  0xe8   :  { %1135 = vmatprep.subr.bf16.mxu0 %v8286_v42  ;;  %2758 = vmatprep.subr.bf16.mxu1 %v8286_v42  ;;  %v8355_v42 = vld [vmem:[%s10188_s1 + $0x510] ss:$8 sps:$4 sm:$0xff]  }
  0xeb   :  { %1136 = vmatpush1.bf16.msra.mxu0 %v8284_v43  ;;  %2759 = vmatpush1.bf16.msra.mxu1 %v8284_v43  ;;  %v8360_v43 = vld [vmem:[%s10188_s1 + $0x524] ss:$8 sps:$4 sm:$0xff]  }
  0xec   :  { %1137 = vmatprep.subr.bf16.mxu0 %v8289_v44  ;;  %2760 = vmatprep.subr.bf16.mxu1 %v8289_v44  ;;  %v8358_v44 = vld [vmem:[%s10188_s1 + $0x520] ss:$8 sps:$4 sm:$0xff]  }
  0xef   :  { %1138 = vmatpush1.bf16.msra.mxu0 %v8287_v45  ;;  %2761 = vmatpush1.bf16.msra.mxu1 %v8287_v45  ;;  %v8363_v45 = vld [vmem:[%s10188_s1 + $0x534] ss:$8 sps:$4 sm:$0xff]  }
  0xf0   :  { %1139 = vmatprep.subr.bf16.mxu0 %v8292_v46  ;;  %2762 = vmatprep.subr.bf16.mxu1 %v8292_v46  ;;  %v8361_v46 = vld [vmem:[%s10188_s1 + $0x530] ss:$8 sps:$4 sm:$0xff]  }
  0xf3   :  { %1140 = vmatpush1.bf16.msra.mxu0 %v8290_v47  ;;  %2763 = vmatpush1.bf16.msra.mxu1 %v8290_v47  ;;  %v8366_v47 = vld [vmem:[%s10188_s1 + $0x544] ss:$8 sps:$4 sm:$0xff]  }
  0xf4   :  { %1141 = vmatprep.subr.bf16.mxu0 %v8295_v48  ;;  %2764 = vmatprep.subr.bf16.mxu1 %v8295_v48  ;;  %v8364_v48 = vld [vmem:[%s10188_s1 + $0x540] ss:$8 sps:$4 sm:$0xff]  }
  0xf7   :  { %1142 = vmatpush1.bf16.msra.mxu0 %v8293_v49  ;;  %2765 = vmatpush1.bf16.msra.mxu1 %v8293_v49  ;;  %v8369_v49 = vld [vmem:[%s10188_s1 + $0x554] ss:$8 sps:$4 sm:$0xff]  }
  0xf8   :  { %1143 = vmatprep.subr.bf16.mxu0 %v8298_v50  ;;  %2766 = vmatprep.subr.bf16.mxu1 %v8298_v50  ;;  %v8367_v50 = vld [vmem:[%s10188_s1 + $0x550] ss:$8 sps:$4 sm:$0xff]  }
  0xfb   :  { %1144 = vmatpush1.bf16.msra.mxu0 %v8296_v51  ;;  %2767 = vmatpush1.bf16.msra.mxu1 %v8296_v51  ;;  %v8372_v51 = vld [vmem:[%s10188_s1 + $0x564] ss:$8 sps:$4 sm:$0xff]  }
  0xfc   :  { %1145 = vmatprep.subr.bf16.mxu0 %v8301_v52  ;;  %2768 = vmatprep.subr.bf16.mxu1 %v8301_v52  ;;  %v1251_v52 = vshll.u32 %v9088_v19, 16 }
  0xff   :  { %1146 = vmatpush1.bf16.msra.mxu0 %v8299_v53  ;;  %2769 = vmatpush1.bf16.msra.mxu1 %v8299_v53  ;;  %v2873_v53 = vshll.u32 %v9092_v20, 16 }
 0x100   :  { %1156 = vmatprep.subr.bf16.mxu0 %v8304_v54  ;;  %2779 = vmatprep.subr.bf16.mxu1 %v8304_v54  ;;  %v8370_v54 = vld [vmem:[%s10188_s1 + $0x560] ss:$8 sps:$4 sm:$0xff]  }
 0x102   :  { %1148 = vmatmul.mubr.bf16.vlgmr.msra.gmra.mrb[0].mxu0 %v9088_v19  ;;  %2771 = vmatmul.mubr.bf16.vlgmr.msra.gmra.mrb[0].mxu1 %v9092_v20 }
 0x103   :  { %1157 = vmatpush1.bf16.msra.mxu0 %v8302_v55  ;;  %2780 = vmatpush1.bf16.msra.mxu1 %v8302_v55  ;;  %v8375_v55 = vld [vmem:[%s10188_s1 + $0x574] ss:$8 sps:$4 sm:$0xff]  }
 0x104   :  { %1158 = vmatprep.subr.bf16.mxu0 %v8307_v56  ;;  %2781 = vmatprep.subr.bf16.mxu1 %v8307_v56  ;;  %v1249_v56 = vshrl.u32 %v9088_v19, 16  ;;  %v8376_v19 = vld [vmem:[%s10188_s1 + $0x580] ss:$8 sps:$4 sm:$0xff]  }
 0x105   :  { %1188 = vmatprep.mubr.bf16.mxu0 %v8697_v1  ;;  %2811 = vmatprep.mubr.bf16.mxu1 %v8697_v1 }
 0x107   :  { %1159 = vmatpush1.bf16.msra.mxu0 %v8305_v57  ;;  %2782 = vmatpush1.bf16.msra.mxu1 %v8305_v57  ;;  %v1253_v57 = vrot.slane %v1251_v52, 1  ;;  %v8420_v52 = vld [vmem:[%s10188_s1 + $0x1e4] ss:$8 sps:$4 sm:$0xff]  }
 0x108   :  { %1160 = vmatprep.subr.bf16.mxu0 %v8310_v58  ;;  %2783 = vmatprep.subr.bf16.mxu1 %v8310_v58  ;;  %v2871_v58 = vshrl.u32 %v9092_v20, 16  ;;  %v8381_v20 = vld [vmem:[%s10188_s1 + $0x594] ss:$8 sps:$4 sm:$0xff]  }
 0x10b   :  { %1161 = vmatpush1.bf16.msra.mxu0 %v8308_v59  ;;  %2784 = vmatpush1.bf16.msra.mxu1 %v8308_v59  ;;  %v2875_v59 = vrot.slane %v2873_v53, 1  ;;  %v8418_v53 = vld [vmem:[%s10188_s1 + $0x1e0] ss:$8 sps:$4 sm:$0xff]  }
 0x10c   :  { %1162 = vmatprep.subr.bf16.mxu0 %v8313_v60  ;;  %2785 = vmatprep.subr.bf16.mxu1 %v8313_v60  ;;  %v8373_v60 = vld [vmem:[%s10188_s1 + $0x570] ss:$8 sps:$4 sm:$0xff]  }
 0x10f   :  { %1163 = vmatpush1.bf16.msra.mxu0 %v8311_v61  ;;  %2786 = vmatpush1.bf16.msra.mxu1 %v8311_v61  ;;  %v8378_v61 = vld [vmem:[%s10188_s1 + $0x584] ss:$8 sps:$4 sm:$0xff]  }
 0x110   :  { %1164 = vmatprep.subr.bf16.mxu0 %v8316_v62  ;;  %2787 = vmatprep.subr.bf16.mxu1 %v8316_v62  ;;  %v1254_v62 = vor.u32 %v1253_v57, %v1249_v56  ;;  %v8426_v56 = vld [vmem:[%s10188_s1 + $0x204] ss:$8 sps:$4 sm:$0xff]   ;;  %v8424_v57 = vld [vmem:[%s10188_s1 + $0x200] ss:$8 sps:$4 sm:$0xff]  }
 0x113   :  { %1165 = vmatpush1.bf16.msra.mxu0 %v8314_v63  ;;  %2788 = vmatpush1.bf16.msra.mxu1 %v8314_v63  ;;  %v2876_v63 = vor.u32 %v2875_v59, %v2871_v58  ;;  %v8429_v58 = vld [vmem:[%s10188_s1 + $0x214] ss:$8 sps:$4 sm:$0xff]   ;;  %v8427_v59 = vld [vmem:[%s10188_s1 + $0x210] ss:$8 sps:$4 sm:$0xff]  }
 0x114   :  { %1166 = vmatprep.subr.bf16.mxu0 %v8319_v0  ;;  %2789 = vmatprep.subr.bf16.mxu1 %v8319_v0  ;;  %v8379_v0 = vld [vmem:[%s10188_s1 + $0x590] ss:$8 sps:$4 sm:$0xff]  }
 0x117   :  { %1167 = vmatpush1.bf16.msra.mxu0 %v8317_v2  ;;  %2790 = vmatpush1.bf16.msra.mxu1 %v8317_v2  ;;  %v8384_v2 = vld [vmem:[%s10188_s1 + $0x5a4] ss:$8 sps:$4 sm:$0xff]  }
 0x118   :  { %1168 = vmatprep.subr.bf16.mxu0 %v8322_v21  ;;  %2791 = vmatprep.subr.bf16.mxu1 %v8322_v21  ;;  %v8382_v21 = vld [vmem:[%s10188_s1 + $0x5a0] ss:$8 sps:$4 sm:$0xff]  }
 0x11b   :  { %1169 = vmatpush1.bf16.msra.mxu0 %v8320_v25  ;;  %2792 = vmatpush1.bf16.msra.mxu1 %v8320_v25  ;;  %v8387_v25 = vld [vmem:[%s10188_s1 + $0x5b4] ss:$8 sps:$4 sm:$0xff]  }
 0x11c   :  { %1170 = vmatprep.subr.bf16.mxu0 %v8325_v3  ;;  %2793 = vmatprep.subr.bf16.mxu1 %v8325_v3  ;;  %v8385_v3 = vld [vmem:[%s10188_s1 + $0x5b0] ss:$8 sps:$4 sm:$0xff]  }
 0x11f   :  { %1171 = vmatpush1.bf16.msra.mxu0 %v8323_v8  ;;  %2794 = vmatpush1.bf16.msra.mxu1 %v8323_v8  ;;  %v8393_v8 = vld [vmem:[%s10188_s1 + $0x5d4] ss:$8 sps:$4 sm:$0xff]  }
 0x120   :  { %1512 = vmatprep.subr.bf16.mxu0 %v8328_v9  ;;  %3134 = vmatprep.subr.bf16.mxu1 %v8328_v9  ;;  %v9414_v9 = vrot.slane %v9399_v5, %v8760_v16 }
 0x122   :  { %1189 = vmatmul.mubr.bf16.vlgmr.msra.gmra.mrb[0].mxu0 %v9263_v15  ;;  %2812 = vmatmul.mubr.bf16.vlgmr.msra.gmra.mrb[0].mxu1 %v9266_v22  ;;  %v9428_v18 = vcombine.high %v9414_v9, %v9414_v9 }
 0x123   :  { %1513 = vmatpush1.bf16.msra.mxu0 %v8326_v23  ;;  %3135 = vmatpush1.bf16.msra.mxu1 %v8326_v23  ;;  %v9432_v23 = vcombine.high %v9418_v12, %v9418_v12 }
 0x124   :  { %1514 = vmatprep.subr.bf16.mxu0 %v8333_v26  ;;  %3136 = vmatprep.subr.bf16.mxu1 %v8333_v26  ;;  %v1265_v26 = vshll.u32 %v9263_v15, 16 }
 0x125   :  { %1544 = vmatprep.mubr.bf16.mxu0 %v1261_v27  ;;  %3166 = vmatprep.mubr.bf16.mxu1 %v2883_v29  ;;  %v2887_v27 = vshll.u32 %v9266_v22, 16  ;;  %v8394_v29 = vld [vmem:[%s10188_s1 + $0x5e0] ss:$8 sps:$4 sm:$0xff]  }
 0x127   :  { %1515 = vmatpush1.bf16.msra.mxu0 %v8331_v30  ;;  %3137 = vmatpush1.bf16.msra.mxu1 %v8331_v30  ;;  %v8399_v30 = vld [vmem:[%s10188_s1 + $0x5f4] ss:$8 sps:$4 sm:$0xff]  }
 0x128   :  { %1516 = vmatprep.subr.bf16.mxu0 %v8336_v10  ;;  %3138 = vmatprep.subr.bf16.mxu1 %v8336_v10  ;;  %v3390_v10 = vshll.u32 %v9428_v18, 16 }
 0x12b   :  { %1517 = vmatpush1.bf16.msra.mxu0 %v8334_v11  ;;  %3139 = vmatpush1.bf16.msra.mxu1 %v8334_v11  ;;  %v5012_v11 = vshll.u32 %v9432_v23, 16 }
 0x12c   :  { %1518 = vmatprep.subr.bf16.mxu0 %v8339_v31  ;;  %3140 = vmatprep.subr.bf16.mxu1 %v8339_v31  ;;  %v1263_v31 = vshrl.u32 %v9263_v15, 16  ;;  %v5010_v15 = vshrl.u32 %v9432_v23, 16 }
 0x12f   :  { %1519 = vmatpush1.bf16.msra.mxu0 %v8337_v32  ;;  %3141 = vmatpush1.bf16.msra.mxu1 %v8337_v32  ;;  %v1267_v32 = vrot.slane %v1265_v26, 1 }
 0x130   :  { %1520 = vmatprep.subr.bf16.mxu0 %v8342_v33  ;;  %3142 = vmatprep.subr.bf16.mxu1 %v8342_v33  ;;  %v2885_v33 = vshrl.u32 %v9266_v22, 16 }
 0x131   :  { %v1268_v22 = vor.u32 %v1267_v32, %v1263_v31  ;;  %v8453_v31 = vld [vmem:[%s10188_s1 + $0x294] ss:$8 sps:$4 sm:$0xff]   ;;  %v8451_v32 = vld [vmem:[%s10188_s1 + $0x290] ss:$8 sps:$4 sm:$0xff]  }
 0x133   :  { %1521 = vmatpush1.bf16.msra.mxu0 %v8340_v34  ;;  %3143 = vmatpush1.bf16.msra.mxu1 %v8340_v34  ;;  %v2889_v34 = vrot.slane %v2887_v27, 1  ;;  %v8445_v27 = vld [vmem:[%s10188_s1 + $0x270] ss:$8 sps:$4 sm:$0xff]  }
 0x134   :  { %1522 = vmatprep.subr.bf16.mxu0 %v8345_v35  ;;  %3144 = vmatprep.subr.bf16.mxu1 %v8345_v35  ;;  %v8397_v35 = vld [vmem:[%s10188_s1 + $0x5f0] ss:$8 sps:$4 sm:$0xff]  }
 0x137   :  { %1523 = vmatpush1.bf16.msra.mxu0 %v8343_v36  ;;  %3145 = vmatpush1.bf16.msra.mxu1 %v8343_v36  ;;  %v8402_v36 = vld [vmem:[%s10188_s1 + $0x184] ss:$8 sps:$4 sm:$0xff]  }
 0x138   :  { %1524 = vmatprep.subr.bf16.mxu0 %v8348_v37  ;;  %3146 = vmatprep.subr.bf16.mxu1 %v8348_v37  ;;  %v3388_v37 = vshrl.u32 %v9428_v18, 16 }
 0x13b   :  { %1525 = vmatpush1.bf16.msra.mxu0 %v8346_v24  ;;  %3147 = vmatpush1.bf16.msra.mxu1 %v8346_v24  ;;  %v3392_v24 = vrot.slane %v3390_v10, 1 }
 0x13c   :  { %1526 = vmatprep.subr.bf16.mxu0 %v8351_v28  ;;  %3148 = vmatprep.subr.bf16.mxu1 %v8351_v28  ;;  %v5014_v28 = vrot.slane %v5012_v11, 1  ;;  %v8448_v11 = vld [vmem:[%s10188_s1 + $0x280] ss:$8 sps:$4 sm:$0xff]  }
 0x13f   :  { %1527 = vmatpush1.bf16.msra.mxu0 %v8349_v38  ;;  %3149 = vmatpush1.bf16.msra.mxu1 %v8349_v38  ;;  %v2890_v38 = vor.u32 %v2889_v34, %v2885_v33  ;;  %v8456_v33 = vld [vmem:[%s10188_s1 + $0x2a4] ss:$8 sps:$4 sm:$0xff]   ;;  %v8454_v34 = vld [vmem:[%s10188_s1 + $0x2a0] ss:$8 sps:$4 sm:$0xff]  }
 0x140   :  { %1528 = vmatprep.subr.bf16.mxu0 %v8354_v39  ;;  %3150 = vmatprep.subr.bf16.mxu1 %v8354_v39  ;;  %v8400_v39 = vld [vmem:[%s10188_s1 + $0x180] ss:$8 sps:$4 sm:$0xff]  }
 0x143   :  { %1529 = vmatpush1.bf16.msra.mxu0 %v8352_v40  ;;  %3151 = vmatpush1.bf16.msra.mxu1 %v8352_v40  ;;  %v8405_v40 = vld [vmem:[%s10188_s1 + $0x194] ss:$8 sps:$4 sm:$0xff]  }
 0x144   :  { %1530 = vmatprep.subr.bf16.mxu0 %v8357_v41  ;;  %3152 = vmatprep.subr.bf16.mxu1 %v8357_v41  ;;  %v3393_v41 = vor.u32 %v3392_v24, %v3388_v37  ;;  %v8462_v37 = vld [vmem:[%s10188_s1 + $0x2c4] ss:$8 sps:$4 sm:$0xff]   ;;  %v3364_v24 = vcombine.high %v9399_v5, %v9399_v5 }
 0x147   :  { %1531 = vmatpush1.bf16.msra.mxu0 %v8355_v42  ;;  %3153 = vmatpush1.bf16.msra.mxu1 %v8355_v42  ;;  %v5015_v42 = vor.u32 %v5014_v28, %v5010_v15  ;;  %v4986_v15 = vcombine.high %v9404_v6, %v9404_v6  ;;  %v8460_v28 = vld [vmem:[%s10188_s1 + $0x2c0] ss:$8 sps:$4 sm:$0xff]   ;;  %v8463_v6 = vld [vmem:[%s10188_s1 + $0x2d0] ss:$8 sps:$4 sm:$0xff]  }
 0x148   :  { %1532 = vmatprep.subr.bf16.mxu0 %v8360_v43  ;;  %3154 = vmatprep.subr.bf16.mxu1 %v8360_v43  ;;  %v8403_v43 = vld [vmem:[%s10188_s1 + $0x190] ss:$8 sps:$4 sm:$0xff]  }
 0x149   :  { %v9594_v5 = vrot.slane %v4986_v15, %v8760_v16  ;;  %v8537_v15 = vld [vmem:[%s10188_s1 + $0x150] ss:$8 sps:$4 sm:$0xff]  }
 0x14b   :  { %1533 = vmatpush1.bf16.msra.mxu0 %v8358_v44  ;;  %3155 = vmatpush1.bf16.msra.mxu1 %v8358_v44  ;;  %v8408_v44 = vld [vmem:[%s10188_s1 + $0x1a4] ss:$8 sps:$4 sm:$0xff]  }
 0x14c   :  { %1534 = vmatprep.subr.bf16.mxu0 %v8363_v45  ;;  %3156 = vmatprep.subr.bf16.mxu1 %v8363_v45  ;;  %v8406_v45 = vld [vmem:[%s10188_s1 + $0x1a0] ss:$8 sps:$4 sm:$0xff]  }
 0x14f   :  { %1535 = vmatpush1.bf16.msra.mxu0 %v8361_v46  ;;  %3157 = vmatpush1.bf16.msra.mxu1 %v8361_v46  ;;  %v8411_v46 = vld [vmem:[%s10188_s1 + $0x1b4] ss:$8 sps:$4 sm:$0xff]  }
 0x150   :  { %1536 = vmatprep.subr.bf16.mxu0 %v8366_v47  ;;  %3158 = vmatprep.subr.bf16.mxu1 %v8366_v47  ;;  %v8409_v47 = vld [vmem:[%s10188_s1 + $0x1b0] ss:$8 sps:$4 sm:$0xff]  }
 0x153   :  { %1537 = vmatpush1.bf16.msra.mxu0 %v8364_v48  ;;  %3159 = vmatpush1.bf16.msra.mxu1 %v8364_v48  ;;  %v8414_v48 = vld [vmem:[%s10188_s1 + $0x1c4] ss:$8 sps:$4 sm:$0xff]  }
 0x154   :  { %1538 = vmatprep.subr.bf16.mxu0 %v8369_v49  ;;  %3160 = vmatprep.subr.bf16.mxu1 %v8369_v49  ;;  %v8412_v49 = vld [vmem:[%s10188_s1 + $0x1c0] ss:$8 sps:$4 sm:$0xff]  }
 0x157   :  { %1539 = vmatpush1.bf16.msra.mxu0 %v8367_v50  ;;  %3161 = vmatpush1.bf16.msra.mxu1 %v8367_v50  ;;  %v8417_v50 = vld [vmem:[%s10188_s1 + $0x1d4] ss:$8 sps:$4 sm:$0xff]  }
 0x158   :  { %1540 = vmatprep.subr.bf16.mxu0 %v8372_v51  ;;  %3162 = vmatprep.subr.bf16.mxu1 %v8372_v51  ;;  %v8415_v51 = vld [vmem:[%s10188_s1 + $0x1d0] ss:$8 sps:$4 sm:$0xff]  }
 0x15b   :  { %1541 = vmatpush1.bf16.msra.mxu0 %v8370_v54  ;;  %3163 = vmatpush1.bf16.msra.mxu1 %v8370_v54  ;;  %v8423_v54 = vld [vmem:[%s10188_s1 + $0x1f4] ss:$8 sps:$4 sm:$0xff]  }
 0x15c   :  { %1542 = vmatprep.subr.bf16.mxu0 %v8375_v55  ;;  %3164 = vmatprep.subr.bf16.mxu1 %v8375_v55  ;;  %v8421_v55 = vld [vmem:[%s10188_s1 + $0x1f0] ss:$8 sps:$4 sm:$0xff]  }
 0x15f   :  { %1543 = vmatpush1.bf16.msra.mxu0 %v8373_v60  ;;  %3165 = vmatpush1.bf16.msra.mxu1 %v8373_v60  ;;  %v8432_v60 = vld [vmem:[%s10188_s1 + $0x224] ss:$8 sps:$4 sm:$0xff]  }
 0x160   :  { %1553 = vmatprep.subr.bf16.mxu0 %v8378_v61  ;;  %3175 = vmatprep.subr.bf16.mxu1 %v8378_v61  ;;  %v8430_v61 = vld [vmem:[%s10188_s1 + $0x220] ss:$8 sps:$4 sm:$0xff]  }
 0x162   :  { %1545 = vmatmul.mubr.bf16.vlgmr.msra.gmra.mrb[0].mxu0 %v1254_v62  ;;  %3167 = vmatmul.mubr.bf16.vlgmr.msra.gmra.mrb[0].mxu1 %v2876_v63  ;;  %v8435_v62 = vld [vmem:[%s10188_s1 + $0x234] ss:$8 sps:$4 sm:$0xff]   ;;  %v8433_v63 = vld [vmem:[%s10188_s1 + $0x230] ss:$8 sps:$4 sm:$0xff]  }
 0x163   :  { %1554 = vmatpush1.bf16.msra.mxu0 %v8376_v19  ;;  %3176 = vmatpush1.bf16.msra.mxu1 %v8376_v19  ;;  %v8438_v19 = vld [vmem:[%s10188_s1 + $0x244] ss:$8 sps:$4 sm:$0xff]  }
 0x164   :  { %1555 = vmatprep.subr.bf16.mxu0 %v8381_v20  ;;  %3177 = vmatprep.subr.bf16.mxu1 %v8381_v20  ;;  %v8436_v20 = vld [vmem:[%s10188_s1 + $0x240] ss:$8 sps:$4 sm:$0xff]  }
 0x165   :  { %1585 = vmatprep.mubr.bf16.mxu0 %v8697_v1  ;;  %3207 = vmatprep.mubr.bf16.mxu1 %v8697_v1 }
 0x167   :  { %1556 = vmatpush1.bf16.msra.mxu0 %v8379_v0  ;;  %3178 = vmatpush1.bf16.msra.mxu1 %v8379_v0  ;;  %v8441_v0 = vld [vmem:[%s10188_s1 + $0x254] ss:$8 sps:$4 sm:$0xff]  }
 0x168   :  { %1557 = vmatprep.subr.bf16.mxu0 %v8384_v2  ;;  %3179 = vmatprep.subr.bf16.mxu1 %v8384_v2  ;;  %v8439_v2 = vld [vmem:[%s10188_s1 + $0x250] ss:$8 sps:$4 sm:$0xff]  }
 0x16b   :  { %1558 = vmatpush1.bf16.msra.mxu0 %v8382_v21  ;;  %3180 = vmatpush1.bf16.msra.mxu1 %v8382_v21  ;;  %v8444_v21 = vld [vmem:[%s10188_s1 + $0x264] ss:$8 sps:$4 sm:$0xff]  }
 0x16c   :  { %1559 = vmatprep.subr.bf16.mxu0 %v8387_v25  ;;  %3181 = vmatprep.subr.bf16.mxu1 %v8387_v25  ;;  %v3383_v25 = vshll.u32 %v9414_v9, 16 }
 0x16f   :  { %1560 = vmatpush1.bf16.msra.mxu0 %v8385_v3  ;;  %3182 = vmatpush1.bf16.msra.mxu1 %v8385_v3  ;;  %v5005_v3 = vshll.u32 %v9418_v12, 16 }
 0x170   :  { %1561 = vmatprep.subr.bf16.mxu0 %v8390_v4  ;;  %3183 = vmatprep.subr.bf16.mxu1 %v8390_v4  ;;  %v8442_v4 = vld [vmem:[%s10188_s1 + $0x260] ss:$8 sps:$4 sm:$0xff]  }
 0x171   :  { %v5007_v26 = vrot.slane %v5005_v3, 1  ;;  %v8504_v3 = vld [vmem:[%s10188_s1 + $0xa0] ss:$8 sps:$4 sm:$0xff]  }
 0x173   :  { %1562 = vmatpush1.bf16.msra.mxu0 %v8388_v7  ;;  %3184 = vmatpush1.bf16.msra.mxu1 %v8388_v7  ;;  %v8447_v7 = vld [vmem:[%s10188_s1 + $0x274] ss:$8 sps:$4 sm:$0xff]  }
 0x174   :  { %1563 = vmatprep.subr.bf16.mxu0 %v8393_v8  ;;  %3185 = vmatprep.subr.bf16.mxu1 %v8393_v8  ;;  %v3381_v8 = vshrl.u32 %v9414_v9, 16 }
 0x177   :  { %1564 = vmatpush1.bf16.msra.mxu0 %v8391_v17  ;;  %3186 = vmatpush1.bf16.msra.mxu1 %v8391_v17  ;;  %v3385_v17 = vrot.slane %v3383_v25, 1  ;;  %v8506_v25 = vld [vmem:[%s10188_s1 + $0xa4] ss:$8 sps:$4 sm:$0xff]  }
 0x178   :  { %1565 = vmatprep.subr.bf16.mxu0 %v8396_v14  ;;  %3187 = vmatprep.subr.bf16.mxu1 %v8396_v14  ;;  %v5003_v14 = vshrl.u32 %v9418_v12, 16 }
 0x17a   :  { %v5008_v10 = vor.u32 %v5007_v26, %v5003_v14  ;;  %v8515_v14 = vld [vmem:[%s10188_s1 + $0xd4] ss:$8 sps:$4 sm:$0xff]   ;;  %v8513_v26 = vld [vmem:[%s10188_s1 + $0xd0] ss:$8 sps:$4 sm:$0xff]  }
 0x17b   :  { %1566 = vmatpush1.bf16.msra.mxu0 %v8394_v29  ;;  %3188 = vmatpush1.bf16.msra.mxu1 %v8394_v29  ;;  %v8450_v29 = vld [vmem:[%s10188_s1 + $0x284] ss:$8 sps:$4 sm:$0xff]  }
 0x17c   :  { %1567 = vmatprep.subr.bf16.mxu0 %v8399_v30  ;;  %3189 = vmatprep.subr.bf16.mxu1 %v8399_v30  ;;  %v3386_v30 = vor.u32 %v3385_v17, %v3381_v8  ;;  %v8512_v8 = vld [vmem:[%s10188_s1 + $0xc4] ss:$8 sps:$4 sm:$0xff]   ;;  %v8510_v17 = vld [vmem:[%s10188_s1 + $0xc0] ss:$8 sps:$4 sm:$0xff]  }
 0x17f   :  { %1568 = vmatpush1.bf16.msra.mxu0 %v8397_v35  ;;  %3190 = vmatpush1.bf16.msra.mxu1 %v8397_v35  ;;  %v8459_v35 = vld [vmem:[%s10188_s1 + $0x2b4] ss:$8 sps:$4 sm:$0xff]  }
 0x180   :  { %3644 = vmatprep.subr.bf16.mxu0 %v8402_v36  ;;  %5266 = vmatprep.subr.bf16.mxu1 %v8402_v36  ;;  %v8457_v36 = vld [vmem:[%s10188_s1 + $0x2b0] ss:$8 sps:$4 sm:$0xff]  }
 0x182   :  { %1586 = vmatmul.mubr.bf16.vlgmr.msra.gmra.mrb[0].mxu0 %v1268_v22  ;;  %3208 = vmatmul.mubr.bf16.vlgmr.msra.gmra.mrb[0].mxu1 %v2890_v38  ;;  %v8465_v22 = vld [vmem:[%s10188_s1 + $0x2d4] ss:$8 sps:$4 sm:$0xff]   ;;  %v9591_v38 = vrot.slane %v3364_v24, %v8760_v16 }
 0x183   :  { %3645 = vmatpush1.bf16.msra.mxu0 %v8400_v39  ;;  %5267 = vmatpush1.bf16.msra.mxu1 %v8400_v39  ;;  %v8468_v39 = vld [vmem:[%s10188_s1 + $0x2e4] ss:$8 sps:$4 sm:$0xff]   ;;  %v8539_v24 = vld [vmem:[%s10188_s1 + $0x154] ss:$8 sps:$4 sm:$0xff]  }
 0x184   :  { %3646 = vmatprep.subr.bf16.mxu0 %v8405_v40  ;;  %5268 = vmatprep.subr.bf16.mxu1 %v8405_v40  ;;  %v3397_v40 = vshll.u32 %v9591_v38, 16 }
 0x185   :  { %3676 = vmatprep.mubr.bf16.mxu0 %v3393_v41  ;;  %5298 = vmatprep.mubr.bf16.mxu1 %v5015_v42  ;;  %v5019_v41 = vshll.u32 %v9594_v5, 16  ;;  %v8466_v42 = vld [vmem:[%s10188_s1 + $0x2e0] ss:$8 sps:$4 sm:$0xff]  }
 0x187   :  { %3647 = vmatpush1.bf16.msra.mxu0 %v8403_v43  ;;  %5269 = vmatpush1.bf16.msra.mxu1 %v8403_v43  ;;  %v8471_v43 = vld [vmem:[%s10188_s1 + $0x2f4] ss:$8 sps:$4 sm:$0xff]  }
 0x188   :  { %3648 = vmatprep.subr.bf16.mxu0 %v8408_v44  ;;  %5270 = vmatprep.subr.bf16.mxu1 %v8408_v44  ;;  %v3395_v44 = vshrl.u32 %v9591_v38, 16 }
 0x18b   :  { %3649 = vmatpush1.bf16.msra.mxu0 %v8406_v45  ;;  %5271 = vmatpush1.bf16.msra.mxu1 %v8406_v45  ;;  %v3399_v45 = vrot.slane %v3397_v40, 1  ;;  %v9770_v40 = vld [vmem:[%s10189_s0 + $0x1e] sm:$0x3f] }
 0x18c   :  { %3650 = vmatprep.subr.bf16.mxu0 %v8411_v46  ;;  %5272 = vmatprep.subr.bf16.mxu1 %v8411_v46  ;;  %v5017_v46 = vshrl.u32 %v9594_v5, 16 }
 0x18f   :  { %3651 = vmatpush1.bf16.msra.mxu0 %v8409_v47  ;;  %5273 = vmatpush1.bf16.msra.mxu1 %v8409_v47  ;;  %v5021_v47 = vrot.slane %v5019_v41, 1  ;;  %v8543_v41 = vld [vmem:[%s10188_s1 + $0x170] ss:$8 sps:$4 sm:$0xff]  }
 0x190   :  { %3652 = vmatprep.subr.bf16.mxu0 %v8414_v48  ;;  %5274 = vmatprep.subr.bf16.mxu1 %v8414_v48  ;;  %v8469_v48 = vld [vmem:[%s10188_s1 + $0x2f0] ss:$8 sps:$4 sm:$0xff]  }
 0x193   :  { %3653 = vmatpush1.bf16.msra.mxu0 %v8412_v49  ;;  %5275 = vmatpush1.bf16.msra.mxu1 %v8412_v49  ;;  %v8474_v49 = vld [vmem:[%s10188_s1 + $0x4] ss:$8 sps:$4 sm:$0xff]  }
 0x194   :  { %3654 = vmatprep.subr.bf16.mxu0 %v8417_v50  ;;  %5276 = vmatprep.subr.bf16.mxu1 %v8417_v50  ;;  %v3400_v50 = vor.u32 %v3399_v45, %v3395_v44  ;;  %v9784_v44 = vrot.slane %v9770_v40, %v8760_v16  ;;  %v8546_v45 = vld [vmem:[%s10188_s1 + $0x300] ss:$8 sps:$4 sm:$0xff]  }
 0x197   :  { %3655 = vmatpush1.bf16.msra.mxu0 %v8415_v51  ;;  %5277 = vmatpush1.bf16.msra.mxu1 %v8415_v51  ;;  %v5022_v51 = vor.u32 %v5021_v47, %v5017_v46  ;;  %v8551_v46 = vld [vmem:[%s10188_s1 + $0x314] ss:$8 sps:$4 sm:$0xff]  }
 0x198   :  { %3656 = vmatprep.subr.bf16.mxu0 %v8420_v52  ;;  %5278 = vmatprep.subr.bf16.mxu1 %v8420_v52  ;;  %v8472_v52 = vld [vmem:[%s10188_s1] ss:$8 sps:$4 sm:$0xff]  }
 0x19b   :  { %3657 = vmatpush1.bf16.msra.mxu0 %v8418_v53  ;;  %5279 = vmatpush1.bf16.msra.mxu1 %v8418_v53  ;;  %v8479_v53 = vld [vmem:[%s10188_s1 + $0x14] ss:$8 sps:$4 sm:$0xff]  }
 0x19c   :  { %3658 = vmatprep.subr.bf16.mxu0 %v8423_v54  ;;  %5280 = vmatprep.subr.bf16.mxu1 %v8423_v54  ;;  %v8477_v54 = vld [vmem:[%s10188_s1 + $0x10] ss:$8 sps:$4 sm:$0xff]  }
 0x19f   :  { %3659 = vmatpush1.bf16.msra.mxu0 %v8421_v55  ;;  %5281 = vmatpush1.bf16.msra.mxu1 %v8421_v55  ;;  %v8482_v55 = vld [vmem:[%s10188_s1 + $0x24] ss:$8 sps:$4 sm:$0xff]  }
 0x1a0   :  { %3660 = vmatprep.subr.bf16.mxu0 %v8426_v56  ;;  %5282 = vmatprep.subr.bf16.mxu1 %v8426_v56  ;;  %v8480_v56 = vld [vmem:[%s10188_s1 + $0x20] ss:$8 sps:$4 sm:$0xff]  }
 0x1a3   :  { %3661 = vmatpush1.bf16.msra.mxu0 %v8424_v57  ;;  %5283 = vmatpush1.bf16.msra.mxu1 %v8424_v57  ;;  %v8485_v57 = vld [vmem:[%s10188_s1 + $0x34] ss:$8 sps:$4 sm:$0xff]  }
 0x1a4   :  { %3662 = vmatprep.subr.bf16.mxu0 %v8429_v58  ;;  %5284 = vmatprep.subr.bf16.mxu1 %v8429_v58  ;;  %v8486_v58 = vld [vmem:[%s10188_s1 + $0x40] ss:$8 sps:$4 sm:$0xff]  }
 0x1a7   :  { %3663 = vmatpush1.bf16.msra.mxu0 %v8427_v59  ;;  %5285 = vmatpush1.bf16.msra.mxu1 %v8427_v59  ;;  %v8491_v59 = vld [vmem:[%s10188_s1 + $0x54] ss:$8 sps:$4 sm:$0xff]  }
 0x1a8   :  { %3664 = vmatprep.subr.bf16.mxu0 %v8432_v60  ;;  %5286 = vmatprep.subr.bf16.mxu1 %v8432_v60  ;;  %v8489_v60 = vld [vmem:[%s10188_s1 + $0x50] ss:$8 sps:$4 sm:$0xff]  }
 0x1ab   :  { %3665 = vmatpush1.bf16.msra.mxu0 %v8430_v61  ;;  %5287 = vmatpush1.bf16.msra.mxu1 %v8430_v61  ;;  %v8494_v61 = vld [vmem:[%s10188_s1 + $0x64] ss:$8 sps:$4 sm:$0xff]  }
 0x1ac   :  { %3666 = vmatprep.subr.bf16.mxu0 %v8435_v62  ;;  %5288 = vmatprep.subr.bf16.mxu1 %v8435_v62  ;;  %v8492_v62 = vld [vmem:[%s10188_s1 + $0x60] ss:$8 sps:$4 sm:$0xff]  }
 0x1af   :  { %3667 = vmatpush1.bf16.msra.mxu0 %v8433_v63  ;;  %5289 = vmatpush1.bf16.msra.mxu1 %v8433_v63  ;;  %v8497_v63 = vld [vmem:[%s10188_s1 + $0x74] ss:$8 sps:$4 sm:$0xff]  }
 0x1b0   :  { %3668 = vmatprep.subr.bf16.mxu0 %v8438_v19  ;;  %5290 = vmatprep.subr.bf16.mxu1 %v8438_v19  ;;  %v8495_v19 = vld [vmem:[%s10188_s1 + $0x70] ss:$8 sps:$4 sm:$0xff]  }
 0x1b3   :  { %3669 = vmatpush1.bf16.msra.mxu0 %v8436_v20  ;;  %5291 = vmatpush1.bf16.msra.mxu1 %v8436_v20  ;;  %v8500_v20 = vld [vmem:[%s10188_s1 + $0x84] ss:$8 sps:$4 sm:$0xff]  }
 0x1b4   :  { %3670 = vmatprep.subr.bf16.mxu0 %v8441_v0  ;;  %5292 = vmatprep.subr.bf16.mxu1 %v8441_v0  ;;  %v8498_v0 = vld [vmem:[%s10188_s1 + $0x80] ss:$8 sps:$4 sm:$0xff]  }
 0x1b7   :  { %3671 = vmatpush1.bf16.msra.mxu0 %v8439_v2  ;;  %5293 = vmatpush1.bf16.msra.mxu1 %v8439_v2  ;;  %v8503_v2 = vld [vmem:[%s10188_s1 + $0x94] ss:$8 sps:$4 sm:$0xff]  }
 0x1b8   :  { %3672 = vmatprep.subr.bf16.mxu0 %v8444_v21  ;;  %5294 = vmatprep.subr.bf16.mxu1 %v8444_v21  ;;  %v8501_v21 = vld [vmem:[%s10188_s1 + $0x90] ss:$8 sps:$4 sm:$0xff]  }
 0x1bb   :  { %3673 = vmatpush1.bf16.msra.mxu0 %v8442_v4  ;;  %5295 = vmatpush1.bf16.msra.mxu1 %v8442_v4  ;;  %v8509_v4 = vld [vmem:[%s10188_s1 + $0xb4] ss:$8 sps:$4 sm:$0xff]  }
 0x1bc   :  { %3674 = vmatprep.subr.bf16.mxu0 %v8447_v7  ;;  %5296 = vmatprep.subr.bf16.mxu1 %v8447_v7  ;;  %v8507_v7 = vld [vmem:[%s10188_s1 + $0xb0] ss:$8 sps:$4 sm:$0xff]  }
 0x1bf   :  { %3675 = vmatpush1.bf16.msra.mxu0 %v8445_v27  ;;  %5297 = vmatpush1.bf16.msra.mxu1 %v8445_v27  ;;  %v8518_v27 = vld [vmem:[%s10188_s1 + $0xe4] ss:$8 sps:$4 sm:$0xff]  }
 0x1c0   :  { %3685 = vmatprep.subr.bf16.mxu0 %v8450_v29  ;;  %5307 = vmatprep.subr.bf16.mxu1 %v8450_v29  ;;  %v8516_v29 = vld [vmem:[%s10188_s1 + $0xe0] ss:$8 sps:$4 sm:$0xff]  }
 0x1c2   :  { %3677 = vmatmul.mubr.bf16.vlgmr.msra.gmra.mrb[4].mxu0 %v3386_v30  ;;  %5299 = vmatmul.mubr.bf16.vlgmr.msra.gmra.mrb[4].mxu1 %v5008_v10  ;;  %v8521_v30 = vld [vmem:[%s10188_s1 + $0xf4] ss:$8 sps:$4 sm:$0xff]   ;;  %v8519_v10 = vld [vmem:[%s10188_s1 + $0xf0] ss:$8 sps:$4 sm:$0xff]  }
 0x1c3   :  { %3686 = vmatpush1.bf16.msra.mxu0 %v8448_v11  ;;  %5308 = vmatpush1.bf16.msra.mxu1 %v8448_v11  ;;  %v8524_v11 = vld [vmem:[%s10188_s1 + $0x104] ss:$8 sps:$4 sm:$0xff]  }
 0x1c4   :  { %3687 = vmatprep.subr.bf16.mxu0 %v8453_v31  ;;  %5309 = vmatprep.subr.bf16.mxu1 %v8453_v31  ;;  %v8522_v31 = vld [vmem:[%s10188_s1 + $0x100] ss:$8 sps:$4 sm:$0xff]  }
 0x1c5   :  { %3717 = vmatprep.mubr.bf16.mxu0 %v8697_v1  ;;  %5339 = vmatprep.mubr.bf16.mxu1 %v8697_v1 }
 0x1c7   :  { %3688 = vmatpush1.bf16.msra.mxu0 %v8451_v32  ;;  %5310 = vmatpush1.bf16.msra.mxu1 %v8451_v32  ;;  %v8527_v32 = vld [vmem:[%s10188_s1 + $0x114] ss:$8 sps:$4 sm:$0xff]  }
 0x1c8   :  { %3689 = vmatprep.subr.bf16.mxu0 %v8456_v33  ;;  %5311 = vmatprep.subr.bf16.mxu1 %v8456_v33  ;;  %v8525_v33 = vld [vmem:[%s10188_s1 + $0x110] ss:$8 sps:$4 sm:$0xff]  }
 0x1cb   :  { %3690 = vmatpush1.bf16.msra.mxu0 %v8454_v34  ;;  %5312 = vmatpush1.bf16.msra.mxu1 %v8454_v34  ;;  %v8530_v34 = vld [vmem:[%s10188_s1 + $0x124] ss:$8 sps:$4 sm:$0xff]  }
 0x1cc   :  { %3691 = vmatprep.subr.bf16.mxu0 %v8459_v35  ;;  %5313 = vmatprep.subr.bf16.mxu1 %v8459_v35  ;;  %v8531_v35 = vld [vmem:[%s10188_s1 + $0x130] ss:$8 sps:$4 sm:$0xff]  }
 0x1cf   :  { %3692 = vmatpush1.bf16.msra.mxu0 %v8457_v36  ;;  %5314 = vmatpush1.bf16.msra.mxu1 %v8457_v36  ;;  %v8536_v36 = vld [vmem:[%s10188_s1 + $0x144] ss:$8 sps:$4 sm:$0xff]  }
 0x1d0   :  { %3693 = vmatprep.subr.bf16.mxu0 %v8462_v37  ;;  %5315 = vmatprep.subr.bf16.mxu1 %v8462_v37  ;;  %v8534_v37 = vld [vmem:[%s10188_s1 + $0x140] ss:$8 sps:$4 sm:$0xff]  }
 0x1d3   :  { %3694 = vmatpush1.bf16.msra.mxu0 %v8460_v28  ;;  %5316 = vmatpush1.bf16.msra.mxu1 %v8460_v28  ;;  %v8542_v28 = vld [vmem:[%s10188_s1 + $0x164] ss:$8 sps:$4 sm:$0xff]  }
 0x1d4   :  { %3695 = vmatprep.subr.bf16.mxu0 %v8465_v22  ;;  %5317 = vmatprep.subr.bf16.mxu1 %v8465_v22  ;;  %v8540_v22 = vld [vmem:[%s10188_s1 + $0x160] ss:$8 sps:$4 sm:$0xff]  }
 0x1d7   :  { %3696 = vmatpush1.bf16.msra.mxu0 %v8463_v6  ;;  %5318 = vmatpush1.bf16.msra.mxu1 %v8463_v6  ;;  %v8545_v6 = vld [vmem:[%s10188_s1 + $0x174] ss:$8 sps:$4 sm:$0xff]  }
 0x1d8   :  { %3697 = vmatprep.subr.bf16.mxu0 %v8468_v39  ;;  %5319 = vmatprep.subr.bf16.mxu1 %v8468_v39  ;;  %v9765_v39 = vld [vmem:[%s10189_s0 + $0x18] sm:$0x3f] }
 0x1db   :  { %3698 = vmatpush1.bf16.msra.mxu0 %v8466_v42  ;;  %5320 = vmatpush1.bf16.msra.mxu1 %v8466_v42  ;;  %v8548_v42 = vld [vmem:[%s10188_s1 + $0x304] ss:$8 sps:$4 sm:$0xff]  }
 0x1dc   :  { %3699 = vmatprep.subr.bf16.mxu0 %v8471_v43  ;;  %5321 = vmatprep.subr.bf16.mxu1 %v8471_v43  ;;  %v9780_v43 = vrot.slane %v9765_v39, %v8760_v16 }
 0x1de   :  { %v9794_v47 = vcombine.high %v9780_v43, %v9780_v43 }
 0x1df   :  { %3700 = vmatpush1.bf16.msra.mxu0 %v8469_v48  ;;  %5322 = vmatpush1.bf16.msra.mxu1 %v8469_v48  ;;  %v9798_v48 = vcombine.high %v9784_v44, %v9784_v44 }
 0x1e0   :  { %3969 = vmatprep.subr.bf16.mxu0 %v8474_v49  ;;  %5591 = vmatprep.subr.bf16.mxu1 %v8474_v49  ;;  %v8549_v49 = vld [vmem:[%s10188_s1 + $0x310] ss:$8 sps:$4 sm:$0xff]  }
 0x1e2   :  { %3718 = vmatmul.mubr.bf16.vlgmr.msra.gmra.mrb[4].mxu0 %v3400_v50  ;;  %5340 = vmatmul.mubr.bf16.vlgmr.msra.gmra.mrb[4].mxu1 %v5022_v51  ;;  %v8554_v50 = vld [vmem:[%s10188_s1 + $0x324] ss:$8 sps:$4 sm:$0xff]   ;;  %v8555_v51 = vld [vmem:[%s10188_s1 + $0x330] ss:$8 sps:$4 sm:$0xff]  }
 0x1e3   :  { %3970 = vmatpush1.bf16.msra.mxu0 %v8472_v52  ;;  %5592 = vmatpush1.bf16.msra.mxu1 %v8472_v52  ;;  %v8560_v52 = vld [vmem:[%s10188_s1 + $0x344] ss:$8 sps:$4 sm:$0xff]  }
 0x1e4   :  { %3971 = vmatprep.subr.bf16.mxu0 %v8479_v53  ;;  %5593 = vmatprep.subr.bf16.mxu1 %v8479_v53  ;;  %v8558_v53 = vld [vmem:[%s10188_s1 + $0x340] ss:$8 sps:$4 sm:$0xff]  }
 0x1e5   :  { %4001 = vmatprep.mubr.bf16.mxu0 %v9428_v18  ;;  %5623 = vmatprep.mubr.bf16.mxu1 %v9432_v23  ;;  %v8483_v18 = vld [vmem:[%s10188_s1 + $0x30] ss:$8 sps:$4 sm:$0xff]   ;;  %v8488_v23 = vld [vmem:[%s10188_s1 + $0x44] ss:$8 sps:$4 sm:$0xff]  }
 0x1e7   :  { %3972 = vmatpush1.bf16.msra.mxu0 %v8477_v54  ;;  %5594 = vmatpush1.bf16.msra.mxu1 %v8477_v54  ;;  %v8563_v54 = vld [vmem:[%s10188_s1 + $0x354] ss:$8 sps:$4 sm:$0xff]  }
 0x1e8   :  { %3973 = vmatprep.subr.bf16.mxu0 %v8482_v55  ;;  %5595 = vmatprep.subr.bf16.mxu1 %v8482_v55  ;;  %v8561_v55 = vld [vmem:[%s10188_s1 + $0x350] ss:$8 sps:$4 sm:$0xff]  }
 0x1eb   :  { %3974 = vmatpush1.bf16.msra.mxu0 %v8480_v56  ;;  %5596 = vmatpush1.bf16.msra.mxu1 %v8480_v56  ;;  %v8566_v56 = vld [vmem:[%s10188_s1 + $0x364] ss:$8 sps:$4 sm:$0xff]  }
 0x1ec   :  { %3975 = vmatprep.subr.bf16.mxu0 %v8485_v57  ;;  %5597 = vmatprep.subr.bf16.mxu1 %v8485_v57 }
 0x1ef   :  { %3976 = vmatpush1.bf16.msra.mxu0 %v8483_v18  ;;  %5598 = vmatpush1.bf16.msra.mxu1 %v8483_v18 }
 0x1f0   :  { %3977 = vmatprep.subr.bf16.mxu0 %v8488_v23  ;;  %5599 = vmatprep.subr.bf16.mxu1 %v8488_v23  ;;  %v8564_v23 = vld [vmem:[%s10188_s1 + $0x360] ss:$8 sps:$4 sm:$0xff]  }
 0x1f3   :  { %3978 = vmatpush1.bf16.msra.mxu0 %v8486_v58  ;;  %5600 = vmatpush1.bf16.msra.mxu1 %v8486_v58 }
 0x1f4   :  { %3979 = vmatprep.subr.bf16.mxu0 %v8491_v59  ;;  %5601 = vmatprep.subr.bf16.mxu1 %v8491_v59 }
 0x1f7   :  { %3980 = vmatpush1.bf16.msra.mxu0 %v8489_v60  ;;  %5602 = vmatpush1.bf16.msra.mxu1 %v8489_v60 }
 0x1f8   :  { %3981 = vmatprep.subr.bf16.mxu0 %v8494_v61  ;;  %5603 = vmatprep.subr.bf16.mxu1 %v8494_v61 }
 0x1fb   :  { %3982 = vmatpush1.bf16.msra.mxu0 %v8492_v62  ;;  %5604 = vmatpush1.bf16.msra.mxu1 %v8492_v62 }
 0x1fc   :  { %3983 = vmatprep.subr.bf16.mxu0 %v8497_v63  ;;  %5605 = vmatprep.subr.bf16.mxu1 %v8497_v63 }
 0x1ff   :  { %3984 = vmatpush1.bf16.msra.mxu0 %v8495_v19  ;;  %5606 = vmatpush1.bf16.msra.mxu1 %v8495_v19  ;;  %v8569_v19 = vld [vmem:[%s10188_s1 + $0x374] ss:$8 sps:$4 sm:$0xff]  }
 0x200   :  { %3985 = vmatprep.subr.bf16.mxu0 %v8500_v20  ;;  %5607 = vmatprep.subr.bf16.mxu1 %v8500_v20 }
 0x203   :  { %3986 = vmatpush1.bf16.msra.mxu0 %v8498_v0  ;;  %5608 = vmatpush1.bf16.msra.mxu1 %v8498_v0 }
 0x204   :  { %3987 = vmatprep.subr.bf16.mxu0 %v8503_v2  ;;  %5609 = vmatprep.subr.bf16.mxu1 %v8503_v2 }
 0x207   :  { %3988 = vmatpush1.bf16.msra.mxu0 %v8501_v21  ;;  %5610 = vmatpush1.bf16.msra.mxu1 %v8501_v21 }
 0x208   :  { %3989 = vmatprep.subr.bf16.mxu0 %v8506_v25  ;;  %5611 = vmatprep.subr.bf16.mxu1 %v8506_v25 }
 0x20b   :  { %3990 = vmatpush1.bf16.msra.mxu0 %v8504_v3  ;;  %5612 = vmatpush1.bf16.msra.mxu1 %v8504_v3 }
 0x20c   :  { %3991 = vmatprep.subr.bf16.mxu0 %v8509_v4  ;;  %5613 = vmatprep.subr.bf16.mxu1 %v8509_v4 }
 0x20f   :  { %3992 = vmatpush1.bf16.msra.mxu0 %v8507_v7  ;;  %5614 = vmatpush1.bf16.msra.mxu1 %v8507_v7 }
 0x210   :  { %3993 = vmatprep.subr.bf16.mxu0 %v8512_v8  ;;  %5615 = vmatprep.subr.bf16.mxu1 %v8512_v8 }
 0x213   :  { %3994 = vmatpush1.bf16.msra.mxu0 %v8510_v17  ;;  %5616 = vmatpush1.bf16.msra.mxu1 %v8510_v17 }
 0x214   :  { %3995 = vmatprep.subr.bf16.mxu0 %v8515_v14  ;;  %5617 = vmatprep.subr.bf16.mxu1 %v8515_v14 }
 0x217   :  { %3996 = vmatpush1.bf16.msra.mxu0 %v8513_v26  ;;  %5618 = vmatpush1.bf16.msra.mxu1 %v8513_v26 }
 0x218   :  { %3997 = vmatprep.subr.bf16.mxu0 %v8518_v27  ;;  %5619 = vmatprep.subr.bf16.mxu1 %v8518_v27 }
 0x21b   :  { %3998 = vmatpush1.bf16.msra.mxu0 %v8516_v29  ;;  %5620 = vmatpush1.bf16.msra.mxu1 %v8516_v29 }
 0x21c   :  { %3999 = vmatprep.subr.bf16.mxu0 %v8521_v30  ;;  %5621 = vmatprep.subr.bf16.mxu1 %v8521_v30 }
 0x21f   :  { %4000 = vmatpush1.bf16.msra.mxu0 %v8519_v10  ;;  %5622 = vmatpush1.bf16.msra.mxu1 %v8519_v10 }
 0x220   :  { %4010 = vmatprep.subr.bf16.mxu0 %v8524_v11  ;;  %5632 = vmatprep.subr.bf16.mxu1 %v8524_v11 }
 0x222   :  { %4002 = vmatmul.mubr.bf16.vlgmr.msra.gmra.mrb[4].mxu0 %v9414_v9  ;;  %5624 = vmatmul.mubr.bf16.vlgmr.msra.gmra.mrb[4].mxu1 %v9418_v12  ;;  %v8528_v9 = vld [vmem:[%s10188_s1 + $0x120] ss:$8 sps:$4 sm:$0xff]   ;;  %v8533_v12 = vld [vmem:[%s10188_s1 + $0x134] ss:$8 sps:$4 sm:$0xff]  }
 0x223   :  { %4011 = vmatpush1.bf16.msra.mxu0 %v8522_v31  ;;  %5633 = vmatpush1.bf16.msra.mxu1 %v8522_v31 }
 0x224   :  { %4012 = vmatprep.subr.bf16.mxu0 %v8527_v32  ;;  %5634 = vmatprep.subr.bf16.mxu1 %v8527_v32 }
 0x225   :  { %4042 = vmatprep.mubr.bf16.mxu0 %v8697_v1  ;;  %5664 = vmatprep.mubr.bf16.mxu1 %v8697_v1 }
 0x227   :  { %4013 = vmatpush1.bf16.msra.mxu0 %v8525_v33  ;;  %5635 = vmatpush1.bf16.msra.mxu1 %v8525_v33 }
 0x228   :  { %4014 = vmatprep.subr.bf16.mxu0 %v8530_v34  ;;  %5636 = vmatprep.subr.bf16.mxu1 %v8530_v34 }
 0x22b   :  { %4015 = vmatpush1.bf16.msra.mxu0 %v8528_v9  ;;  %5637 = vmatpush1.bf16.msra.mxu1 %v8528_v9 }
 0x22c   :  { %4016 = vmatprep.subr.bf16.mxu0 %v8533_v12  ;;  %5638 = vmatprep.subr.bf16.mxu1 %v8533_v12 }
 0x22f   :  { %4017 = vmatpush1.bf16.msra.mxu0 %v8531_v35  ;;  %5639 = vmatpush1.bf16.msra.mxu1 %v8531_v35 }
 0x230   :  { %4018 = vmatprep.subr.bf16.mxu0 %v8536_v36  ;;  %5640 = vmatprep.subr.bf16.mxu1 %v8536_v36  ;;  %v8567_v36 = vld [vmem:[%s10188_s1 + $0x370] ss:$8 sps:$4 sm:$0xff]  }
 0x233   :  { %4019 = vmatpush1.bf16.msra.mxu0 %v8534_v37  ;;  %5641 = vmatpush1.bf16.msra.mxu1 %v8534_v37 }
 0x234   :  { %4020 = vmatprep.subr.bf16.mxu0 %v8539_v24  ;;  %5642 = vmatprep.subr.bf16.mxu1 %v8539_v24 }
 0x237   :  { %4021 = vmatpush1.bf16.msra.mxu0 %v8537_v15  ;;  %5643 = vmatpush1.bf16.msra.mxu1 %v8537_v15 }
 0x238   :  { %4022 = vmatprep.subr.bf16.mxu0 %v8542_v28  ;;  %5644 = vmatprep.subr.bf16.mxu1 %v8542_v28 }
 0x23b   :  { %4023 = vmatpush1.bf16.msra.mxu0 %v8540_v22  ;;  %5645 = vmatpush1.bf16.msra.mxu1 %v8540_v22  ;;  %v8572_v22 = vld [vmem:[%s10188_s1 + $0x384] ss:$8 sps:$4 sm:$0xff]  }
 0x23c   :  { %4024 = vmatprep.subr.bf16.mxu0 %v8545_v6  ;;  %5646 = vmatprep.subr.bf16.mxu1 %v8545_v6 }
 0x23f   :  { %4025 = vmatpush1.bf16.msra.mxu0 %v8543_v41  ;;  %5647 = vmatpush1.bf16.msra.mxu1 %v8543_v41 }
 0x240   :  { %4361 = vmatprep.subr.bf16.mxu0 %v8548_v42  ;;  %5983 = vmatprep.subr.bf16.mxu1 %v8548_v42 }
 0x242   :  { %4043 = vmatmul.mubr.bf16.vlgmr.msra.gmra.mrb[4].mxu0 %v9591_v38  ;;  %5665 = vmatmul.mubr.bf16.vlgmr.msra.gmra.mrb[4].mxu1 %v9594_v5  ;;  %v8552_v38 = vld [vmem:[%s10188_s1 + $0x320] ss:$8 sps:$4 sm:$0xff]   ;;  %v8557_v5 = vld [vmem:[%s10188_s1 + $0x334] ss:$8 sps:$4 sm:$0xff]  }
 0x243   :  { %4362 = vmatpush1.bf16.msra.mxu0 %v8546_v45  ;;  %5984 = vmatpush1.bf16.msra.mxu1 %v8546_v45 }
 0x244   :  { %4363 = vmatprep.subr.bf16.mxu0 %v8551_v46  ;;  %5985 = vmatprep.subr.bf16.mxu1 %v8551_v46 }
 0x245   :  { %4393 = vmatprep.mubr.bf16.mxu0 %v9794_v47  ;;  %6015 = vmatprep.mubr.bf16.mxu1 %v9798_v48 }
 0x247   :  { %4364 = vmatpush1.bf16.msra.mxu0 %v8549_v49  ;;  %5986 = vmatpush1.bf16.msra.mxu1 %v8549_v49 }
 0x248   :  { %4365 = vmatprep.subr.bf16.mxu0 %v8554_v50  ;;  %5987 = vmatprep.subr.bf16.mxu1 %v8554_v50 }
 0x24b   :  { %4366 = vmatpush1.bf16.msra.mxu0 %v8552_v38  ;;  %5988 = vmatpush1.bf16.msra.mxu1 %v8552_v38 }
 0x24c   :  { %4367 = vmatprep.subr.bf16.mxu0 %v8557_v5  ;;  %5989 = vmatprep.subr.bf16.mxu1 %v8557_v5 }
 0x24f   :  { %4368 = vmatpush1.bf16.msra.mxu0 %v8555_v51  ;;  %5990 = vmatpush1.bf16.msra.mxu1 %v8555_v51 }
 0x250   :  { %4369 = vmatprep.subr.bf16.mxu0 %v8560_v52  ;;  %5991 = vmatprep.subr.bf16.mxu1 %v8560_v52 }
 0x253   :  { %4370 = vmatpush1.bf16.msra.mxu0 %v8558_v53  ;;  %5992 = vmatpush1.bf16.msra.mxu1 %v8558_v53 }
 0x254   :  { %4371 = vmatprep.subr.bf16.mxu0 %v8563_v54  ;;  %5993 = vmatprep.subr.bf16.mxu1 %v8563_v54  ;;  %v8570_v54 = vld [vmem:[%s10188_s1 + $0x380] ss:$8 sps:$4 sm:$0xff]  }
 0x255   :  { %v1587_v57 = vpop.f32.mrb[0].mxu0  ;;  %v3209_v18 = vpop.f32.mrb[0].mxu1 }
 0x256   :  { %v1609_v58 = vsel %vm1608_vm0, %v1587_v57, 0.0  ;;  %v1625_v59 = vmul.f32 %v1587_v57, %v1587_v57  ;;  %v3231_v60 = vsel %vm1608_vm0, %v3209_v18, 0.0  ;;  %v3247_v61 = vmul.f32 %v3209_v18, %v3209_v18  ;;  %v1589_v62 = vpop.f32.mrb[1].mxu0  ;;  %v3211_v63 = vpop.f32.mrb[1].mxu1 }
 0x257   :  { %v1610_v20 = vrot.slane %v1609_v58, 4  ;;  %v3232_v0 = vrot.slane %v3231_v60, 4  ;;  %v1598_v2 = vcombine.low %v1587_v57, %v1589_v62  ;;  %v1616_v21 = vsel %vm1608_vm0, %v1589_v62, 0.0  ;;  %v1591_v25 = vpop.f32.mrb[2].mxu0  ;;  %v3213_v3 = vpop.f32.mrb[2].mxu1  ;;  %4372 = vmatpush1.bf16.msra.mxu0 %v8561_v55  ;;  %5994 = vmatpush1.bf16.msra.mxu1 %v8561_v55 }
 0x258   :  { %v1627_v4 = vsel %vm1608_vm0, %v1625_v59, 0.0  ;;  %v3249_v7 = vsel %vm1608_vm0, %v3247_v61, 0.0  ;;  %v1617_v8 = vrot.slane %v1616_v21, 4  ;;  %v1626_v17 = vmul.f32 %v1589_v62, %v1589_v62  ;;  %v1592_v14 = vpop.f32.mrb[3].mxu0  ;;  %v3214_v26 = vpop.f32.mrb[3].mxu1  ;;  %4373 = vmatprep.subr.bf16.mxu0 %v8566_v56  ;;  %5995 = vmatprep.subr.bf16.mxu1 %v8566_v56 }
 0x259   :  { %v1611_v27 = vadd.f32 %v1610_v20, %v1609_v58  ;;  %v1628_v29 = vrot.slane %v1627_v4, 4  ;;  %v3233_v30 = vadd.f32 %v3232_v0, %v3231_v60  ;;  %v3250_v10 = vrot.slane %v3249_v7, 4  ;;  %6966 = vst.sshfl [vmem:[%s10190_s4] sm:$0x33 pattern:$0x76325410] %v1598_v2 }
 0x25a   :  { %v1618_v11 = vadd.f32 %v1617_v8, %v1616_v21  ;;  %v1634_v31 = vsel %vm1608_vm0, %v1626_v17, 0.0  ;;  %v3220_v32 = vcombine.low %v3209_v18, %v3211_v63  ;;  %v3238_v33 = vsel %vm1608_vm0, %v3211_v63, 0.0  ;;  %v8573_v21 = vld [vmem:[%s10188_s1 + $0x390] ss:$8 sps:$4 sm:$0xff]   ;;  %v8578_v8 = vld [vmem:[%s10188_s1 + $0x3a4] ss:$8 sps:$4 sm:$0xff]  }
 0x25b   :  { %v1612_v34 = vrot.slane %v1611_v27, 2  ;;  %v1629_v9 = vadd.f32 %v1628_v29, %v1627_v4  ;;  %v3234_v12 = vrot.slane %v3233_v30, 2  ;;  %v3251_v35 = vadd.f32 %v3250_v10, %v3249_v7  ;;  %4374 = vmatpush1.bf16.msra.mxu0 %v8564_v23  ;;  %5996 = vmatpush1.bf16.msra.mxu1 %v8564_v23  ;;  %v8575_v23 = vld [vmem:[%s10188_s1 + $0x394] ss:$8 sps:$4 sm:$0xff]  }
 0x25c   :  { %v1619_v37 = vrot.slane %v1618_v11, 2  ;;  %v1635_v24 = vrot.slane %v1634_v31, 4  ;;  %7990 = vst.sshfl [vmem:[%s10190_s4 + $0x4] sm:$0x33 pattern:$0x76325410] %v3220_v32  ;;  %v3248_v28 = vmul.f32 %v3211_v63, %v3211_v63  ;;  %4375 = vmatprep.subr.bf16.mxu0 %v8569_v19  ;;  %5997 = vmatprep.subr.bf16.mxu1 %v8569_v19 }
 0x25d   :  { %v3239_v15 = vrot.slane %v3238_v33, 4  ;;  %v1613_v6 = vadd.f32 %v1612_v34, %v1611_v27  ;;  %v1630_v41 = vrot.slane %v1629_v9, 2  ;;  %v3235_v42 = vadd.f32 %v3234_v12, %v3233_v30  ;;  %v8576_v27 = vld [vmem:[%s10188_s1 + $0x3a0] ss:$8 sps:$4 sm:$0xff]   ;;  %v8579_v32 = vld [vmem:[%s10188_s1 + $0x3b0] ss:$8 sps:$4 sm:$0xff]  }
 0x25e   :  { %v3252_v45 = vrot.slane %v3251_v35, 2  ;;  %v1620_v46 = vadd.f32 %v1619_v37, %v1618_v11  ;;  %v1636_v49 = vadd.f32 %v1635_v24, %v1634_v31  ;;  %v3256_v38 = vsel %vm1608_vm0, %v3248_v28, 0.0  ;;  %v8581_v11 = vld [vmem:[%s10188_s1 + $0x3b4] ss:$8 sps:$4 sm:$0xff]   ;;  %v8584_v34 = vld [vmem:[%s10188_s1 + $0x3c4] ss:$8 sps:$4 sm:$0xff]  }
 0x25f   :  { %v3240_v50 = vadd.f32 %v3239_v15, %v3238_v33  ;;  %v1614_v5 = vrot.slane %v1613_v6, 1  ;;  %v1631_v51 = vadd.f32 %v1630_v41, %v1629_v9  ;;  %v3236_v52 = vrot.slane %v3235_v42, 1  ;;  %4376 = vmatpush1.bf16.msra.mxu0 %v8567_v36  ;;  %5998 = vmatpush1.bf16.msra.mxu1 %v8567_v36  ;;  %v8582_v9 = vld [vmem:[%s10188_s1 + $0x3c0] ss:$8 sps:$4 sm:$0xff]   ;;  %v8587_v12 = vld [vmem:[%s10188_s1 + $0x3d4] ss:$8 sps:$4 sm:$0xff]  }
 0x260   :  { %v3253_v53 = vadd.f32 %v3252_v45, %v3251_v35  ;;  %v1621_v55 = vrot.slane %v1620_v46, 1  ;;  %v1637_v56 = vrot.slane %v1636_v49, 2  ;;  %v3257_v18 = vrot.slane %v3256_v38, 4  ;;  %4377 = vmatprep.subr.bf16.mxu0 %v8572_v22  ;;  %5999 = vmatprep.subr.bf16.mxu1 %v8572_v22  ;;  %v8585_v35 = vld [vmem:[%s10188_s1 + $0x3d0] ss:$8 sps:$4 sm:$0xff]  }
 0x261   :  { %v3241_v57 = vrot.slane %v3240_v50, 2  ;;  %v1615_v58 = vadd.f32 %v1614_v5, %v1613_v6  ;;  %v1632_v59 = vrot.slane %v1631_v51, 1  ;;  %v3237_v60 = vadd.f32 %v3236_v52, %v3235_v42  ;;  %v8590_v36 = vld [vmem:[%s10188_s1 + $0x3e4] ss:$8 sps:$4 sm:$0xff]   ;;  %v8588_v37 = vld [vmem:[%s10188_s1 + $0x3e0] ss:$8 sps:$4 sm:$0xff]  }
 0x262   :  { %v3254_v61 = vrot.slane %v3253_v53, 1  ;;  %v1638_v62 = vadd.f32 %v1637_v56, %v1636_v49  ;;  %v3258_v19 = vadd.f32 %v3257_v18, %v3256_v38  ;;  %v1622_v25 = vadd.f32 %v1621_v55, %v1620_v46  ;;  %v8593_v24 = vld [vmem:[%s10188_s1 + $0x3f4] ss:$8 sps:$4 sm:$0xff]   ;;  %v8591_v15 = vld [vmem:[%s10188_s1 + $0x3f0] ss:$8 sps:$4 sm:$0xff]  }
 0x263   :  { %v3242_v63 = vadd.f32 %v3241_v57, %v3240_v50  ;;  %v1633_v20 = vadd.f32 %v1632_v59, %v1631_v51  ;;  %v9866_v0 = vadd.f32 %v3237_v60, %v1615_v58  ;;  %4378 = vmatpush1.bf16.msra.mxu0 %v8570_v54  ;;  %6000 = vmatpush1.bf16.msra.mxu1 %v8570_v54  ;;  %v8596_v28 = vld [vmem:[%s10188_s1 + $0x404] ss:$8 sps:$4 sm:$0xff]   ;;  %v8594_v22 = vld [vmem:[%s10188_s1 + $0x400] ss:$8 sps:$4 sm:$0xff]   ;;  %v8599_v6 = vld [vmem:[%s10188_s1 + $0x414] ss:$8 sps:$4 sm:$0xff]  }
 0x264   :  { %v3255_v2 = vadd.f32 %v3254_v61, %v3253_v53  ;;  %v1639_v3 = vrot.slane %v1638_v62, 1  ;;  %v3259_v7 = vrot.slane %v3258_v19, 2  ;;  %4379 = vmatprep.subr.bf16.mxu0 %v8575_v23  ;;  %6001 = vmatprep.subr.bf16.mxu1 %v8575_v23  ;;  %v8597_v41 = vld [vmem:[%s10188_s1 + $0x410] ss:$8 sps:$4 sm:$0xff]   ;;  %v8602_v42 = vld [vmem:[%s10188_s1 + $0x424] ss:$8 sps:$4 sm:$0xff]   ;;  %v4102_v57 = vcombine.high %v9765_v39, %v9765_v39 }
 0x265   :  { %v3243_v4 = vrot.slane %v3242_v63, 1  ;;  %v8600_v45 = vld [vmem:[%s10188_s1 + $0x420] ss:$8 sps:$4 sm:$0xff]   ;;  %v8605_v46 = vld [vmem:[%s10188_s1 + $0x434] ss:$8 sps:$4 sm:$0xff]   ;;  %v4503_v55 = vshll.u32 %v9794_v47, 16  ;;  %v5724_v18 = vcombine.high %v9770_v40, %v9770_v40 }
 0x266   :  { %v9874_v17 = vadd.f32 %v3255_v2, %v1633_v20  ;;  %v3260_v26 = vadd.f32 %v3259_v7, %v3258_v19  ;;  %v1640_v29 = vadd.f32 %v1639_v3, %v1638_v62  ;;  %v8603_v49 = vld [vmem:[%s10188_s1 + $0x430] ss:$8 sps:$4 sm:$0xff]   ;;  %v8608_v50 = vld [vmem:[%s10188_s1 + $0x444] ss:$8 sps:$4 sm:$0xff]   ;;  %v8606_v38 = vld [vmem:[%s10188_s1 + $0x440] ss:$8 sps:$4 sm:$0xff]   ;;  %v9977_v40 = vrot.slane %v4102_v57, %v8760_v16 }
 0x267   :  { %v3244_v14 = vadd.f32 %v3243_v4, %v3242_v63  ;;  %4380 = vmatpush1.bf16.msra.mxu0 %v8573_v21  ;;  %6002 = vmatpush1.bf16.msra.mxu1 %v8573_v21  ;;  %v8611_v5 = vld [vmem:[%s10188_s1 + $0x454] ss:$8 sps:$4 sm:$0xff]   ;;  %v8609_v51 = vld [vmem:[%s10188_s1 + $0x450] ss:$8 sps:$4 sm:$0xff]   ;;  %v8614_v52 = vld [vmem:[%s10188_s1 + $0x464] ss:$8 sps:$4 sm:$0xff]   ;;  %v9980_v62 = vrot.slane %v5724_v18, %v8760_v16 }
 0x268   :  { %v3261_v10 = vrot.slane %v3260_v26, 1  ;;  %4381 = vmatprep.subr.bf16.mxu0 %v8578_v8  ;;  %6003 = vmatprep.subr.bf16.mxu1 %v8578_v8  ;;  %v8612_v53 = vld [vmem:[%s10188_s1 + $0x460] ss:$8 sps:$4 sm:$0xff]   ;;  %v8617_v54 = vld [vmem:[%s10188_s1 + $0x474] ss:$8 sps:$4 sm:$0xff]   ;;  %v6125_v56 = vshll.u32 %v9798_v48, 16 }
 0x269   :  { %v9879_v30 = vadd.f32 %v3244_v14, %v1622_v25  ;;  %v8615_v23 = vld [vmem:[%s10188_s1 + $0x470] ss:$8 sps:$4 sm:$0xff]   ;;  %v8620_v58 = vld [vmem:[%s10188_s1 + $0x484] ss:$8 sps:$4 sm:$0xff]   ;;  %v4501_v59 = vshrl.u32 %v9794_v47, 16  ;;  %v4505_v60 = vrot.slane %v4503_v55, 1 }
 0x26a   :  { %v3262_v31 = vadd.f32 %v3261_v10, %v3260_v26  ;;  %v6123_v39 = vshrl.u32 %v9798_v48, 16  ;;  %v6127_v61 = vrot.slane %v6125_v56, 1  ;;  %v8618_v63 = vld [vmem:[%s10188_s1 + $0x480] ss:$8 sps:$4 sm:$0xff]   ;;  %v8625_v47 = vld [vmem:[%s10188_s1 + $0x494] ss:$8 sps:$4 sm:$0xff]  }
 0x26b   :  { %4382 = vmatpush1.bf16.msra.mxu0 %v8576_v27  ;;  %6004 = vmatpush1.bf16.msra.mxu1 %v8576_v27  ;;  %v4506_v48 = vor.u32 %v4505_v60, %v4501_v59  ;;  %v8623_v20 = vld [vmem:[%s10188_s1 + $0x490] ss:$8 sps:$4 sm:$0xff]   ;;  %v8628_v2 = vld [vmem:[%s10188_s1 + $0x4a4] ss:$8 sps:$4 sm:$0xff]   ;;  %v8626_v21 = vld [vmem:[%s10188_s1 + $0x4a0] ss:$8 sps:$4 sm:$0xff]  }
 0x26c   :  { %v9887_v33 = vadd.f32 %v3262_v31, %v1640_v29  ;;  %4383 = vmatprep.subr.bf16.mxu0 %v8581_v11  ;;  %6005 = vmatprep.subr.bf16.mxu1 %v8581_v11  ;;  %v6128_v19 = vor.u32 %v6127_v61, %v6123_v39  ;;  %v8631_v25 = vld [vmem:[%s10188_s1 + $0x4b4] ss:$8 sps:$4 sm:$0xff]   ;;  %v8629_v3 = vld [vmem:[%s10188_s1 + $0x4b0] ss:$8 sps:$4 sm:$0xff]   ;;  %v8634_v4 = vld [vmem:[%s10188_s1 + $0x4c4] ss:$8 sps:$4 sm:$0xff]  }
 0x26d   :  { %v8632_v7 = vld [vmem:[%s10188_s1 + $0x4c0] ss:$8 sps:$4 sm:$0xff]   ;;  %v8637_v8 = vld [vmem:[%s10188_s1 + $0x4d4] ss:$8 sps:$4 sm:$0xff]   ;;  %v8635_v14 = vld [vmem:[%s10188_s1 + $0x4d0] ss:$8 sps:$4 sm:$0xff]  }
 0x26e   :  { %v8640_v26 = vld [vmem:[%s10188_s1 + $0x4e4] ss:$8 sps:$4 sm:$0xff]   ;;  %v8638_v27 = vld [vmem:[%s10188_s1 + $0x4e0] ss:$8 sps:$4 sm:$0xff]   ;;  %v8643_v29 = vld [vmem:[%s10188_s1 + $0x4f4] ss:$8 sps:$4 sm:$0xff]  }
 0x26f   :  { %4384 = vmatpush1.bf16.msra.mxu0 %v8579_v32  ;;  %6006 = vmatpush1.bf16.msra.mxu1 %v8579_v32  ;;  %v8641_v10 = vld [vmem:[%s10188_s1 + $0x4f0] ss:$8 sps:$4 sm:$0xff]   ;;  %v8646_v11 = vld [vmem:[%s10188_s1 + $0x504] ss:$8 sps:$4 sm:$0xff]   ;;  %v8644_v31 = vld [vmem:[%s10188_s1 + $0x500] ss:$8 sps:$4 sm:$0xff]  }
 0x270   :  { %4385 = vmatprep.subr.bf16.mxu0 %v8584_v34  ;;  %6007 = vmatprep.subr.bf16.mxu1 %v8584_v34  ;;  %v8649_v32 = vld [vmem:[%s10188_s1 + $0x514] ss:$8 sps:$4 sm:$0xff]   ;;  %v8647_v34 = vld [vmem:[%s10188_s1 + $0x510] ss:$8 sps:$4 sm:$0xff]   ;;  %v8676_v55 = vld [vmem:[%s10188_s1 + $0x5a4] ss:$8 sps:$4 sm:$0xff]  }
 0x271   :  { %v8674_v56 = vld [vmem:[%s10188_s1 + $0x5a0] ss:$8 sps:$4 sm:$0xff]   ;;  %v8679_v57 = vld [vmem:[%s10188_s1 + $0x5b4] ss:$8 sps:$4 sm:$0xff]   ;;  %v8677_v18 = vld [vmem:[%s10188_s1 + $0x5b0] ss:$8 sps:$4 sm:$0xff]  }
 0x272   :  { %v8683_v59 = vld [vmem:[%s10188_s1 + $0x5d0] ss:$8 sps:$4 sm:$0xff]   ;;  %v8688_v60 = vld [vmem:[%s10188_s1 + $0x5e4] ss:$8 sps:$4 sm:$0xff]   ;;  %v4510_v39 = vshll.u32 %v9977_v40, 16  ;;  %v6132_v61 = vshll.u32 %v9980_v62, 16 }
 0x273   :  { %4386 = vmatpush1.bf16.msra.mxu0 %v8582_v9  ;;  %6008 = vmatpush1.bf16.msra.mxu1 %v8582_v9  ;;  %v8652_v9 = vld [vmem:[%s10188_s1 + $0x524] ss:$8 sps:$4 sm:$0xff]  }
 0x274   :  { %4387 = vmatprep.subr.bf16.mxu0 %v8587_v12  ;;  %6009 = vmatprep.subr.bf16.mxu1 %v8587_v12  ;;  %v8650_v12 = vld [vmem:[%s10188_s1 + $0x520] ss:$8 sps:$4 sm:$0xff]  }
 0x277   :  { %4388 = vmatpush1.bf16.msra.mxu0 %v8585_v35  ;;  %6010 = vmatpush1.bf16.msra.mxu1 %v8585_v35  ;;  %v8655_v35 = vld [vmem:[%s10188_s1 + $0x534] ss:$8 sps:$4 sm:$0xff]  }
 0x278   :  { %4389 = vmatprep.subr.bf16.mxu0 %v8590_v36  ;;  %6011 = vmatprep.subr.bf16.mxu1 %v8590_v36  ;;  %v8653_v36 = vld [vmem:[%s10188_s1 + $0x530] ss:$8 sps:$4 sm:$0xff]  }
 0x27b   :  { %4390 = vmatpush1.bf16.msra.mxu0 %v8588_v37  ;;  %6012 = vmatpush1.bf16.msra.mxu1 %v8588_v37  ;;  %v8658_v37 = vld [vmem:[%s10188_s1 + $0x544] ss:$8 sps:$4 sm:$0xff]  }
 0x27c   :  { %4391 = vmatprep.subr.bf16.mxu0 %v8593_v24  ;;  %6013 = vmatprep.subr.bf16.mxu1 %v8593_v24  ;;  %v8656_v24 = vld [vmem:[%s10188_s1 + $0x540] ss:$8 sps:$4 sm:$0xff]  }
 0x27f   :  { %4392 = vmatpush1.bf16.msra.mxu0 %v8591_v15  ;;  %6014 = vmatpush1.bf16.msra.mxu1 %v8591_v15  ;;  %v8661_v15 = vld [vmem:[%s10188_s1 + $0x554] ss:$8 sps:$4 sm:$0xff]  }
 0x280   :  { %4402 = vmatprep.subr.bf16.mxu0 %v8596_v28  ;;  %6024 = vmatprep.subr.bf16.mxu1 %v8596_v28  ;;  %v8659_v28 = vld [vmem:[%s10188_s1 + $0x550] ss:$8 sps:$4 sm:$0xff]  }
 0x282   :  { %4394 = vmatmul.mubr.bf16.vlgmr.msra.gmra.mrb[4].mxu0 %v9780_v43  ;;  %6016 = vmatmul.mubr.bf16.vlgmr.msra.gmra.mrb[4].mxu1 %v9784_v44 }
 0x283   :  { %4403 = vmatpush1.bf16.msra.mxu0 %v8594_v22  ;;  %6025 = vmatpush1.bf16.msra.mxu1 %v8594_v22  ;;  %v8664_v22 = vld [vmem:[%s10188_s1 + $0x564] ss:$8 sps:$4 sm:$0xff]  }
 0x284   :  { %4404 = vmatprep.subr.bf16.mxu0 %v8599_v6  ;;  %6026 = vmatprep.subr.bf16.mxu1 %v8599_v6  ;;  %v4496_v6 = vshll.u32 %v9780_v43, 16 }
 0x285   :  { %4434 = vmatprep.mubr.bf16.mxu0 %v8697_v1  ;;  %6056 = vmatprep.mubr.bf16.mxu1 %v8697_v1 }
 0x287   :  { %4405 = vmatpush1.bf16.msra.mxu0 %v8597_v41  ;;  %6027 = vmatpush1.bf16.msra.mxu1 %v8597_v41  ;;  %v6118_v41 = vshll.u32 %v9784_v44, 16 }
 0x288   :  { %4406 = vmatprep.subr.bf16.mxu0 %v8602_v42  ;;  %6028 = vmatprep.subr.bf16.mxu1 %v8602_v42  ;;  %v8662_v42 = vld [vmem:[%s10188_s1 + $0x560] ss:$8 sps:$4 sm:$0xff]  }
 0x28b   :  { %4407 = vmatpush1.bf16.msra.mxu0 %v8600_v45  ;;  %6029 = vmatpush1.bf16.msra.mxu1 %v8600_v45  ;;  %v8667_v45 = vld [vmem:[%s10188_s1 + $0x574] ss:$8 sps:$4 sm:$0xff]  }
 0x28c   :  { %4408 = vmatprep.subr.bf16.mxu0 %v8605_v46  ;;  %6030 = vmatprep.subr.bf16.mxu1 %v8605_v46  ;;  %v4494_v46 = vshrl.u32 %v9780_v43, 16  ;;  %v8668_v43 = vld [vmem:[%s10188_s1 + $0x580] ss:$8 sps:$4 sm:$0xff]  }
 0x28f   :  { %4409 = vmatpush1.bf16.msra.mxu0 %v8603_v49  ;;  %6031 = vmatpush1.bf16.msra.mxu1 %v8603_v49  ;;  %v4498_v49 = vrot.slane %v4496_v6, 1 }
 0x290   :  { %4410 = vmatprep.subr.bf16.mxu0 %v8608_v50  ;;  %6032 = vmatprep.subr.bf16.mxu1 %v8608_v50  ;;  %v6116_v50 = vshrl.u32 %v9784_v44, 16  ;;  %v8673_v44 = vld [vmem:[%s10188_s1 + $0x594] ss:$8 sps:$4 sm:$0xff]  }
 0x293   :  { %4411 = vmatpush1.bf16.msra.mxu0 %v8606_v38  ;;  %6033 = vmatpush1.bf16.msra.mxu1 %v8606_v38  ;;  %v6120_v38 = vrot.slane %v6118_v41, 1 }
 0x294   :  { %4412 = vmatprep.subr.bf16.mxu0 %v8611_v5  ;;  %6034 = vmatprep.subr.bf16.mxu1 %v8611_v5  ;;  %v8665_v5 = vld [vmem:[%s10188_s1 + $0x570] ss:$8 sps:$4 sm:$0xff]  }
 0x297   :  { %4413 = vmatpush1.bf16.msra.mxu0 %v8609_v51  ;;  %6035 = vmatpush1.bf16.msra.mxu1 %v8609_v51  ;;  %v8670_v51 = vld [vmem:[%s10188_s1 + $0x584] ss:$8 sps:$4 sm:$0xff]  }
 0x298   :  { %4414 = vmatprep.subr.bf16.mxu0 %v8614_v52  ;;  %6036 = vmatprep.subr.bf16.mxu1 %v8614_v52  ;;  %v4499_v52 = vor.u32 %v4498_v49, %v4494_v46 }
 0x29b   :  { %4415 = vmatpush1.bf16.msra.mxu0 %v8612_v53  ;;  %6037 = vmatpush1.bf16.msra.mxu1 %v8612_v53  ;;  %v6121_v53 = vor.u32 %v6120_v38, %v6116_v50 }
 0x29c   :  { %4416 = vmatprep.subr.bf16.mxu0 %v8617_v54  ;;  %6038 = vmatprep.subr.bf16.mxu1 %v8617_v54  ;;  %v8671_v54 = vld [vmem:[%s10188_s1 + $0x590] ss:$8 sps:$4 sm:$0xff]  }
 0x29f   :  { %4417 = vmatpush1.bf16.msra.mxu0 %v8615_v23  ;;  %6039 = vmatpush1.bf16.msra.mxu1 %v8615_v23  ;;  %v8680_v23 = vld [vmem:[%s10188_s1 + $0x5c0] ss:$8 sps:$4 sm:$0xff]  }
 0x2a0   :  { %4757 = vmatprep.subr.bf16.mxu0 %v8620_v58  ;;  %6379 = vmatprep.subr.bf16.mxu1 %v8620_v58  ;;  %v8685_v58 = vld [vmem:[%s10188_s1 + $0x5d4] ss:$8 sps:$4 sm:$0xff]  }
 0x2a2   :  { %4435 = vmatmul.mubr.bf16.vlgmr.msra.gmra.mrb[4].mxu0 %v9977_v40  ;;  %6057 = vmatmul.mubr.bf16.vlgmr.msra.gmra.mrb[4].mxu1 %v9980_v62 }
 0x2a3   :  { %4758 = vmatpush1.bf16.msra.mxu0 %v8618_v63  ;;  %6380 = vmatpush1.bf16.msra.mxu1 %v8618_v63  ;;  %v8686_v63 = vld [vmem:[%s10188_s1 + $0x5e0] ss:$8 sps:$4 sm:$0xff]  }
 0x2a4   :  { %4759 = vmatprep.subr.bf16.mxu0 %v8625_v47  ;;  %6381 = vmatprep.subr.bf16.mxu1 %v8625_v47  ;;  %v8691_v47 = vld [vmem:[%s10188_s1 + $0x5f4] ss:$8 sps:$4 sm:$0xff]  }
 0x2a5   :  { %4789 = vmatprep.mubr.bf16.mxu0 %v4506_v48  ;;  %6411 = vmatprep.mubr.bf16.mxu1 %v6128_v19  ;;  %v4508_v48 = vshrl.u32 %v9977_v40, 16  ;;  %v4512_v19 = vrot.slane %v4510_v39, 1 }
 0x2a7   :  { %4760 = vmatpush1.bf16.msra.mxu0 %v8623_v20  ;;  %6382 = vmatpush1.bf16.msra.mxu1 %v8623_v20  ;;  %v6130_v20 = vshrl.u32 %v9980_v62, 16 }
 0x2a8   :  { %4761 = vmatprep.subr.bf16.mxu0 %v8628_v2  ;;  %6383 = vmatprep.subr.bf16.mxu1 %v8628_v2  ;;  %v6134_v2 = vrot.slane %v6132_v61, 1 }
 0x2ab   :  { %4762 = vmatpush1.bf16.msra.mxu0 %v8626_v21  ;;  %6384 = vmatpush1.bf16.msra.mxu1 %v8626_v21  ;;  %v8689_v21 = vld [vmem:[%s10188_s1 + $0x5f0] ss:$8 sps:$4 sm:$0xff]  }
 0x2ac   :  { %4763 = vmatprep.subr.bf16.mxu0 %v8631_v25  ;;  %6385 = vmatprep.subr.bf16.mxu1 %v8631_v25  ;;  %v4513_v25 = vor.u32 %v4512_v19, %v4508_v48 }
 0x2af   :  { %4764 = vmatpush1.bf16.msra.mxu0 %v8629_v3  ;;  %6386 = vmatpush1.bf16.msra.mxu1 %v8629_v3  ;;  %v6135_v3 = vor.u32 %v6134_v2, %v6130_v20 }
 0x2b0   :  { %4765 = vmatprep.subr.bf16.mxu0 %v8634_v4  ;;  %6387 = vmatprep.subr.bf16.mxu1 %v8634_v4 }
 0x2b3   :  { %4766 = vmatpush1.bf16.msra.mxu0 %v8632_v7  ;;  %6388 = vmatpush1.bf16.msra.mxu1 %v8632_v7 }
 0x2b4   :  { %4767 = vmatprep.subr.bf16.mxu0 %v8637_v8  ;;  %6389 = vmatprep.subr.bf16.mxu1 %v8637_v8 }
 0x2b7   :  { %4768 = vmatpush1.bf16.msra.mxu0 %v8635_v14  ;;  %6390 = vmatpush1.bf16.msra.mxu1 %v8635_v14 }
 0x2b8   :  { %4769 = vmatprep.subr.bf16.mxu0 %v8640_v26  ;;  %6391 = vmatprep.subr.bf16.mxu1 %v8640_v26 }
 0x2bb   :  { %4770 = vmatpush1.bf16.msra.mxu0 %v8638_v27  ;;  %6392 = vmatpush1.bf16.msra.mxu1 %v8638_v27 }
 0x2bc   :  { %4771 = vmatprep.subr.bf16.mxu0 %v8643_v29  ;;  %6393 = vmatprep.subr.bf16.mxu1 %v8643_v29 }
 0x2bf   :  { %4772 = vmatpush1.bf16.msra.mxu0 %v8641_v10  ;;  %6394 = vmatpush1.bf16.msra.mxu1 %v8641_v10 }
 0x2c0   :  { %4773 = vmatprep.subr.bf16.mxu0 %v8646_v11  ;;  %6395 = vmatprep.subr.bf16.mxu1 %v8646_v11 }
 0x2c3   :  { %4774 = vmatpush1.bf16.msra.mxu0 %v8644_v31  ;;  %6396 = vmatpush1.bf16.msra.mxu1 %v8644_v31 }
 0x2c4   :  { %4775 = vmatprep.subr.bf16.mxu0 %v8649_v32  ;;  %6397 = vmatprep.subr.bf16.mxu1 %v8649_v32 }
 0x2c7   :  { %4776 = vmatpush1.bf16.msra.mxu0 %v8647_v34  ;;  %6398 = vmatpush1.bf16.msra.mxu1 %v8647_v34 }
 0x2c8   :  { %4777 = vmatprep.subr.bf16.mxu0 %v8652_v9  ;;  %6399 = vmatprep.subr.bf16.mxu1 %v8652_v9 }
 0x2cb   :  { %4778 = vmatpush1.bf16.msra.mxu0 %v8650_v12  ;;  %6400 = vmatpush1.bf16.msra.mxu1 %v8650_v12 }
 0x2cc   :  { %4779 = vmatprep.subr.bf16.mxu0 %v8655_v35  ;;  %6401 = vmatprep.subr.bf16.mxu1 %v8655_v35 }
 0x2cf   :  { %4780 = vmatpush1.bf16.msra.mxu0 %v8653_v36  ;;  %6402 = vmatpush1.bf16.msra.mxu1 %v8653_v36 }
 0x2d0   :  { %4781 = vmatprep.subr.bf16.mxu0 %v8658_v37  ;;  %6403 = vmatprep.subr.bf16.mxu1 %v8658_v37 }
 0x2d3   :  { %4782 = vmatpush1.bf16.msra.mxu0 %v8656_v24  ;;  %6404 = vmatpush1.bf16.msra.mxu1 %v8656_v24 }
 0x2d4   :  { %4783 = vmatprep.subr.bf16.mxu0 %v8661_v15  ;;  %6405 = vmatprep.subr.bf16.mxu1 %v8661_v15 }
 0x2d7   :  { %4784 = vmatpush1.bf16.msra.mxu0 %v8659_v28  ;;  %6406 = vmatpush1.bf16.msra.mxu1 %v8659_v28 }
 0x2d8   :  { %4785 = vmatprep.subr.bf16.mxu0 %v8664_v22  ;;  %6407 = vmatprep.subr.bf16.mxu1 %v8664_v22 }
 0x2db   :  { %4786 = vmatpush1.bf16.msra.mxu0 %v8662_v42  ;;  %6408 = vmatpush1.bf16.msra.mxu1 %v8662_v42 }
 0x2dc   :  { %4787 = vmatprep.subr.bf16.mxu0 %v8667_v45  ;;  %6409 = vmatprep.subr.bf16.mxu1 %v8667_v45 }
 0x2df   :  { %4788 = vmatpush1.bf16.msra.mxu0 %v8665_v5  ;;  %6410 = vmatpush1.bf16.msra.mxu1 %v8665_v5 }
 0x2e0   :  { %4798 = vmatprep.subr.bf16.mxu0 %v8670_v51  ;;  %6420 = vmatprep.subr.bf16.mxu1 %v8670_v51 }
 0x2e2   :  { %4790 = vmatmul.mubr.bf16.vlgmr.msra.gmra.mrb[4].mxu0 %v4499_v52  ;;  %6412 = vmatmul.mubr.bf16.vlgmr.msra.gmra.mrb[4].mxu1 %v6121_v53 }
 0x2e3   :  { %4799 = vmatpush1.bf16.msra.mxu0 %v8668_v43  ;;  %6421 = vmatpush1.bf16.msra.mxu1 %v8668_v43 }
 0x2e4   :  { %4800 = vmatprep.subr.bf16.mxu0 %v8673_v44  ;;  %6422 = vmatprep.subr.bf16.mxu1 %v8673_v44 }
 0x2e5   :  { %4830 = vmatprep.mubr.bf16.mxu0 %v8697_v1  ;;  %6452 = vmatprep.mubr.bf16.mxu1 %v8697_v1  ;;  %v8682_v1 = vld [vmem:[%s10188_s1 + $0x5c4] ss:$8 sps:$4 sm:$0xff]  }
 0x2e7   :  { %4801 = vmatpush1.bf16.msra.mxu0 %v8671_v54  ;;  %6423 = vmatpush1.bf16.msra.mxu1 %v8671_v54 }
 0x2e8   :  { %4802 = vmatprep.subr.bf16.mxu0 %v8676_v55  ;;  %6424 = vmatprep.subr.bf16.mxu1 %v8676_v55 }
 0x2eb   :  { %4803 = vmatpush1.bf16.msra.mxu0 %v8674_v56  ;;  %6425 = vmatpush1.bf16.msra.mxu1 %v8674_v56 }
 0x2ec   :  { %4804 = vmatprep.subr.bf16.mxu0 %v8679_v57  ;;  %6426 = vmatprep.subr.bf16.mxu1 %v8679_v57 }
 0x2ef   :  { %4805 = vmatpush1.bf16.msra.mxu0 %v8677_v18  ;;  %6427 = vmatpush1.bf16.msra.mxu1 %v8677_v18 }
 0x2f0   :  { %4806 = vmatprep.subr.bf16.mxu0 %v8682_v1  ;;  %6428 = vmatprep.subr.bf16.mxu1 %v8682_v1 }
 0x2f3   :  { %4807 = vmatpush1.bf16.msra.mxu0 %v8680_v23  ;;  %6429 = vmatpush1.bf16.msra.mxu1 %v8680_v23 }
 0x2f4   :  { %4808 = vmatprep.subr.bf16.mxu0 %v8685_v58  ;;  %6430 = vmatprep.subr.bf16.mxu1 %v8685_v58 }
 0x2f7   :  { %4809 = vmatpush1.bf16.msra.mxu0 %v8683_v59  ;;  %6431 = vmatpush1.bf16.msra.mxu1 %v8683_v59 }
 0x2f8   :  { %4810 = vmatprep.subr.bf16.mxu0 %v8688_v60  ;;  %6432 = vmatprep.subr.bf16.mxu1 %v8688_v60 }
 0x2fb   :  { %4811 = vmatpush1.bf16.msra.mxu0 %v8686_v63  ;;  %6433 = vmatpush1.bf16.msra.mxu1 %v8686_v63 }
 0x2fc   :  { %4812 = vmatprep.subr.bf16.mxu0 %v8691_v47  ;;  %6434 = vmatprep.subr.bf16.mxu1 %v8691_v47 }
 0x2ff   :  { %4813 = vmatpush1.bf16.msra.mxu0 %v8689_v21  ;;  %6435 = vmatpush1.bf16.msra.mxu1 %v8689_v21 }
 0x302   :  { %4831 = vmatmul.mubr.bf16.vlgmr.msra.gmra.mrb[4].mxu0 %v4513_v25  ;;  %6453 = vmatmul.mubr.bf16.vlgmr.msra.gmra.mrb[4].mxu1 %v6135_v3 }
 0x3d5   :  { %v4832_v4 = vpop.f32.mrb[4].mxu0  ;;  %v6454_v40 = vpop.f32.mrb[4].mxu1 }
 0x3d6   :  { %v4854_v7 = vsel %vm1608_vm0, %v4832_v4, 0.0  ;;  %v4870_v62 = vmul.f32 %v4832_v4, %v4832_v4  ;;  %v6476_v8 = vsel %vm1608_vm0, %v6454_v40, 0.0  ;;  %v6492_v14 = vmul.f32 %v6454_v40, %v6454_v40  ;;  %v4834_v26 = vpop.f32.mrb[5].mxu0  ;;  %v6456_v27 = vpop.f32.mrb[5].mxu1 }
 0x3d7   :  { %v4855_v29 = vrot.slane %v4854_v7, 4  ;;  %v6477_v10 = vrot.slane %v6476_v8, 4  ;;  %v4843_v11 = vcombine.low %v4832_v4, %v4834_v26  ;;  %v4861_v31 = vsel %vm1608_vm0, %v4834_v26, 0.0  ;;  %v4836_v32 = vpop.f32.mrb[6].mxu0  ;;  %v6458_v34 = vpop.f32.mrb[6].mxu1 }
 0x3d8   :  { %v4872_v9 = vsel %vm1608_vm0, %v4870_v62, 0.0  ;;  %v6494_v12 = vsel %vm1608_vm0, %v6492_v14, 0.0  ;;  %v4862_v35 = vrot.slane %v4861_v31, 4  ;;  %v4871_v36 = vmul.f32 %v4834_v26, %v4834_v26  ;;  %v4837_v37 = vpop.f32.mrb[7].mxu0  ;;  %v6459_v24 = vpop.f32.mrb[7].mxu1 }
 0x3d9   :  { %v4856_v15 = vadd.f32 %v4855_v29, %v4854_v7  ;;  %v4873_v28 = vrot.slane %v4872_v9, 4  ;;  %v6478_v22 = vadd.f32 %v6477_v10, %v6476_v8  ;;  %v6495_v6 = vrot.slane %v6494_v12, 4  ;;  %7991 = vst.sshfl [vmem:[%s10190_s4 + $0x8] sm:$0x33 pattern:$0x76325410] %v4843_v11 }
 0x3da   :  { %v4863_v41 = vadd.f32 %v4862_v35, %v4861_v31  ;;  %v4879_v42 = vsel %vm1608_vm0, %v4871_v36, 0.0  ;;  %v6465_v45 = vcombine.low %v6454_v40, %v6456_v27  ;;  %v6483_v46 = vsel %vm1608_vm0, %v6456_v27, 0.0 }
 0x3db   :  { %v4857_v49 = vrot.slane %v4856_v15, 2  ;;  %v4874_v50 = vadd.f32 %v4873_v28, %v4872_v9  ;;  %v6479_v38 = vrot.slane %v6478_v22, 2  ;;  %v6496_v5 = vadd.f32 %v6495_v6, %v6494_v12 }
 0x3dc   :  { %v4864_v51 = vrot.slane %v4863_v41, 2  ;;  %v4880_v52 = vrot.slane %v4879_v42, 4  ;;  %7992 = vst.sshfl [vmem:[%s10190_s4 + $0xc] sm:$0x33 pattern:$0x76325410] %v6465_v45  ;;  %v6493_v43 = vmul.f32 %v6456_v27, %v6456_v27 }
 0x3dd   :  { %v6484_v53 = vrot.slane %v6483_v46, 4  ;;  %v4858_v44 = vadd.f32 %v4857_v49, %v4856_v15  ;;  %v4875_v54 = vrot.slane %v4874_v50, 2  ;;  %v6480_v55 = vadd.f32 %v6479_v38, %v6478_v22 }
 0x3de   :  { %v6497_v56 = vrot.slane %v6496_v5, 2  ;;  %v4865_v57 = vadd.f32 %v4864_v51, %v4863_v41  ;;  %v4881_v18 = vadd.f32 %v4880_v52, %v4879_v42  ;;  %v6501_v23 = vsel %vm1608_vm0, %v6493_v43, 0.0 }
 0x3df   :  { %v6485_v1 = vadd.f32 %v6484_v53, %v6483_v46  ;;  %v4859_v58 = vrot.slane %v4858_v44, 1  ;;  %v4876_v59 = vadd.f32 %v4875_v54, %v4874_v50  ;;  %v6481_v60 = vrot.slane %v6480_v55, 1 }
 0x3e0   :  { %v6498_v39 = vadd.f32 %v6497_v56, %v6496_v5  ;;  %v4866_v61 = vrot.slane %v4865_v57, 1  ;;  %v4882_v63 = vrot.slane %v4881_v18, 2  ;;  %v6502_v48 = vrot.slane %v6501_v23, 4 }
 0x3e1   :  { %v6486_v47 = vrot.slane %v6485_v1, 2  ;;  %v4860_v19 = vadd.f32 %v4859_v58, %v4858_v44  ;;  %v4877_v20 = vrot.slane %v4876_v59, 1  ;;  %v6482_v62 = vadd.f32 %v6481_v60, %v6480_v55  ;;  %v6521_v44 = vld [vmem:[%s10191_s2] sm:$0x3] }
 0x3e2   :  { %v6499_v2 = vrot.slane %v6498_v39, 1  ;;  %v4867_v21 = vadd.f32 %v4866_v61, %v4865_v57  ;;  %v4883_v25 = vadd.f32 %v4882_v63, %v4881_v18  ;;  %v6503_v4 = vadd.f32 %v6502_v48, %v6501_v23 }
 0x3e3   :  { %v6487_v3 = vadd.f32 %v6486_v47, %v6485_v1  ;;  %v4868_v40 = vadd.f32 %v4860_v19, %v9866_v0  ;;  %v4878_v7 = vadd.f32 %v4877_v20, %v4876_v59  ;;  %v8698_v50 = vmov 1966171168  }
 0x3e4   :  { %v4869_v8 = vadd.f32 %v4867_v21, %v9879_v30  ;;  %v4884_v14 = vrot.slane %v4883_v25, 1  ;;  %v6504_v27 = vrot.slane %v6503_v4, 2  ;;  %v6500_v11 = vadd.f32 %v6499_v2, %v6498_v39  ;;  %v6545_v39 = vld [vmem:[%s10192_s3] sm:$0x3] }
 0x3e5   :  { %v6488_v26 = vrot.slane %v6487_v3, 1  ;;  %v4886_v29 = vadd.f32 %v4878_v7, %v9874_v17  ;;  %v6490_v10 = vadd.f32 %v6482_v62, %v4868_v40  ;;  %v6530_v38 = vunpack.c.l.s4 %v8698_v50 }
 0x3e6   :  { %v4885_v31 = vadd.f32 %v4884_v14, %v4883_v25  ;;  %v6505_v34 = vadd.f32 %v6504_v27, %v6503_v4  ;;  %v6549_v55 = vsub.s32 0, %v8751_v13  ;;  %v6553_v56 = vsub.s32 1, %v8751_v13  ;;  %v7984_v25 = vld [vmem:[%s10190_s4 + $0x4] sm:$0xf]  ;;  %v7988_v4 = vld [vmem:[%s10190_s4 + $0xc] sm:$0xf] }
 0x3e7   :  { %v6489_v32 = vadd.f32 %v6488_v26, %v6487_v3  ;;  %v6508_v9 = vadd.f32 %v6500_v11, %v4886_v29  ;;  %v6511_v12 = vmul.f32 0.125, %v6490_v10  ;;  %v7986_v3 = vld [vmem:[%s10190_s4 + $0x8] sm:$0xf] }
 0x3e8   :  { %v4887_v35 = vadd.f32 %v4885_v31, %v9887_v33  ;;  %v6506_v0 = vrot.slane %v6505_v34, 1  ;;  %v6531_v33 = vunpack.c.0.s8 %v6530_v38 }
 0x3e9   :  { %v6491_v36 = vadd.f32 %v6489_v32, %v4869_v8  ;;  %v6513_v37 = vmul.f32 0.125, %v6508_v9  ;;  %v6515_v24 = vmul.f32 %v6511_v12, %v6511_v12 }
 0x3ea   :  { %v6507_v15 = vadd.f32 %v6506_v0, %v6505_v34  ;;  %v6534_v51 = vsub.s32 %v6531_v33, %v8751_v13  ;;  %v6578_v13 = vld [vmem:[%s10190_s4] sm:$0xf] }
 0x3eb   :  { %v6512_v30 = vmul.f32 0.125, %v6491_v36  ;;  %v6517_v28 = vsub.f32 %v6513_v37, %v6515_v24 }
 0x3ec   :  { %v6509_v22 = vadd.f32 %v6507_v15, %v4887_v35 }
 0x3ed   :  { %v6516_v6 = vmul.f32 %v6512_v30, %v6512_v30  ;;  %v6519_v41 = vmax.f32 %v6517_v28, 0.0 }
 0x3ee   :  { %v6514_v17 = vmul.f32 0.125, %v6509_v22 }
 0x3ef   :  { %v6522_v42 = vadd.f32 1e-05, %v6519_v41 }
 0x3f0   :  { %v6518_v45 = vsub.f32 %v6514_v17, %v6516_v6 }
 0x3f1   :  { %8692 = vrsqrt.f32 %v6522_v42 }
 0x3f2   :  { %v6520_v46 = vmax.f32 %v6518_v45, 0.0 }
 0x3f4   :  { %v6523_v49 = vadd.f32 1e-05, %v6520_v46 }
 0x3f6   :  { %8694 = vrsqrt.f32 %v6523_v49 }
 0x3fb   :  { %v8693_v5 = vpop.eup %8692 }
 0x400   :  { %v8695_v52 = vpop.eup %8694 }
 0x401   :  { %v6528_v53 = vcombine.low %v8693_v5, %v8695_v52 }
 0x403   :  { %v6535_v43 = vrot.slane %v6528_v53, %v6534_v51 }
 0x405   :  { %v6542_v54 = vrot.slane %v6535_v43, %v6534_v51 }
 0x407   :  { %v6544_v57 = vmul.f32 %v6542_v54, %v6521_v44 }
 0x409   :  { %v6550_v18 = vrot.slane %v6544_v57, %v6549_v55  ;;  %v6554_v1 = vrot.slane %v6544_v57, %v6553_v56 }
 0x40b   :  { %v6557_v23 = vmul.f32 %v6550_v18, %v6511_v12  ;;  %v6558_v58 = vmul.f32 %v6554_v1, %v6512_v30  ;;  %v6579_v61 = vcombine.low %v6550_v18, %v6554_v1 }
 0x40d   :  { %v6561_v59 = vcombine.low %v6557_v23, %v6558_v58  ;;  %v6586_v48 = vrot.slane %v6579_v61, %v8760_v16 }
 0x40f   :  { %v6568_v60 = vrot.slane %v6561_v59, %v6534_v51  ;;  %v6588_v21 = vmul.f32 %v6586_v48, %v6578_v13  ;;  %v6611_v7 = vmul.f32 %v7984_v25, %v6586_v48  ;;  %v6616_v62 = vmul.f32 %v7986_v3, %v6586_v48 }
 0x410   :  { %v6621_v8 = vmul.f32 %v7988_v4, %v6586_v48 }
 0x411   :  { %v6575_v63 = vrot.slane %v6568_v60, %v6534_v51 }
 0x413   :  { %v6577_v47 = vsub.f32 %v6545_v39, %v6575_v63 }
 0x415   :  { %v6593_v19 = vrot.slane %v6577_v47, %v6549_v55  ;;  %v6597_v20 = vrot.slane %v6577_v47, %v6553_v56 }
 0x417   :  { %v6598_v2 = vcombine.low %v6593_v19, %v6597_v20 }
 0x419   :  { %v6605_v40 = vrot.slane %v6598_v2, %v8760_v16 }
 0x41b   :  { %v6607_v14 = vadd.f32 %v6605_v40, %v6588_v21  ;;  %v6612_v26 = vadd.f32 %v6611_v7, %v6605_v40  ;;  %v6617_v27 = vadd.f32 %v6616_v62, %v6605_v40  ;;  %v6622_v29 = vadd.f32 %v6621_v8, %v6605_v40 }
 0x41d   :  { %v6608_v10 = vmax.f32 %v6607_v14, 0.0  ;;  %v6613_v11 = vmax.f32 %v6612_v26, 0.0  ;;  %v6618_v31 = vmax.f32 %v6617_v27, 0.0  ;;  %v6623_v32 = vmax.f32 %v6622_v29, 0.0 }
 0x41f   :  { %6609 = vst [vmem:[%s10190_s4] sm:$0xf] %v6608_v10  ;;  %7985 = vst [vmem:[%s10190_s4 + $0x4] sm:$0xf] %v6613_v11 }
 0x420   :  { %7987 = vst [vmem:[%s10190_s4 + $0x8] sm:$0xf] %v6618_v31  ;;  %7989 = vst [vmem:[%s10190_s4 + $0xc] sm:$0xf] %v6623_v32 }

</bundles_post_ra>
